<compile_context>
chip_gen: v7x
topology: tpu7x:2x2x1
jax: 0.10.0
libtpu: 0.0.40
codegen_flags: <defaults>
</compile_context>

<pallas_src>
import functools

import jax
import jax.numpy as jnp
import numpy as np
from jax.experimental import pallas as pl
from jax.experimental.pallas import tpu as pltpu

EPS = 1e-5
EXPANSION = 4
LANE = 128
DEFAULT_TILE_M = 256
VMEM_LIMIT_BYTES = 48 * 1024 * 1024  # sized with headroom for v7x's 64 MiB VMEM


def _round_up(x, m):
    return (x + m - 1) // m * m


def _compiler_params():
    return pltpu.CompilerParams(
        dimension_semantics=("parallel",),
        vmem_limit_bytes=VMEM_LIMIT_BYTES)


# ----------------------------- Pallas kernels ------------------------------

def _gemm_stats_kernel(x_ref, w_ref, si_ref, bi_ref, h_ref, st_ref, *,
                       pre_relu, m_valid, tile_m, mm_dtype):
    """(fused pre-BN affine [+relu]) -> GEMM -> raw output + BN partial stats.

    x_ref : (tile_m, K)  activation taps (pool / im2col taps packed along K)
    w_ref : (K, C)       weights (avg-pool already folded: tiled, 1/s^2 scaled)
    si/bi : (1, K)       scale/shift of the producer's BN (identity if already
                         normalized); applied per tap before the GEMM
    h_ref : (tile_m, C)  raw (pre-BN) conv output tile
    st_ref: (1, 2, C)    per-tile [sum, sum_of_squares] over valid rows
    """
    x = x_ref[...].astype(jnp.float32) * si_ref[...] + bi_ref[...]
    if pre_relu:
        x = jnp.maximum(x, 0.0)
    if m_valid % tile_m != 0:
        # rows past m_valid are grid padding; zero them so BN stats stay exact
        row = pl.program_id(0) * tile_m + jax.lax.broadcasted_iota(
            jnp.int32, (tile_m, 1), 0)
        x = jnp.where(row < m_valid, x, 0.0)
    h = jnp.dot(x.astype(mm_dtype), w_ref[...].astype(mm_dtype),
                preferred_element_type=jnp.float32)
    h_ref[...] = h
    st = jnp.concatenate(
        [jnp.sum(h, axis=0, keepdims=True),
         jnp.sum(h * h, axis=0, keepdims=True)], axis=0)        # (2, C)
    st_ref[...] = st[None]                                       # (1, 2, C)


def _bn_relu_kernel(h_ref, s_ref, b_ref, o_ref):
    o_ref[...] = jnp.maximum(h_ref[...] * s_ref[...] + b_ref[...], 0.0)


def _dual_bn_add_relu_kernel(a_ref, b_ref, sa_ref, ba_ref, sb_ref, bb_ref,
                             o_ref):
    a = a_ref[...] * sa_ref[...] + ba_ref[...]
    b = b_ref[...] * sb_ref[...] + bb_ref[...]
    o_ref[...] = jnp.maximum(a + b, 0.0)


# ----------------------------- launch wrappers ------------------------------

def _gemm_stats(x, w, scale_in, shift_in, *, pre_relu, m_valid, tile_m,
                mm_dtype):
    mp, k = x.shape
    c = w.shape[1]
    n_t = mp // tile_m
    kernel = functools.partial(
        _gemm_stats_kernel, pre_relu=pre_relu, m_valid=m_valid,
        tile_m=tile_m, mm_dtype=mm_dtype)
    return pl.pallas_call(
        kernel,
        out_shape=(jax.ShapeDtypeStruct((mp, c), jnp.float32),
                   jax.ShapeDtypeStruct((n_t, 2, c), jnp.float32)),
        grid=(n_t,),
        in_specs=[
            pl.BlockSpec((tile_m, k), lambda i: (i, 0)),
            pl.BlockSpec((k, c), lambda i: (0, 0)),
            pl.BlockSpec((1, k), lambda i: (0, 0)),
            pl.BlockSpec((1, k), lambda i: (0, 0)),
        ],
        out_specs=(
            pl.BlockSpec((tile_m, c), lambda i: (i, 0)),
            pl.BlockSpec((1, 2, c), lambda i: (i, 0, 0)),
        ),
        compiler_params=_compiler_params(),
    )(x, w, scale_in, shift_in)


def _bn_relu(h, scale, shift, *, tile_m):
    mp, c = h.shape
    return pl.pallas_call(
        _bn_relu_kernel,
        out_shape=jax.ShapeDtypeStruct((mp, c), jnp.float32),
        grid=(mp // tile_m,),
        in_specs=[
            pl.BlockSpec((tile_m, c), lambda i: (i, 0)),
            pl.BlockSpec((1, c), lambda i: (0, 0)),
            pl.BlockSpec((1, c), lambda i: (0, 0)),
        ],
        out_specs=pl.BlockSpec((tile_m, c), lambda i: (i, 0)),
        compiler_params=_compiler_params(),
    )(h, scale, shift)


def _dual_bn_add_relu(a, b, sa, ba, sb, bb, *, tile_m):
    mp, c = a.shape
    return pl.pallas_call(
        _dual_bn_add_relu_kernel,
        out_shape=jax.ShapeDtypeStruct((mp, c), jnp.float32),
        grid=(mp // tile_m,),
        in_specs=[
            pl.BlockSpec((tile_m, c), lambda i: (i, 0)),
            pl.BlockSpec((tile_m, c), lambda i: (i, 0)),
            pl.BlockSpec((1, c), lambda i: (0, 0)),
            pl.BlockSpec((1, c), lambda i: (0, 0)),
            pl.BlockSpec((1, c), lambda i: (0, 0)),
            pl.BlockSpec((1, c), lambda i: (0, 0)),
        ],
        out_specs=pl.BlockSpec((tile_m, c), lambda i: (i, 0)),
        compiler_params=_compiler_params(),
    )(a, b, sa, ba, sb, bb)


def _finalize_bn(stats, gamma, beta, count, c_pad):
    """Tiny (C,)-sized reduction of per-tile partial stats -> scale/shift."""
    s = jnp.sum(stats[:, 0, :], axis=0)
    ss = jnp.sum(stats[:, 1, :], axis=0)
    mean = s / count
    var = jnp.maximum(ss / count - mean * mean, 0.0)
    g = jnp.pad(gamma, (0, c_pad - gamma.shape[0]))
    b = jnp.pad(beta, (0, c_pad - beta.shape[0]))
    scale = g * jax.lax.rsqrt(var + EPS)
    shift = b - mean * scale
    return scale.reshape(1, c_pad), shift.reshape(1, c_pad)


# ------------------------------- forward pass --------------------------------

def bottleneck_pallas(x_nchw, params, *, inplanes, planes, stride,
                      tile_m=DEFAULT_TILE_M, mm_dtype=jnp.float32):
    n, cin, h, w = x_nchw.shape
    assert cin == inplanes
    cout = planes * EXPANSION
    s2 = stride * stride
    ho, wo = h // stride, w // stride
    m = n * h * w
    mo = n * ho * wo

    cip = _round_up(cin, LANE)      # lane-dense channel padding
    pp = _round_up(planes, LANE)
    cop = _round_up(cout, LANE)

    tile_a = min(tile_m, _round_up(m, 8))
    mp = _round_up(m, tile_a)
    tile_b = min(tile_m, _round_up(mo, 8))
    mop = _round_up(mo, tile_b)

    f32 = jnp.float32
    ones = lambda k: jnp.ones((1, k), f32)
    zeros = lambda k: jnp.zeros((1, k), f32)

    x_nhwc = jnp.transpose(x_nchw, (0, 2, 3, 1)).astype(f32)
    x_pad_c = jnp.pad(x_nhwc, ((0, 0), (0, 0), (0, 0), (0, cip - cin)))
    x_flat = jnp.pad(x_pad_c.reshape(m, cip), ((0, mp - m), (0, 0)))

    # ---- conv1 (1x1) + bn1 partial stats ------------------------------------
    w1p = jnp.pad(params["w1"], ((0, cip - cin), (0, pp - planes)))
    h1_raw, st1 = _gemm_stats(x_flat, w1p, ones(cip), zeros(cip),
                              pre_relu=False, m_valid=m, tile_m=tile_a,
                              mm_dtype=mm_dtype)
    sc1, sh1 = _finalize_bn(st1, params["g1"], params["b1"], m, pp)

    # ---- bn1 + relu (tiled elementwise). Kept as its own kernel because the
    #      3x3 conv's zero padding must be applied *after* normalization.
    h1n = _bn_relu(h1_raw, sc1, sh1, tile_m=tile_a)[:m].reshape(n, h, w, pp)

    # ---- conv2 (3x3, pad=1) as a single K=9*P GEMM + bn2 partial stats -------
    # TODO(synk): generate the 9 shifted taps in-kernel (halo reads / manual
    # DMA) to avoid materializing the 9x im2col tensor in HBM.
    h1p = jnp.pad(h1n, ((0, 0), (1, 1), (1, 1), (0, 0)))
    taps2 = jnp.concatenate(
        [h1p[:, di:di + h, dj:dj + w, :] for di in range(3) for dj in range(3)],
        axis=-1).reshape(m, 9 * pp)
    taps2 = jnp.pad(taps2, ((0, mp - m), (0, 0)))
    w2p = jnp.zeros((9, pp, pp), f32).at[:, :planes, :planes].set(
        params["w2_hwio"].reshape(9, planes, planes)).reshape(9 * pp, pp)
    h2_raw, st2 = _gemm_stats(taps2, w2p, ones(9 * pp), zeros(9 * pp),
                              pre_relu=False, m_valid=m, tile_m=tile_a,
                              mm_dtype=mm_dtype)
    sc2, sh2 = _finalize_bn(st2, params["g2"], params["b2"], m, pp)

    # ---- avgpool(stride) + conv3 (1x1) + bn3 partial stats -------------------
    # bn2+relu of every pooling tap is fused in-kernel (pre-affine + relu);
    # the pooling mean is folded into the GEMM K dim via 1/s^2-scaled weights.
    taps3 = h2_raw[:m].reshape(n, ho, stride, wo, stride, pp)
    taps3 = taps3.transpose(0, 1, 3, 2, 4, 5).reshape(mo, s2 * pp)
    taps3 = jnp.pad(taps3, ((0, mop - mo), (0, 0)))
    w3p = jnp.pad(params["w3"], ((0, pp - planes), (0, cop - cout)))
    w3t = jnp.tile(w3p, (s2, 1)) * (1.0 / s2)
    h3_raw, st3 = _gemm_stats(taps3, w3t,
                              jnp.tile(sc2, (1, s2)), jnp.tile(sh2, (1, s2)),
                              pre_relu=True, m_valid=mo, tile_m=tile_b,
                              mm_dtype=mm_dtype)
    sc3, sh3 = _finalize_bn(st3, params["g3"], params["b3"], mo, cop)

    # ---- identity / downsample path ------------------------------------------
    if stride > 1 or inplanes != cout:
        tapsd = x_pad_c.reshape(n, ho, stride, wo, stride, cip)
        tapsd = tapsd.transpose(0, 1, 3, 2, 4, 5).reshape(mo, s2 * cip)
        tapsd = jnp.pad(tapsd, ((0, mop - mo), (0, 0)))
        wdp = jnp.pad(params["wd"], ((0, cip - cin), (0, cop - cout)))
        wdt = jnp.tile(wdp, (s2, 1)) * (1.0 / s2)
        hd_raw, std = _gemm_stats(tapsd, wdt, ones(s2 * cip), zeros(s2 * cip),
                                  pre_relu=False, m_valid=mo, tile_m=tile_b,
                                  mm_dtype=mm_dtype)
        scd, shd = _finalize_bn(std, params["gd"], params["bd"], mo, cop)
        idn = hd_raw
    else:
        idn = x_flat                        # stride==1, cip==cop, mp==mop
        scd, shd = ones(cop), zeros(cop)

    # ---- fused bn3 + bn_downsample + residual add + relu ---------------------
    out = _dual_bn_add_relu(h3_raw, idn, sc3, sh3, scd, shd, tile_m=tile_b)
    out = out[:mo, :cout].reshape(n, ho, wo, cout)
    return jnp.transpose(out, (0, 3, 1, 2))  # back to NCHW


# --------------------------- pure-JAX reference -----------------------------

def _bn_train(x, g, b):
    mean = x.mean(axis=(0, 1, 2), keepdims=True)
    var = ((x - mean) ** 2).mean(axis=(0, 1, 2), keepdims=True)
    return (x - mean) * jax.lax.rsqrt(var + EPS) * g + b


def _avgpool(x, s):
    n, h, w, c = x.shape
    return x.reshape(n, h // s, s, w // s, s, c).mean(axis=(2, 4))


def bottleneck_ref(x_nchw, params, *, inplanes, planes, stride):
    hp = jax.lax.Precision.HIGHEST
    cout = planes * EXPANSION
    x = jnp.transpose(x_nchw, (0, 2, 3, 1)).astype(jnp.float32)
    h = jnp.einsum("nhwc,cd->nhwd", x, params["w1"], precision=hp)
    h = jax.nn.relu(_bn_train(h, params["g1"], params["b1"]))
    h = jax.lax.conv_general_dilated(
        h, params["w2_hwio"], (1, 1), ((1, 1), (1, 1)),
        dimension_numbers=("NHWC", "HWIO", "NHWC"), precision=hp)
    h = jax.nn.relu(_bn_train(h, params["g2"], params["b2"]))
    if stride > 1:
        h = _avgpool(h, stride)
    h = jnp.einsum("nhwc,cd->nhwd", h, params["w3"], precision=hp)
    h = _bn_train(h, params["g3"], params["b3"])
    if stride > 1 or inplanes != cout:
        idn = _avgpool(x, stride) if stride > 1 else x
        idn = jnp.einsum("nhwc,cd->nhwd", idn, params["wd"], precision=hp)
        idn = _bn_train(idn, params["gd"], params["bd"])
    else:
        idn = x
    out = jax.nn.relu(h + idn)
    return jnp.transpose(out, (0, 3, 1, 2))


# --------------------------------- setup ------------------------------------

def make_params(key, inplanes, planes):
    # TODO(synk): BatchNorm running-stats (momentum) buffer updates are not
    # modeled; they do not affect the training-mode forward output.
    cout = planes * EXPANSION
    ks = jax.random.split(key, 12)
    return {
        "w1": 0.1 * jax.random.normal(ks[0], (inplanes, planes), jnp.float32),
        "w2_hwio": 0.1 * jax.random.normal(ks[1], (3, 3, planes, planes), jnp.float32),
        "w3": 0.1 * jax.random.normal(ks[2], (planes, cout), jnp.float32),
        "wd": 0.1 * jax.random.normal(ks[3], (inplanes, cout), jnp.float32),
        "g1": 1.0 + 0.1 * jax.random.normal(ks[4], (planes,), jnp.float32),
        "b1": 0.1 * jax.random.normal(ks[5], (planes,), jnp.float32),
        "g2": 1.0 + 0.1 * jax.random.normal(ks[6], (planes,), jnp.float32),
        "b2": 0.1 * jax.random.normal(ks[7], (planes,), jnp.float32),
        "g3": 1.0 + 0.1 * jax.random.normal(ks[8], (cout,), jnp.float32),
        "b3": 0.1 * jax.random.normal(ks[9], (cout,), jnp.float32),
        "gd": 1.0 + 0.1 * jax.random.normal(ks[10], (cout,), jnp.float32),
        "bd": 0.1 * jax.random.normal(ks[11], (cout,), jnp.float32),
    }


if __name__ == "__main__":
    key = jax.random.PRNGKey(0)
    k_x1, k_x2, k_p1, k_p2 = jax.random.split(key, 4)

    # config 1: stride=2 with downsample branch (inplanes != planes*4)
    inplanes, planes, stride = 8, 4, 2
    x1 = jax.random.normal(k_x1, (2, inplanes, 16, 16), jnp.float32)
    p1 = make_params(k_p1, inplanes, planes)
    run1 = jax.jit(functools.partial(
        bottleneck_pallas, inplanes=inplanes, planes=planes, stride=stride))
    out1 = run1(x1, p1)
    jax.block_until_ready(out1)
    ref1 = bottleneck_ref(x1, p1, inplanes=inplanes, planes=planes, stride=stride)
    np.testing.assert_allclose(np.asarray(out1), np.asarray(ref1),
                               atol=1e-3, rtol=1e-3)

    # config 2: stride=1, identity residual (inplanes == planes*4, no downsample)
    inplanes2, planes2, stride2 = 16, 4, 1
    x2 = jax.random.normal(k_x2, (2, inplanes2, 16, 16), jnp.float32)
    p2 = make_params(k_p2, inplanes2, planes2)
    run2 = jax.jit(functools.partial(
        bottleneck_pallas, inplanes=inplanes2, planes=planes2, stride=stride2))
    out2 = run2(x2, p2)
    jax.block_until_ready(out2)
    ref2 = bottleneck_ref(x2, p2, inplanes=inplanes2, planes=planes2, stride=stride2)
    np.testing.assert_allclose(np.asarray(out2), np.asarray(ref2),
                               atol=1e-3, rtol=1e-3)

    print("KERNEL_OK")
</pallas_src>

<mosaic_0001>
module attributes {stable_mosaic.version = 11 : i64} {
  func.func @_bn_relu_kernel(%arg0: i32, %arg1: memref<256x128xf32, #tpu.memory_space<vmem>>, %arg2: memref<1x128xf32, #tpu.memory_space<vmem>>, %arg3: memref<1x128xf32, #tpu.memory_space<vmem>>, %arg4: memref<256x128xf32, #tpu.memory_space<vmem>>) attributes {dimension_semantics = [#tpu.dimension_semantics<parallel>], iteration_bounds = array<i64: 2>, scalar_prefetch = 0 : i64, scratch_operands = 0 : i64, tpu.core_type = #tpu.core_type<tc>, window_params = [{transform_indices = @transform_0, window_bounds = array<i64: 256, 128>}, {pipeline_mode = #tpu.pipeline_mode<synchronous>, transform_indices = @transform_1, window_bounds = array<i64: 1, 128>}, {pipeline_mode = #tpu.pipeline_mode<synchronous>, transform_indices = @transform_2, window_bounds = array<i64: 1, 128>}, {transform_indices = @transform_3, window_bounds = array<i64: 256, 128>}]} {
    %c0 = arith.constant 0 : index
    %c0_0 = arith.constant 0 : index
    %0 = vector.load %arg1[%c0, %c0_0] : memref<256x128xf32, #tpu.memory_space<vmem>>, vector<256x128xf32>
    %c0_1 = arith.constant 0 : index
    %c0_2 = arith.constant 0 : index
    %1 = vector.load %arg2[%c0_1, %c0_2] : memref<1x128xf32, #tpu.memory_space<vmem>>, vector<1x128xf32>
    %2 = vector.broadcast %1 : vector<1x128xf32> to vector<256x128xf32>
    %3 = arith.mulf %0, %2 : vector<256x128xf32>
    %c0_3 = arith.constant 0 : index
    %c0_4 = arith.constant 0 : index
    %4 = vector.load %arg3[%c0_3, %c0_4] : memref<1x128xf32, #tpu.memory_space<vmem>>, vector<1x128xf32>
    %5 = vector.broadcast %4 : vector<1x128xf32> to vector<256x128xf32>
    %6 = arith.addf %3, %5 : vector<256x128xf32>
    %cst = arith.constant 0.000000e+00 : f32
    %7 = vector.broadcast %cst : f32 to vector<256x128xf32>
    %8 = arith.maximumf %6, %7 : vector<256x128xf32>
    %c0_5 = arith.constant 0 : index
    %c0_6 = arith.constant 0 : index
    %9 = vector.load %arg4[%c0_5, %c0_6] : memref<256x128xf32, #tpu.memory_space<vmem>>, vector<256x128xf32>
    tpu.vector_store %arg4[%c0_5, %c0_6], %8 {strides = array<i32>} : memref<256x128xf32, #tpu.memory_space<vmem>>, vector<256x128xf32>,
    return
  }
  func.func @transform_0(%arg0: i32) -> (i32, i32) {
    %c0_i32 = arith.constant 0 : i32
    %c0_i32_0 = arith.constant 0 : i32
    return %arg0, %c0_i32 : i32, i32
  }
  func.func @transform_1(%arg0: i32) -> (i32, i32) {
    %c0_i32 = arith.constant 0 : i32
    %c0_i32_0 = arith.constant 0 : i32
    %c0_i32_1 = arith.constant 0 : i32
    return %c0_i32, %c0_i32_0 : i32, i32
  }
  func.func @transform_2(%arg0: i32) -> (i32, i32) {
    %c0_i32 = arith.constant 0 : i32
    %c0_i32_0 = arith.constant 0 : i32
    %c0_i32_1 = arith.constant 0 : i32
    return %c0_i32, %c0_i32_0 : i32, i32
  }
  func.func @transform_3(%arg0: i32) -> (i32, i32) {
    %c0_i32 = arith.constant 0 : i32
    %c0_i32_0 = arith.constant 0 : i32
    return %arg0, %c0_i32 : i32, i32
  }
}

module attributes {stable_mosaic.version = 11 : i64} {
  func.func @_gemm_stats_kernel(%arg0: i32, %arg1: memref<256x128xf32, #tpu.memory_space<vmem>>, %arg2: memref<128x128xf32, #tpu.memory_space<vmem>>, %arg3: memref<1x128xf32, #tpu.memory_space<vmem>>, %arg4: memref<1x128xf32, #tpu.memory_space<vmem>>, %arg5: memref<256x128xf32, #tpu.memory_space<vmem>>, %arg6: memref<1x2x128xf32, #tpu.memory_space<vmem>>) attributes {dimension_semantics = [#tpu.dimension_semantics<parallel>], iteration_bounds = array<i64: 2>, scalar_prefetch = 0 : i64, scratch_operands = 0 : i64, tpu.core_type = #tpu.core_type<tc>, window_params = [{transform_indices = @transform_0, window_bounds = array<i64: 256, 128>}, {pipeline_mode = #tpu.pipeline_mode<synchronous>, transform_indices = @transform_1, window_bounds = array<i64: 128, 128>}, {pipeline_mode = #tpu.pipeline_mode<synchronous>, transform_indices = @transform_2, window_bounds = array<i64: 1, 128>}, {pipeline_mode = #tpu.pipeline_mode<synchronous>, transform_indices = @transform_3, window_bounds = array<i64: 1, 128>}, {transform_indices = @transform_4, window_bounds = array<i64: 256, 128>}, {transform_indices = @transform_5, window_bounds = array<i64: 1, 2, 128>}]} {
    %c0 = arith.constant 0 : index
    %c0_0 = arith.constant 0 : index
    %0 = vector.load %arg1[%c0, %c0_0] : memref<256x128xf32, #tpu.memory_space<vmem>>, vector<256x128xf32>
    %c0_1 = arith.constant 0 : index
    %c0_2 = arith.constant 0 : index
    %1 = vector.load %arg3[%c0_1, %c0_2] : memref<1x128xf32, #tpu.memory_space<vmem>>, vector<1x128xf32>
    %2 = vector.broadcast %1 : vector<1x128xf32> to vector<256x128xf32>
    %3 = arith.mulf %0, %2 : vector<256x128xf32>
    %c0_3 = arith.constant 0 : index
    %c0_4 = arith.constant 0 : index
    %4 = vector.load %arg4[%c0_3, %c0_4] : memref<1x128xf32, #tpu.memory_space<vmem>>, vector<1x128xf32>
    %5 = vector.broadcast %4 : vector<1x128xf32> to vector<256x128xf32>
    %6 = arith.addf %3, %5 : vector<256x128xf32>
    %c0_5 = arith.constant 0 : index
    %c0_6 = arith.constant 0 : index
    %7 = vector.load %arg2[%c0_5, %c0_6] : memref<128x128xf32, #tpu.memory_space<vmem>>, vector<128x128xf32>
    %cst = arith.constant dense<0.000000e+00> : vector<256x128xf32>
    %8 = tpu.matmul %6, %7, %cst {dimension_numbers = #tpu.dot_dimension_numbers<[1], [0], [0], [1], [0, 0, 1, 1], [], []>} : vector<256x128xf32>, vector<128x128xf32>, vector<256x128xf32> -> vector<256x128xf32>
    %c0_7 = arith.constant 0 : index
    %c0_8 = arith.constant 0 : index
    %9 = vector.load %arg5[%c0_7, %c0_8] : memref<256x128xf32, #tpu.memory_space<vmem>>, vector<256x128xf32>
    tpu.vector_store %arg5[%c0_7, %c0_8], %8 {strides = array<i32>} : memref<256x128xf32, #tpu.memory_space<vmem>>, vector<256x128xf32>,
    %cst_9 = arith.constant dense<0.000000e+00> : vector<128xf32>
    %10 = vector.multi_reduction <add>, %8, %cst_9 [0] : vector<256x128xf32> to vector<128xf32>
    %11 = vector.shape_cast %10 : vector<128xf32> to vector<1x128xf32>
    %12 = arith.mulf %8, %8 : vector<256x128xf32>
    %cst_10 = arith.constant dense<0.000000e+00> : vector<128xf32>
    %13 = vector.multi_reduction <add>, %12, %cst_10 [0] : vector<256x128xf32> to vector<128xf32>
    %14 = vector.shape_cast %13 : vector<128xf32> to vector<1x128xf32>
    %15 = tpu.concatenate %11, %14 in 0 : vector<1x128xf32>, vector<1x128xf32> -> vector<2x128xf32>
    %16 = vector.shape_cast %15 : vector<2x128xf32> to vector<1x2x128xf32>
    %c0_11 = arith.constant 0 : index
    %c0_12 = arith.constant 0 : index
    %c0_13 = arith.constant 0 : index
    %17 = vector.load %arg6[%c0_11, %c0_12, %c0_13] : memref<1x2x128xf32, #tpu.memory_space<vmem>>, vector<1x2x128xf32>
    tpu.vector_store %arg6[%c0_11, %c0_12, %c0_13], %16 {strides = array<i32>} : memref<1x2x128xf32, #tpu.memory_space<vmem>>, vector<1x2x128xf32>,
    return
  }
  func.func @transform_0(%arg0: i32) -> (i32, i32) {
    %c0_i32 = arith.constant 0 : i32
    %c0_i32_0 = arith.constant 0 : i32
    return %arg0, %c0_i32 : i32, i32
  }
  func.func @transform_1(%arg0: i32) -> (i32, i32) {
    %c0_i32 = arith.constant 0 : i32
    %c0_i32_0 = arith.constant 0 : i32
    %c0_i32_1 = arith.constant 0 : i32
    return %c0_i32, %c0_i32_0 : i32, i32
  }
  func.func @transform_2(%arg0: i32) -> (i32, i32) {
    %c0_i32 = arith.constant 0 : i32
    %c0_i32_0 = arith.constant 0 : i32
    %c0_i32_1 = arith.constant 0 : i32
    return %c0_i32, %c0_i32_0 : i32, i32
  }
  func.func @transform_3(%arg0: i32) -> (i32, i32) {
    %c0_i32 = arith.constant 0 : i32
    %c0_i32_0 = arith.constant 0 : i32
    %c0_i32_1 = arith.constant 0 : i32
    return %c0_i32, %c0_i32_0 : i32, i32
  }
  func.func @transform_4(%arg0: i32) -> (i32, i32) {
    %c0_i32 = arith.constant 0 : i32
    %c0_i32_0 = arith.constant 0 : i32
    return %arg0, %c0_i32 : i32, i32
  }
  func.func @transform_5(%arg0: i32) -> (i32, i32, i32) {
    %c0_i32 = arith.constant 0 : i32
    %c0_i32_0 = arith.constant 0 : i32
    %c0_i32_1 = arith.constant 0 : i32
    return %arg0, %c0_i32, %c0_i32_0 : i32, i32, i32
  }
}

module attributes {stable_mosaic.version = 11 : i64} {
  func.func @_gemm_stats_kernel(%arg0: i32, %arg1: memref<128x512xf32, #tpu.memory_space<vmem>>, %arg2: memref<512x128xf32, #tpu.memory_space<vmem>>, %arg3: memref<1x512xf32, #tpu.memory_space<vmem>>, %arg4: memref<1x512xf32, #tpu.memory_space<vmem>>, %arg5: memref<128x128xf32, #tpu.memory_space<vmem>>, %arg6: memref<1x2x128xf32, #tpu.memory_space<vmem>>) attributes {dimension_semantics = [#tpu.dimension_semantics<parallel>], iteration_bounds = array<i64: 1>, scalar_prefetch = 0 : i64, scratch_operands = 0 : i64, tpu.core_type = #tpu.core_type<tc>, window_params = [{transform_indices = @transform_0, window_bounds = array<i64: 128, 512>}, {pipeline_mode = #tpu.pipeline_mode<synchronous>, transform_indices = @transform_1, window_bounds = array<i64: 512, 128>}, {pipeline_mode = #tpu.pipeline_mode<synchronous>, transform_indices = @transform_2, window_bounds = array<i64: 1, 512>}, {pipeline_mode = #tpu.pipeline_mode<synchronous>, transform_indices = @transform_3, window_bounds = array<i64: 1, 512>}, {transform_indices = @transform_4, window_bounds = array<i64: 128, 128>}, {transform_indices = @transform_5, window_bounds = array<i64: 1, 2, 128>}]} {
    %c0 = arith.constant 0 : index
    %c0_0 = arith.constant 0 : index
    %0 = vector.load %arg1[%c0, %c0_0] : memref<128x512xf32, #tpu.memory_space<vmem>>, vector<128x512xf32>
    %c0_1 = arith.constant 0 : index
    %c0_2 = arith.constant 0 : index
    %1 = vector.load %arg3[%c0_1, %c0_2] : memref<1x512xf32, #tpu.memory_space<vmem>>, vector<1x512xf32>
    %2 = vector.broadcast %1 : vector<1x512xf32> to vector<128x512xf32>
    %3 = arith.mulf %0, %2 : vector<128x512xf32>
    %c0_3 = arith.constant 0 : index
    %c0_4 = arith.constant 0 : index
    %4 = vector.load %arg4[%c0_3, %c0_4] : memref<1x512xf32, #tpu.memory_space<vmem>>, vector<1x512xf32>
    %5 = vector.broadcast %4 : vector<1x512xf32> to vector<128x512xf32>
    %6 = arith.addf %3, %5 : vector<128x512xf32>
    %cst = arith.constant 0.000000e+00 : f32
    %7 = vector.broadcast %cst : f32 to vector<128x512xf32>
    %8 = arith.maximumf %6, %7 : vector<128x512xf32>
    %c0_5 = arith.constant 0 : index
    %c0_6 = arith.constant 0 : index
    %9 = vector.load %arg2[%c0_5, %c0_6] : memref<512x128xf32, #tpu.memory_space<vmem>>, vector<512x128xf32>
    %cst_7 = arith.constant dense<0.000000e+00> : vector<128x128xf32>
    %10 = tpu.matmul %8, %9, %cst_7 {dimension_numbers = #tpu.dot_dimension_numbers<[1], [0], [0], [1], [0, 0, 1, 1], [], []>} : vector<128x512xf32>, vector<512x128xf32>, vector<128x128xf32> -> vector<128x128xf32>
    %c0_8 = arith.constant 0 : index
    %c0_9 = arith.constant 0 : index
    %11 = vector.load %arg5[%c0_8, %c0_9] : memref<128x128xf32, #tpu.memory_space<vmem>>, vector<128x128xf32>
    tpu.vector_store %arg5[%c0_8, %c0_9], %10 {strides = array<i32>} : memref<128x128xf32, #tpu.memory_space<vmem>>, vector<128x128xf32>,
    %cst_10 = arith.constant dense<0.000000e+00> : vector<128xf32>
    %12 = vector.multi_reduction <add>, %10, %cst_10 [0] : vector<128x128xf32> to vector<128xf32>
    %13 = vector.shape_cast %12 : vector<128xf32> to vector<1x128xf32>
    %14 = arith.mulf %10, %10 : vector<128x128xf32>
    %cst_11 = arith.constant dense<0.000000e+00> : vector<128xf32>
    %15 = vector.multi_reduction <add>, %14, %cst_11 [0] : vector<128x128xf32> to vector<128xf32>
    %16 = vector.shape_cast %15 : vector<128xf32> to vector<1x128xf32>
    %17 = tpu.concatenate %13, %16 in 0 : vector<1x128xf32>, vector<1x128xf32> -> vector<2x128xf32>
    %18 = vector.shape_cast %17 : vector<2x128xf32> to vector<1x2x128xf32>
    %c0_12 = arith.constant 0 : index
    %c0_13 = arith.constant 0 : index
    %c0_14 = arith.constant 0 : index
    %19 = vector.load %arg6[%c0_12, %c0_13, %c0_14] : memref<1x2x128xf32, #tpu.memory_space<vmem>>, vector<1x2x128xf32>
    tpu.vector_store %arg6[%c0_12, %c0_13, %c0_14], %18 {strides = array<i32>} : memref<1x2x128xf32, #tpu.memory_space<vmem>>, vector<1x2x128xf32>,
    return
  }
  func.func @transform_0(%arg0: i32) -> (i32, i32) {
    %c0_i32 = arith.constant 0 : i32
    %c0_i32_0 = arith.constant 0 : i32
    return %arg0, %c0_i32 : i32, i32
  }
  func.func @transform_1(%arg0: i32) -> (i32, i32) {
    %c0_i32 = arith.constant 0 : i32
    %c0_i32_0 = arith.constant 0 : i32
    %c0_i32_1 = arith.constant 0 : i32
    return %c0_i32, %c0_i32_0 : i32, i32
  }
  func.func @transform_2(%arg0: i32) -> (i32, i32) {
    %c0_i32 = arith.constant 0 : i32
    %c0_i32_0 = arith.constant 0 : i32
    %c0_i32_1 = arith.constant 0 : i32
    return %c0_i32, %c0_i32_0 : i32, i32
  }
  func.func @transform_3(%arg0: i32) -> (i32, i32) {
    %c0_i32 = arith.constant 0 : i32
    %c0_i32_0 = arith.constant 0 : i32
    %c0_i32_1 = arith.constant 0 : i32
    return %c0_i32, %c0_i32_0 : i32, i32
  }
  func.func @transform_4(%arg0: i32) -> (i32, i32) {
    %c0_i32 = arith.constant 0 : i32
    %c0_i32_0 = arith.constant 0 : i32
    return %arg0, %c0_i32 : i32, i32
  }
  func.func @transform_5(%arg0: i32) -> (i32, i32, i32) {
    %c0_i32 = arith.constant 0 : i32
    %c0_i32_0 = arith.constant 0 : i32
    %c0_i32_1 = arith.constant 0 : i32
    return %arg0, %c0_i32, %c0_i32_0 : i32, i32, i32
  }
}

module attributes {stable_mosaic.version = 11 : i64} {
  func.func @_gemm_stats_kernel(%arg0: i32, %arg1: memref<256x1152xf32, #tpu.memory_space<vmem>>, %arg2: memref<1152x128xf32, #tpu.memory_space<vmem>>, %arg3: memref<1x1152xf32, #tpu.memory_space<vmem>>, %arg4: memref<1x1152xf32, #tpu.memory_space<vmem>>, %arg5: memref<256x128xf32, #tpu.memory_space<vmem>>, %arg6: memref<1x2x128xf32, #tpu.memory_space<vmem>>) attributes {dimension_semantics = [#tpu.dimension_semantics<parallel>], iteration_bounds = array<i64: 2>, scalar_prefetch = 0 : i64, scratch_operands = 0 : i64, tpu.core_type = #tpu.core_type<tc>, window_params = [{transform_indices = @transform_0, window_bounds = array<i64: 256, 1152>}, {pipeline_mode = #tpu.pipeline_mode<synchronous>, transform_indices = @transform_1, window_bounds = array<i64: 1152, 128>}, {pipeline_mode = #tpu.pipeline_mode<synchronous>, transform_indices = @transform_2, window_bounds = array<i64: 1, 1152>}, {pipeline_mode = #tpu.pipeline_mode<synchronous>, transform_indices = @transform_3, window_bounds = array<i64: 1, 1152>}, {transform_indices = @transform_4, window_bounds = array<i64: 256, 128>}, {transform_indices = @transform_5, window_bounds = array<i64: 1, 2, 128>}]} {
    %c0 = arith.constant 0 : index
    %c0_0 = arith.constant 0 : index
    %0 = vector.load %arg1[%c0, %c0_0] : memref<256x1152xf32, #tpu.memory_space<vmem>>, vector<256x1152xf32>
    %c0_1 = arith.constant 0 : index
    %c0_2 = arith.constant 0 : index
    %1 = vector.load %arg3[%c0_1, %c0_2] : memref<1x1152xf32, #tpu.memory_space<vmem>>, vector<1x1152xf32>
    %2 = vector.broadcast %1 : vector<1x1152xf32> to vector<256x1152xf32>
    %3 = arith.mulf %0, %2 : vector<256x1152xf32>
    %c0_3 = arith.constant 0 : index
    %c0_4 = arith.constant 0 : index
    %4 = vector.load %arg4[%c0_3, %c0_4] : memref<1x1152xf32, #tpu.memory_space<vmem>>, vector<1x1152xf32>
    %5 = vector.broadcast %4 : vector<1x1152xf32> to vector<256x1152xf32>
    %6 = arith.addf %3, %5 : vector<256x1152xf32>
    %c0_5 = arith.constant 0 : index
    %c0_6 = arith.constant 0 : index
    %7 = vector.load %arg2[%c0_5, %c0_6] : memref<1152x128xf32, #tpu.memory_space<vmem>>, vector<1152x128xf32>
    %cst = arith.constant dense<0.000000e+00> : vector<256x128xf32>
    %8 = tpu.matmul %6, %7, %cst {dimension_numbers = #tpu.dot_dimension_numbers<[1], [0], [0], [1], [0, 0, 1, 1], [], []>} : vector<256x1152xf32>, vector<1152x128xf32>, vector<256x128xf32> -> vector<256x128xf32>
    %c0_7 = arith.constant 0 : index
    %c0_8 = arith.constant 0 : index
    %9 = vector.load %arg5[%c0_7, %c0_8] : memref<256x128xf32, #tpu.memory_space<vmem>>, vector<256x128xf32>
    tpu.vector_store %arg5[%c0_7, %c0_8], %8 {strides = array<i32>} : memref<256x128xf32, #tpu.memory_space<vmem>>, vector<256x128xf32>,
    %cst_9 = arith.constant dense<0.000000e+00> : vector<128xf32>
    %10 = vector.multi_reduction <add>, %8, %cst_9 [0] : vector<256x128xf32> to vector<128xf32>
    %11 = vector.shape_cast %10 : vector<128xf32> to vector<1x128xf32>
    %12 = arith.mulf %8, %8 : vector<256x128xf32>
    %cst_10 = arith.constant dense<0.000000e+00> : vector<128xf32>
    %13 = vector.multi_reduction <add>, %12, %cst_10 [0] : vector<256x128xf32> to vector<128xf32>
    %14 = vector.shape_cast %13 : vector<128xf32> to vector<1x128xf32>
    %15 = tpu.concatenate %11, %14 in 0 : vector<1x128xf32>, vector<1x128xf32> -> vector<2x128xf32>
    %16 = vector.shape_cast %15 : vector<2x128xf32> to vector<1x2x128xf32>
    %c0_11 = arith.constant 0 : index
    %c0_12 = arith.constant 0 : index
    %c0_13 = arith.constant 0 : index
    %17 = vector.load %arg6[%c0_11, %c0_12, %c0_13] : memref<1x2x128xf32, #tpu.memory_space<vmem>>, vector<1x2x128xf32>
    tpu.vector_store %arg6[%c0_11, %c0_12, %c0_13], %16 {strides = array<i32>} : memref<1x2x128xf32, #tpu.memory_space<vmem>>, vector<1x2x128xf32>,
    return
  }
  func.func @transform_0(%arg0: i32) -> (i32, i32) {
    %c0_i32 = arith.constant 0 : i32
    %c0_i32_0 = arith.constant 0 : i32
    return %arg0, %c0_i32 : i32, i32
  }
  func.func @transform_1(%arg0: i32) -> (i32, i32) {
    %c0_i32 = arith.constant 0 : i32
    %c0_i32_0 = arith.constant 0 : i32
    %c0_i32_1 = arith.constant 0 : i32
    return %c0_i32, %c0_i32_0 : i32, i32
  }
  func.func @transform_2(%arg0: i32) -> (i32, i32) {
    %c0_i32 = arith.constant 0 : i32
    %c0_i32_0 = arith.constant 0 : i32
    %c0_i32_1 = arith.constant 0 : i32
    return %c0_i32, %c0_i32_0 : i32, i32
  }
  func.func @transform_3(%arg0: i32) -> (i32, i32) {
    %c0_i32 = arith.constant 0 : i32
    %c0_i32_0 = arith.constant 0 : i32
    %c0_i32_1 = arith.constant 0 : i32
    return %c0_i32, %c0_i32_0 : i32, i32
  }
  func.func @transform_4(%arg0: i32) -> (i32, i32) {
    %c0_i32 = arith.constant 0 : i32
    %c0_i32_0 = arith.constant 0 : i32
    return %arg0, %c0_i32 : i32, i32
  }
  func.func @transform_5(%arg0: i32) -> (i32, i32, i32) {
    %c0_i32 = arith.constant 0 : i32
    %c0_i32_0 = arith.constant 0 : i32
    %c0_i32_1 = arith.constant 0 : i32
    return %arg0, %c0_i32, %c0_i32_0 : i32, i32, i32
  }
}

module attributes {stable_mosaic.version = 11 : i64} {
  func.func @_gemm_stats_kernel(%arg0: i32, %arg1: memref<128x512xf32, #tpu.memory_space<vmem>>, %arg2: memref<512x128xf32, #tpu.memory_space<vmem>>, %arg3: memref<1x512xf32, #tpu.memory_space<vmem>>, %arg4: memref<1x512xf32, #tpu.memory_space<vmem>>, %arg5: memref<128x128xf32, #tpu.memory_space<vmem>>, %arg6: memref<1x2x128xf32, #tpu.memory_space<vmem>>) attributes {dimension_semantics = [#tpu.dimension_semantics<parallel>], iteration_bounds = array<i64: 1>, scalar_prefetch = 0 : i64, scratch_operands = 0 : i64, tpu.core_type = #tpu.core_type<tc>, window_params = [{transform_indices = @transform_0, window_bounds = array<i64: 128, 512>}, {pipeline_mode = #tpu.pipeline_mode<synchronous>, transform_indices = @transform_1, window_bounds = array<i64: 512, 128>}, {pipeline_mode = #tpu.pipeline_mode<synchronous>, transform_indices = @transform_2, window_bounds = array<i64: 1, 512>}, {pipeline_mode = #tpu.pipeline_mode<synchronous>, transform_indices = @transform_3, window_bounds = array<i64: 1, 512>}, {transform_indices = @transform_4, window_bounds = array<i64: 128, 128>}, {transform_indices = @transform_5, window_bounds = array<i64: 1, 2, 128>}]} {
    %c0 = arith.constant 0 : index
    %c0_0 = arith.constant 0 : index
    %0 = vector.load %arg1[%c0, %c0_0] : memref<128x512xf32, #tpu.memory_space<vmem>>, vector<128x512xf32>
    %c0_1 = arith.constant 0 : index
    %c0_2 = arith.constant 0 : index
    %1 = vector.load %arg3[%c0_1, %c0_2] : memref<1x512xf32, #tpu.memory_space<vmem>>, vector<1x512xf32>
    %2 = vector.broadcast %1 : vector<1x512xf32> to vector<128x512xf32>
    %3 = arith.mulf %0, %2 : vector<128x512xf32>
    %c0_3 = arith.constant 0 : index
    %c0_4 = arith.constant 0 : index
    %4 = vector.load %arg4[%c0_3, %c0_4] : memref<1x512xf32, #tpu.memory_space<vmem>>, vector<1x512xf32>
    %5 = vector.broadcast %4 : vector<1x512xf32> to vector<128x512xf32>
    %6 = arith.addf %3, %5 : vector<128x512xf32>
    %c0_5 = arith.constant 0 : index
    %c0_6 = arith.constant 0 : index
    %7 = vector.load %arg2[%c0_5, %c0_6] : memref<512x128xf32, #tpu.memory_space<vmem>>, vector<512x128xf32>
    %cst = arith.constant dense<0.000000e+00> : vector<128x128xf32>
    %8 = tpu.matmul %6, %7, %cst {dimension_numbers = #tpu.dot_dimension_numbers<[1], [0], [0], [1], [0, 0, 1, 1], [], []>} : vector<128x512xf32>, vector<512x128xf32>, vector<128x128xf32> -> vector<128x128xf32>
    %c0_7 = arith.constant 0 : index
    %c0_8 = arith.constant 0 : index
    %9 = vector.load %arg5[%c0_7, %c0_8] : memref<128x128xf32, #tpu.memory_space<vmem>>, vector<128x128xf32>
    tpu.vector_store %arg5[%c0_7, %c0_8], %8 {strides = array<i32>} : memref<128x128xf32, #tpu.memory_space<vmem>>, vector<128x128xf32>,
    %cst_9 = arith.constant dense<0.000000e+00> : vector<128xf32>
    %10 = vector.multi_reduction <add>, %8, %cst_9 [0] : vector<128x128xf32> to vector<128xf32>
    %11 = vector.shape_cast %10 : vector<128xf32> to vector<1x128xf32>
    %12 = arith.mulf %8, %8 : vector<128x128xf32>
    %cst_10 = arith.constant dense<0.000000e+00> : vector<128xf32>
    %13 = vector.multi_reduction <add>, %12, %cst_10 [0] : vector<128x128xf32> to vector<128xf32>
    %14 = vector.shape_cast %13 : vector<128xf32> to vector<1x128xf32>
    %15 = tpu.concatenate %11, %14 in 0 : vector<1x128xf32>, vector<1x128xf32> -> vector<2x128xf32>
    %16 = vector.shape_cast %15 : vector<2x128xf32> to vector<1x2x128xf32>
    %c0_11 = arith.constant 0 : index
    %c0_12 = arith.constant 0 : index
    %c0_13 = arith.constant 0 : index
    %17 = vector.load %arg6[%c0_11, %c0_12, %c0_13] : memref<1x2x128xf32, #tpu.memory_space<vmem>>, vector<1x2x128xf32>
    tpu.vector_store %arg6[%c0_11, %c0_12, %c0_13], %16 {strides = array<i32>} : memref<1x2x128xf32, #tpu.memory_space<vmem>>, vector<1x2x128xf32>,
    return
  }
  func.func @transform_0(%arg0: i32) -> (i32, i32) {
    %c0_i32 = arith.constant 0 : i32
    %c0_i32_0 = arith.constant 0 : i32
    return %arg0, %c0_i32 : i32, i32
  }
  func.func @transform_1(%arg0: i32) -> (i32, i32) {
    %c0_i32 = arith.constant 0 : i32
    %c0_i32_0 = arith.constant 0 : i32
    %c0_i32_1 = arith.constant 0 : i32
    return %c0_i32, %c0_i32_0 : i32, i32
  }
  func.func @transform_2(%arg0: i32) -> (i32, i32) {
    %c0_i32 = arith.constant 0 : i32
    %c0_i32_0 = arith.constant 0 : i32
    %c0_i32_1 = arith.constant 0 : i32
    return %c0_i32, %c0_i32_0 : i32, i32
  }
  func.func @transform_3(%arg0: i32) -> (i32, i32) {
    %c0_i32 = arith.constant 0 : i32
    %c0_i32_0 = arith.constant 0 : i32
    %c0_i32_1 = arith.constant 0 : i32
    return %c0_i32, %c0_i32_0 : i32, i32
  }
  func.func @transform_4(%arg0: i32) -> (i32, i32) {
    %c0_i32 = arith.constant 0 : i32
    %c0_i32_0 = arith.constant 0 : i32
    return %arg0, %c0_i32 : i32, i32
  }
  func.func @transform_5(%arg0: i32) -> (i32, i32, i32) {
    %c0_i32 = arith.constant 0 : i32
    %c0_i32_0 = arith.constant 0 : i32
    %c0_i32_1 = arith.constant 0 : i32
    return %arg0, %c0_i32, %c0_i32_0 : i32, i32, i32
  }
}

module attributes {stable_mosaic.version = 11 : i64} {
  func.func @_dual_bn_add_relu_kernel(%arg0: i32, %arg1: memref<128x128xf32, #tpu.memory_space<vmem>>, %arg2: memref<128x128xf32, #tpu.memory_space<vmem>>, %arg3: memref<1x128xf32, #tpu.memory_space<vmem>>, %arg4: memref<1x128xf32, #tpu.memory_space<vmem>>, %arg5: memref<1x128xf32, #tpu.memory_space<vmem>>, %arg6: memref<1x128xf32, #tpu.memory_space<vmem>>, %arg7: memref<128x128xf32, #tpu.memory_space<vmem>>) attributes {dimension_semantics = [#tpu.dimension_semantics<parallel>], iteration_bounds = array<i64: 1>, scalar_prefetch = 0 : i64, scratch_operands = 0 : i64, tpu.core_type = #tpu.core_type<tc>, window_params = [{transform_indices = @transform_0, window_bounds = array<i64: 128, 128>}, {transform_indices = @transform_1, window_bounds = array<i64: 128, 128>}, {pipeline_mode = #tpu.pipeline_mode<synchronous>, transform_indices = @transform_2, window_bounds = array<i64: 1, 128>}, {pipeline_mode = #tpu.pipeline_mode<synchronous>, transform_indices = @transform_3, window_bounds = array<i64: 1, 128>}, {pipeline_mode = #tpu.pipeline_mode<synchronous>, transform_indices = @transform_4, window_bounds = array<i64: 1, 128>}, {pipeline_mode = #tpu.pipeline_mode<synchronous>, transform_indices = @transform_5, window_bounds = array<i64: 1, 128>}, {transform_indices = @transform_6, window_bounds = array<i64: 128, 128>}]} {
    %c0 = arith.constant 0 : index
    %c0_0 = arith.constant 0 : index
    %0 = vector.load %arg1[%c0, %c0_0] : memref<128x128xf32, #tpu.memory_space<vmem>>, vector<128x128xf32>
    %c0_1 = arith.constant 0 : index
    %c0_2 = arith.constant 0 : index
    %1 = vector.load %arg3[%c0_1, %c0_2] : memref<1x128xf32, #tpu.memory_space<vmem>>, vector<1x128xf32>
    %2 = vector.broadcast %1 : vector<1x128xf32> to vector<128x128xf32>
    %3 = arith.mulf %0, %2 : vector<128x128xf32>
    %c0_3 = arith.constant 0 : index
    %c0_4 = arith.constant 0 : index
    %4 = vector.load %arg4[%c0_3, %c0_4] : memref<1x128xf32, #tpu.memory_space<vmem>>, vector<1x128xf32>
    %5 = vector.broadcast %4 : vector<1x128xf32> to vector<128x128xf32>
    %6 = arith.addf %3, %5 : vector<128x128xf32>
    %c0_5 = arith.constant 0 : index
    %c0_6 = arith.constant 0 : index
    %7 = vector.load %arg2[%c0_5, %c0_6] : memref<128x128xf32, #tpu.memory_space<vmem>>, vector<128x128xf32>
    %c0_7 = arith.constant 0 : index
    %c0_8 = arith.constant 0 : index
    %8 = vector.load %arg5[%c0_7, %c0_8] : memref<1x128xf32, #tpu.memory_space<vmem>>, vector<1x128xf32>
    %9 = vector.broadcast %8 : vector<1x128xf32> to vector<128x128xf32>
    %10 = arith.mulf %7, %9 : vector<128x128xf32>
    %c0_9 = arith.constant 0 : index
    %c0_10 = arith.constant 0 : index
    %11 = vector.load %arg6[%c0_9, %c0_10] : memref<1x128xf32, #tpu.memory_space<vmem>>, vector<1x128xf32>
    %12 = vector.broadcast %11 : vector<1x128xf32> to vector<128x128xf32>
    %13 = arith.addf %10, %12 : vector<128x128xf32>
    %14 = arith.addf %6, %13 : vector<128x128xf32>
    %cst = arith.constant 0.000000e+00 : f32
    %15 = vector.broadcast %cst : f32 to vector<128x128xf32>
    %16 = arith.maximumf %14, %15 : vector<128x128xf32>
    %c0_11 = arith.constant 0 : index
    %c0_12 = arith.constant 0 : index
    %17 = vector.load %arg7[%c0_11, %c0_12] : memref<128x128xf32, #tpu.memory_space<vmem>>, vector<128x128xf32>
    tpu.vector_store %arg7[%c0_11, %c0_12], %16 {strides = array<i32>} : memref<128x128xf32, #tpu.memory_space<vmem>>, vector<128x128xf32>,
    return
  }
  func.func @transform_0(%arg0: i32) -> (i32, i32) {
    %c0_i32 = arith.constant 0 : i32
    %c0_i32_0 = arith.constant 0 : i32
    return %arg0, %c0_i32 : i32, i32
  }
  func.func @transform_1(%arg0: i32) -> (i32, i32) {
    %c0_i32 = arith.constant 0 : i32
    %c0_i32_0 = arith.constant 0 : i32
    return %arg0, %c0_i32 : i32, i32
  }
  func.func @transform_2(%arg0: i32) -> (i32, i32) {
    %c0_i32 = arith.constant 0 : i32
    %c0_i32_0 = arith.constant 0 : i32
    %c0_i32_1 = arith.constant 0 : i32
    return %c0_i32, %c0_i32_0 : i32, i32
  }
  func.func @transform_3(%arg0: i32) -> (i32, i32) {
    %c0_i32 = arith.constant 0 : i32
    %c0_i32_0 = arith.constant 0 : i32
    %c0_i32_1 = arith.constant 0 : i32
    return %c0_i32, %c0_i32_0 : i32, i32
  }
  func.func @transform_4(%arg0: i32) -> (i32, i32) {
    %c0_i32 = arith.constant 0 : i32
    %c0_i32_0 = arith.constant 0 : i32
    %c0_i32_1 = arith.constant 0 : i32
    return %c0_i32, %c0_i32_0 : i32, i32
  }
  func.func @transform_5(%arg0: i32) -> (i32, i32) {
    %c0_i32 = arith.constant 0 : i32
    %c0_i32_0 = arith.constant 0 : i32
    %c0_i32_1 = arith.constant 0 : i32
    return %c0_i32, %c0_i32_0 : i32, i32
  }
  func.func @transform_6(%arg0: i32) -> (i32, i32) {
    %c0_i32 = arith.constant 0 : i32
    %c0_i32_0 = arith.constant 0 : i32
    return %arg0, %c0_i32 : i32, i32
  }
}

</mosaic_0001>

<bundles_post_ra>
// kernel: bottleneck_pallas.7
= control target key start
LH: loop header
LB: loop body
LE: loop exit
PB: predicated region body
PF: predicated region fallthrough
CT: control target
= control target key end

     0   :  { %s453_s12 = smov 0   ;;  %s612_s0 = inlined_call_operand.vmem [shape: f32[512,128], index: 0, kind: input, shape index: {}]   ;;  %s613_s1 = inlined_call_operand.vmem [shape: f32[1,128], index: 1, kind: input, shape index: {}]   ;;  %s614_s2 = inlined_call_operand.vmem [shape: f32[1,128], index: 2, kind: input, shape index: {}]   ;;  %s615_s3 = inlined_call_operand.vmem [shape: f32[512,128], index: 3, kind: output, shape index: {}]  }
   0x1 LB: > { %s404_s13 = sadd.s32 4294967295, %s431_s12   ;;  %p408_p0 = scmp.ge.s32.totalorder %s431_s12, 1  ;;  %s431_s12 = sphi %s453_s12, %s13_s12  }
   0x2   : > { %p138_p1 = scmp.lt.s32.totalorder %s431_s12, 3 }
   0x4   : > { %p139_p2 = pnand %p408_p0, %p138_p1 }
   0x5   : > { %s409_s14 = sshll.u32 (!%p139_p2), %s404_s13, 5  ;;  %v464_v0 = vld [vmem:[%s613_s1] ss:$0 sm:$0xff] (!%p139_p2) }
   0x6   : > { %142 = sbr.rel (%p139_p2) target bundleno = 46 (0x2e), region = 32  ;;  %p163_p3 = scmp.lt.s32.totalorder (!%p139_p2), %s409_s14, 63  ;;  %v474_v1 = vld [vmem:[%s614_s2] ss:$0 sm:$0xff] (!%p139_p2) }
   0xd   : > { %s617_s14 = smov (!%p163_p3, %s409_s14), 63 }
   0xe   : > { %s410_s15 = sshll.u32 %s617_s14, 3 }
   0xf   : > { %s469_s20 = scalar_lea.vmem %s612_s0, %s410_s15  ;;  %s497_s25 = scalar_lea.vmem %s615_s3, %s410_s15 }
  0x10   : > { %v174_v2 = vld [vmem:[%s469_s20] sm:$0xff]  ;;  %v175_v3 = vld [vmem:[%s469_s20 + $0x8] sm:$0xff]  ;;  %v176_v4 = vld [vmem:[%s469_s20 + $0x10] sm:$0xff] }
  0x11   : > { %v213_v5 = vmul.f32 %v464_v0, %v174_v2  ;;  %v214_v6 = vmul.f32 %v464_v0, %v175_v3  ;;  %v215_v7 = vmul.f32 %v464_v0, %v176_v4  ;;  %v177_v8 = vld [vmem:[%s469_s20 + $0x18] sm:$0xff]  ;;  %v178_v9 = vld [vmem:[%s469_s20 + $0x20] sm:$0xff]  ;;  %v179_v10 = vld [vmem:[%s469_s20 + $0x28] sm:$0xff] }
  0x12   : > { %v216_v11 = vmul.f32 %v464_v0, %v177_v8  ;;  %v217_v12 = vmul.f32 %v464_v0, %v178_v9  ;;  %v218_v13 = vmul.f32 %v464_v0, %v179_v10  ;;  %v180_v14 = vld [vmem:[%s469_s20 + $0x30] sm:$0xff]  ;;  %v181_v15 = vld [vmem:[%s469_s20 + $0x38] sm:$0xff]  ;;  %v182_v24 = vld [vmem:[%s469_s20 + $0x40] sm:$0xff] }
  0x13   : > { %v252_v16 = vadd.f32 %v474_v1, %v213_v5  ;;  %v253_v17 = vadd.f32 %v474_v1, %v214_v6  ;;  %v254_v18 = vadd.f32 %v474_v1, %v215_v7  ;;  %v219_v19 = vmul.f32 %v464_v0, %v180_v14  ;;  %v183_v25 = vld [vmem:[%s469_s20 + $0x48] sm:$0xff]  ;;  %v184_v26 = vld [vmem:[%s469_s20 + $0x50] sm:$0xff]  ;;  %v185_v31 = vld [vmem:[%s469_s20 + $0x58] sm:$0xff] }
  0x14   : > { %v255_v20 = vadd.f32 %v474_v1, %v216_v11  ;;  %v256_v21 = vadd.f32 %v474_v1, %v217_v12  ;;  %v257_v22 = vadd.f32 %v474_v1, %v218_v13  ;;  %v220_v23 = vmul.f32 %v464_v0, %v181_v15  ;;  %v186_v32 = vld [vmem:[%s469_s20 + $0x60] sm:$0xff]  ;;  %v187_v33 = vld [vmem:[%s469_s20 + $0x68] sm:$0xff]  ;;  %v188_v38 = vld [vmem:[%s469_s20 + $0x70] sm:$0xff] }
  0x15   : > { %v284_v27 = vmax.f32 %v252_v16, 0.0  ;;  %v285_v28 = vmax.f32 %v253_v17, 0.0  ;;  %v286_v29 = vmax.f32 %v254_v18, 0.0  ;;  %v258_v30 = vadd.f32 %v474_v1, %v219_v19  ;;  %v189_v43 = vld [vmem:[%s469_s20 + $0x78] sm:$0xff]  ;;  %v190_v56 = vld [vmem:[%s469_s20 + $0x80] sm:$0xff]  ;;  %v191_v57 = vld [vmem:[%s469_s20 + $0x88] sm:$0xff] }
  0x16   : > { %v287_v34 = vmax.f32 %v255_v20, 0.0  ;;  %v288_v35 = vmax.f32 %v256_v21, 0.0  ;;  %v289_v36 = vmax.f32 %v257_v22, 0.0  ;;  %v259_v37 = vadd.f32 %v474_v1, %v220_v23  ;;  %v192_v58 = vld [vmem:[%s469_s20 + $0x90] sm:$0xff]  ;;  %v193_v63 = vld [vmem:[%s469_s20 + $0x98] sm:$0xff]  ;;  %v194_v2 = vld [vmem:[%s469_s20 + $0xa0] sm:$0xff] }
  0x17   : > { %316 = vst [vmem:[%s497_s25] sm:$0xff] %v284_v27  ;;  %317 = vst [vmem:[%s497_s25 + $0x8] sm:$0xff] %v285_v28  ;;  %v290_v39 = vmax.f32 %v258_v30, 0.0  ;;  %v221_v40 = vmul.f32 %v464_v0, %v182_v24  ;;  %v222_v41 = vmul.f32 %v464_v0, %v183_v25  ;;  %v223_v42 = vmul.f32 %v464_v0, %v184_v26  ;;  %v195_v3 = vld [vmem:[%s469_s20 + $0xa8] sm:$0xff]  ;;  %v196_v8 = vld [vmem:[%s469_s20 + $0xb0] sm:$0xff] }
  0x18   : > { %318 = vst [vmem:[%s497_s25 + $0x10] sm:$0xff] %v286_v29  ;;  %319 = vst [vmem:[%s497_s25 + $0x18] sm:$0xff] %v287_v34  ;;  %v291_v44 = vmax.f32 %v259_v37, 0.0  ;;  %v224_v45 = vmul.f32 %v464_v0, %v185_v31  ;;  %v225_v46 = vmul.f32 %v464_v0, %v186_v32  ;;  %v226_v47 = vmul.f32 %v464_v0, %v187_v33  ;;  %v197_v13 = vld [vmem:[%s469_s20 + $0xb8] sm:$0xff]  ;;  %v198_v26 = vld [vmem:[%s469_s20 + $0xc0] sm:$0xff] }
  0x19   : > { %320 = vst [vmem:[%s497_s25 + $0x20] sm:$0xff] %v288_v35  ;;  %321 = vst [vmem:[%s497_s25 + $0x28] sm:$0xff] %v289_v36  ;;  %v260_v48 = vadd.f32 %v474_v1, %v221_v40  ;;  %v261_v49 = vadd.f32 %v474_v1, %v222_v41  ;;  %v262_v50 = vadd.f32 %v474_v1, %v223_v42  ;;  %v199_v27 = vld [vmem:[%s469_s20 + $0xc8] sm:$0xff]  ;;  %v200_v28 = vld [vmem:[%s469_s20 + $0xd0] sm:$0xff] }
  0x1a   : > { %322 = vst [vmem:[%s497_s25 + $0x30] sm:$0xff] %v290_v39  ;;  %v227_v51 = vmul.f32 %v464_v0, %v188_v38  ;;  %323 = vst [vmem:[%s497_s25 + $0x38] sm:$0xff] %v291_v44  ;;  %v263_v52 = vadd.f32 %v474_v1, %v224_v45  ;;  %v264_v53 = vadd.f32 %v474_v1, %v225_v46  ;;  %v201_v33 = vld [vmem:[%s469_s20 + $0xd8] sm:$0xff]  ;;  %v202_v34 = vld [vmem:[%s469_s20 + $0xe0] sm:$0xff] }
  0x1b   : > { %v265_v54 = vadd.f32 %v474_v1, %v226_v47  ;;  %v228_v55 = vmul.f32 %v464_v0, %v189_v43  ;;  %v292_v59 = vmax.f32 %v260_v48, 0.0  ;;  %v293_v60 = vmax.f32 %v261_v49, 0.0  ;;  %v203_v35 = vld [vmem:[%s469_s20 + $0xe8] sm:$0xff]  ;;  %v204_v40 = vld [vmem:[%s469_s20 + $0xf0] sm:$0xff]  ;;  %v205_v45 = vld [vmem:[%s469_s20 + $0xf8] sm:$0xff] }
  0x1c   : > { %v294_v61 = vmax.f32 %v262_v50, 0.0  ;;  %v266_v62 = vadd.f32 %v474_v1, %v227_v51  ;;  %v295_v4 = vmax.f32 %v263_v52, 0.0  ;;  %v296_v5 = vmax.f32 %v264_v53, 0.0 }
  0x1d   : > { %v297_v6 = vmax.f32 %v265_v54, 0.0  ;;  %v267_v7 = vadd.f32 %v474_v1, %v228_v55  ;;  %324 = vst [vmem:[%s497_s25 + $0x40] sm:$0xff] %v292_v59  ;;  %325 = vst [vmem:[%s497_s25 + $0x48] sm:$0xff] %v293_v60  ;;  %v229_v10 = vmul.f32 %v464_v0, %v190_v56  ;;  %v230_v11 = vmul.f32 %v464_v0, %v191_v57 }
  0x1e   : > { %326 = vst [vmem:[%s497_s25 + $0x50] sm:$0xff] %v294_v61  ;;  %v298_v9 = vmax.f32 %v266_v62, 0.0  ;;  %v231_v12 = vmul.f32 %v464_v0, %v192_v58  ;;  %327 = vst [vmem:[%s497_s25 + $0x58] sm:$0xff] %v295_v4  ;;  %v232_v15 = vmul.f32 %v464_v0, %v193_v63  ;;  %v233_v16 = vmul.f32 %v464_v0, %v194_v2 }
  0x1f   : > { %328 = vst [vmem:[%s497_s25 + $0x60] sm:$0xff] %v296_v5  ;;  %329 = vst [vmem:[%s497_s25 + $0x68] sm:$0xff] %v297_v6  ;;  %v299_v14 = vmax.f32 %v267_v7, 0.0  ;;  %v234_v17 = vmul.f32 %v464_v0, %v195_v3  ;;  %v268_v18 = vadd.f32 %v474_v1, %v229_v10  ;;  %v269_v19 = vadd.f32 %v474_v1, %v230_v11 }
  0x20   : > { %330 = vst [vmem:[%s497_s25 + $0x70] sm:$0xff] %v298_v9  ;;  %v270_v20 = vadd.f32 %v474_v1, %v231_v12  ;;  %v235_v21 = vmul.f32 %v464_v0, %v196_v8  ;;  %v271_v22 = vadd.f32 %v474_v1, %v232_v15  ;;  %v272_v23 = vadd.f32 %v474_v1, %v233_v16 }
  0x21   : > { %331 = vst [vmem:[%s497_s25 + $0x78] sm:$0xff] %v299_v14  ;;  %v273_v24 = vadd.f32 %v474_v1, %v234_v17  ;;  %v236_v25 = vmul.f32 %v464_v0, %v197_v13  ;;  %v300_v29 = vmax.f32 %v268_v18, 0.0  ;;  %v301_v30 = vmax.f32 %v269_v19, 0.0 }
  0x22   : > { %v302_v31 = vmax.f32 %v270_v20, 0.0  ;;  %v274_v32 = vadd.f32 %v474_v1, %v235_v21  ;;  %v303_v36 = vmax.f32 %v271_v22, 0.0  ;;  %v304_v37 = vmax.f32 %v272_v23, 0.0 }
  0x23   : > { %v305_v38 = vmax.f32 %v273_v24, 0.0  ;;  %v275_v39 = vadd.f32 %v474_v1, %v236_v25  ;;  %332 = vst [vmem:[%s497_s25 + $0x80] sm:$0xff] %v300_v29  ;;  %333 = vst [vmem:[%s497_s25 + $0x88] sm:$0xff] %v301_v30  ;;  %v237_v42 = vmul.f32 %v464_v0, %v198_v26  ;;  %v238_v43 = vmul.f32 %v464_v0, %v199_v27 }
  0x24   : > { %334 = vst [vmem:[%s497_s25 + $0x90] sm:$0xff] %v302_v31  ;;  %v306_v41 = vmax.f32 %v274_v32, 0.0  ;;  %v239_v44 = vmul.f32 %v464_v0, %v200_v28  ;;  %335 = vst [vmem:[%s497_s25 + $0x98] sm:$0xff] %v303_v36  ;;  %v240_v47 = vmul.f32 %v464_v0, %v201_v33  ;;  %v241_v48 = vmul.f32 %v464_v0, %v202_v34 }
  0x25   : > { %336 = vst [vmem:[%s497_s25 + $0xa0] sm:$0xff] %v304_v37  ;;  %337 = vst [vmem:[%s497_s25 + $0xa8] sm:$0xff] %v305_v38  ;;  %v307_v46 = vmax.f32 %v275_v39, 0.0  ;;  %v242_v49 = vmul.f32 %v464_v0, %v203_v35  ;;  %v276_v50 = vadd.f32 %v474_v1, %v237_v42  ;;  %v277_v51 = vadd.f32 %v474_v1, %v238_v43 }
  0x26   : > { %338 = vst [vmem:[%s497_s25 + $0xb0] sm:$0xff] %v306_v41  ;;  %v278_v52 = vadd.f32 %v474_v1, %v239_v44  ;;  %v243_v53 = vmul.f32 %v464_v0, %v204_v40  ;;  %v279_v54 = vadd.f32 %v474_v1, %v240_v47  ;;  %v280_v55 = vadd.f32 %v474_v1, %v241_v48 }
  0x27   : > { %339 = vst [vmem:[%s497_s25 + $0xb8] sm:$0xff] %v307_v46  ;;  %v281_v56 = vadd.f32 %v474_v1, %v242_v49  ;;  %v244_v57 = vmul.f32 %v464_v0, %v205_v45  ;;  %v308_v58 = vmax.f32 %v276_v50, 0.0  ;;  %v309_v59 = vmax.f32 %v277_v51, 0.0 }
  0x28   : > { %v310_v60 = vmax.f32 %v278_v52, 0.0  ;;  %v282_v61 = vadd.f32 %v474_v1, %v243_v53  ;;  %v311_v62 = vmax.f32 %v279_v54, 0.0  ;;  %v312_v63 = vmax.f32 %v280_v55, 0.0 }
  0x29   : > { %v313_v2 = vmax.f32 %v281_v56, 0.0  ;;  %v283_v3 = vadd.f32 %v474_v1, %v244_v57  ;;  %340 = vst [vmem:[%s497_s25 + $0xc0] sm:$0xff] %v308_v58  ;;  %341 = vst [vmem:[%s497_s25 + $0xc8] sm:$0xff] %v309_v59 }
  0x2a   : > { %342 = vst [vmem:[%s497_s25 + $0xd0] sm:$0xff] %v310_v60  ;;  %v314_v4 = vmax.f32 %v282_v61, 0.0  ;;  %343 = vst [vmem:[%s497_s25 + $0xd8] sm:$0xff] %v311_v62 }
  0x2b   : > { %344 = vst [vmem:[%s497_s25 + $0xe0] sm:$0xff] %v312_v63  ;;  %345 = vst [vmem:[%s497_s25 + $0xe8] sm:$0xff] %v313_v2  ;;  %v315_v0 = vmax.f32 %v283_v3, 0.0 }
  0x2c   : > { %346 = vst [vmem:[%s497_s25 + $0xf0] sm:$0xff] %v314_v4 }
  0x2d   : > { %347 = vst [vmem:[%s497_s25 + $0xf8] sm:$0xff] %v315_v0 }
  0x2e PF: > { %s13_s12 = sadd.s32 1, %s431_s12  }
  0x2f   : > { %p10_p4 = scmp.ge.s32.totalorder %s13_s12, 4  }
  0x31   :  { %12 = sbr.rel (!%p10_p4) target bundleno = 1 (0x1), region = 62 }

// kernel: bottleneck_pallas.6
= control target key start
LH: loop header
LB: loop body
LE: loop exit
PB: predicated region body
PF: predicated region fallthrough
CT: control target
= control target key end

     0   :  { %s1054_s18 = smov 0   ;;  %s1354_s0 = inlined_call_operand.vmem [shape: f32[512,128], index: 0, kind: input, shape index: {}]   ;;  %s1355_s1 = inlined_call_operand.vmem [shape: f32[128,128], index: 1, kind: input, shape index: {}]   ;;  %s1356_s2 = inlined_call_operand.vmem [shape: f32[1,128], index: 2, kind: input, shape index: {}]   ;;  %s1357_s3 = inlined_call_operand.vmem [shape: f32[1,128], index: 3, kind: input, shape index: {}]   ;;  %s1358_s4 = inlined_call_operand.vmem [shape: f32[512,128], index: 4, kind: output, shape index: {0}]   ;;  %s1359_s5 = inlined_call_operand.vmem [shape: f32[2,2,128], index: 5, kind: output, shape index: {1}]  }
   0x1 LB: > { %s1060_s19 = sadd.s32 4294967295, %s1022_s18   ;;  %p822_p0 = scmp.ge.s32.totalorder %s1022_s18, 1  ;;  %s1022_s18 = sphi %s1054_s18, %s16_s18  }
   0x2   : > { %p191_p1 = scmp.lt.s32.totalorder %s1022_s18, 3 }
   0x4   : > { %p192_p2 = pnand %p822_p0, %p191_p1 }
   0x5   : > { %v349_v0 = vld [vmem:[%s1355_s1] sm:$0xff] (!%p192_p2)  ;;  %v350_v1 = vld [vmem:[%s1355_s1 + $0x8] sm:$0xff] (!%p192_p2)  ;;  %v351_v2 = vld [vmem:[%s1355_s1 + $0x10] sm:$0xff] (!%p192_p2)  ;;  %s823_s26 = sshll.u32 (!%p192_p2), %s1060_s19, 5  ;;  %p235_p4 = scmp.lt.s32.totalorder (!%p192_p2), %s1060_s19, 1  ;;  %vm728_vm0 = vcmask (!%p192_p2), 1040384  }
   0x6   : > { %195 = sbr.rel (%p192_p2) target bundleno = 333 (0x14d), region = 36  ;;  %v960_v3 = vpack.c.bf16 (!%p192_p2), %v350_v1, %v349_v0  ;;  %v352_v4 = vld [vmem:[%s1355_s1 + $0x18] sm:$0xff] (!%p192_p2)  ;;  %p224_p3 = scmp.lt.s32.totalorder (!%p192_p2), %s823_s26, 63  ;;  %v353_v6 = vld [vmem:[%s1355_s1 + $0x20] sm:$0xff] (!%p192_p2)  ;;  %v354_v7 = vld [vmem:[%s1355_s1 + $0x28] sm:$0xff] (!%p192_p2) }
   0x7   : > { %v964_v5 = vpack.c.bf16 (!%p192_p2), %v352_v4, %v351_v2  ;;  %v968_v8 = vpack.c.bf16 (!%p192_p2), %v354_v7, %v353_v6  ;;  %v1089_v9 = vld [vmem:[%s1356_s2] ss:$0 sm:$0xff] (!%p192_p2)  ;;  %v355_v10 = vld [vmem:[%s1355_s1 + $0x30] sm:$0xff] (!%p192_p2)  ;;  %v356_v11 = vld [vmem:[%s1355_s1 + $0x38] sm:$0xff] (!%p192_p2) }
   0x8   : > { %961 = vmatprep.subr.bf16.mxu0 (!%p192_p2), %v960_v3  ;;  %992 = vmatprep.subr.bf16.mxu1 (!%p192_p2), %v960_v3  ;;  %v1108_v13 = vld [vmem:[%s1357_s3] ss:$0 sm:$0xff] (!%p192_p2)  ;;  %v972_v15 = vpack.c.bf16 (!%p192_p2), %v356_v11, %v355_v10  ;;  %v358_v17 = vld [vmem:[%s1355_s1 + $0x48] sm:$0xff] (!%p192_p2)  ;;  %v359_v21 = vld [vmem:[%s1355_s1 + $0x50] sm:$0xff] (!%p192_p2) }
   0x9   : > { %963 = vmatpush3.bf16.msra.mxu0 (!%p192_p2), %v960_v3  ;;  %1000 = vmatpush3.bf16.msra.mxu1 (!%p192_p2), %v960_v3  ;;  %v357_v16 = vld [vmem:[%s1355_s1 + $0x40] sm:$0xff] (!%p192_p2)  ;;  %v360_v22 = vld [vmem:[%s1355_s1 + $0x58] sm:$0xff] (!%p192_p2)  ;;  %v362_v26 = vld [vmem:[%s1355_s1 + $0x68] sm:$0xff] (!%p192_p2) }
   0xa   : > { %965 = vmatprep.subr.bf16.mxu0 (!%p192_p2), %v964_v5  ;;  %993 = vmatprep.subr.bf16.mxu1 (!%p192_p2), %v964_v5  ;;  %v976_v19 = vpack.c.bf16 (!%p192_p2), %v358_v17, %v357_v16  ;;  %v980_v24 = vpack.c.bf16 (!%p192_p2), %v360_v22, %v359_v21  ;;  %v361_v25 = vld [vmem:[%s1355_s1 + $0x60] sm:$0xff] (!%p192_p2)  ;;  %v363_v29 = vld [vmem:[%s1355_s1 + $0x70] sm:$0xff] (!%p192_p2)  ;;  %v364_v30 = vld [vmem:[%s1355_s1 + $0x78] sm:$0xff] (!%p192_p2) }
   0xb   : > { %v984_v28 = vpack.c.bf16 (!%p192_p2), %v362_v26, %v361_v25  ;;  %v988_v32 = vpack.c.bf16 (!%p192_p2), %v364_v30, %v363_v29 }
   0xd   : > { %s1361_s26 = smov (!%p224_p3, %s823_s26), 63  ;;  %967 = vmatpush3.bf16.msra.mxu0 %v964_v5  ;;  %1001 = vmatpush3.bf16.msra.mxu1 %v964_v5  ;;  %s1363_s19 = smov (!%p235_p4, %s1060_s19), 1 }
   0xe   : > { %s824_s8 = sshll.u32 %s1361_s26, 3  ;;  %969 = vmatprep.subr.bf16.mxu0 %v968_v8  ;;  %994 = vmatprep.subr.bf16.mxu1 %v968_v8  ;;  %s827_s26 = sshll.u32 %s1363_s19, 1 }
   0xf   : > { %s1102_s17 = scalar_lea.vmem %s1354_s0, %s824_s8  ;;  %s238_s21 = scalar_lea.vmem %s1359_s5, %s827_s26 }
  0x10   : > { %v239_v12 = vld [vmem:[%s1102_s17] sm:$0xff]  ;;  %v240_v31 = vld [vmem:[%s1102_s17 + $0x8] sm:$0xff]  ;;  %v241_v33 = vld [vmem:[%s1102_s17 + $0x10] sm:$0xff] }
  0x11   : > { %v278_v14 = vmul.f32 %v1089_v9, %v239_v12  ;;  %971 = vmatpush3.bf16.msra.mxu0 %v968_v8  ;;  %1002 = vmatpush3.bf16.msra.mxu1 %v968_v8  ;;  %v255_v20 = vld [vmem:[%s1102_s17 + $0x80] sm:$0xff]  ;;  %v256_v34 = vld [vmem:[%s1102_s17 + $0x88] sm:$0xff]  ;;  %v257_v35 = vld [vmem:[%s1102_s17 + $0x90] sm:$0xff]  ;;  %v279_v36 = vmul.f32 %v1089_v9, %v240_v31  ;;  %v280_v37 = vmul.f32 %v1089_v9, %v241_v33 }
  0x12   : > { %973 = vmatprep.subr.bf16.mxu0 %v972_v15  ;;  %995 = vmatprep.subr.bf16.mxu1 %v972_v15  ;;  %v294_v23 = vmul.f32 %v1089_v9, %v255_v20  ;;  %v242_v38 = vld [vmem:[%s1102_s17 + $0x18] sm:$0xff]  ;;  %v295_v39 = vmul.f32 %v1089_v9, %v256_v34  ;;  %v243_v40 = vld [vmem:[%s1102_s17 + $0x20] sm:$0xff]  ;;  %v296_v41 = vmul.f32 %v1089_v9, %v257_v35  ;;  %v244_v48 = vld [vmem:[%s1102_s17 + $0x28] sm:$0xff] }
  0x13   : > { %v317_v18 = vadd.f32 %v1108_v13, %v278_v14  ;;  %v258_v42 = vld [vmem:[%s1102_s17 + $0x98] sm:$0xff]  ;;  %v259_v43 = vld [vmem:[%s1102_s17 + $0xa0] sm:$0xff]  ;;  %v318_v44 = vadd.f32 %v1108_v13, %v279_v36  ;;  %v281_v45 = vmul.f32 %v1089_v9, %v242_v38  ;;  %v319_v46 = vadd.f32 %v1108_v13, %v280_v37  ;;  %v245_v49 = vld [vmem:[%s1102_s17 + $0x30] sm:$0xff] }
  0x14   : > { %v333_v27 = vadd.f32 %v1108_v13, %v294_v23  ;;  %v282_v47 = vmul.f32 %v1089_v9, %v243_v40  ;;  %v334_v50 = vadd.f32 %v1108_v13, %v295_v39  ;;  %v297_v51 = vmul.f32 %v1089_v9, %v258_v42  ;;  %v260_v54 = vld [vmem:[%s1102_s17 + $0xa8] sm:$0xff]  ;;  %v261_v55 = vld [vmem:[%s1102_s17 + $0xb0] sm:$0xff]  ;;  %v246_v60 = vld [vmem:[%s1102_s17 + $0x38] sm:$0xff] }
  0x15   : > { %912 = vmatprep.mubr.f32.mxu0 %v317_v18  ;;  %975 = vmatpush3.bf16.msra.mxu0 %v972_v15  ;;  %v335_v52 = vadd.f32 %v1108_v13, %v296_v41  ;;  %v298_v53 = vmul.f32 %v1089_v9, %v259_v43  ;;  %v320_v56 = vadd.f32 %v1108_v13, %v281_v45  ;;  %v247_v63 = vld [vmem:[%s1102_s17 + $0x40] sm:$0xff]  ;;  %v262_v2 = vld [vmem:[%s1102_s17 + $0xb8] sm:$0xff]  ;;  %v248_v8 = vld [vmem:[%s1102_s17 + $0x48] sm:$0xff] }
  0x16   : > { %977 = vmatprep.subr.bf16.mxu0 %v976_v19  ;;  %1003 = vmatpush3.bf16.msra.mxu1 %v972_v15  ;;  %v283_v57 = vmul.f32 %v1089_v9, %v244_v48  ;;  %v284_v58 = vmul.f32 %v1089_v9, %v245_v49  ;;  %v321_v59 = vadd.f32 %v1108_v13, %v282_v47  ;;  %v263_v3 = vld [vmem:[%s1102_s17 + $0xc0] sm:$0xff]  ;;  %v249_v10 = vld [vmem:[%s1102_s17 + $0x50] sm:$0xff]  ;;  %v264_v16 = vld [vmem:[%s1102_s17 + $0xc8] sm:$0xff] }
  0x17   : > { %996 = vmatprep.subr.bf16.mxu1 %v976_v19  ;;  %936 = vmatprep.mubr.f32.mxu1 %v333_v27  ;;  %v336_v61 = vadd.f32 %v1108_v13, %v297_v51  ;;  %v299_v62 = vmul.f32 %v1089_v9, %v260_v54  ;;  %v337_v0 = vadd.f32 %v1108_v13, %v298_v53  ;;  %v265_v17 = vld [vmem:[%s1102_s17 + $0xd0] sm:$0xff]  ;;  %v250_v22 = vld [vmem:[%s1102_s17 + $0x58] sm:$0xff]  ;;  %v251_v23 = vld [vmem:[%s1102_s17 + $0x60] sm:$0xff] }
  0x18   : > { %v300_v1 = vmul.f32 %v1089_v9, %v261_v55  ;;  %v322_v4 = vadd.f32 %v1108_v13, %v283_v57  ;;  %v323_v5 = vadd.f32 %v1108_v13, %v284_v58  ;;  %v285_v6 = vmul.f32 %v1089_v9, %v246_v60  ;;  %v267_v29 = vld [vmem:[%s1102_s17 + $0xe0] sm:$0xff]  ;;  %v252_v34 = vld [vmem:[%s1102_s17 + $0x68] sm:$0xff]  ;;  %v253_v35 = vld [vmem:[%s1102_s17 + $0x70] sm:$0xff] }
  0x19   : > { %979 = vmatpush3.bf16.msra.mxu0 %v976_v19  ;;  %v286_v7 = vmul.f32 %v1089_v9, %v247_v63  ;;  %v338_v11 = vadd.f32 %v1108_v13, %v299_v62  ;;  %v301_v12 = vmul.f32 %v1089_v9, %v262_v2  ;;  %v302_v15 = vmul.f32 %v1089_v9, %v263_v3  ;;  %v268_v40 = vld [vmem:[%s1102_s17 + $0xe8] sm:$0xff]  ;;  %v269_v41 = vld [vmem:[%s1102_s17 + $0xf0] sm:$0xff]  ;;  %v270_v51 = vld [vmem:[%s1102_s17 + $0xf8] sm:$0xff] }
  0x1a   : > { %981 = vmatprep.subr.bf16.mxu0 %v980_v24  ;;  %1004 = vmatpush3.bf16.msra.mxu1 %v976_v19  ;;  %v339_v14 = vadd.f32 %v1108_v13, %v300_v1  ;;  %v324_v18 = vadd.f32 %v1108_v13, %v285_v6  ;;  %v287_v19 = vmul.f32 %v1089_v9, %v248_v8 }
  0x1b   : > { %997 = vmatprep.subr.bf16.mxu1 %v980_v24  ;;  %v288_v20 = vmul.f32 %v1089_v9, %v249_v10  ;;  %v325_v21 = vadd.f32 %v1108_v13, %v286_v7  ;;  %v303_v25 = vmul.f32 %v1089_v9, %v264_v16  ;;  %v341_v26 = vadd.f32 %v1108_v13, %v302_v15 }
  0x1c   : > { %v304_v27 = vmul.f32 %v1089_v9, %v265_v17  ;;  %v326_v30 = vadd.f32 %v1108_v13, %v287_v19  ;;  %v289_v31 = vmul.f32 %v1089_v9, %v250_v22  ;;  %v306_v39 = vmul.f32 %v1089_v9, %v267_v29 }
  0x1d   : > { %983 = vmatpush3.bf16.msra.mxu0 %v980_v24  ;;  %v327_v33 = vadd.f32 %v1108_v13, %v288_v20  ;;  %v342_v36 = vadd.f32 %v1108_v13, %v303_v25  ;;  %v291_v43 = vmul.f32 %v1089_v9, %v252_v34  ;;  %v307_v48 = vmul.f32 %v1089_v9, %v268_v40 }
  0x1e   : > { %985 = vmatprep.subr.bf16.mxu0 %v984_v28  ;;  %1005 = vmatpush3.bf16.msra.mxu1 %v980_v24  ;;  %v340_v24 = vadd.f32 %v1108_v13, %v301_v12  ;;  %v343_v38 = vadd.f32 %v1108_v13, %v304_v27  ;;  %v328_v42 = vadd.f32 %v1108_v13, %v289_v31 }
  0x1f   : > { %998 = vmatprep.subr.bf16.mxu1 %v984_v28  ;;  %v345_v49 = vadd.f32 %v1108_v13, %v306_v39  ;;  %v346_v55 = vadd.f32 %v1108_v13, %v307_v48 }
  0x21   : > { %987 = vmatpush3.bf16.msra.mxu0 %v984_v28 }
  0x22   : > { %989 = vmatprep.subr.bf16.mxu0 %v988_v32  ;;  %1006 = vmatpush3.bf16.msra.mxu1 %v984_v28  ;;  %v266_v28 = vld [vmem:[%s1102_s17 + $0xd8] sm:$0xff] }
  0x23   : > { %999 = vmatprep.subr.bf16.mxu1 %v988_v32  ;;  %v305_v37 = vmul.f32 %v1089_v9, %v266_v28 }
  0x25   : > { %991 = vmatpush3.bf16.msra.mxu0 %v988_v32  ;;  %v344_v47 = vadd.f32 %v1108_v13, %v305_v37 }
  0x26   : > { %1007 = vmatpush3.bf16.msra.mxu1 %v988_v32  ;;  %v290_v32 = vmul.f32 %v1089_v9, %v251_v23 }
  0x28   : > { %913 = vmatmul.mubr.f32.vlgmr.msra.gmra.mrb[0].mxu0 %v318_v44  ;;  %v292_v44 = vmul.f32 %v1089_v9, %v253_v35  ;;  %v329_v45 = vadd.f32 %v1108_v13, %v290_v32 }
  0x29   : > { %915 = vmatprep.mubr.f32.mxu0 %v319_v46  ;;  %937 = vmatmul.mubr.f32.vlgmr.msra.gmra.mrb[0].mxu1 %v334_v50  ;;  %v254_v46 = vld [vmem:[%s1102_s17 + $0x78] sm:$0xff]  ;;  %v308_v50 = vmul.f32 %v1089_v9, %v269_v41  ;;  %s1234_s17 = scalar_lea.vmem %s1358_s4, %s824_s8 }
  0x2a   : > { %939 = vmatprep.mubr.f32.mxu1 %v335_v52  ;;  %v330_v52 = vadd.f32 %v1108_v13, %v291_v43  ;;  %v293_v53 = vmul.f32 %v1089_v9, %v254_v46  ;;  %v331_v54 = vadd.f32 %v1108_v13, %v292_v44 }
  0x2b   : > { %v347_v57 = vadd.f32 %v1108_v13, %v308_v50 }
  0x2c   : > { %916 = vmatmul.mubr.f32.gmra.mrb[2].mxu0 %v320_v56  ;;  %v309_v56 = vmul.f32 %v1089_v9, %v270_v51  ;;  %v332_v58 = vadd.f32 %v1108_v13, %v293_v53 }
  0x2d   : > { %918 = vmatprep.mubr.f32.mxu0 %v321_v59  ;;  %940 = vmatmul.mubr.f32.gmra.mrb[2].mxu1 %v336_v61 }
  0x2e   : > { %942 = vmatprep.mubr.f32.mxu1 %v337_v0  ;;  %v348_v59 = vadd.f32 %v1108_v13, %v309_v56 }
  0x30   : > { %919 = vmatmul.mubr.f32.gmra.mrb[4].mxu0 %v322_v4 }
  0x31   : > { %921 = vmatprep.mubr.f32.mxu0 %v323_v5  ;;  %943 = vmatmul.mubr.f32.gmra.mrb[4].mxu1 %v338_v11 }
  0x32   : > { %945 = vmatprep.mubr.f32.mxu1 %v339_v14 }
  0x34   : > { %922 = vmatmul.mubr.f32.gmra.mrb[6].mxu0 %v324_v18 }
  0x35   : > { %924 = vmatprep.mubr.f32.mxu0 %v325_v21  ;;  %946 = vmatmul.mubr.f32.gmra.mrb[6].mxu1 %v340_v24 }
  0x36   : > { %948 = vmatprep.mubr.f32.mxu1 %v341_v26 }
  0x38   : > { %925 = vmatmul.mubr.f32.gmra.mrb[8].mxu0 %v326_v30 }
  0x39   : > { %927 = vmatprep.mubr.f32.mxu0 %v327_v33  ;;  %949 = vmatmul.mubr.f32.gmra.mrb[8].mxu1 %v342_v36 }
  0x3a   : > { %951 = vmatprep.mubr.f32.mxu1 %v343_v38 }
  0x3c   : > { %928 = vmatmul.mubr.f32.gmra.mrb[10].mxu0 %v328_v42 }
  0x3d   : > { %930 = vmatprep.mubr.f32.mxu0 %v329_v45  ;;  %952 = vmatmul.mubr.f32.gmra.mrb[10].mxu1 %v344_v47 }
  0x3e   : > { %954 = vmatprep.mubr.f32.mxu1 %v345_v49 }
  0x40   : > { %931 = vmatmul.mubr.f32.gmra.mrb[12].mxu0 %v330_v52 }
  0x41   : > { %933 = vmatprep.mubr.f32.mxu0 %v331_v54  ;;  %955 = vmatmul.mubr.f32.gmra.mrb[12].mxu1 %v346_v55 }
  0x42   : > { %957 = vmatprep.mubr.f32.mxu1 %v347_v57 }
  0x44   : > { %934 = vmatmul.mubr.f32.gmra.mrb[14].mxu0 %v332_v58 }
  0x45   : > { %958 = vmatmul.mubr.f32.gmra.mrb[14].mxu1 %v348_v59 }
  0xfb   : > { %v914_v9 = vpop.f32.mrb[0].mxu0 }
  0xfc   : > { %591 = vst [vmem:[%s1234_s17 + $0x8] sm:$0xff] %v914_v9  ;;  %v660_v60 = vmul.f32 %v914_v9, %v914_v9  ;;  %v431_v61 = vpop.f32.mrb[1].mxu0  ;;  %v1237_v13 = vpop.f32.mrb[0].mxu1 }
  0xfd   : > { %590 = vst [vmem:[%s1234_s17] sm:$0xff] %v431_v61  ;;  %v622_v62 = vadd.f32 %v914_v9, %v431_v61  ;;  %v659_v63 = vmul.f32 %v431_v61, %v431_v61  ;;  %607 = vst [vmem:[%s1234_s17 + $0x88] sm:$0xff] %v1237_v13  ;;  %v1242_v0 = vpop.f32.mrb[1].mxu1 }
  0xfe   : > { %606 = vst [vmem:[%s1234_s17 + $0x80] sm:$0xff] %v1242_v0 }
  0xff   : > { %v691_v1 = vadd.f32 %v660_v60, %v659_v63  ;;  %v917_v2 = vpop.f32.mrb[2].mxu0 }
 0x100   : > { %593 = vst [vmem:[%s1234_s17 + $0x18] sm:$0xff] %v917_v2  ;;  %v441_v3 = vpop.f32.mrb[3].mxu0  ;;  %v1247_v4 = vpop.f32.mrb[2].mxu1  ;;  %v662_v8 = vmul.f32 %v917_v2, %v917_v2 }
 0x101   : > { %592 = vst [vmem:[%s1234_s17 + $0x10] sm:$0xff] %v441_v3  ;;  %v623_v5 = vadd.f32 %v622_v62, %v441_v3  ;;  %v661_v6 = vmul.f32 %v441_v3, %v441_v3  ;;  %609 = vst [vmem:[%s1234_s17 + $0x98] sm:$0xff] %v1247_v4  ;;  %v1252_v7 = vpop.f32.mrb[3].mxu1 }
 0x102   : > { %608 = vst [vmem:[%s1234_s17 + $0x90] sm:$0xff] %v1252_v7 }
 0x103   : > { %v692_v10 = vadd.f32 %v691_v1, %v661_v6  ;;  %v920_v11 = vpop.f32.mrb[4].mxu0  ;;  %v624_v12 = vadd.f32 %v917_v2, %v623_v5 }
 0x104   : > { %595 = vst [vmem:[%s1234_s17 + $0x28] sm:$0xff] %v920_v11  ;;  %v451_v14 = vpop.f32.mrb[5].mxu0  ;;  %v1257_v15 = vpop.f32.mrb[4].mxu1  ;;  %v664_v20 = vmul.f32 %v920_v11, %v920_v11 }
 0x105   : > { %594 = vst [vmem:[%s1234_s17 + $0x20] sm:$0xff] %v451_v14  ;;  %v625_v16 = vadd.f32 %v624_v12, %v451_v14  ;;  %v663_v17 = vmul.f32 %v451_v14, %v451_v14  ;;  %v693_v18 = vadd.f32 %v692_v10, %v662_v8  ;;  %611 = vst [vmem:[%s1234_s17 + $0xa8] sm:$0xff] %v1257_v15  ;;  %v1262_v19 = vpop.f32.mrb[5].mxu1 }
 0x106   : > { %610 = vst [vmem:[%s1234_s17 + $0xa0] sm:$0xff] %v1262_v19  ;;  %v675_v12 = vmul.f32 %v1242_v0, %v1242_v0 }
 0x107   : > { %v694_v21 = vadd.f32 %v693_v18, %v663_v17  ;;  %v923_v22 = vpop.f32.mrb[6].mxu0  ;;  %v626_v23 = vadd.f32 %v920_v11, %v625_v16  ;;  %v676_v17 = vmul.f32 %v1237_v13, %v1237_v13 }
 0x108   : > { %597 = vst [vmem:[%s1234_s17 + $0x38] sm:$0xff] %v923_v22  ;;  %v461_v24 = vpop.f32.mrb[7].mxu0  ;;  %v1267_v25 = vpop.f32.mrb[6].mxu1  ;;  %v666_v30 = vmul.f32 %v923_v22, %v923_v22 }
 0x109   : > { %596 = vst [vmem:[%s1234_s17 + $0x30] sm:$0xff] %v461_v24  ;;  %v627_v26 = vadd.f32 %v626_v23, %v461_v24  ;;  %v665_v27 = vmul.f32 %v461_v24, %v461_v24  ;;  %v695_v28 = vadd.f32 %v694_v21, %v664_v20  ;;  %613 = vst [vmem:[%s1234_s17 + $0xb8] sm:$0xff] %v1267_v25  ;;  %v1272_v29 = vpop.f32.mrb[7].mxu1 }
 0x10a   : > { %612 = vst [vmem:[%s1234_s17 + $0xb0] sm:$0xff] %v1272_v29  ;;  %v677_v21 = vmul.f32 %v1252_v7, %v1252_v7  ;;  %v678_v24 = vmul.f32 %v1247_v4, %v1247_v4 }
 0x10b   : > { %v696_v31 = vadd.f32 %v695_v28, %v665_v27  ;;  %v926_v32 = vpop.f32.mrb[8].mxu0  ;;  %v628_v33 = vadd.f32 %v923_v22, %v627_v26 }
 0x10c   : > { %599 = vst [vmem:[%s1234_s17 + $0x48] sm:$0xff] %v926_v32  ;;  %v471_v34 = vpop.f32.mrb[9].mxu0  ;;  %v1277_v35 = vpop.f32.mrb[8].mxu1  ;;  %v668_v40 = vmul.f32 %v926_v32, %v926_v32 }
 0x10d   : > { %598 = vst [vmem:[%s1234_s17 + $0x40] sm:$0xff] %v471_v34  ;;  %v629_v36 = vadd.f32 %v628_v33, %v471_v34  ;;  %v667_v37 = vmul.f32 %v471_v34, %v471_v34  ;;  %v697_v38 = vadd.f32 %v696_v31, %v666_v30  ;;  %615 = vst [vmem:[%s1234_s17 + $0xc8] sm:$0xff] %v1277_v35  ;;  %v1282_v39 = vpop.f32.mrb[9].mxu1 }
 0x10e   : > { %614 = vst [vmem:[%s1234_s17 + $0xc0] sm:$0xff] %v1282_v39 }
 0x10f   : > { %v698_v41 = vadd.f32 %v697_v38, %v667_v37  ;;  %v929_v42 = vpop.f32.mrb[10].mxu0  ;;  %v630_v43 = vadd.f32 %v926_v32, %v629_v36 }
 0x110   : > { %601 = vst [vmem:[%s1234_s17 + $0x58] sm:$0xff] %v929_v42  ;;  %v481_v44 = vpop.f32.mrb[11].mxu0  ;;  %v1287_v45 = vpop.f32.mrb[10].mxu1  ;;  %v670_v50 = vmul.f32 %v929_v42, %v929_v42 }
 0x111   : > { %600 = vst [vmem:[%s1234_s17 + $0x50] sm:$0xff] %v481_v44  ;;  %v631_v46 = vadd.f32 %v630_v43, %v481_v44  ;;  %v669_v47 = vmul.f32 %v481_v44, %v481_v44  ;;  %v699_v48 = vadd.f32 %v698_v41, %v668_v40  ;;  %617 = vst [vmem:[%s1234_s17 + $0xd8] sm:$0xff] %v1287_v45  ;;  %v1292_v49 = vpop.f32.mrb[11].mxu1 }
 0x112   : > { %616 = vst [vmem:[%s1234_s17 + $0xd0] sm:$0xff] %v1292_v49 }
 0x113   : > { %v700_v51 = vadd.f32 %v699_v48, %v669_v47  ;;  %v932_v52 = vpop.f32.mrb[12].mxu0  ;;  %v632_v53 = vadd.f32 %v929_v42, %v631_v46 }
 0x114   : > { %603 = vst [vmem:[%s1234_s17 + $0x68] sm:$0xff] %v932_v52  ;;  %v491_v54 = vpop.f32.mrb[13].mxu0  ;;  %v1297_v55 = vpop.f32.mrb[12].mxu1  ;;  %v672_v9 = vmul.f32 %v932_v52, %v932_v52 }
 0x115   : > { %602 = vst [vmem:[%s1234_s17 + $0x60] sm:$0xff] %v491_v54  ;;  %v633_v56 = vadd.f32 %v632_v53, %v491_v54  ;;  %v671_v57 = vmul.f32 %v491_v54, %v491_v54  ;;  %v701_v58 = vadd.f32 %v700_v51, %v670_v50  ;;  %619 = vst [vmem:[%s1234_s17 + $0xe8] sm:$0xff] %v1297_v55  ;;  %v571_v59 = vpop.f32.mrb[13].mxu1 }
 0x116   : > { %618 = vst [vmem:[%s1234_s17 + $0xe0] sm:$0xff] %v571_v59  ;;  %v687_v47 = vmul.f32 %v571_v59, %v571_v59  ;;  %v688_v51 = vmul.f32 %v1297_v55, %v1297_v55 }
 0x117   : > { %v702_v60 = vadd.f32 %v701_v58, %v671_v57  ;;  %v935_v61 = vpop.f32.mrb[14].mxu0  ;;  %v634_v62 = vadd.f32 %v932_v52, %v633_v56 }
 0x118   : > { %605 = vst [vmem:[%s1234_s17 + $0x78] sm:$0xff] %v935_v61  ;;  %v501_v63 = vpop.f32.mrb[15].mxu0  ;;  %v959_v1 = vpop.f32.mrb[14].mxu1  ;;  %v674_v8 = vmul.f32 %v935_v61, %v935_v61 }
 0x119   : > { %604 = vst [vmem:[%s1234_s17 + $0x70] sm:$0xff] %v501_v63  ;;  %v635_v2 = vadd.f32 %v634_v62, %v501_v63  ;;  %v673_v3 = vmul.f32 %v501_v63, %v501_v63  ;;  %v703_v5 = vadd.f32 %v702_v60, %v672_v9  ;;  %621 = vst [vmem:[%s1234_s17 + $0xf8] sm:$0xff] %v959_v1  ;;  %v581_v6 = vpop.f32.mrb[15].mxu1 }
 0x11a   : > { %620 = vst [vmem:[%s1234_s17 + $0xf0] sm:$0xff] %v581_v6  ;;  %v689_v53 = vmul.f32 %v581_v6, %v581_v6  ;;  %v690_v56 = vmul.f32 %v959_v1, %v959_v1 }
 0x11b   : > { %v636_v10 = vadd.f32 %v935_v61, %v635_v2  ;;  %v704_v11 = vadd.f32 %v703_v5, %v673_v3 }
 0x11d   : > { %v705_v14 = vadd.f32 %v704_v11, %v674_v8  ;;  %v637_v16 = vadd.f32 %v636_v10, %v1242_v0  ;;  %v679_v0 = vmul.f32 %v1262_v19, %v1262_v19 }
 0x11f   : > { %v706_v18 = vadd.f32 %v705_v14, %v675_v12  ;;  %v638_v20 = vadd.f32 %v1237_v13, %v637_v16  ;;  %v680_v13 = vmul.f32 %v1257_v15, %v1257_v15 }
 0x121   : > { %v639_v22 = vadd.f32 %v638_v20, %v1252_v7  ;;  %v707_v23 = vadd.f32 %v706_v18, %v676_v17  ;;  %v681_v7 = vmul.f32 %v1272_v29, %v1272_v29 }
 0x123   : > { %v708_v26 = vadd.f32 %v707_v23, %v677_v21  ;;  %v640_v27 = vadd.f32 %v1247_v4, %v639_v22  ;;  %v682_v4 = vmul.f32 %v1267_v25, %v1267_v25 }
 0x125   : > { %v641_v28 = vadd.f32 %v640_v27, %v1262_v19  ;;  %v709_v30 = vadd.f32 %v708_v26, %v678_v24  ;;  %v683_v19 = vmul.f32 %v1282_v39, %v1282_v39 }
 0x127   : > { %v710_v31 = vadd.f32 %v709_v30, %v679_v0  ;;  %v642_v32 = vadd.f32 %v1257_v15, %v641_v28  ;;  %v684_v15 = vmul.f32 %v1277_v35, %v1277_v35 }
 0x129   : > { %v643_v33 = vadd.f32 %v642_v32, %v1272_v29  ;;  %v711_v34 = vadd.f32 %v710_v31, %v680_v13  ;;  %v685_v29 = vmul.f32 %v1292_v49, %v1292_v49 }
 0x12b   : > { %v712_v36 = vadd.f32 %v711_v34, %v681_v7  ;;  %v644_v37 = vadd.f32 %v1267_v25, %v643_v33  ;;  %v686_v25 = vmul.f32 %v1287_v45, %v1287_v45 }
 0x12d   : > { %v645_v38 = vadd.f32 %v644_v37, %v1282_v39  ;;  %v713_v40 = vadd.f32 %v712_v36, %v682_v4 }
 0x12f   : > { %v714_v41 = vadd.f32 %v713_v40, %v683_v19  ;;  %v646_v42 = vadd.f32 %v1277_v35, %v645_v38 }
 0x131   : > { %v647_v43 = vadd.f32 %v646_v42, %v1292_v49  ;;  %v715_v44 = vadd.f32 %v714_v41, %v684_v15 }
 0x133   : > { %v716_v46 = vadd.f32 %v715_v44, %v685_v29  ;;  %v648_v39 = vadd.f32 %v1287_v45, %v647_v43 }
 0x135   : > { %v649_v48 = vadd.f32 %v648_v39, %v571_v59  ;;  %v717_v50 = vadd.f32 %v716_v46, %v686_v25 }
 0x137   : > { %v718_v35 = vadd.f32 %v717_v50, %v687_v47  ;;  %v650_v52 = vadd.f32 %v1297_v55, %v649_v48 }
 0x139   : > { %v651_v49 = vadd.f32 %v650_v52, %v581_v6  ;;  %v719_v54 = vadd.f32 %v718_v35, %v688_v51 }
 0x13b   : > { %v652_v57 = vadd.f32 %v959_v1, %v651_v49  ;;  %v720_v58 = vadd.f32 %v719_v54, %v689_v53 }
 0x13d   : > { %v653_v9 = vrot.slane %v652_v57, 4  ;;  %v721_v60 = vadd.f32 %v720_v58, %v690_v56 }
 0x13f   : > { %v654_v45 = vadd.f32 %v653_v9, %v652_v57  ;;  %v722_v61 = vrot.slane %v721_v60, 4 }
 0x141   : > { %v655_v59 = vrot.slane %v654_v45, 2  ;;  %v723_v62 = vadd.f32 %v722_v61, %v721_v60 }
 0x143   : > { %v656_v63 = vadd.f32 %v655_v59, %v654_v45  ;;  %v724_v2 = vrot.slane %v723_v62, 2 }
 0x145   : > { %v657_v3 = vrot.slane %v656_v63, 1  ;;  %v725_v5 = vadd.f32 %v724_v2, %v723_v62 }
 0x147   : > { %v726_v55 = vrot.slane %v725_v5, 1  ;;  %v658_v1 = vadd.f32 %v657_v3, %v656_v63 }
 0x149   : > { %v727_v6 = vadd.f32 %v726_v55, %v725_v5 }
 0x14b   : > { %v729_v8 = vsel %vm728_vm0, %v658_v1, %v727_v6 }
 0x14c   : > { %730 = vst [vmem:[%s238_s21] sm:$0x3] %v729_v8 }
 0x14d PF: > { %s16_s18 = sadd.s32 1, %s1022_s18  }
 0x14e   : > { %p13_p5 = scmp.ge.s32.totalorder %s16_s18, 4  }
 0x150   :  { %15 = sbr.rel (!%p13_p5) target bundleno = 1 (0x1), region = 78 }

// kernel: bottleneck_pallas.9
= control target key start
LH: loop header
LB: loop body
LE: loop exit
PB: predicated region body
PF: predicated region fallthrough
CT: control target
= control target key end

     0   :  { %v85_v47 = vlaneseq  ;;  %vm747_vm0 = vcmask 1040384   ;;  %s1621_s1 = inlined_call_operand.vmem [shape: f32[512,128], index: 1, kind: input, shape index: {}]   ;;  %s1622_s0 = inlined_call_operand.vmem [shape: f32[128,512], index: 0, kind: input, shape index: {}]   ;;  %s1623_s2 = inlined_call_operand.vmem [shape: f32[1,512], index: 2, kind: input, shape index: {}]   ;;  %s1624_s3 = inlined_call_operand.vmem [shape: f32[1,512], index: 3, kind: input, shape index: {}]   ;;  %s1625_s4 = inlined_call_operand.vmem [shape: f32[128,128], index: 4, kind: output, shape index: {0}]   ;;  %s1626_s5 = inlined_call_operand.vmem [shape: f32[1,2,128], index: 5, kind: output, shape index: {1}]  }
   0x1   :  { %v335_v0 = vld [vmem:[%s1621_s1 + $0x80] sm:$0xff]  ;;  %v336_v1 = vld [vmem:[%s1621_s1 + $0x88] sm:$0xff]  ;;  %v337_v11 = vld [vmem:[%s1621_s1 + $0x90] sm:$0xff] }
   0x2   :  { %v367_v2 = vld [vmem:[%s1621_s1 + $0x180] sm:$0xff]  ;;  %v918_v3 = vpack.c.bf16 %v336_v1, %v335_v0  ;;  %v368_v4 = vld [vmem:[%s1621_s1 + $0x188] sm:$0xff]  ;;  %v338_v13 = vld [vmem:[%s1621_s1 + $0x98] sm:$0xff]  ;;  %v1144_v63 = vshrl.u32 %v85_v47, 7 }
   0x3   :  { %v319_v5 = vld [vmem:[%s1621_s1] sm:$0xff]  ;;  %v320_v6 = vld [vmem:[%s1621_s1 + $0x8] sm:$0xff]  ;;  %v950_v7 = vpack.c.bf16 %v368_v4, %v367_v2  ;;  %v369_v14 = vld [vmem:[%s1621_s1 + $0x190] sm:$0xff]  ;;  %v922_v16 = vpack.c.bf16 %v338_v13, %v337_v11 }
   0x4   :  { %v920_v8 = vpack.c.bf16 %v320_v6, %v319_v5  ;;  %v351_v9 = vld [vmem:[%s1621_s1 + $0x100] sm:$0xff]  ;;  %v352_v10 = vld [vmem:[%s1621_s1 + $0x108] sm:$0xff]  ;;  %919 = vmatprep.subr.bf16.mxu0 %v918_v3  ;;  %v370_v15 = vld [vmem:[%s1621_s1 + $0x198] sm:$0xff] }
   0x5   :  { %v952_v12 = vpack.c.bf16 %v352_v10, %v351_v9  ;;  %951 = vmatprep.subr.bf16.mxu1 %v950_v7  ;;  %v954_v17 = vpack.c.bf16 %v370_v15, %v369_v14  ;;  %v321_v18 = vld [vmem:[%s1621_s1 + $0x10] sm:$0xff]  ;;  %v322_v19 = vld [vmem:[%s1621_s1 + $0x18] sm:$0xff]  ;;  %v339_v23 = vld [vmem:[%s1621_s1 + $0xa0] sm:$0xff] }
   0x6   :  { %921 = vmatpush3.bf16.msra.mxu0 %v920_v8  ;;  %v353_v20 = vld [vmem:[%s1621_s1 + $0x110] sm:$0xff]  ;;  %v924_v21 = vpack.c.bf16 %v322_v19, %v321_v18  ;;  %v354_v22 = vld [vmem:[%s1621_s1 + $0x118] sm:$0xff]  ;;  %v340_v24 = vld [vmem:[%s1621_s1 + $0xa8] sm:$0xff]  ;;  %v87_v18 = vsub.s32 0, %v1144_v63 }
   0x7   :  { %953 = vmatpush3.bf16.msra.mxu1 %v952_v12  ;;  %923 = vmatprep.subr.bf16.mxu0 %v922_v16  ;;  %v956_v25 = vpack.c.bf16 %v354_v22, %v353_v20  ;;  %v926_v26 = vpack.c.bf16 %v340_v24, %v339_v23  ;;  %v371_v27 = vld [vmem:[%s1621_s1 + $0x1a0] sm:$0xff]  ;;  %v372_v28 = vld [vmem:[%s1621_s1 + $0x1a8] sm:$0xff]  ;;  %v341_v35 = vld [vmem:[%s1621_s1 + $0xb0] sm:$0xff]  ;;  %v91_v16 = vsub.s32 1, %v1144_v63 }
   0x8   :  { %955 = vmatprep.subr.bf16.mxu1 %v954_v17  ;;  %v323_v29 = vld [vmem:[%s1621_s1 + $0x20] sm:$0xff]  ;;  %v958_v30 = vpack.c.bf16 %v372_v28, %v371_v27  ;;  %v324_v31 = vld [vmem:[%s1621_s1 + $0x28] sm:$0xff]  ;;  %v342_v36 = vld [vmem:[%s1621_s1 + $0xb8] sm:$0xff]  ;;  %v99_v17 = vsub.s32 3, %v1144_v63 }
   0x9   :  { %v355_v32 = vld [vmem:[%s1621_s1 + $0x120] sm:$0xff]  ;;  %v356_v33 = vld [vmem:[%s1621_s1 + $0x128] sm:$0xff]  ;;  %v928_v34 = vpack.c.bf16 %v324_v31, %v323_v29  ;;  %v373_v37 = vld [vmem:[%s1621_s1 + $0x1b0] sm:$0xff]  ;;  %v930_v39 = vpack.c.bf16 %v342_v36, %v341_v35 }
   0xa   :  { %925 = vmatpush3.bf16.msra.mxu0 %v924_v21  ;;  %v960_v38 = vpack.c.bf16 %v356_v33, %v355_v32  ;;  %v374_v40 = vld [vmem:[%s1621_s1 + $0x1b8] sm:$0xff]  ;;  %v325_v41 = vld [vmem:[%s1621_s1 + $0x30] sm:$0xff]  ;;  %v343_v46 = vld [vmem:[%s1621_s1 + $0xc0] sm:$0xff]  ;;  %v95_v21 = vsub.s32 2, %v1144_v63 }
   0xb   :  { %957 = vmatpush3.bf16.msra.mxu1 %v956_v25  ;;  %927 = vmatprep.subr.bf16.mxu0 %v926_v26  ;;  %v326_v42 = vld [vmem:[%s1621_s1 + $0x38] sm:$0xff]  ;;  %v962_v43 = vpack.c.bf16 %v374_v40, %v373_v37  ;;  %v357_v44 = vld [vmem:[%s1621_s1 + $0x130] sm:$0xff]  ;;  %v344_v48 = vld [vmem:[%s1621_s1 + $0xc8] sm:$0xff] }
   0xc   :  { %959 = vmatprep.subr.bf16.mxu1 %v958_v30  ;;  %v358_v45 = vld [vmem:[%s1621_s1 + $0x138] sm:$0xff]  ;;  %v375_v49 = vld [vmem:[%s1621_s1 + $0x1c0] sm:$0xff]  ;;  %v376_v50 = vld [vmem:[%s1621_s1 + $0x1c8] sm:$0xff]  ;;  %v932_v51 = vpack.c.bf16 %v326_v42, %v325_v41  ;;  %v934_v55 = vpack.c.bf16 %v344_v48, %v343_v46 }
   0xd   :  { %v327_v52 = vld [vmem:[%s1621_s1 + $0x40] sm:$0xff]  ;;  %v328_v53 = vld [vmem:[%s1621_s1 + $0x48] sm:$0xff]  ;;  %v964_v54 = vpack.c.bf16 %v358_v45, %v357_v44  ;;  %v345_v58 = vld [vmem:[%s1621_s1 + $0xd0] sm:$0xff]  ;;  %v966_v59 = vpack.c.bf16 %v376_v50, %v375_v49 }
   0xe   :  { %929 = vmatpush3.bf16.msra.mxu0 %v928_v34  ;;  %v359_v56 = vld [vmem:[%s1621_s1 + $0x140] sm:$0xff]  ;;  %v360_v57 = vld [vmem:[%s1621_s1 + $0x148] sm:$0xff]  ;;  %v346_v60 = vld [vmem:[%s1621_s1 + $0xd8] sm:$0xff]  ;;  %v936_v3 = vpack.c.bf16 %v328_v53, %v327_v52 }
   0xf   :  { %961 = vmatpush3.bf16.msra.mxu1 %v960_v38  ;;  %931 = vmatprep.subr.bf16.mxu0 %v930_v39  ;;  %v377_v61 = vld [vmem:[%s1621_s1 + $0x1d0] sm:$0xff]  ;;  %v378_v62 = vld [vmem:[%s1621_s1 + $0x1d8] sm:$0xff]  ;;  %v347_v5 = vld [vmem:[%s1621_s1 + $0xe0] sm:$0xff]  ;;  %v968_v7 = vpack.c.bf16 %v360_v57, %v359_v56  ;;  %v938_v8 = vpack.c.bf16 %v346_v60, %v345_v58 }
  0x10   :  { %963 = vmatprep.subr.bf16.mxu1 %v962_v43  ;;  %v329_v0 = vld [vmem:[%s1621_s1 + $0x50] sm:$0xff]  ;;  %v330_v1 = vld [vmem:[%s1621_s1 + $0x58] sm:$0xff]  ;;  %v348_v6 = vld [vmem:[%s1621_s1 + $0xe8] sm:$0xff]  ;;  %v970_v12 = vpack.c.bf16 %v378_v62, %v377_v61 }
  0x11   :  { %v361_v2 = vld [vmem:[%s1621_s1 + $0x150] sm:$0xff]  ;;  %v362_v4 = vld [vmem:[%s1621_s1 + $0x158] sm:$0xff]  ;;  %v379_v9 = vld [vmem:[%s1621_s1 + $0x1e0] sm:$0xff]  ;;  %v940_v22 = vpack.c.bf16 %v330_v1, %v329_v0  ;;  %v942_v24 = vpack.c.bf16 %v348_v6, %v347_v5 }
  0x12   :  { %933 = vmatpush3.bf16.msra.mxu0 %v932_v51  ;;  %v380_v10 = vld [vmem:[%s1621_s1 + $0x1e8] sm:$0xff]  ;;  %v1173_v11 = vld [vmem:[%s1621_s1 + $0x60] sm:$0xff]  ;;  %v1196_v19 = vld [vmem:[%s1621_s1 + $0xf0] sm:$0xff]  ;;  %v972_v23 = vpack.c.bf16 %v362_v4, %v361_v2 }
  0x13   :  { %965 = vmatpush3.bf16.msra.mxu1 %v964_v54  ;;  %935 = vmatprep.subr.bf16.mxu0 %v934_v55  ;;  %v1178_v13 = vld [vmem:[%s1621_s1 + $0x68] sm:$0xff]  ;;  %v1183_v14 = vld [vmem:[%s1621_s1 + $0x160] sm:$0xff]  ;;  %v1201_v20 = vld [vmem:[%s1621_s1 + $0xf8] sm:$0xff]  ;;  %v974_v25 = vpack.c.bf16 %v380_v10, %v379_v9 }
  0x14   :  { %967 = vmatprep.subr.bf16.mxu1 %v966_v59  ;;  %v1188_v15 = vld [vmem:[%s1621_s1 + $0x168] sm:$0xff]  ;;  %v944_v26 = vpack.c.bf16 %v1178_v13, %v1173_v11  ;;  %v381_v28 = vld [vmem:[%s1621_s1 + $0x1f0] sm:$0xff]  ;;  %v382_v29 = vld [vmem:[%s1621_s1 + $0x1f8] sm:$0xff]  ;;  %v946_v32 = vpack.c.bf16 %v1201_v20, %v1196_v19 }
  0x15   :  { %v976_v27 = vpack.c.bf16 %v1188_v15, %v1183_v14  ;;  %v20_v30 = vld [vmem:[%s1622_s0 + $0x8] sm:$0xff]  ;;  %v83_v31 = vld [vmem:[%s1623_s2] sm:$0xf]  ;;  %v22_v35 = vld [vmem:[%s1622_s0 + $0x18] sm:$0xff]  ;;  %v978_v57 = vpack.c.bf16 %v382_v29, %v381_v28 }
  0x16   :  { %937 = vmatpush3.bf16.msra.mxu0 %v936_v3  ;;  %v1222_v33 = vrot.slane %v83_v31, %v91_v16  ;;  %v169_v34 = vld [vmem:[%s1624_s3] sm:$0xf]  ;;  %v1230_v36 = vrot.slane %v83_v31, %v99_v17  ;;  %v1235_v38 = vrot.slane %v83_v31, %v87_v18  ;;  %v21_v42 = vld [vmem:[%s1622_s0 + $0x10] sm:$0xff]  ;;  %v1246_v43 = vrot.slane %v83_v31, %v95_v21  ;;  %v24_v44 = vld [vmem:[%s1622_s0 + $0x28] sm:$0xff] }
  0x17   :  { %969 = vmatpush3.bf16.msra.mxu1 %v968_v7  ;;  %939 = vmatprep.subr.bf16.mxu0 %v938_v8  ;;  %v19_v37 = vld [vmem:[%s1622_s0] sm:$0xff]  ;;  %v1237_v39 = vrot.slane %v169_v34, %v91_v16  ;;  %v1239_v40 = vrot.slane %v169_v34, %v99_v17  ;;  %v1241_v41 = vrot.slane %v169_v34, %v87_v18  ;;  %v26_v45 = vld [vmem:[%s1622_s0 + $0x38] sm:$0xff]  ;;  %v25_v51 = vld [vmem:[%s1622_s0 + $0x30] sm:$0xff] }
  0x18   :  { %971 = vmatprep.subr.bf16.mxu1 %v970_v12  ;;  %v106_v46 = vmul.f32 %v1222_v33, %v20_v30  ;;  %v108_v47 = vmul.f32 %v1230_v36, %v22_v35  ;;  %v105_v48 = vmul.f32 %v1235_v38, %v19_v37  ;;  %v1257_v49 = vrot.slane %v169_v34, %v95_v21  ;;  %v23_v50 = vld [vmem:[%s1622_s0 + $0x20] sm:$0xff]  ;;  %v333_v52 = vld [vmem:[%s1621_s1 + $0x70] sm:$0xff]  ;;  %v334_v53 = vld [vmem:[%s1621_s1 + $0x78] sm:$0xff] }
  0x19   :  { %v107_v54 = vmul.f32 %v1246_v43, %v21_v42  ;;  %v110_v55 = vmul.f32 %v1222_v33, %v24_v44  ;;  %v112_v56 = vmul.f32 %v1230_v36, %v26_v45  ;;  %v365_v58 = vld [vmem:[%s1621_s1 + $0x170] sm:$0xff]  ;;  %v366_v59 = vld [vmem:[%s1621_s1 + $0x178] sm:$0xff]  ;;  %v109_v0 = vmul.f32 %v1235_v38, %v23_v50  ;;  %v28_v2 = vld [vmem:[%s1622_s0 + $0x48] sm:$0xff] }
  0x1a   :  { %941 = vmatpush3.bf16.msra.mxu0 %v940_v22  ;;  %v192_v60 = vadd.f32 %v1237_v39, %v106_v46  ;;  %v194_v61 = vadd.f32 %v1239_v40, %v108_v47  ;;  %v191_v62 = vadd.f32 %v1241_v41, %v105_v48  ;;  %v111_v1 = vmul.f32 %v1246_v43, %v25_v51  ;;  %v30_v3 = vld [vmem:[%s1622_s0 + $0x58] sm:$0xff]  ;;  %v27_v8 = vld [vmem:[%s1622_s0 + $0x40] sm:$0xff]  ;;  %v29_v11 = vld [vmem:[%s1622_s0 + $0x50] sm:$0xff] }
  0x1b   :  { %973 = vmatpush3.bf16.msra.mxu1 %v972_v23  ;;  %943 = vmatprep.subr.bf16.mxu0 %v942_v24  ;;  %v193_v63 = vadd.f32 %v1257_v49, %v107_v54  ;;  %v948_v4 = vpack.c.bf16 %v334_v53, %v333_v52  ;;  %v196_v7 = vadd.f32 %v1237_v39, %v110_v55  ;;  %v32_v12 = vld [vmem:[%s1622_s0 + $0x68] sm:$0xff]  ;;  %v34_v16 = vld [vmem:[%s1622_s0 + $0x78] sm:$0xff]  ;;  %v31_v21 = vld [vmem:[%s1622_s0 + $0x60] sm:$0xff] }
  0x1c   :  { %975 = vmatprep.subr.bf16.mxu1 %v974_v25  ;;  %v256_v5 = vmax.f32 %v192_v60, 0.0  ;;  %v258_v6 = vmax.f32 %v194_v61, 0.0  ;;  %v980_v9 = vpack.c.bf16 %v366_v59, %v365_v58  ;;  %v198_v10 = vadd.f32 %v1239_v40, %v112_v56  ;;  %v36_v30 = vld [vmem:[%s1622_s0 + $0x88] sm:$0xff]  ;;  %v35_v48 = vld [vmem:[%s1622_s0 + $0x80] sm:$0xff]  ;;  %v37_v50 = vld [vmem:[%s1622_s0 + $0x90] sm:$0xff] }
  0x1d   :  { %v255_v13 = vmax.f32 %v191_v62, 0.0  ;;  %v114_v14 = vmul.f32 %v1222_v33, %v28_v2  ;;  %v116_v15 = vmul.f32 %v1230_v36, %v30_v3  ;;  %v257_v17 = vmax.f32 %v193_v63, 0.0  ;;  %v40_v54 = vld [vmem:[%s1622_s0 + $0xa8] sm:$0xff]  ;;  %v42_v56 = vld [vmem:[%s1622_s0 + $0xb8] sm:$0xff] }
  0x1e   :  { %945 = vmatpush3.bf16.msra.mxu0 %v944_v26  ;;  %447 = vmatprep.mubr.f32.mxu0 %v256_v5  ;;  %v195_v18 = vadd.f32 %v1241_v41, %v109_v0  ;;  %v197_v19 = vadd.f32 %v1257_v49, %v111_v1  ;;  %v113_v20 = vmul.f32 %v1235_v38, %v27_v8  ;;  %v260_v22 = vmax.f32 %v196_v7, 0.0  ;;  %v33_v26 = vld [vmem:[%s1622_s0 + $0x70] sm:$0xff]  ;;  %v39_v1 = vld [vmem:[%s1622_s0 + $0xa0] sm:$0xff]  ;;  %v46_v8 = vld [vmem:[%s1622_s0 + $0xd8] sm:$0xff] }
  0x1f   :  { %977 = vmatpush3.bf16.msra.mxu1 %v976_v27  ;;  %947 = vmatprep.subr.bf16.mxu0 %v946_v32  ;;  %v200_v23 = vadd.f32 %v1237_v39, %v114_v14  ;;  %v115_v24 = vmul.f32 %v1246_v43, %v29_v11  ;;  %v118_v25 = vmul.f32 %v1222_v33, %v32_v12  ;;  %v262_v27 = vmax.f32 %v198_v10, 0.0  ;;  %v38_v32 = vld [vmem:[%s1622_s0 + $0x98] sm:$0xff]  ;;  %v41_v5 = vld [vmem:[%s1622_s0 + $0xb0] sm:$0xff] }
  0x20   :  { %979 = vmatprep.subr.bf16.mxu1 %v978_v57  ;;  %592 = vmatprep.mubr.f32.mxu1 %v258_v6  ;;  %v202_v28 = vadd.f32 %v1239_v40, %v116_v15  ;;  %v120_v29 = vmul.f32 %v1230_v36, %v34_v16  ;;  %v117_v31 = vmul.f32 %v1235_v38, %v31_v21  ;;  %v259_v34 = vmax.f32 %v195_v18, 0.0  ;;  %v44_v6 = vld [vmem:[%s1622_s0 + $0xc8] sm:$0xff]  ;;  %v45_v18 = vld [vmem:[%s1622_s0 + $0xd0] sm:$0xff] }
  0x21   :  { %v261_v35 = vmax.f32 %v197_v19, 0.0  ;;  %v199_v37 = vadd.f32 %v1241_v41, %v113_v20  ;;  %v119_v42 = vmul.f32 %v1246_v43, %v33_v26  ;;  %v264_v44 = vmax.f32 %v200_v23, 0.0 }
  0x22   :  { %949 = vmatpush3.bf16.msra.mxu0 %v948_v4  ;;  %v201_v45 = vadd.f32 %v1257_v49, %v115_v24  ;;  %v204_v46 = vadd.f32 %v1237_v39, %v118_v25  ;;  %v122_v47 = vmul.f32 %v1222_v33, %v36_v30  ;;  %v266_v51 = vmax.f32 %v202_v28, 0.0  ;;  %v50_v24 = vld [vmem:[%s1622_s0 + $0xf8] sm:$0xff] }
  0x23   :  { %981 = vmatpush3.bf16.msra.mxu1 %v980_v9  ;;  %v206_v52 = vadd.f32 %v1239_v40, %v120_v29  ;;  %v124_v53 = vmul.f32 %v1230_v36, %v38_v32  ;;  %v203_v55 = vadd.f32 %v1241_v41, %v117_v31  ;;  %v263_v57 = vmax.f32 %v199_v37, 0.0 }
  0x24   :  { %v205_v58 = vadd.f32 %v1257_v49, %v119_v42  ;;  %v121_v59 = vmul.f32 %v1235_v38, %v35_v48  ;;  %v123_v60 = vmul.f32 %v1246_v43, %v37_v50  ;;  %v265_v61 = vmax.f32 %v201_v45, 0.0  ;;  %v52_v45 = vld [vmem:[%s1622_s0 + $0x108] sm:$0xff] }
  0x25   :  { %448 = vmatmul.mubr.f32.vlgmr.msra.gmra.mrb[0].mxu0 %v255_v13  ;;  %v268_v62 = vmax.f32 %v204_v46, 0.0  ;;  %v208_v63 = vadd.f32 %v1237_v39, %v122_v47  ;;  %v126_v0 = vmul.f32 %v1222_v33, %v40_v54  ;;  %v270_v2 = vmax.f32 %v206_v52, 0.0  ;;  %v43_v13 = vld [vmem:[%s1622_s0 + $0xc0] sm:$0xff]  ;;  %v54_v47 = vld [vmem:[%s1622_s0 + $0x118] sm:$0xff] }
  0x26   :  { %593 = vmatmul.mubr.f32.vlgmr.msra.gmra.mrb[0].mxu1 %v257_v17  ;;  %452 = vmatprep.mubr.f32.mxu0 %v260_v22  ;;  %v210_v3 = vadd.f32 %v1239_v40, %v124_v53  ;;  %v128_v4 = vmul.f32 %v1230_v36, %v42_v56  ;;  %v267_v7 = vmax.f32 %v203_v55, 0.0  ;;  %v269_v9 = vmax.f32 %v205_v58, 0.0  ;;  %v48_v22 = vld [vmem:[%s1622_s0 + $0xe8] sm:$0xff] }
  0x27   :  { %597 = vmatprep.mubr.f32.mxu1 %v262_v27  ;;  %v207_v10 = vadd.f32 %v1241_v41, %v121_v59  ;;  %v209_v11 = vadd.f32 %v1257_v49, %v123_v60  ;;  %v125_v12 = vmul.f32 %v1235_v38, %v39_v1  ;;  %v272_v14 = vmax.f32 %v208_v63, 0.0 }
  0x28   :  { %v212_v15 = vadd.f32 %v1237_v39, %v126_v0  ;;  %v127_v16 = vmul.f32 %v1246_v43, %v41_v5  ;;  %v130_v17 = vmul.f32 %v1222_v33, %v44_v6  ;;  %v274_v19 = vmax.f32 %v210_v3, 0.0  ;;  %v58_v0 = vld [vmem:[%s1622_s0 + $0x138] sm:$0xff]  ;;  %v55_v5 = vld [vmem:[%s1622_s0 + $0x120] sm:$0xff] }
  0x29   :  { %453 = vmatmul.mubr.f32.gmra.mrb[2].mxu0 %v259_v34  ;;  %v214_v20 = vadd.f32 %v1239_v40, %v128_v4  ;;  %v132_v21 = vmul.f32 %v1230_v36, %v46_v8  ;;  %v129_v23 = vmul.f32 %v1235_v38, %v43_v13  ;;  %v271_v25 = vmax.f32 %v207_v10, 0.0  ;;  %v47_v34 = vld [vmem:[%s1622_s0 + $0xe0] sm:$0xff]  ;;  %v57_v10 = vld [vmem:[%s1622_s0 + $0x130] sm:$0xff] }
  0x2a   :  { %598 = vmatmul.mubr.f32.gmra.mrb[2].mxu1 %v261_v35  ;;  %457 = vmatprep.mubr.f32.mxu0 %v264_v44  ;;  %v273_v26 = vmax.f32 %v209_v11, 0.0  ;;  %v211_v27 = vadd.f32 %v1241_v41, %v125_v12  ;;  %v131_v28 = vmul.f32 %v1246_v43, %v45_v18  ;;  %v276_v29 = vmax.f32 %v212_v15, 0.0  ;;  %v49_v35 = vld [vmem:[%s1622_s0 + $0xf0] sm:$0xff] }
  0x2b   :  { %602 = vmatprep.mubr.f32.mxu1 %v266_v51  ;;  %v213_v30 = vadd.f32 %v1257_v49, %v127_v16  ;;  %v216_v31 = vadd.f32 %v1237_v39, %v130_v17  ;;  %v134_v32 = vmul.f32 %v1222_v33, %v48_v22  ;;  %v278_v37 = vmax.f32 %v214_v20, 0.0  ;;  %v62_v16 = vld [vmem:[%s1622_s0 + $0x158] sm:$0xff] }
  0x2c   :  { %v218_v42 = vadd.f32 %v1239_v40, %v132_v21  ;;  %v136_v44 = vmul.f32 %v1230_v36, %v50_v24  ;;  %v215_v46 = vadd.f32 %v1241_v41, %v129_v23  ;;  %v275_v48 = vmax.f32 %v211_v27, 0.0 }
  0x2d   :  { %458 = vmatmul.mubr.f32.gmra.mrb[4].mxu0 %v263_v57  ;;  %v217_v50 = vadd.f32 %v1257_v49, %v131_v28  ;;  %v133_v51 = vmul.f32 %v1235_v38, %v47_v34  ;;  %v135_v52 = vmul.f32 %v1246_v43, %v49_v35  ;;  %v277_v53 = vmax.f32 %v213_v30, 0.0  ;;  %v51_v57 = vld [vmem:[%s1622_s0 + $0x100] sm:$0xff]  ;;  %v64_v30 = vld [vmem:[%s1622_s0 + $0x168] sm:$0xff] }
  0x2e   :  { %603 = vmatmul.mubr.f32.gmra.mrb[4].mxu1 %v265_v61  ;;  %462 = vmatprep.mubr.f32.mxu0 %v268_v62  ;;  %v280_v54 = vmax.f32 %v216_v31, 0.0  ;;  %v220_v55 = vadd.f32 %v1237_v39, %v134_v32  ;;  %v138_v56 = vmul.f32 %v1222_v33, %v52_v45  ;;  %v282_v58 = vmax.f32 %v218_v42, 0.0  ;;  %v53_v61 = vld [vmem:[%s1622_s0 + $0x110] sm:$0xff]  ;;  %v56_v62 = vld [vmem:[%s1622_s0 + $0x128] sm:$0xff]  ;;  %v66_v32 = vld [vmem:[%s1622_s0 + $0x178] sm:$0xff] }
  0x2f   :  { %607 = vmatprep.mubr.f32.mxu1 %v270_v2  ;;  %v222_v59 = vadd.f32 %v1239_v40, %v136_v44  ;;  %v140_v60 = vmul.f32 %v1230_v36, %v54_v47  ;;  %v279_v63 = vmax.f32 %v215_v46, 0.0  ;;  %v281_v1 = vmax.f32 %v217_v50, 0.0 }
  0x30   :  { %v219_v2 = vadd.f32 %v1241_v41, %v133_v51  ;;  %v221_v3 = vadd.f32 %v1257_v49, %v135_v52  ;;  %v137_v4 = vmul.f32 %v1235_v38, %v51_v57  ;;  %v284_v6 = vmax.f32 %v220_v55, 0.0 }
  0x31   :  { %463 = vmatmul.mubr.f32.gmra.mrb[6].mxu0 %v267_v7  ;;  %v224_v7 = vadd.f32 %v1237_v39, %v138_v56  ;;  %v139_v8 = vmul.f32 %v1246_v43, %v53_v61  ;;  %v286_v11 = vmax.f32 %v222_v59, 0.0  ;;  %v226_v12 = vadd.f32 %v1239_v40, %v140_v60  ;;  %v70_v56 = vld [vmem:[%s1622_s0 + $0x198] sm:$0xff]  ;;  %v67_v61 = vld [vmem:[%s1622_s0 + $0x180] sm:$0xff] }
  0x32   :  { %608 = vmatmul.mubr.f32.gmra.mrb[6].mxu1 %v269_v9  ;;  %467 = vmatprep.mubr.f32.mxu0 %v272_v14  ;;  %v142_v9 = vmul.f32 %v1222_v33, %v56_v62  ;;  %v144_v13 = vmul.f32 %v1230_v36, %v58_v0  ;;  %v60_v14 = vld [vmem:[%s1622_s0 + $0x148] sm:$0xff]  ;;  %v141_v15 = vmul.f32 %v1235_v38, %v55_v5  ;;  %v283_v17 = vmax.f32 %v219_v2, 0.0  ;;  %v69_v2 = vld [vmem:[%s1622_s0 + $0x190] sm:$0xff] }
  0x33   :  { %612 = vmatprep.mubr.f32.mxu1 %v274_v19  ;;  %v285_v18 = vmax.f32 %v221_v3, 0.0  ;;  %v223_v19 = vadd.f32 %v1241_v41, %v137_v4  ;;  %v143_v20 = vmul.f32 %v1246_v43, %v57_v10  ;;  %v288_v21 = vmax.f32 %v224_v7, 0.0 }
  0x34   :  { %v225_v22 = vadd.f32 %v1257_v49, %v139_v8  ;;  %v228_v23 = vadd.f32 %v1237_v39, %v142_v9  ;;  %v146_v24 = vmul.f32 %v1222_v33, %v60_v14  ;;  %v290_v27 = vmax.f32 %v226_v12, 0.0  ;;  %v74_v8 = vld [vmem:[%s1622_s0 + $0x1b8] sm:$0xff] }
  0x35   :  { %468 = vmatmul.mubr.f32.gmra.mrb[8].mxu0 %v271_v25  ;;  %v59_v25 = vld [vmem:[%s1622_s0 + $0x140] sm:$0xff]  ;;  %v230_v28 = vadd.f32 %v1239_v40, %v144_v13  ;;  %v227_v31 = vadd.f32 %v1241_v41, %v141_v15  ;;  %v287_v34 = vmax.f32 %v223_v19, 0.0  ;;  %v229_v35 = vadd.f32 %v1257_v49, %v143_v20 }
  0x36   :  { %613 = vmatmul.mubr.f32.gmra.mrb[8].mxu1 %v273_v26  ;;  %472 = vmatprep.mubr.f32.mxu0 %v276_v29  ;;  %v61_v26 = vld [vmem:[%s1622_s0 + $0x150] sm:$0xff]  ;;  %v148_v29 = vmul.f32 %v1230_v36, %v62_v16  ;;  %v289_v44 = vmax.f32 %v225_v22, 0.0  ;;  %v292_v45 = vmax.f32 %v228_v23, 0.0  ;;  %v232_v46 = vadd.f32 %v1237_v39, %v146_v24  ;;  %v76_v22 = vld [vmem:[%s1622_s0 + $0x1c8] sm:$0xff]  ;;  %v78_v24 = vld [vmem:[%s1622_s0 + $0x1d8] sm:$0xff] }
  0x37   :  { %617 = vmatprep.mubr.f32.mxu1 %v278_v37  ;;  %v145_v37 = vmul.f32 %v1235_v38, %v59_v25  ;;  %v147_v42 = vmul.f32 %v1246_v43, %v61_v26  ;;  %v150_v47 = vmul.f32 %v1222_v33, %v64_v30  ;;  %v294_v50 = vmax.f32 %v230_v28, 0.0 }
  0x38   :  { %v234_v51 = vadd.f32 %v1239_v40, %v148_v29  ;;  %v152_v52 = vmul.f32 %v1230_v36, %v66_v32  ;;  %v291_v55 = vmax.f32 %v227_v31, 0.0  ;;  %v293_v57 = vmax.f32 %v229_v35, 0.0 }
  0x39   :  { %473 = vmatmul.mubr.f32.gmra.mrb[10].mxu0 %v275_v48  ;;  %v63_v48 = vld [vmem:[%s1622_s0 + $0x160] sm:$0xff]  ;;  %v233_v59 = vadd.f32 %v1257_v49, %v147_v42  ;;  %v296_v62 = vmax.f32 %v232_v46, 0.0  ;;  %v156_v5 = vmul.f32 %v1230_v36, %v70_v56  ;;  %v153_v7 = vmul.f32 %v1235_v38, %v67_v61  ;;  %v81_v61 = vld [vmem:[%s1622_s0 + $0x1f0] sm:$0xff] }
  0x3a   :  { %618 = vmatmul.mubr.f32.gmra.mrb[10].mxu1 %v277_v53  ;;  %477 = vmatprep.mubr.f32.mxu0 %v280_v54  ;;  %v65_v53 = vld [vmem:[%s1622_s0 + $0x170] sm:$0xff]  ;;  %v68_v54 = vld [vmem:[%s1622_s0 + $0x188] sm:$0xff]  ;;  %v149_v60 = vmul.f32 %v1235_v38, %v63_v48  ;;  %v298_v3 = vmax.f32 %v234_v51, 0.0  ;;  %v238_v4 = vadd.f32 %v1239_v40, %v152_v52  ;;  %v155_v12 = vmul.f32 %v1246_v43, %v69_v2 }
  0x3b   :  { %622 = vmatprep.mubr.f32.mxu1 %v282_v58  ;;  %v231_v58 = vadd.f32 %v1241_v41, %v145_v37  ;;  %v151_v0 = vmul.f32 %v1246_v43, %v65_v53  ;;  %v297_v10 = vmax.f32 %v233_v59, 0.0  ;;  %v242_v20 = vadd.f32 %v1239_v40, %v156_v5 }
  0x3c   :  { %v302_v19 = vmax.f32 %v238_v4, 0.0  ;;  %v239_v23 = vadd.f32 %v1241_v41, %v153_v7  ;;  %v241_v26 = vadd.f32 %v1257_v49, %v155_v12  ;;  %v162_v32 = vmul.f32 %v1222_v33, %v76_v22 }
  0x3d   :  { %478 = vmatmul.mubr.f32.gmra.mrb[12].mxu0 %v279_v63  ;;  %v236_v63 = vadd.f32 %v1237_v39, %v150_v47  ;;  %v295_v9 = vmax.f32 %v231_v58, 0.0  ;;  %v237_v14 = vadd.f32 %v1257_v49, %v151_v0  ;;  %v306_v35 = vmax.f32 %v242_v20, 0.0  ;;  %v82_v47 = vld [vmem:[%s1622_s0 + $0x1f8] sm:$0xff] }
  0x3e   :  { %623 = vmatmul.mubr.f32.gmra.mrb[12].mxu1 %v281_v1  ;;  %482 = vmatprep.mubr.f32.mxu0 %v284_v6  ;;  %v154_v1 = vmul.f32 %v1222_v33, %v68_v54  ;;  %v72_v6 = vld [vmem:[%s1622_s0 + $0x1a8] sm:$0xff]  ;;  %v164_v42 = vmul.f32 %v1230_v36, %v78_v24  ;;  %v303_v46 = vmax.f32 %v239_v23, 0.0  ;;  %v305_v48 = vmax.f32 %v241_v26, 0.0 }
  0x3f   :  { %627 = vmatprep.mubr.f32.mxu1 %v286_v11  ;;  %v235_v11 = vadd.f32 %v1241_v41, %v149_v60  ;;  %v300_v13 = vmax.f32 %v236_v63, 0.0  ;;  %v158_v16 = vmul.f32 %v1222_v33, %v72_v6  ;;  %v301_v29 = vmax.f32 %v237_v14, 0.0 }
  0x40   :  { %v240_v15 = vadd.f32 %v1237_v39, %v154_v1  ;;  %v248_v54 = vadd.f32 %v1237_v39, %v162_v32  ;;  %v250_v59 = vadd.f32 %v1239_v40, %v164_v42  ;;  %v168_v60 = vmul.f32 %v1230_v36, %v82_v47 }
  0x41   :  { %483 = vmatmul.mubr.f32.gmra.mrb[14].mxu0 %v283_v17  ;;  %v71_v17 = vld [vmem:[%s1622_s0 + $0x1a0] sm:$0xff]  ;;  %v299_v25 = vmax.f32 %v235_v11, 0.0  ;;  %v244_v31 = vadd.f32 %v1237_v39, %v158_v16 }
  0x42   :  { %628 = vmatmul.mubr.f32.gmra.mrb[14].mxu1 %v285_v18  ;;  %487 = vmatprep.mubr.f32.mxu0 %v288_v21  ;;  %v73_v18 = vld [vmem:[%s1622_s0 + $0x1b0] sm:$0xff]  ;;  %v160_v21 = vmul.f32 %v1230_v36, %v74_v8  ;;  %v304_v30 = vmax.f32 %v240_v15, 0.0  ;;  %v312_v1 = vmax.f32 %v248_v54, 0.0  ;;  %v167_v36 = vmul.f32 %v1246_v43, %v81_v61 }
  0x43   :  { %632 = vmatprep.mubr.f32.mxu1 %v290_v27  ;;  %v157_v27 = vmul.f32 %v1235_v38, %v71_v17  ;;  %v159_v28 = vmul.f32 %v1246_v43, %v73_v18  ;;  %v308_v53 = vmax.f32 %v244_v31, 0.0  ;;  %v314_v4 = vmax.f32 %v250_v59, 0.0 }
  0x44   :  { %v246_v37 = vadd.f32 %v1239_v40, %v160_v21  ;;  %v254_v5 = vadd.f32 %v1239_v40, %v168_v60 }
  0x45   :  { %488 = vmatmul.mubr.f32.gmra.mrb[16].mxu0 %v287_v34  ;;  %v75_v34 = vld [vmem:[%s1622_s0 + $0x1c0] sm:$0xff]  ;;  %v245_v51 = vadd.f32 %v1257_v49, %v159_v28 }
  0x46   :  { %633 = vmatmul.mubr.f32.gmra.mrb[16].mxu1 %v289_v44  ;;  %492 = vmatprep.mubr.f32.mxu0 %v292_v45  ;;  %v77_v44 = vld [vmem:[%s1622_s0 + $0x1d0] sm:$0xff]  ;;  %v80_v45 = vld [vmem:[%s1622_s0 + $0x1e8] sm:$0xff]  ;;  %v161_v52 = vmul.f32 %v1235_v38, %v75_v34  ;;  %v310_v58 = vmax.f32 %v246_v37, 0.0 }
  0x47   :  { %637 = vmatprep.mubr.f32.mxu1 %v294_v50  ;;  %v243_v50 = vadd.f32 %v1241_v41, %v157_v27  ;;  %v166_v56 = vmul.f32 %v1222_v33, %v80_v45  ;;  %v309_v63 = vmax.f32 %v245_v51, 0.0 }
  0x48   :  { %v247_v0 = vadd.f32 %v1241_v41, %v161_v52 }
  0x49   :  { %493 = vmatmul.mubr.f32.gmra.mrb[18].mxu0 %v291_v55  ;;  %v163_v55 = vmul.f32 %v1246_v43, %v77_v44 }
  0x4a   :  { %638 = vmatmul.mubr.f32.gmra.mrb[18].mxu1 %v293_v57  ;;  %497 = vmatprep.mubr.f32.mxu0 %v296_v62  ;;  %v79_v57 = vld [vmem:[%s1622_s0 + $0x1e0] sm:$0xff]  ;;  %v307_v62 = vmax.f32 %v243_v50, 0.0  ;;  %v311_v6 = vmax.f32 %v247_v0, 0.0 }
  0x4b   :  { %642 = vmatprep.mubr.f32.mxu1 %v298_v3  ;;  %v165_v33 = vmul.f32 %v1235_v38, %v79_v57  ;;  %v249_v2 = vadd.f32 %v1257_v49, %v163_v55  ;;  %v252_v3 = vadd.f32 %v1237_v39, %v166_v56 }
  0x4d   :  { %498 = vmatmul.mubr.f32.gmra.mrb[20].mxu0 %v295_v9  ;;  %v251_v7 = vadd.f32 %v1241_v41, %v165_v33  ;;  %v313_v38 = vmax.f32 %v249_v2, 0.0  ;;  %v316_v8 = vmax.f32 %v252_v3, 0.0  ;;  %v253_v9 = vadd.f32 %v1257_v49, %v167_v36 }
  0x4e   :  { %643 = vmatmul.mubr.f32.gmra.mrb[20].mxu1 %v297_v10  ;;  %502 = vmatprep.mubr.f32.mxu0 %v300_v13  ;;  %v318_v10 = vmax.f32 %v254_v5, 0.0 }
  0x4f   :  { %647 = vmatprep.mubr.f32.mxu1 %v302_v19  ;;  %v315_v39 = vmax.f32 %v251_v7, 0.0  ;;  %v317_v43 = vmax.f32 %v253_v9, 0.0 }
  0x51   :  { %503 = vmatmul.mubr.f32.gmra.mrb[22].mxu0 %v299_v25 }
  0x52   :  { %648 = vmatmul.mubr.f32.gmra.mrb[22].mxu1 %v301_v29  ;;  %507 = vmatprep.mubr.f32.mxu0 %v304_v30 }
  0x53   :  { %652 = vmatprep.mubr.f32.mxu1 %v306_v35 }
  0x55   :  { %508 = vmatmul.mubr.f32.gmra.mrb[24].mxu0 %v303_v46 }
  0x56   :  { %653 = vmatmul.mubr.f32.gmra.mrb[24].mxu1 %v305_v48  ;;  %512 = vmatprep.mubr.f32.mxu0 %v308_v53 }
  0x57   :  { %657 = vmatprep.mubr.f32.mxu1 %v310_v58 }
  0x59   :  { %513 = vmatmul.mubr.f32.gmra.mrb[26].mxu0 %v307_v62 }
  0x5a   :  { %658 = vmatmul.mubr.f32.gmra.mrb[26].mxu1 %v309_v63  ;;  %517 = vmatprep.mubr.f32.mxu0 %v312_v1 }
  0x5b   :  { %662 = vmatprep.mubr.f32.mxu1 %v314_v4 }
  0x5d   :  { %518 = vmatmul.mubr.f32.gmra.mrb[28].mxu0 %v311_v6 }
  0x5e   :  { %663 = vmatmul.mubr.f32.gmra.mrb[28].mxu1 %v313_v38  ;;  %522 = vmatprep.mubr.f32.mxu0 %v316_v8 }
  0x5f   :  { %667 = vmatprep.mubr.f32.mxu1 %v318_v10 }
  0x61   :  { %523 = vmatmul.mubr.f32.gmra.mrb[30].mxu0 %v315_v39 }
  0x62   :  { %668 = vmatmul.mubr.f32.gmra.mrb[30].mxu1 %v317_v43 }
  0xf8   :  { %v790_v40 = vpop.f32.mrb[0].mxu0 }
  0xf9   :  { %v870_v11 = vpop.f32.mrb[0].mxu1  ;;  %v791_v12 = vpop.f32.mrb[1].mxu0 }
  0xfa   :  { %v792_v41 = vadd.f32 %v791_v12, %v790_v40  ;;  %v871_v13 = vpop.f32.mrb[1].mxu1 }
  0xfb   :  { %v872_v14 = vadd.f32 %v871_v13, %v870_v11 }
  0xfc   :  { %v793_v15 = vpop.f32.mrb[2].mxu0 }
  0xfd   :  { %v595_v16 = vadd.f32 %v872_v14, %v792_v41  ;;  %v873_v17 = vpop.f32.mrb[2].mxu1  ;;  %v794_v49 = vpop.f32.mrb[3].mxu0 }
  0xfe   :  { %v795_v18 = vadd.f32 %v794_v49, %v793_v15  ;;  %v874_v19 = vpop.f32.mrb[3].mxu1 }
  0xff   :  { %673 = vst [vmem:[%s1625_s4] sm:$0xff] %v595_v16  ;;  %v875_v20 = vadd.f32 %v874_v19, %v873_v17  ;;  %v710_v27 = vmul.f32 %v595_v16, %v595_v16 }
 0x100   :  { %v796_v21 = vpop.f32.mrb[4].mxu0 }
 0x101   :  { %v600_v22 = vadd.f32 %v875_v20, %v795_v18  ;;  %v876_v23 = vpop.f32.mrb[4].mxu1  ;;  %v797_v24 = vpop.f32.mrb[5].mxu0 }
 0x102   :  { %v798_v25 = vadd.f32 %v797_v24, %v796_v21  ;;  %v877_v26 = vpop.f32.mrb[5].mxu1 }
 0x103   :  { %674 = vst [vmem:[%s1625_s4 + $0x8] sm:$0xff] %v600_v22  ;;  %v689_v28 = vadd.f32 %v600_v22, %v595_v16  ;;  %v711_v29 = vmul.f32 %v600_v22, %v600_v22  ;;  %v878_v30 = vadd.f32 %v877_v26, %v876_v23 }
 0x104   :  { %v799_v31 = vpop.f32.mrb[6].mxu0 }
 0x105   :  { %v726_v32 = vadd.f32 %v711_v29, %v710_v27  ;;  %v605_v34 = vadd.f32 %v878_v30, %v798_v25  ;;  %v879_v35 = vpop.f32.mrb[6].mxu1  ;;  %v800_v37 = vpop.f32.mrb[7].mxu0 }
 0x106   :  { %v801_v42 = vadd.f32 %v800_v37, %v799_v31  ;;  %v880_v44 = vpop.f32.mrb[7].mxu1 }
 0x107   :  { %675 = vst [vmem:[%s1625_s4 + $0x10] sm:$0xff] %v605_v34  ;;  %v690_v45 = vadd.f32 %v689_v28, %v605_v34  ;;  %v712_v46 = vmul.f32 %v605_v34, %v605_v34  ;;  %v881_v47 = vadd.f32 %v880_v44, %v879_v35 }
 0x108   :  { %v802_v48 = vpop.f32.mrb[8].mxu0 }
 0x109   :  { %v727_v50 = vadd.f32 %v726_v32, %v712_v46  ;;  %v610_v51 = vadd.f32 %v881_v47, %v801_v42  ;;  %v882_v52 = vpop.f32.mrb[8].mxu1  ;;  %v803_v53 = vpop.f32.mrb[9].mxu0 }
 0x10a   :  { %v804_v54 = vadd.f32 %v803_v53, %v802_v48  ;;  %v883_v55 = vpop.f32.mrb[9].mxu1 }
 0x10b   :  { %676 = vst [vmem:[%s1625_s4 + $0x18] sm:$0xff] %v610_v51  ;;  %v691_v56 = vadd.f32 %v690_v45, %v610_v51  ;;  %v713_v57 = vmul.f32 %v610_v51, %v610_v51  ;;  %v884_v58 = vadd.f32 %v883_v55, %v882_v52 }
 0x10c   :  { %v805_v59 = vpop.f32.mrb[10].mxu0 }
 0x10d   :  { %v728_v60 = vadd.f32 %v727_v50, %v713_v57  ;;  %v615_v61 = vadd.f32 %v884_v58, %v804_v54  ;;  %v885_v62 = vpop.f32.mrb[10].mxu1  ;;  %v806_v63 = vpop.f32.mrb[11].mxu0 }
 0x10e   :  { %v807_v0 = vadd.f32 %v806_v63, %v805_v59  ;;  %v886_v33 = vpop.f32.mrb[11].mxu1 }
 0x10f   :  { %677 = vst [vmem:[%s1625_s4 + $0x20] sm:$0xff] %v615_v61  ;;  %v692_v1 = vadd.f32 %v691_v56, %v615_v61  ;;  %v714_v2 = vmul.f32 %v615_v61, %v615_v61  ;;  %v887_v3 = vadd.f32 %v886_v33, %v885_v62 }
 0x110   :  { %v808_v36 = vpop.f32.mrb[12].mxu0 }
 0x111   :  { %v729_v4 = vadd.f32 %v728_v60, %v714_v2  ;;  %v620_v5 = vadd.f32 %v887_v3, %v807_v0  ;;  %v888_v6 = vpop.f32.mrb[12].mxu1  ;;  %v809_v7 = vpop.f32.mrb[13].mxu0 }
 0x112   :  { %v810_v38 = vadd.f32 %v809_v7, %v808_v36  ;;  %v889_v8 = vpop.f32.mrb[13].mxu1 }
 0x113   :  { %678 = vst [vmem:[%s1625_s4 + $0x28] sm:$0xff] %v620_v5  ;;  %v693_v9 = vadd.f32 %v692_v1, %v620_v5  ;;  %v715_v10 = vmul.f32 %v620_v5, %v620_v5  ;;  %v890_v39 = vadd.f32 %v889_v8, %v888_v6 }
 0x114   :  { %v811_v43 = vpop.f32.mrb[14].mxu0 }
 0x115   :  { %v730_v40 = vadd.f32 %v729_v4, %v715_v10  ;;  %v625_v11 = vadd.f32 %v890_v39, %v810_v38  ;;  %v891_v12 = vpop.f32.mrb[14].mxu1  ;;  %v812_v41 = vpop.f32.mrb[15].mxu0 }
 0x116   :  { %v813_v13 = vadd.f32 %v812_v41, %v811_v43  ;;  %v892_v14 = vpop.f32.mrb[15].mxu1 }
 0x117   :  { %679 = vst [vmem:[%s1625_s4 + $0x30] sm:$0xff] %v625_v11  ;;  %v694_v15 = vadd.f32 %v693_v9, %v625_v11  ;;  %v716_v16 = vmul.f32 %v625_v11, %v625_v11  ;;  %v893_v17 = vadd.f32 %v892_v14, %v891_v12 }
 0x118   :  { %v814_v49 = vpop.f32.mrb[16].mxu0 }
 0x119   :  { %v731_v18 = vadd.f32 %v730_v40, %v716_v16  ;;  %v630_v19 = vadd.f32 %v893_v17, %v813_v13  ;;  %v894_v20 = vpop.f32.mrb[16].mxu1  ;;  %v815_v21 = vpop.f32.mrb[17].mxu0 }
 0x11a   :  { %v816_v22 = vadd.f32 %v815_v21, %v814_v49  ;;  %v895_v23 = vpop.f32.mrb[17].mxu1 }
 0x11b   :  { %680 = vst [vmem:[%s1625_s4 + $0x38] sm:$0xff] %v630_v19  ;;  %v695_v24 = vadd.f32 %v694_v15, %v630_v19  ;;  %v717_v25 = vmul.f32 %v630_v19, %v630_v19  ;;  %v896_v26 = vadd.f32 %v895_v23, %v894_v20 }
 0x11c   :  { %v817_v27 = vpop.f32.mrb[18].mxu0 }
 0x11d   :  { %v732_v28 = vadd.f32 %v731_v18, %v717_v25  ;;  %v635_v29 = vadd.f32 %v896_v26, %v816_v22  ;;  %v897_v30 = vpop.f32.mrb[18].mxu1  ;;  %v818_v31 = vpop.f32.mrb[19].mxu0 }
 0x11e   :  { %v819_v32 = vadd.f32 %v818_v31, %v817_v27  ;;  %v898_v34 = vpop.f32.mrb[19].mxu1 }
 0x11f   :  { %681 = vst [vmem:[%s1625_s4 + $0x40] sm:$0xff] %v635_v29  ;;  %v696_v35 = vadd.f32 %v695_v24, %v635_v29  ;;  %v718_v37 = vmul.f32 %v635_v29, %v635_v29  ;;  %v899_v42 = vadd.f32 %v898_v34, %v897_v30 }
 0x120   :  { %v820_v44 = vpop.f32.mrb[20].mxu0 }
 0x121   :  { %v733_v45 = vadd.f32 %v732_v28, %v718_v37  ;;  %v640_v46 = vadd.f32 %v899_v42, %v819_v32  ;;  %v900_v47 = vpop.f32.mrb[20].mxu1  ;;  %v821_v48 = vpop.f32.mrb[21].mxu0 }
 0x122   :  { %v822_v50 = vadd.f32 %v821_v48, %v820_v44  ;;  %v901_v51 = vpop.f32.mrb[21].mxu1 }
 0x123   :  { %682 = vst [vmem:[%s1625_s4 + $0x48] sm:$0xff] %v640_v46  ;;  %v697_v52 = vadd.f32 %v696_v35, %v640_v46  ;;  %v719_v53 = vmul.f32 %v640_v46, %v640_v46  ;;  %v902_v54 = vadd.f32 %v901_v51, %v900_v47 }
 0x124   :  { %v823_v55 = vpop.f32.mrb[22].mxu0 }
 0x125   :  { %v734_v56 = vadd.f32 %v733_v45, %v719_v53  ;;  %v645_v57 = vadd.f32 %v902_v54, %v822_v50  ;;  %v903_v58 = vpop.f32.mrb[22].mxu1  ;;  %v824_v59 = vpop.f32.mrb[23].mxu0 }
 0x126   :  { %v825_v60 = vadd.f32 %v824_v59, %v823_v55  ;;  %v904_v61 = vpop.f32.mrb[23].mxu1 }
 0x127   :  { %683 = vst [vmem:[%s1625_s4 + $0x50] sm:$0xff] %v645_v57  ;;  %v698_v62 = vadd.f32 %v697_v52, %v645_v57  ;;  %v720_v63 = vmul.f32 %v645_v57, %v645_v57  ;;  %v905_v0 = vadd.f32 %v904_v61, %v903_v58 }
 0x128   :  { %v826_v33 = vpop.f32.mrb[24].mxu0 }
 0x129   :  { %v735_v1 = vadd.f32 %v734_v56, %v720_v63  ;;  %v650_v2 = vadd.f32 %v905_v0, %v825_v60  ;;  %v906_v3 = vpop.f32.mrb[24].mxu1  ;;  %v827_v36 = vpop.f32.mrb[25].mxu0 }
 0x12a   :  { %v828_v4 = vadd.f32 %v827_v36, %v826_v33  ;;  %v907_v5 = vpop.f32.mrb[25].mxu1 }
 0x12b   :  { %684 = vst [vmem:[%s1625_s4 + $0x58] sm:$0xff] %v650_v2  ;;  %v699_v6 = vadd.f32 %v698_v62, %v650_v2  ;;  %v721_v7 = vmul.f32 %v650_v2, %v650_v2  ;;  %v908_v38 = vadd.f32 %v907_v5, %v906_v3 }
 0x12c   :  { %v829_v8 = vpop.f32.mrb[26].mxu0 }
 0x12d   :  { %v736_v9 = vadd.f32 %v735_v1, %v721_v7  ;;  %v655_v10 = vadd.f32 %v908_v38, %v828_v4  ;;  %v909_v39 = vpop.f32.mrb[26].mxu1  ;;  %v830_v43 = vpop.f32.mrb[27].mxu0 }
 0x12e   :  { %v831_v40 = vadd.f32 %v830_v43, %v829_v8  ;;  %v910_v11 = vpop.f32.mrb[27].mxu1 }
 0x12f   :  { %685 = vst [vmem:[%s1625_s4 + $0x60] sm:$0xff] %v655_v10  ;;  %v700_v12 = vadd.f32 %v699_v6, %v655_v10  ;;  %v722_v41 = vmul.f32 %v655_v10, %v655_v10  ;;  %v911_v13 = vadd.f32 %v910_v11, %v909_v39 }
 0x130   :  { %v832_v14 = vpop.f32.mrb[28].mxu0 }
 0x131   :  { %v737_v15 = vadd.f32 %v736_v9, %v722_v41  ;;  %v660_v16 = vadd.f32 %v911_v13, %v831_v40  ;;  %v912_v17 = vpop.f32.mrb[28].mxu1  ;;  %v833_v49 = vpop.f32.mrb[29].mxu0 }
 0x132   :  { %v834_v18 = vadd.f32 %v833_v49, %v832_v14  ;;  %v913_v19 = vpop.f32.mrb[29].mxu1 }
 0x133   :  { %686 = vst [vmem:[%s1625_s4 + $0x68] sm:$0xff] %v660_v16  ;;  %v701_v20 = vadd.f32 %v700_v12, %v660_v16  ;;  %v723_v21 = vmul.f32 %v660_v16, %v660_v16  ;;  %v914_v22 = vadd.f32 %v913_v19, %v912_v17 }
 0x134   :  { %v835_v23 = vpop.f32.mrb[30].mxu0 }
 0x135   :  { %v738_v24 = vadd.f32 %v737_v15, %v723_v21  ;;  %v665_v25 = vadd.f32 %v914_v22, %v834_v18  ;;  %v915_v26 = vpop.f32.mrb[30].mxu1  ;;  %v836_v27 = vpop.f32.mrb[31].mxu0 }
 0x136   :  { %v837_v28 = vadd.f32 %v836_v27, %v835_v23  ;;  %v916_v29 = vpop.f32.mrb[31].mxu1 }
 0x137   :  { %687 = vst [vmem:[%s1625_s4 + $0x70] sm:$0xff] %v665_v25  ;;  %v702_v30 = vadd.f32 %v701_v20, %v665_v25  ;;  %v724_v31 = vmul.f32 %v665_v25, %v665_v25  ;;  %v917_v32 = vadd.f32 %v916_v29, %v915_v26 }
 0x139   :  { %v739_v34 = vadd.f32 %v738_v24, %v724_v31  ;;  %v670_v35 = vadd.f32 %v917_v32, %v837_v28 }
 0x13b   :  { %688 = vst [vmem:[%s1625_s4 + $0x78] sm:$0xff] %v670_v35  ;;  %v703_v37 = vadd.f32 %v702_v30, %v670_v35  ;;  %v725_v42 = vmul.f32 %v670_v35, %v670_v35 }
 0x13d   :  { %v704_v44 = vrot.slane %v703_v37, 4  ;;  %v740_v45 = vadd.f32 %v739_v34, %v725_v42 }
 0x13f   :  { %v705_v46 = vadd.f32 %v704_v44, %v703_v37  ;;  %v741_v47 = vrot.slane %v740_v45, 4 }
 0x141   :  { %v706_v48 = vrot.slane %v705_v46, 2  ;;  %v742_v50 = vadd.f32 %v741_v47, %v740_v45 }
 0x143   :  { %v707_v51 = vadd.f32 %v706_v48, %v705_v46  ;;  %v743_v52 = vrot.slane %v742_v50, 2 }
 0x145   :  { %v708_v53 = vrot.slane %v707_v51, 1  ;;  %v744_v54 = vadd.f32 %v743_v52, %v742_v50 }
 0x147   :  { %v745_v55 = vrot.slane %v744_v54, 1  ;;  %v709_v56 = vadd.f32 %v708_v53, %v707_v51 }
 0x149   :  { %v746_v57 = vadd.f32 %v745_v55, %v744_v54 }
 0x14b   :  { %v748_v58 = vsel %vm747_vm0, %v709_v56, %v746_v57 }
 0x14c   :  { %749 = vst [vmem:[%s1626_s5] sm:$0x3] %v748_v58 }

// kernel: bottleneck_pallas.10
= control target key start
LH: loop header
LB: loop body
LE: loop exit
PB: predicated region body
PF: predicated region fallthrough
CT: control target
= control target key end

     0   :  { %v85_v47 = vlaneseq  ;;  %vm683_vm0 = vcmask 1040384   ;;  %s1545_s1 = inlined_call_operand.vmem [shape: f32[512,128], index: 1, kind: input, shape index: {}]   ;;  %s1546_s0 = inlined_call_operand.vmem [shape: f32[128,512], index: 0, kind: input, shape index: {}]   ;;  %s1547_s2 = inlined_call_operand.vmem [shape: f32[1,512], index: 2, kind: input, shape index: {}]   ;;  %s1548_s3 = inlined_call_operand.vmem [shape: f32[1,512], index: 3, kind: input, shape index: {}]   ;;  %s1549_s4 = inlined_call_operand.vmem [shape: f32[128,128], index: 4, kind: output, shape index: {0}]   ;;  %s1550_s5 = inlined_call_operand.vmem [shape: f32[1,2,128], index: 5, kind: output, shape index: {1}]  }
   0x1   :  { %v271_v0 = vld [vmem:[%s1545_s1 + $0x80] sm:$0xff]  ;;  %v272_v1 = vld [vmem:[%s1545_s1 + $0x88] sm:$0xff]  ;;  %v273_v11 = vld [vmem:[%s1545_s1 + $0x90] sm:$0xff] }
   0x2   :  { %v303_v2 = vld [vmem:[%s1545_s1 + $0x180] sm:$0xff]  ;;  %v854_v3 = vpack.c.bf16 %v272_v1, %v271_v0  ;;  %v304_v4 = vld [vmem:[%s1545_s1 + $0x188] sm:$0xff]  ;;  %v274_v13 = vld [vmem:[%s1545_s1 + $0x98] sm:$0xff]  ;;  %v1074_v61 = vshrl.u32 %v85_v47, 7 }
   0x3   :  { %v255_v5 = vld [vmem:[%s1545_s1] sm:$0xff]  ;;  %v256_v6 = vld [vmem:[%s1545_s1 + $0x8] sm:$0xff]  ;;  %v886_v7 = vpack.c.bf16 %v304_v4, %v303_v2  ;;  %v305_v14 = vld [vmem:[%s1545_s1 + $0x190] sm:$0xff]  ;;  %v858_v16 = vpack.c.bf16 %v274_v13, %v273_v11 }
   0x4   :  { %v856_v8 = vpack.c.bf16 %v256_v6, %v255_v5  ;;  %v287_v9 = vld [vmem:[%s1545_s1 + $0x100] sm:$0xff]  ;;  %v288_v10 = vld [vmem:[%s1545_s1 + $0x108] sm:$0xff]  ;;  %855 = vmatprep.subr.bf16.mxu0 %v854_v3  ;;  %v306_v15 = vld [vmem:[%s1545_s1 + $0x198] sm:$0xff]  ;;  %v99_v11 = vsub.s32 3, %v1074_v61 }
   0x5   :  { %v888_v12 = vpack.c.bf16 %v288_v10, %v287_v9  ;;  %887 = vmatprep.subr.bf16.mxu1 %v886_v7  ;;  %v890_v17 = vpack.c.bf16 %v306_v15, %v305_v14  ;;  %v257_v18 = vld [vmem:[%s1545_s1 + $0x10] sm:$0xff]  ;;  %v258_v19 = vld [vmem:[%s1545_s1 + $0x18] sm:$0xff]  ;;  %v275_v23 = vld [vmem:[%s1545_s1 + $0xa0] sm:$0xff]  ;;  %v91_v10 = vsub.s32 1, %v1074_v61  ;;  %v87_v15 = vsub.s32 0, %v1074_v61 }
   0x6   :  { %857 = vmatpush3.bf16.msra.mxu0 %v856_v8  ;;  %v289_v20 = vld [vmem:[%s1545_s1 + $0x110] sm:$0xff]  ;;  %v860_v21 = vpack.c.bf16 %v258_v19, %v257_v18  ;;  %v290_v22 = vld [vmem:[%s1545_s1 + $0x118] sm:$0xff]  ;;  %v276_v24 = vld [vmem:[%s1545_s1 + $0xa8] sm:$0xff] }
   0x7   :  { %889 = vmatpush3.bf16.msra.mxu1 %v888_v12  ;;  %859 = vmatprep.subr.bf16.mxu0 %v858_v16  ;;  %v892_v25 = vpack.c.bf16 %v290_v22, %v289_v20  ;;  %v862_v26 = vpack.c.bf16 %v276_v24, %v275_v23  ;;  %v307_v27 = vld [vmem:[%s1545_s1 + $0x1a0] sm:$0xff]  ;;  %v308_v28 = vld [vmem:[%s1545_s1 + $0x1a8] sm:$0xff]  ;;  %v277_v35 = vld [vmem:[%s1545_s1 + $0xb0] sm:$0xff]  ;;  %v95_v20 = vsub.s32 2, %v1074_v61 }
   0x8   :  { %891 = vmatprep.subr.bf16.mxu1 %v890_v17  ;;  %v259_v29 = vld [vmem:[%s1545_s1 + $0x20] sm:$0xff]  ;;  %v894_v30 = vpack.c.bf16 %v308_v28, %v307_v27  ;;  %v260_v31 = vld [vmem:[%s1545_s1 + $0x28] sm:$0xff]  ;;  %v278_v36 = vld [vmem:[%s1545_s1 + $0xb8] sm:$0xff] }
   0x9   :  { %v291_v32 = vld [vmem:[%s1545_s1 + $0x120] sm:$0xff]  ;;  %v292_v33 = vld [vmem:[%s1545_s1 + $0x128] sm:$0xff]  ;;  %v864_v34 = vpack.c.bf16 %v260_v31, %v259_v29  ;;  %v309_v37 = vld [vmem:[%s1545_s1 + $0x1b0] sm:$0xff]  ;;  %v866_v39 = vpack.c.bf16 %v278_v36, %v277_v35 }
   0xa   :  { %861 = vmatpush3.bf16.msra.mxu0 %v860_v21  ;;  %v896_v38 = vpack.c.bf16 %v292_v33, %v291_v32  ;;  %v310_v40 = vld [vmem:[%s1545_s1 + $0x1b8] sm:$0xff]  ;;  %v261_v41 = vld [vmem:[%s1545_s1 + $0x30] sm:$0xff]  ;;  %v279_v46 = vld [vmem:[%s1545_s1 + $0xc0] sm:$0xff] }
   0xb   :  { %893 = vmatpush3.bf16.msra.mxu1 %v892_v25  ;;  %863 = vmatprep.subr.bf16.mxu0 %v862_v26  ;;  %v262_v42 = vld [vmem:[%s1545_s1 + $0x38] sm:$0xff]  ;;  %v898_v43 = vpack.c.bf16 %v310_v40, %v309_v37  ;;  %v293_v44 = vld [vmem:[%s1545_s1 + $0x130] sm:$0xff]  ;;  %v280_v48 = vld [vmem:[%s1545_s1 + $0xc8] sm:$0xff] }
   0xc   :  { %895 = vmatprep.subr.bf16.mxu1 %v894_v30  ;;  %v294_v45 = vld [vmem:[%s1545_s1 + $0x138] sm:$0xff]  ;;  %v311_v49 = vld [vmem:[%s1545_s1 + $0x1c0] sm:$0xff]  ;;  %v312_v50 = vld [vmem:[%s1545_s1 + $0x1c8] sm:$0xff]  ;;  %v868_v51 = vpack.c.bf16 %v262_v42, %v261_v41  ;;  %v870_v53 = vpack.c.bf16 %v280_v48, %v279_v46 }
   0xd   :  { %v900_v52 = vpack.c.bf16 %v294_v45, %v293_v44  ;;  %v263_v54 = vld [vmem:[%s1545_s1 + $0x40] sm:$0xff]  ;;  %v264_v55 = vld [vmem:[%s1545_s1 + $0x48] sm:$0xff]  ;;  %v902_v57 = vpack.c.bf16 %v312_v50, %v311_v49  ;;  %v281_v59 = vld [vmem:[%s1545_s1 + $0xd0] sm:$0xff] }
   0xe   :  { %865 = vmatpush3.bf16.msra.mxu0 %v864_v34  ;;  %v295_v56 = vld [vmem:[%s1545_s1 + $0x140] sm:$0xff]  ;;  %v296_v58 = vld [vmem:[%s1545_s1 + $0x148] sm:$0xff]  ;;  %v282_v60 = vld [vmem:[%s1545_s1 + $0xd8] sm:$0xff]  ;;  %v872_v0 = vpack.c.bf16 %v264_v55, %v263_v54 }
   0xf   :  { %897 = vmatpush3.bf16.msra.mxu1 %v896_v38  ;;  %867 = vmatprep.subr.bf16.mxu0 %v866_v39  ;;  %v313_v62 = vld [vmem:[%s1545_s1 + $0x1d0] sm:$0xff]  ;;  %v314_v63 = vld [vmem:[%s1545_s1 + $0x1d8] sm:$0xff]  ;;  %v904_v1 = vpack.c.bf16 %v296_v58, %v295_v56  ;;  %v874_v2 = vpack.c.bf16 %v282_v60, %v281_v59  ;;  %v283_v8 = vld [vmem:[%s1545_s1 + $0xe0] sm:$0xff] }
  0x10   :  { %899 = vmatprep.subr.bf16.mxu1 %v898_v43  ;;  %v265_v3 = vld [vmem:[%s1545_s1 + $0x50] sm:$0xff]  ;;  %v266_v4 = vld [vmem:[%s1545_s1 + $0x58] sm:$0xff]  ;;  %v906_v6 = vpack.c.bf16 %v314_v63, %v313_v62  ;;  %v284_v9 = vld [vmem:[%s1545_s1 + $0xe8] sm:$0xff] }
  0x11   :  { %v297_v5 = vld [vmem:[%s1545_s1 + $0x150] sm:$0xff]  ;;  %v298_v7 = vld [vmem:[%s1545_s1 + $0x158] sm:$0xff]  ;;  %v315_v12 = vld [vmem:[%s1545_s1 + $0x1e0] sm:$0xff]  ;;  %v876_v16 = vpack.c.bf16 %v266_v4, %v265_v3  ;;  %v878_v22 = vpack.c.bf16 %v284_v9, %v283_v8 }
  0x12   :  { %869 = vmatpush3.bf16.msra.mxu0 %v868_v51  ;;  %v316_v13 = vld [vmem:[%s1545_s1 + $0x1e8] sm:$0xff]  ;;  %v267_v14 = vld [vmem:[%s1545_s1 + $0x60] sm:$0xff]  ;;  %v908_v21 = vpack.c.bf16 %v298_v7, %v297_v5  ;;  %v285_v23 = vld [vmem:[%s1545_s1 + $0xf0] sm:$0xff] }
  0x13   :  { %901 = vmatpush3.bf16.msra.mxu1 %v900_v52  ;;  %871 = vmatprep.subr.bf16.mxu0 %v870_v53  ;;  %v268_v17 = vld [vmem:[%s1545_s1 + $0x68] sm:$0xff]  ;;  %v299_v18 = vld [vmem:[%s1545_s1 + $0x160] sm:$0xff]  ;;  %v910_v26 = vpack.c.bf16 %v316_v13, %v315_v12  ;;  %v286_v27 = vld [vmem:[%s1545_s1 + $0xf8] sm:$0xff] }
  0x14   :  { %903 = vmatprep.subr.bf16.mxu1 %v902_v57  ;;  %v300_v19 = vld [vmem:[%s1545_s1 + $0x168] sm:$0xff]  ;;  %v83_v25 = vld [vmem:[%s1547_s2] sm:$0xf]  ;;  %v22_v30 = vld [vmem:[%s1546_s0 + $0x18] sm:$0xff]  ;;  %v880_v37 = vpack.c.bf16 %v268_v17, %v267_v14  ;;  %v882_v45 = vpack.c.bf16 %v286_v27, %v285_v23 }
  0x15   :  { %v20_v24 = vld [vmem:[%s1546_s0 + $0x8] sm:$0xff]  ;;  %v1134_v28 = vrot.slane %v83_v25, %v91_v10  ;;  %v169_v29 = vld [vmem:[%s1548_s3] sm:$0xf]  ;;  %v1142_v31 = vrot.slane %v83_v25, %v99_v11  ;;  %v317_v32 = vld [vmem:[%s1545_s1 + $0x1f0] sm:$0xff]  ;;  %v1154_v36 = vrot.slane %v83_v25, %v87_v15  ;;  %v1167_v43 = vrot.slane %v83_v25, %v95_v20 }
  0x16   :  { %873 = vmatpush3.bf16.msra.mxu0 %v872_v0  ;;  %v318_v33 = vld [vmem:[%s1545_s1 + $0x1f8] sm:$0xff]  ;;  %v1150_v34 = vrot.slane %v169_v29, %v91_v10  ;;  %v1152_v35 = vrot.slane %v169_v29, %v99_v11  ;;  %v269_v38 = vld [vmem:[%s1545_s1 + $0x70] sm:$0xff]  ;;  %v19_v42 = vld [vmem:[%s1546_s0] sm:$0xff]  ;;  %v912_v44 = vpack.c.bf16 %v300_v19, %v299_v18  ;;  %v1187_v56 = vrot.slane %v169_v29, %v87_v15 }
  0x17   :  { %905 = vmatpush3.bf16.msra.mxu1 %v904_v1  ;;  %875 = vmatprep.subr.bf16.mxu0 %v874_v2  ;;  %v270_v39 = vld [vmem:[%s1545_s1 + $0x78] sm:$0xff]  ;;  %v106_v40 = vmul.f32 %v1134_v28, %v20_v24  ;;  %v108_v41 = vmul.f32 %v1142_v31, %v22_v30  ;;  %v21_v46 = vld [vmem:[%s1546_s0 + $0x10] sm:$0xff]  ;;  %v24_v47 = vld [vmem:[%s1546_s0 + $0x28] sm:$0xff]  ;;  %v914_v48 = vpack.c.bf16 %v318_v33, %v317_v32 }
  0x18   :  { %907 = vmatprep.subr.bf16.mxu1 %v906_v6  ;;  %v301_v49 = vld [vmem:[%s1545_s1 + $0x170] sm:$0xff]  ;;  %v302_v50 = vld [vmem:[%s1545_s1 + $0x178] sm:$0xff]  ;;  %v884_v54 = vpack.c.bf16 %v270_v39, %v269_v38  ;;  %v105_v55 = vmul.f32 %v1154_v36, %v19_v42  ;;  %v107_v57 = vmul.f32 %v1167_v43, %v21_v46  ;;  %v1190_v58 = vrot.slane %v169_v29, %v95_v20  ;;  %v23_v60 = vld [vmem:[%s1546_s0 + $0x20] sm:$0xff] }
  0x19   :  { %v192_v51 = vadd.f32 %v1150_v34, %v106_v40  ;;  %v194_v52 = vadd.f32 %v1152_v35, %v108_v41  ;;  %v26_v53 = vld [vmem:[%s1546_s0 + $0x38] sm:$0xff]  ;;  %v110_v59 = vmul.f32 %v1134_v28, %v24_v47  ;;  %v916_v61 = vpack.c.bf16 %v302_v50, %v301_v49  ;;  %v25_v63 = vld [vmem:[%s1546_s0 + $0x30] sm:$0xff]  ;;  %v28_v0 = vld [vmem:[%s1546_s0 + $0x48] sm:$0xff] }
  0x1a   :  { %877 = vmatpush3.bf16.msra.mxu0 %v876_v16  ;;  %v112_v62 = vmul.f32 %v1142_v31, %v26_v53  ;;  %v30_v1 = vld [vmem:[%s1546_s0 + $0x58] sm:$0xff]  ;;  %v191_v2 = vadd.f32 %v1187_v56, %v105_v55  ;;  %v109_v3 = vmul.f32 %v1154_v36, %v23_v60  ;;  %v193_v4 = vadd.f32 %v1190_v58, %v107_v57  ;;  %v27_v8 = vld [vmem:[%s1546_s0 + $0x40] sm:$0xff]  ;;  %v29_v9 = vld [vmem:[%s1546_s0 + $0x50] sm:$0xff] }
  0x1b   :  { %909 = vmatpush3.bf16.msra.mxu1 %v908_v21  ;;  %879 = vmatprep.subr.bf16.mxu0 %v878_v22  ;;  %v196_v5 = vadd.f32 %v1150_v34, %v110_v59  ;;  %v111_v6 = vmul.f32 %v1167_v43, %v25_v63  ;;  %v114_v7 = vmul.f32 %v1134_v28, %v28_v0  ;;  %v32_v12 = vld [vmem:[%s1546_s0 + $0x68] sm:$0xff]  ;;  %v34_v13 = vld [vmem:[%s1546_s0 + $0x78] sm:$0xff]  ;;  %v31_v20 = vld [vmem:[%s1546_s0 + $0x60] sm:$0xff] }
  0x1c   :  { %911 = vmatprep.subr.bf16.mxu1 %v910_v26  ;;  %383 = vmatprep.mubr.f32.mxu0 %v192_v51  ;;  %v198_v10 = vadd.f32 %v1152_v35, %v112_v62  ;;  %v116_v11 = vmul.f32 %v1142_v31, %v30_v1  ;;  %v195_v14 = vadd.f32 %v1187_v56, %v109_v3  ;;  %v33_v23 = vld [vmem:[%s1546_s0 + $0x70] sm:$0xff]  ;;  %v36_v24 = vld [vmem:[%s1546_s0 + $0x88] sm:$0xff]  ;;  %v38_v25 = vld [vmem:[%s1546_s0 + $0x98] sm:$0xff] }
  0x1d   :  { %528 = vmatprep.mubr.f32.mxu1 %v194_v52  ;;  %v113_v15 = vmul.f32 %v1154_v36, %v27_v8  ;;  %v115_v16 = vmul.f32 %v1167_v43, %v29_v9  ;;  %v197_v17 = vadd.f32 %v1190_v58, %v111_v6  ;;  %v200_v18 = vadd.f32 %v1150_v34, %v114_v7  ;;  %v37_v38 = vld [vmem:[%s1546_s0 + $0x90] sm:$0xff]  ;;  %v40_v41 = vld [vmem:[%s1546_s0 + $0xa8] sm:$0xff]  ;;  %v42_v42 = vld [vmem:[%s1546_s0 + $0xb8] sm:$0xff] }
  0x1e   :  { %881 = vmatpush3.bf16.msra.mxu0 %v880_v37  ;;  %v118_v19 = vmul.f32 %v1134_v28, %v32_v12  ;;  %v202_v21 = vadd.f32 %v1152_v35, %v116_v11  ;;  %v120_v22 = vmul.f32 %v1142_v31, %v34_v13  ;;  %v117_v29 = vmul.f32 %v1154_v36, %v31_v20  ;;  %v35_v37 = vld [vmem:[%s1546_s0 + $0x80] sm:$0xff]  ;;  %v41_v53 = vld [vmem:[%s1546_s0 + $0xb0] sm:$0xff]  ;;  %v46_v55 = vld [vmem:[%s1546_s0 + $0xd8] sm:$0xff] }
  0x1f   :  { %913 = vmatpush3.bf16.msra.mxu1 %v912_v44  ;;  %883 = vmatprep.subr.bf16.mxu0 %v882_v45  ;;  %v199_v26 = vadd.f32 %v1187_v56, %v113_v15  ;;  %v201_v27 = vadd.f32 %v1190_v58, %v115_v16  ;;  %v119_v32 = vmul.f32 %v1167_v43, %v33_v23  ;;  %v39_v50 = vld [vmem:[%s1546_s0 + $0xa0] sm:$0xff]  ;;  %v45_v1 = vld [vmem:[%s1546_s0 + $0xd0] sm:$0xff]  ;;  %v50_v6 = vld [vmem:[%s1546_s0 + $0xf8] sm:$0xff] }
  0x20   :  { %915 = vmatprep.subr.bf16.mxu1 %v914_v48  ;;  %v204_v30 = vadd.f32 %v1150_v34, %v118_v19  ;;  %v122_v33 = vmul.f32 %v1134_v28, %v36_v24  ;;  %v206_v39 = vadd.f32 %v1152_v35, %v120_v22  ;;  %v124_v40 = vmul.f32 %v1142_v31, %v38_v25  ;;  %v47_v12 = vld [vmem:[%s1546_s0 + $0xe0] sm:$0xff]  ;;  %v80_v13 = vld [vmem:[%s1546_s0 + $0x1e8] sm:$0xff]  ;;  %v54_v20 = vld [vmem:[%s1546_s0 + $0x118] sm:$0xff] }
  0x21   :  { %v203_v44 = vadd.f32 %v1187_v56, %v117_v29  ;;  %v121_v45 = vmul.f32 %v1154_v36, %v35_v37  ;;  %v123_v46 = vmul.f32 %v1167_v43, %v37_v38  ;;  %v205_v47 = vadd.f32 %v1190_v58, %v119_v32  ;;  %v51_v29 = vld [vmem:[%s1546_s0 + $0x100] sm:$0xff]  ;;  %v56_v37 = vld [vmem:[%s1546_s0 + $0x128] sm:$0xff] }
  0x22   :  { %885 = vmatpush3.bf16.msra.mxu0 %v884_v54  ;;  %v208_v48 = vadd.f32 %v1150_v34, %v122_v33  ;;  %v126_v49 = vmul.f32 %v1134_v28, %v40_v41  ;;  %v210_v51 = vadd.f32 %v1152_v35, %v124_v40  ;;  %v128_v52 = vmul.f32 %v1142_v31, %v42_v42  ;;  %v44_v54 = vld [vmem:[%s1546_s0 + $0xc8] sm:$0xff]  ;;  %v58_v40 = vld [vmem:[%s1546_s0 + $0x138] sm:$0xff] }
  0x23   :  { %917 = vmatpush3.bf16.msra.mxu1 %v916_v61  ;;  %v207_v57 = vadd.f32 %v1187_v56, %v121_v45  ;;  %v209_v59 = vadd.f32 %v1190_v58, %v123_v46  ;;  %v125_v60 = vmul.f32 %v1154_v36, %v39_v50  ;;  %v43_v61 = vld [vmem:[%s1546_s0 + $0xc0] sm:$0xff]  ;;  %v127_v63 = vmul.f32 %v1167_v43, %v41_v53  ;;  %v62_v53 = vld [vmem:[%s1546_s0 + $0x158] sm:$0xff] }
  0x24   :  { %v212_v62 = vadd.f32 %v1150_v34, %v126_v49  ;;  %v130_v0 = vmul.f32 %v1134_v28, %v44_v54  ;;  %v132_v3 = vmul.f32 %v1142_v31, %v46_v55  ;;  %v131_v8 = vmul.f32 %v1167_v43, %v45_v1 }
  0x25   :  { %384 = vmatmul.mubr.f32.vlgmr.msra.gmra.mrb[0].mxu0 %v191_v2  ;;  %v214_v2 = vadd.f32 %v1152_v35, %v128_v52  ;;  %v211_v7 = vadd.f32 %v1187_v56, %v125_v60  ;;  %v213_v9 = vadd.f32 %v1190_v58, %v127_v63  ;;  %v136_v16 = vmul.f32 %v1142_v31, %v50_v6  ;;  %v60_v52 = vld [vmem:[%s1546_s0 + $0x148] sm:$0xff]  ;;  %v61_v63 = vld [vmem:[%s1546_s0 + $0x150] sm:$0xff] }
  0x26   :  { %529 = vmatmul.mubr.f32.vlgmr.msra.gmra.mrb[0].mxu1 %v193_v4  ;;  %388 = vmatprep.mubr.f32.mxu0 %v196_v5  ;;  %v48_v4 = vld [vmem:[%s1546_s0 + $0xe8] sm:$0xff]  ;;  %v129_v5 = vmul.f32 %v1154_v36, %v43_v61  ;;  %v218_v15 = vadd.f32 %v1152_v35, %v132_v3  ;;  %v133_v22 = vmul.f32 %v1154_v36, %v47_v12  ;;  %v66_v3 = vld [vmem:[%s1546_s0 + $0x178] sm:$0xff] }
  0x27   :  { %533 = vmatprep.mubr.f32.mxu1 %v198_v10  ;;  %v216_v10 = vadd.f32 %v1150_v34, %v130_v0  ;;  %v134_v11 = vmul.f32 %v1134_v28, %v48_v4  ;;  %v166_v23 = vmul.f32 %v1134_v28, %v80_v13  ;;  %v222_v32 = vadd.f32 %v1152_v35, %v136_v16  ;;  %v65_v13 = vld [vmem:[%s1546_s0 + $0x170] sm:$0xff] }
  0x28   :  { %v215_v19 = vadd.f32 %v1187_v56, %v129_v5  ;;  %v140_v33 = vmul.f32 %v1142_v31, %v54_v20  ;;  %v219_v41 = vadd.f32 %v1187_v56, %v133_v22  ;;  %v137_v42 = vmul.f32 %v1154_v36, %v51_v29  ;;  %v67_v22 = vld [vmem:[%s1546_s0 + $0x180] sm:$0xff] }
  0x29   :  { %389 = vmatmul.mubr.f32.gmra.mrb[2].mxu0 %v195_v14  ;;  %v82_v14 = vld [vmem:[%s1546_s0 + $0x1f8] sm:$0xff]  ;;  %v220_v25 = vadd.f32 %v1150_v34, %v134_v11  ;;  %v1352_v38 = vadd.f32 %v1150_v34, %v166_v23  ;;  %v144_v50 = vmul.f32 %v1142_v31, %v58_v40  ;;  %v146_v61 = vmul.f32 %v1134_v28, %v60_v52  ;;  %v69_v23 = vld [vmem:[%s1546_s0 + $0x190] sm:$0xff] }
  0x2a   :  { %534 = vmatmul.mubr.f32.gmra.mrb[2].mxu1 %v197_v17  ;;  %393 = vmatprep.mubr.f32.mxu0 %v200_v18  ;;  %v49_v17 = vld [vmem:[%s1546_s0 + $0xf0] sm:$0xff]  ;;  %v52_v18 = vld [vmem:[%s1546_s0 + $0x108] sm:$0xff]  ;;  %v168_v24 = vmul.f32 %v1142_v31, %v82_v14  ;;  %v226_v49 = vadd.f32 %v1152_v35, %v140_v33  ;;  %v223_v54 = vadd.f32 %v1187_v56, %v137_v42 }
  0x2b   :  { %538 = vmatprep.mubr.f32.mxu1 %v202_v21  ;;  %v217_v21 = vadd.f32 %v1190_v58, %v131_v8  ;;  %v230_v0 = vadd.f32 %v1152_v35, %v144_v50  ;;  %v148_v1 = vmul.f32 %v1142_v31, %v62_v53  ;;  %v147_v6 = vmul.f32 %v1167_v43, %v61_v63  ;;  %v68_v14 = vld [vmem:[%s1546_s0 + $0x188] sm:$0xff] }
  0x2c   :  { %v232_v8 = vadd.f32 %v1150_v34, %v146_v61  ;;  %v152_v12 = vmul.f32 %v1142_v31, %v66_v3  ;;  %v151_v20 = vmul.f32 %v1167_v43, %v65_v13 }
  0x2d   :  { %394 = vmatmul.mubr.f32.gmra.mrb[4].mxu0 %v199_v26  ;;  %v135_v26 = vmul.f32 %v1167_v43, %v49_v17  ;;  %v234_v11 = vadd.f32 %v1152_v35, %v148_v1  ;;  %v233_v17 = vadd.f32 %v1190_v58, %v147_v6  ;;  %v81_v1 = vld [vmem:[%s1546_s0 + $0x1f0] sm:$0xff] }
  0x2e   :  { %539 = vmatmul.mubr.f32.gmra.mrb[4].mxu1 %v201_v27  ;;  %398 = vmatprep.mubr.f32.mxu0 %v204_v30  ;;  %v138_v27 = vmul.f32 %v1134_v28, %v52_v18  ;;  %v53_v30 = vld [vmem:[%s1546_s0 + $0x110] sm:$0xff]  ;;  %v237_v33 = vadd.f32 %v1190_v58, %v151_v20 }
  0x2f   :  { %543 = vmatprep.mubr.f32.mxu1 %v206_v39  ;;  %v1355_v39 = vadd.f32 %v1152_v35, %v168_v24  ;;  %v221_v45 = vadd.f32 %v1190_v58, %v135_v26  ;;  %v238_v24 = vadd.f32 %v1152_v35, %v152_v12  ;;  %v72_v26 = vld [vmem:[%s1546_s0 + $0x1a8] sm:$0xff] }
  0x30   :  { %v224_v46 = vadd.f32 %v1150_v34, %v138_v27  ;;  %v74_v27 = vld [vmem:[%s1546_s0 + $0x1b8] sm:$0xff]  ;;  %v158_v40 = vmul.f32 %v1134_v28, %v72_v26 }
  0x31   :  { %399 = vmatmul.mubr.f32.gmra.mrb[6].mxu0 %v203_v44  ;;  %v139_v44 = vmul.f32 %v1167_v43, %v53_v30  ;;  %v153_v30 = vmul.f32 %v1154_v36, %v67_v22 }
  0x32   :  { %544 = vmatmul.mubr.f32.gmra.mrb[6].mxu1 %v205_v47  ;;  %403 = vmatprep.mubr.f32.mxu0 %v208_v48  ;;  %v142_v47 = vmul.f32 %v1134_v28, %v56_v37  ;;  %v55_v48 = vld [vmem:[%s1546_s0 + $0x120] sm:$0xff] }
  0x33   :  { %548 = vmatprep.mubr.f32.mxu1 %v210_v51  ;;  %v57_v51 = vld [vmem:[%s1546_s0 + $0x130] sm:$0xff]  ;;  %v225_v55 = vadd.f32 %v1190_v58, %v139_v44  ;;  %v160_v44 = vmul.f32 %v1142_v31, %v74_v27 }
  0x34   :  { %v143_v60 = vmul.f32 %v1167_v43, %v57_v51  ;;  %v244_v51 = vadd.f32 %v1150_v34, %v158_v40 }
  0x35   :  { %404 = vmatmul.mubr.f32.gmra.mrb[8].mxu0 %v207_v57  ;;  %v141_v57 = vmul.f32 %v1154_v36, %v55_v48  ;;  %v239_v48 = vadd.f32 %v1187_v56, %v153_v30 }
  0x36   :  { %549 = vmatmul.mubr.f32.gmra.mrb[8].mxu1 %v209_v59  ;;  %408 = vmatprep.mubr.f32.mxu0 %v212_v62  ;;  %v228_v59 = vadd.f32 %v1150_v34, %v142_v47  ;;  %v59_v62 = vld [vmem:[%s1546_s0 + $0x140] sm:$0xff]  ;;  %v78_v47 = vld [vmem:[%s1546_s0 + $0x1d8] sm:$0xff] }
  0x37   :  { %553 = vmatprep.mubr.f32.mxu1 %v214_v2  ;;  %v64_v2 = vld [vmem:[%s1546_s0 + $0x168] sm:$0xff]  ;;  %v227_v4 = vadd.f32 %v1187_v56, %v141_v57  ;;  %v145_v5 = vmul.f32 %v1154_v36, %v59_v62  ;;  %v164_v57 = vmul.f32 %v1142_v31, %v78_v47 }
  0x39   :  { %409 = vmatmul.mubr.f32.gmra.mrb[10].mxu0 %v211_v7  ;;  %v229_v7 = vadd.f32 %v1190_v58, %v143_v60  ;;  %v231_v16 = vadd.f32 %v1187_v56, %v145_v5 }
  0x3a   :  { %554 = vmatmul.mubr.f32.gmra.mrb[10].mxu1 %v213_v9  ;;  %413 = vmatprep.mubr.f32.mxu0 %v216_v10  ;;  %v150_v9 = vmul.f32 %v1134_v28, %v64_v2  ;;  %v63_v10 = vld [vmem:[%s1546_s0 + $0x160] sm:$0xff] }
  0x3b   :  { %558 = vmatprep.mubr.f32.mxu1 %v218_v15  ;;  %v70_v15 = vld [vmem:[%s1546_s0 + $0x198] sm:$0xff]  ;;  %v149_v18 = vmul.f32 %v1154_v36, %v63_v10 }
  0x3d   :  { %414 = vmatmul.mubr.f32.gmra.mrb[12].mxu0 %v215_v19  ;;  %v236_v19 = vadd.f32 %v1150_v34, %v150_v9  ;;  %v235_v29 = vadd.f32 %v1187_v56, %v149_v18 }
  0x3e   :  { %559 = vmatmul.mubr.f32.gmra.mrb[12].mxu1 %v217_v21  ;;  %418 = vmatprep.mubr.f32.mxu0 %v220_v25  ;;  %v154_v21 = vmul.f32 %v1134_v28, %v68_v14  ;;  %v156_v25 = vmul.f32 %v1142_v31, %v70_v15  ;;  %v79_v31 = vld [vmem:[%s1546_s0 + $0x1e0] sm:$0xff] }
  0x3f   :  { %563 = vmatprep.mubr.f32.mxu1 %v222_v32  ;;  %v155_v32 = vmul.f32 %v1167_v43, %v69_v23  ;;  %v165_v3 = vmul.f32 %v1154_v36, %v79_v31 }
  0x40   :  { %v240_v37 = vadd.f32 %v1150_v34, %v154_v21  ;;  %v242_v42 = vadd.f32 %v1152_v35, %v156_v25 }
  0x41   :  { %419 = vmatmul.mubr.f32.gmra.mrb[14].mxu0 %v219_v41  ;;  %v71_v41 = vld [vmem:[%s1546_s0 + $0x1a0] sm:$0xff]  ;;  %v251_v5 = vadd.f32 %v1187_v56, %v165_v3 }
  0x42   :  { %564 = vmatmul.mubr.f32.gmra.mrb[14].mxu1 %v221_v45  ;;  %423 = vmatprep.mubr.f32.mxu0 %v224_v46  ;;  %v73_v45 = vld [vmem:[%s1546_s0 + $0x1b0] sm:$0xff]  ;;  %v76_v46 = vld [vmem:[%s1546_s0 + $0x1c8] sm:$0xff]  ;;  %v157_v50 = vmul.f32 %v1154_v36, %v71_v41 }
  0x43   :  { %568 = vmatprep.mubr.f32.mxu1 %v226_v49  ;;  %v241_v49 = vadd.f32 %v1190_v58, %v155_v32  ;;  %v159_v52 = vmul.f32 %v1167_v43, %v73_v45  ;;  %v162_v53 = vmul.f32 %v1134_v28, %v76_v46 }
  0x44   :  { %v243_v60 = vadd.f32 %v1187_v56, %v157_v50 }
  0x45   :  { %424 = vmatmul.mubr.f32.gmra.mrb[16].mxu0 %v223_v54  ;;  %v75_v54 = vld [vmem:[%s1546_s0 + $0x1c0] sm:$0xff]  ;;  %v245_v28 = vadd.f32 %v1190_v58, %v159_v52  ;;  %v248_v62 = vadd.f32 %v1150_v34, %v162_v53 }
  0x46   :  { %569 = vmatmul.mubr.f32.gmra.mrb[16].mxu1 %v225_v55  ;;  %428 = vmatprep.mubr.f32.mxu0 %v228_v59  ;;  %v246_v55 = vadd.f32 %v1152_v35, %v160_v44  ;;  %v77_v59 = vld [vmem:[%s1546_s0 + $0x1d0] sm:$0xff]  ;;  %v161_v61 = vmul.f32 %v1154_v36, %v75_v54 }
  0x47   :  { %573 = vmatprep.mubr.f32.mxu1 %v230_v0  ;;  %v163_v63 = vmul.f32 %v1167_v43, %v77_v59  ;;  %v250_v0 = vadd.f32 %v1152_v35, %v164_v57 }
  0x48   :  { %v247_v2 = vadd.f32 %v1187_v56, %v161_v61 }
  0x49   :  { %429 = vmatmul.mubr.f32.gmra.mrb[18].mxu0 %v227_v4  ;;  %v249_v34 = vadd.f32 %v1190_v58, %v163_v63  ;;  %v167_v4 = vmul.f32 %v1167_v43, %v81_v1 }
  0x4a   :  { %574 = vmatmul.mubr.f32.gmra.mrb[18].mxu1 %v229_v7  ;;  %433 = vmatprep.mubr.f32.mxu0 %v232_v8 }
  0x4b   :  { %578 = vmatprep.mubr.f32.mxu1 %v234_v11  ;;  %v253_v35 = vadd.f32 %v1190_v58, %v167_v4 }
  0x4d   :  { %434 = vmatmul.mubr.f32.gmra.mrb[20].mxu0 %v231_v16 }
  0x4e   :  { %579 = vmatmul.mubr.f32.gmra.mrb[20].mxu1 %v233_v17  ;;  %438 = vmatprep.mubr.f32.mxu0 %v236_v19 }
  0x4f   :  { %583 = vmatprep.mubr.f32.mxu1 %v238_v24 }
  0x51   :  { %439 = vmatmul.mubr.f32.gmra.mrb[22].mxu0 %v235_v29 }
  0x52   :  { %584 = vmatmul.mubr.f32.gmra.mrb[22].mxu1 %v237_v33  ;;  %443 = vmatprep.mubr.f32.mxu0 %v240_v37 }
  0x53   :  { %588 = vmatprep.mubr.f32.mxu1 %v242_v42 }
  0x55   :  { %444 = vmatmul.mubr.f32.gmra.mrb[24].mxu0 %v239_v48 }
  0x56   :  { %589 = vmatmul.mubr.f32.gmra.mrb[24].mxu1 %v241_v49  ;;  %448 = vmatprep.mubr.f32.mxu0 %v244_v51 }
  0x57   :  { %593 = vmatprep.mubr.f32.mxu1 %v246_v55 }
  0x59   :  { %449 = vmatmul.mubr.f32.gmra.mrb[26].mxu0 %v243_v60 }
  0x5a   :  { %594 = vmatmul.mubr.f32.gmra.mrb[26].mxu1 %v245_v28  ;;  %453 = vmatprep.mubr.f32.mxu0 %v248_v62 }
  0x5b   :  { %598 = vmatprep.mubr.f32.mxu1 %v250_v0 }
  0x5d   :  { %454 = vmatmul.mubr.f32.gmra.mrb[28].mxu0 %v247_v2 }
  0x5e   :  { %599 = vmatmul.mubr.f32.gmra.mrb[28].mxu1 %v249_v34  ;;  %458 = vmatprep.mubr.f32.mxu0 %v1352_v38 }
  0x5f   :  { %603 = vmatprep.mubr.f32.mxu1 %v1355_v39 }
  0x61   :  { %459 = vmatmul.mubr.f32.gmra.mrb[30].mxu0 %v251_v5 }
  0x62   :  { %604 = vmatmul.mubr.f32.gmra.mrb[30].mxu1 %v253_v35 }
  0xf8   :  { %v726_v36 = vpop.f32.mrb[0].mxu0 }
  0xf9   :  { %v806_v6 = vpop.f32.mrb[0].mxu1  ;;  %v727_v7 = vpop.f32.mrb[1].mxu0 }
  0xfa   :  { %v728_v8 = vadd.f32 %v727_v7, %v726_v36  ;;  %v807_v9 = vpop.f32.mrb[1].mxu1 }
  0xfb   :  { %v808_v10 = vadd.f32 %v807_v9, %v806_v6 }
  0xfc   :  { %v729_v43 = vpop.f32.mrb[2].mxu0 }
  0xfd   :  { %v531_v11 = vadd.f32 %v808_v10, %v728_v8  ;;  %v809_v12 = vpop.f32.mrb[2].mxu1  ;;  %v730_v13 = vpop.f32.mrb[3].mxu0 }
  0xfe   :  { %v731_v56 = vadd.f32 %v730_v13, %v729_v43  ;;  %v810_v14 = vpop.f32.mrb[3].mxu1 }
  0xff   :  { %609 = vst [vmem:[%s1549_s4] sm:$0xff] %v531_v11  ;;  %v811_v58 = vadd.f32 %v810_v14, %v809_v12  ;;  %v646_v19 = vmul.f32 %v531_v11, %v531_v11 }
 0x100   :  { %v732_v38 = vpop.f32.mrb[4].mxu0 }
 0x101   :  { %v536_v39 = vadd.f32 %v811_v58, %v731_v56  ;;  %v812_v15 = vpop.f32.mrb[4].mxu1  ;;  %v733_v16 = vpop.f32.mrb[5].mxu0 }
 0x102   :  { %v734_v17 = vadd.f32 %v733_v16, %v732_v38  ;;  %v813_v18 = vpop.f32.mrb[5].mxu1 }
 0x103   :  { %610 = vst [vmem:[%s1549_s4 + $0x8] sm:$0xff] %v536_v39  ;;  %v625_v20 = vadd.f32 %v536_v39, %v531_v11  ;;  %v647_v21 = vmul.f32 %v536_v39, %v536_v39  ;;  %v814_v22 = vadd.f32 %v813_v18, %v812_v15 }
 0x104   :  { %v735_v23 = vpop.f32.mrb[6].mxu0 }
 0x105   :  { %v662_v24 = vadd.f32 %v647_v21, %v646_v19  ;;  %v541_v25 = vadd.f32 %v814_v22, %v734_v17  ;;  %v815_v26 = vpop.f32.mrb[6].mxu1  ;;  %v736_v27 = vpop.f32.mrb[7].mxu0 }
 0x106   :  { %v737_v29 = vadd.f32 %v736_v27, %v735_v23  ;;  %v816_v30 = vpop.f32.mrb[7].mxu1 }
 0x107   :  { %611 = vst [vmem:[%s1549_s4 + $0x10] sm:$0xff] %v541_v25  ;;  %v626_v32 = vadd.f32 %v625_v20, %v541_v25  ;;  %v648_v33 = vmul.f32 %v541_v25, %v541_v25  ;;  %v817_v37 = vadd.f32 %v816_v30, %v815_v26 }
 0x108   :  { %v738_v40 = vpop.f32.mrb[8].mxu0 }
 0x109   :  { %v663_v41 = vadd.f32 %v662_v24, %v648_v33  ;;  %v546_v42 = vadd.f32 %v817_v37, %v737_v29  ;;  %v818_v44 = vpop.f32.mrb[8].mxu1  ;;  %v739_v45 = vpop.f32.mrb[9].mxu0 }
 0x10a   :  { %v740_v46 = vadd.f32 %v739_v45, %v738_v40  ;;  %v819_v47 = vpop.f32.mrb[9].mxu1 }
 0x10b   :  { %612 = vst [vmem:[%s1549_s4 + $0x18] sm:$0xff] %v546_v42  ;;  %v627_v48 = vadd.f32 %v626_v32, %v546_v42  ;;  %v649_v49 = vmul.f32 %v546_v42, %v546_v42  ;;  %v820_v50 = vadd.f32 %v819_v47, %v818_v44 }
 0x10c   :  { %v741_v51 = vpop.f32.mrb[10].mxu0 }
 0x10d   :  { %v664_v52 = vadd.f32 %v663_v41, %v649_v49  ;;  %v551_v53 = vadd.f32 %v820_v50, %v740_v46  ;;  %v821_v54 = vpop.f32.mrb[10].mxu1  ;;  %v742_v55 = vpop.f32.mrb[11].mxu0 }
 0x10e   :  { %v743_v57 = vadd.f32 %v742_v55, %v741_v51  ;;  %v822_v59 = vpop.f32.mrb[11].mxu1 }
 0x10f   :  { %613 = vst [vmem:[%s1549_s4 + $0x20] sm:$0xff] %v551_v53  ;;  %v628_v60 = vadd.f32 %v627_v48, %v551_v53  ;;  %v650_v61 = vmul.f32 %v551_v53, %v551_v53  ;;  %v823_v28 = vadd.f32 %v822_v59, %v821_v54 }
 0x110   :  { %v744_v62 = vpop.f32.mrb[12].mxu0 }
 0x111   :  { %v665_v63 = vadd.f32 %v664_v52, %v650_v61  ;;  %v556_v31 = vadd.f32 %v823_v28, %v743_v57  ;;  %v824_v0 = vpop.f32.mrb[12].mxu1  ;;  %v745_v1 = vpop.f32.mrb[13].mxu0 }
 0x112   :  { %v746_v2 = vadd.f32 %v745_v1, %v744_v62  ;;  %v825_v3 = vpop.f32.mrb[13].mxu1 }
 0x113   :  { %614 = vst [vmem:[%s1549_s4 + $0x28] sm:$0xff] %v556_v31  ;;  %v629_v34 = vadd.f32 %v628_v60, %v556_v31  ;;  %v651_v4 = vmul.f32 %v556_v31, %v556_v31  ;;  %v826_v5 = vadd.f32 %v825_v3, %v824_v0 }
 0x114   :  { %v747_v35 = vpop.f32.mrb[14].mxu0 }
 0x115   :  { %v666_v36 = vadd.f32 %v665_v63, %v651_v4  ;;  %v561_v6 = vadd.f32 %v826_v5, %v746_v2  ;;  %v827_v7 = vpop.f32.mrb[14].mxu1  ;;  %v748_v8 = vpop.f32.mrb[15].mxu0 }
 0x116   :  { %v749_v9 = vadd.f32 %v748_v8, %v747_v35  ;;  %v828_v10 = vpop.f32.mrb[15].mxu1 }
 0x117   :  { %615 = vst [vmem:[%s1549_s4 + $0x30] sm:$0xff] %v561_v6  ;;  %v630_v43 = vadd.f32 %v629_v34, %v561_v6  ;;  %v652_v11 = vmul.f32 %v561_v6, %v561_v6  ;;  %v829_v12 = vadd.f32 %v828_v10, %v827_v7 }
 0x118   :  { %v750_v13 = vpop.f32.mrb[16].mxu0 }
 0x119   :  { %v667_v56 = vadd.f32 %v666_v36, %v652_v11  ;;  %v566_v14 = vadd.f32 %v829_v12, %v749_v9  ;;  %v830_v58 = vpop.f32.mrb[16].mxu1  ;;  %v751_v38 = vpop.f32.mrb[17].mxu0 }
 0x11a   :  { %v752_v39 = vadd.f32 %v751_v38, %v750_v13  ;;  %v831_v15 = vpop.f32.mrb[17].mxu1 }
 0x11b   :  { %616 = vst [vmem:[%s1549_s4 + $0x38] sm:$0xff] %v566_v14  ;;  %v631_v16 = vadd.f32 %v630_v43, %v566_v14  ;;  %v653_v17 = vmul.f32 %v566_v14, %v566_v14  ;;  %v832_v18 = vadd.f32 %v831_v15, %v830_v58 }
 0x11c   :  { %v753_v19 = vpop.f32.mrb[18].mxu0 }
 0x11d   :  { %v668_v20 = vadd.f32 %v667_v56, %v653_v17  ;;  %v571_v21 = vadd.f32 %v832_v18, %v752_v39  ;;  %v833_v22 = vpop.f32.mrb[18].mxu1  ;;  %v754_v23 = vpop.f32.mrb[19].mxu0 }
 0x11e   :  { %v755_v24 = vadd.f32 %v754_v23, %v753_v19  ;;  %v834_v25 = vpop.f32.mrb[19].mxu1 }
 0x11f   :  { %617 = vst [vmem:[%s1549_s4 + $0x40] sm:$0xff] %v571_v21  ;;  %v632_v26 = vadd.f32 %v631_v16, %v571_v21  ;;  %v654_v27 = vmul.f32 %v571_v21, %v571_v21  ;;  %v835_v29 = vadd.f32 %v834_v25, %v833_v22 }
 0x120   :  { %v756_v30 = vpop.f32.mrb[20].mxu0 }
 0x121   :  { %v669_v32 = vadd.f32 %v668_v20, %v654_v27  ;;  %v576_v33 = vadd.f32 %v835_v29, %v755_v24  ;;  %v836_v37 = vpop.f32.mrb[20].mxu1  ;;  %v757_v40 = vpop.f32.mrb[21].mxu0 }
 0x122   :  { %v758_v41 = vadd.f32 %v757_v40, %v756_v30  ;;  %v837_v42 = vpop.f32.mrb[21].mxu1 }
 0x123   :  { %618 = vst [vmem:[%s1549_s4 + $0x48] sm:$0xff] %v576_v33  ;;  %v633_v44 = vadd.f32 %v632_v26, %v576_v33  ;;  %v655_v45 = vmul.f32 %v576_v33, %v576_v33  ;;  %v838_v46 = vadd.f32 %v837_v42, %v836_v37 }
 0x124   :  { %v759_v47 = vpop.f32.mrb[22].mxu0 }
 0x125   :  { %v670_v48 = vadd.f32 %v669_v32, %v655_v45  ;;  %v581_v49 = vadd.f32 %v838_v46, %v758_v41  ;;  %v839_v50 = vpop.f32.mrb[22].mxu1  ;;  %v760_v51 = vpop.f32.mrb[23].mxu0 }
 0x126   :  { %v761_v52 = vadd.f32 %v760_v51, %v759_v47  ;;  %v840_v53 = vpop.f32.mrb[23].mxu1 }
 0x127   :  { %619 = vst [vmem:[%s1549_s4 + $0x50] sm:$0xff] %v581_v49  ;;  %v634_v54 = vadd.f32 %v633_v44, %v581_v49  ;;  %v656_v55 = vmul.f32 %v581_v49, %v581_v49  ;;  %v841_v57 = vadd.f32 %v840_v53, %v839_v50 }
 0x128   :  { %v762_v59 = vpop.f32.mrb[24].mxu0 }
 0x129   :  { %v671_v60 = vadd.f32 %v670_v48, %v656_v55  ;;  %v586_v61 = vadd.f32 %v841_v57, %v761_v52  ;;  %v842_v28 = vpop.f32.mrb[24].mxu1  ;;  %v763_v62 = vpop.f32.mrb[25].mxu0 }
 0x12a   :  { %v764_v63 = vadd.f32 %v763_v62, %v762_v59  ;;  %v843_v31 = vpop.f32.mrb[25].mxu1 }
 0x12b   :  { %620 = vst [vmem:[%s1549_s4 + $0x58] sm:$0xff] %v586_v61  ;;  %v635_v0 = vadd.f32 %v634_v54, %v586_v61  ;;  %v657_v1 = vmul.f32 %v586_v61, %v586_v61  ;;  %v844_v2 = vadd.f32 %v843_v31, %v842_v28 }
 0x12c   :  { %v765_v3 = vpop.f32.mrb[26].mxu0 }
 0x12d   :  { %v672_v34 = vadd.f32 %v671_v60, %v657_v1  ;;  %v591_v4 = vadd.f32 %v844_v2, %v764_v63  ;;  %v845_v5 = vpop.f32.mrb[26].mxu1  ;;  %v766_v35 = vpop.f32.mrb[27].mxu0 }
 0x12e   :  { %v767_v36 = vadd.f32 %v766_v35, %v765_v3  ;;  %v846_v6 = vpop.f32.mrb[27].mxu1 }
 0x12f   :  { %621 = vst [vmem:[%s1549_s4 + $0x60] sm:$0xff] %v591_v4  ;;  %v636_v7 = vadd.f32 %v635_v0, %v591_v4  ;;  %v658_v8 = vmul.f32 %v591_v4, %v591_v4  ;;  %v847_v9 = vadd.f32 %v846_v6, %v845_v5 }
 0x130   :  { %v768_v10 = vpop.f32.mrb[28].mxu0 }
 0x131   :  { %v673_v43 = vadd.f32 %v672_v34, %v658_v8  ;;  %v596_v11 = vadd.f32 %v847_v9, %v767_v36  ;;  %v848_v12 = vpop.f32.mrb[28].mxu1  ;;  %v769_v13 = vpop.f32.mrb[29].mxu0 }
 0x132   :  { %v770_v56 = vadd.f32 %v769_v13, %v768_v10  ;;  %v849_v14 = vpop.f32.mrb[29].mxu1 }
 0x133   :  { %622 = vst [vmem:[%s1549_s4 + $0x68] sm:$0xff] %v596_v11  ;;  %v637_v58 = vadd.f32 %v636_v7, %v596_v11  ;;  %v659_v38 = vmul.f32 %v596_v11, %v596_v11  ;;  %v850_v39 = vadd.f32 %v849_v14, %v848_v12 }
 0x134   :  { %v771_v15 = vpop.f32.mrb[30].mxu0 }
 0x135   :  { %v674_v16 = vadd.f32 %v673_v43, %v659_v38  ;;  %v601_v17 = vadd.f32 %v850_v39, %v770_v56  ;;  %v851_v18 = vpop.f32.mrb[30].mxu1  ;;  %v772_v19 = vpop.f32.mrb[31].mxu0 }
 0x136   :  { %v773_v20 = vadd.f32 %v772_v19, %v771_v15  ;;  %v852_v21 = vpop.f32.mrb[31].mxu1 }
 0x137   :  { %623 = vst [vmem:[%s1549_s4 + $0x70] sm:$0xff] %v601_v17  ;;  %v638_v22 = vadd.f32 %v637_v58, %v601_v17  ;;  %v660_v23 = vmul.f32 %v601_v17, %v601_v17  ;;  %v853_v24 = vadd.f32 %v852_v21, %v851_v18 }
 0x139   :  { %v675_v25 = vadd.f32 %v674_v16, %v660_v23  ;;  %v606_v26 = vadd.f32 %v853_v24, %v773_v20 }
 0x13b   :  { %624 = vst [vmem:[%s1549_s4 + $0x78] sm:$0xff] %v606_v26  ;;  %v639_v27 = vadd.f32 %v638_v22, %v606_v26  ;;  %v661_v29 = vmul.f32 %v606_v26, %v606_v26 }
 0x13d   :  { %v640_v30 = vrot.slane %v639_v27, 4  ;;  %v676_v32 = vadd.f32 %v675_v25, %v661_v29 }
 0x13f   :  { %v641_v33 = vadd.f32 %v640_v30, %v639_v27  ;;  %v677_v37 = vrot.slane %v676_v32, 4 }
 0x141   :  { %v642_v40 = vrot.slane %v641_v33, 2  ;;  %v678_v41 = vadd.f32 %v677_v37, %v676_v32 }
 0x143   :  { %v643_v42 = vadd.f32 %v642_v40, %v641_v33  ;;  %v679_v44 = vrot.slane %v678_v41, 2 }
 0x145   :  { %v644_v45 = vrot.slane %v643_v42, 1  ;;  %v680_v46 = vadd.f32 %v679_v44, %v678_v41 }
 0x147   :  { %v681_v47 = vrot.slane %v680_v46, 1  ;;  %v645_v48 = vadd.f32 %v644_v45, %v643_v42 }
 0x149   :  { %v682_v49 = vadd.f32 %v681_v47, %v680_v46 }
 0x14b   :  { %v684_v50 = vsel %vm683_vm0, %v645_v48, %v682_v49 }
 0x14c   :  { %685 = vst [vmem:[%s1550_s5] sm:$0x3] %v684_v50 }

// kernel: bottleneck_pallas.11
= control target key start
LH: loop header
LB: loop body
LE: loop exit
PB: predicated region body
PF: predicated region fallthrough
CT: control target
= control target key end

     0   :  { %s473_s0 = inlined_call_operand.vmem [shape: f32[128,128], index: 0, kind: input, shape index: {}]   ;;  %s474_s1 = inlined_call_operand.vmem [shape: f32[128,128], index: 1, kind: input, shape index: {}]   ;;  %s475_s2 = inlined_call_operand.vmem [shape: f32[1,128], index: 2, kind: input, shape index: {}]   ;;  %s476_s3 = inlined_call_operand.vmem [shape: f32[1,128], index: 3, kind: input, shape index: {}]   ;;  %s477_s4 = inlined_call_operand.vmem [shape: f32[1,128], index: 4, kind: input, shape index: {}]   ;;  %s478_s5 = inlined_call_operand.vmem [shape: f32[1,128], index: 5, kind: input, shape index: {}]   ;;  %s479_s6 = inlined_call_operand.hbm [shape: f32[128,128], index: 6, kind: output, shape index: {}]  }
   0x1   :  { %v24_v0 = vld [vmem:[%s473_s0] sm:$0xff]  ;;  %v25_v8 = vld [vmem:[%s473_s0 + $0x8] sm:$0xff]  ;;  %v26_v10 = vld [vmem:[%s473_s0 + $0x10] sm:$0xff] }
   0x2   :  { %v287_v1 = vld [vmem:[%s475_s2] ss:$0 sm:$0xff]  ;;  %v87_v9 = vld [vmem:[%s474_s1 + $0x8] sm:$0xff]  ;;  %v88_v15 = vld [vmem:[%s474_s1 + $0x10] sm:$0xff] }
   0x3   :  { %v292_v2 = vld [vmem:[%s476_s3] ss:$0 sm:$0xff]  ;;  %v47_v3 = vmul.f32 %v287_v1, %v24_v0  ;;  %v48_v12 = vmul.f32 %v287_v1, %v25_v8  ;;  %v49_v14 = vmul.f32 %v287_v1, %v26_v10  ;;  %v27_v16 = vld [vmem:[%s473_s0 + $0x18] sm:$0xff]  ;;  %v29_v24 = vld [vmem:[%s473_s0 + $0x28] sm:$0xff] }
   0x4   :  { %v86_v4 = vld [vmem:[%s474_s1] sm:$0xff]  ;;  %v89_v17 = vld [vmem:[%s474_s1 + $0x18] sm:$0xff]  ;;  %v50_v20 = vmul.f32 %v287_v1, %v27_v16  ;;  %v91_v29 = vld [vmem:[%s474_s1 + $0x28] sm:$0xff]  ;;  %v52_v38 = vmul.f32 %v287_v1, %v29_v24 }
   0x5   :  { %v301_v5 = vld [vmem:[%s477_s4] ss:$0 sm:$0xff]  ;;  %v70_v11 = vadd.f32 %v292_v2, %v47_v3  ;;  %v71_v25 = vadd.f32 %v292_v2, %v48_v12  ;;  %v72_v27 = vadd.f32 %v292_v2, %v49_v14  ;;  %v30_v34 = vld [vmem:[%s473_s0 + $0x30] sm:$0xff]  ;;  %v31_v44 = vld [vmem:[%s473_s0 + $0x38] sm:$0xff] }
   0x6   :  { %v306_v6 = vld [vmem:[%s478_s5] ss:$0 sm:$0xff]  ;;  %v109_v7 = vmul.f32 %v301_v5, %v86_v4  ;;  %v110_v13 = vmul.f32 %v301_v5, %v87_v9  ;;  %v111_v19 = vmul.f32 %v301_v5, %v88_v15  ;;  %v112_v21 = vmul.f32 %v301_v5, %v89_v17  ;;  %v92_v39 = vld [vmem:[%s474_s1 + $0x30] sm:$0xff]  ;;  %v93_v45 = vld [vmem:[%s474_s1 + $0x38] sm:$0xff] }
   0x7   :  { %v28_v22 = vld [vmem:[%s473_s0 + $0x20] sm:$0xff]  ;;  %v73_v32 = vadd.f32 %v292_v2, %v50_v20  ;;  %v114_v43 = vmul.f32 %v301_v5, %v91_v29  ;;  %v75_v48 = vadd.f32 %v292_v2, %v52_v38  ;;  %v53_v49 = vmul.f32 %v287_v1, %v30_v34  ;;  %v33_v56 = vld [vmem:[%s473_s0 + $0x48] sm:$0xff]  ;;  %v34_v4 = vld [vmem:[%s473_s0 + $0x50] sm:$0xff] }
   0x8   :  { %v132_v18 = vadd.f32 %v306_v6, %v109_v7  ;;  %v90_v23 = vld [vmem:[%s474_s1 + $0x20] sm:$0xff]  ;;  %v133_v26 = vadd.f32 %v306_v6, %v110_v13  ;;  %v51_v28 = vmul.f32 %v287_v1, %v28_v22  ;;  %v134_v31 = vadd.f32 %v306_v6, %v111_v19  ;;  %v95_v3 = vld [vmem:[%s474_s1 + $0x48] sm:$0xff] }
   0x9   :  { %v135_v33 = vadd.f32 %v306_v6, %v112_v21  ;;  %v113_v37 = vmul.f32 %v301_v5, %v90_v23  ;;  %v32_v50 = vld [vmem:[%s473_s0 + $0x40] sm:$0xff]  ;;  %v137_v54 = vadd.f32 %v306_v6, %v114_v43  ;;  %v115_v55 = vmul.f32 %v301_v5, %v92_v39 }
   0xa   :  { %v148_v30 = vadd.f32 %v132_v18, %v70_v11  ;;  %v149_v35 = vadd.f32 %v133_v26, %v71_v25  ;;  %v74_v36 = vadd.f32 %v292_v2, %v51_v28  ;;  %v150_v41 = vadd.f32 %v134_v31, %v72_v27  ;;  %v94_v51 = vld [vmem:[%s474_s1 + $0x40] sm:$0xff] }
   0xb   :  { %v151_v42 = vadd.f32 %v135_v33, %v73_v32  ;;  %v136_v47 = vadd.f32 %v306_v6, %v113_v37  ;;  %v76_v58 = vadd.f32 %v292_v2, %v53_v49  ;;  %v54_v59 = vmul.f32 %v287_v1, %v31_v44 }
   0xc   :  { %v164_v40 = vmax.f32 %v148_v30, 0.0  ;;  %v165_v46 = vmax.f32 %v149_v35, 0.0  ;;  %v166_v52 = vmax.f32 %v150_v41, 0.0  ;;  %v116_v60 = vmul.f32 %v301_v5, %v93_v45 }
   0xd   :  { %v167_v53 = vmax.f32 %v151_v42, 0.0  ;;  %v152_v57 = vadd.f32 %v136_v47, %v74_v36  ;;  %v153_v61 = vadd.f32 %v137_v54, %v75_v48  ;;  %v138_v62 = vadd.f32 %v306_v6, %v115_v55 }
   0xe   :  { %180 = vst [vmem:[#allocation2] sm:$0xff] %v164_v40  ;;  %181 = vst [vmem:[#allocation2 + $0x8] sm:$0xff] %v165_v46  ;;  %v55_v63 = vmul.f32 %v287_v1, %v32_v50  ;;  %v117_v0 = vmul.f32 %v301_v5, %v94_v51 }
   0xf   :  { %182 = vst [vmem:[#allocation2 + $0x10] sm:$0xff] %v166_v52  ;;  %183 = vst [vmem:[#allocation2 + $0x18] sm:$0xff] %v167_v53 }
  0x10   :  { %11 = vsyncpa [#allocation3], 0  ;;  %v168_v7 = vmax.f32 %v152_v57, 0.0  ;;  %v77_v8 = vadd.f32 %v292_v2, %v54_v59  ;;  %v139_v9 = vadd.f32 %v306_v6, %v116_v60  ;;  %v56_v10 = vmul.f32 %v287_v1, %v33_v56  ;;  %v96_v11 = vld [vmem:[%s474_s1 + $0x50] sm:$0xff]  ;;  %v35_v12 = vld [vmem:[%s473_s0 + $0x58] sm:$0xff] }
  0x11   :  { %v169_v13 = vmax.f32 %v153_v61, 0.0  ;;  %v154_v14 = vadd.f32 %v138_v62, %v76_v58  ;;  %v78_v15 = vadd.f32 %v292_v2, %v55_v63  ;;  %v140_v16 = vadd.f32 %v306_v6, %v117_v0  ;;  %v97_v17 = vld [vmem:[%s474_s1 + $0x58] sm:$0xff]  ;;  %v36_v22 = vld [vmem:[%s473_s0 + $0x60] sm:$0xff]  ;;  %v37_v28 = vld [vmem:[%s473_s0 + $0x68] sm:$0xff] }
  0x12   :  { %184 = vst [vmem:[#allocation2 + $0x20] sm:$0xff] %v168_v7  ;;  %v155_v18 = vadd.f32 %v139_v9, %v77_v8  ;;  %v79_v19 = vadd.f32 %v292_v2, %v56_v10  ;;  %v118_v20 = vmul.f32 %v301_v5, %v95_v3  ;;  %v57_v21 = vmul.f32 %v287_v1, %v34_v4  ;;  %v98_v27 = vld [vmem:[%s474_s1 + $0x60] sm:$0xff]  ;;  %v99_v33 = vld [vmem:[%s474_s1 + $0x68] sm:$0xff]  ;;  %v38_v34 = vld [vmem:[%s473_s0 + $0x70] sm:$0xff] }
  0x13   :  { %185 = vst [vmem:[#allocation2 + $0x28] sm:$0xff] %v169_v13  ;;  %v170_v23 = vmax.f32 %v154_v14, 0.0  ;;  %v156_v24 = vadd.f32 %v140_v16, %v78_v15  ;;  %v119_v25 = vmul.f32 %v301_v5, %v96_v11  ;;  %v58_v26 = vmul.f32 %v287_v1, %v35_v12  ;;  %v100_v43 = vld [vmem:[%s474_s1 + $0x70] sm:$0xff]  ;;  %v39_v48 = vld [vmem:[%s473_s0 + $0x78] sm:$0xff]  ;;  %s243_s0 = smov [#allocation2]  }
  0x14   :  { %v171_v29 = vmax.f32 %v155_v18, 0.0  ;;  %v141_v30 = vadd.f32 %v306_v6, %v118_v20  ;;  %v80_v31 = vadd.f32 %v292_v2, %v57_v21  ;;  %v120_v32 = vmul.f32 %v301_v5, %v97_v17  ;;  %v101_v49 = vld [vmem:[%s474_s1 + $0x78] sm:$0xff]  ;;  %s201_s1 = sshll.u32 %s243_s0, 4  ;;  %s202_s1 = int_to_ptr.vmem [resolvable:$true] %s201_s1 }
  0x15   :  { %186 = vst [vmem:[#allocation2 + $0x30] sm:$0xff] %v170_v23  ;;  %v172_v35 = vmax.f32 %v156_v24, 0.0  ;;  %v142_v36 = vadd.f32 %v306_v6, %v119_v25  ;;  %v81_v37 = vadd.f32 %v292_v2, %v58_v26  ;;  %v59_v38 = vmul.f32 %v287_v1, %v36_v22  ;;  %s219_s11 = scalar_lea.vmem %s202_s1, 2048  ;;  %p224_p1 = scmp.lt.s32.totalorder %s202_s1, %s202_s1 }
  0x16   :  { %187 = vst [vmem:[#allocation2 + $0x38] sm:$0xff] %v171_v29  ;;  %v157_v39 = vadd.f32 %v141_v30, %v79_v19  ;;  %v143_v40 = vadd.f32 %v306_v6, %v120_v32  ;;  %v121_v41 = vmul.f32 %v301_v5, %v98_v27  ;;  %v60_v42 = vmul.f32 %v287_v1, %v37_v28  ;;  %p220_p0 = scmp.ne.s32.totalorder %s202_s1, %s219_s11  ;;  %p225_p2 = scmp.lt.s32.totalorder %s219_s11, %s219_s11 }
  0x17   :  { %188 = vst [vmem:[#allocation2 + $0x40] sm:$0xff] %v172_v35  ;;  %v158_v44 = vadd.f32 %v142_v36, %v80_v31  ;;  %v82_v45 = vadd.f32 %v292_v2, %v59_v38  ;;  %v122_v46 = vmul.f32 %v301_v5, %v99_v33  ;;  %v61_v47 = vmul.f32 %v287_v1, %v38_v34 }
  0x18   :  { %v173_v50 = vmax.f32 %v157_v39, 0.0  ;;  %v159_v51 = vadd.f32 %v143_v40, %v81_v37  ;;  %v144_v52 = vadd.f32 %v306_v6, %v121_v41  ;;  %v83_v53 = vadd.f32 %v292_v2, %v60_v42  ;;  %p226_p3 = por %p225_p2, %p224_p1 }
  0x19   :  { %v174_v54 = vmax.f32 %v158_v44, 0.0  ;;  %v145_v55 = vadd.f32 %v306_v6, %v122_v46  ;;  %v84_v56 = vadd.f32 %v292_v2, %v61_v47  ;;  %v123_v57 = vmul.f32 %v301_v5, %v100_v43 }
  0x1a   :  { %189 = vst [vmem:[#allocation2 + $0x48] sm:$0xff] %v173_v50  ;;  %v175_v58 = vmax.f32 %v159_v51, 0.0  ;;  %v160_v59 = vadd.f32 %v144_v52, %v82_v45  ;;  %v62_v60 = vmul.f32 %v287_v1, %v39_v48  ;;  %v124_v61 = vmul.f32 %v301_v5, %v101_v49  ;;  %p227_p4 = pnand %p226_p3, %p220_p0 }
  0x1b   :  { %190 = vst [vmem:[#allocation2 + $0x50] sm:$0xff] %v174_v54  ;;  %v161_v62 = vadd.f32 %v145_v55, %v83_v53  ;;  %v146_v63 = vadd.f32 %v306_v6, %v123_v57 }
  0x1c   :  { %191 = vst [vmem:[#allocation2 + $0x58] sm:$0xff] %v175_v58  ;;  %v176_v0 = vmax.f32 %v160_v59, 0.0  ;;  %v85_v3 = vadd.f32 %v292_v2, %v62_v60  ;;  %v147_v4 = vadd.f32 %v306_v6, %v124_v61 }
  0x1d   :  { %v177_v7 = vmax.f32 %v161_v62, 0.0  ;;  %v162_v8 = vadd.f32 %v146_v63, %v84_v56 }
  0x1e   :  { %192 = vst [vmem:[#allocation2 + $0x60] sm:$0xff] %v176_v0  ;;  %v163_v9 = vadd.f32 %v147_v4, %v85_v3 }
  0x1f   :  { %193 = vst [vmem:[#allocation2 + $0x68] sm:$0xff] %v177_v7  ;;  %v178_v1 = vmax.f32 %v162_v8, 0.0 }
  0x20   :  { %v179_v5 = vmax.f32 %v163_v9, 0.0 }
  0x21   :  { %194 = vst [vmem:[#allocation2 + $0x70] sm:$0xff] %v178_v1 }
  0x22   :  { %195 = vst [vmem:[#allocation2 + $0x78] sm:$0xff] %v179_v5 }
  0x23   :  { %230 = shalt.err (!%p227_p4)
}
  0x24   :  { %s231_s5 = scalar_lea.hbm %s479_s6, 2048 }
  0x25   :  { %p232_p5 = scmp.ne.s32.totalorder %s479_s6, %s231_s5  ;;  %p235_p6 = scmp.lt.u32.totalorder %s231_s5, %s479_s6 }
  0x27   :  { %p237_p7 = pnand %p235_p6, %p232_p5 }
  0x29   :  { %240 = shalt.err (!%p237_p7)
}
  0x2a   :  { %s244_s17 = smov 128   ;;  %s245_s18 = smov 8  }
  0x2b   :  { %207 = dma.vmem_to_hbm [thread:$0]  %s202_s1, 2048, %s479_s6, [#allocation3], %s244_s17, %s244_s17, %s245_s18  }
  0x2c   :  { %241 = dma.done.wait [#allocation3], 2048  }
  0x2d   :  { %242 = vsyncadd [#allocation3], 4294965248 }
  0x2e   :  { %211 = vsyncpa [#allocation3], 1 }

// kernel: bottleneck_pallas.8
= control target key start
LH: loop header
LB: loop body
LE: loop exit
PB: predicated region body
PF: predicated region fallthrough
CT: control target
= control target key end

     0   :  { %s3286_s18 = smov 0   ;;  %s5216_s0 = inlined_call_operand.vmem [shape: f32[512,1152], index: 0, kind: input, shape index: {}]   ;;  %s5217_s1 = inlined_call_operand.vmem [shape: f32[1152,128], index: 1, kind: input, shape index: {}]   ;;  %s5218_s2 = inlined_call_operand.vmem [shape: f32[1,1152], index: 2, kind: input, shape index: {}]   ;;  %s5219_s3 = inlined_call_operand.vmem [shape: f32[1,1152], index: 3, kind: input, shape index: {}]   ;;  %s5220_s4 = inlined_call_operand.vmem [shape: f32[512,128], index: 4, kind: output, shape index: {0}]   ;;  %s5221_s5 = inlined_call_operand.vmem [shape: f32[2,2,128], index: 5, kind: output, shape index: {1}]  }
   0x1 LB: > { %s3292_s19 = sadd.s32 4294967295, %s3253_s18   ;;  %p2705_p0 = scmp.ge.s32.totalorder %s3253_s18, 1  ;;  %s3253_s18 = sphi %s3286_s18, %s16_s18  }
   0x2   : > { %p192_p1 = scmp.lt.s32.totalorder %s3253_s18, 3 }
   0x4   : > { %p193_p2 = pnand %p2705_p0, %p192_p1 }
   0x5   : > { %v1204_v0 = vld [vmem:[%s5217_s1] sm:$0xff] (!%p193_p2)  ;;  %v1205_v1 = vld [vmem:[%s5217_s1 + $0x8] sm:$0xff] (!%p193_p2)  ;;  %v3255_v3 = vmov (!%p193_p2), 0.0|0.0   ;;  %v1206_v6 = vld [vmem:[%s5217_s1 + $0x10] sm:$0xff] (!%p193_p2)  ;;  %s2706_s11 = sshll.u32 (!%p193_p2), %s3292_s19, 5  ;;  %v534_v23 = vlaneseq (!%p193_p2)  ;;  %p238_p4 = scmp.lt.s32.totalorder (!%p193_p2), %s3292_s19, 1 }
   0x6   : > { %196 = sbr.rel (%p193_p2) target bundleno = 638 (0x27e), region = 36  ;;  %v1236_v2 = vld [vmem:[%s5217_s1 + $0x100] sm:$0xff] (!%p193_p2)  ;;  %2843 = vmatprep.subr.bf16.mxu1 (!%p193_p2), %v3255_v3  ;;  %2891 = vmatprep.subr.bf16.mxu0 (!%p193_p2), %v3255_v3  ;;  %v2844_v4 = vpack.c.bf16 (!%p193_p2), %v1205_v1, %v1204_v0  ;;  %v1237_v5 = vld [vmem:[%s5217_s1 + $0x108] sm:$0xff] (!%p193_p2)  ;;  %v1207_v7 = vld [vmem:[%s5217_s1 + $0x18] sm:$0xff] (!%p193_p2)  ;;  %p226_p3 = scmp.lt.s32.totalorder (!%p193_p2), %s2706_s11, 63  ;;  %vm2611_vm0 = vcmask (!%p193_p2), 1040384  }
   0x7   : > { %v2892_v8 = vpack.c.bf16 (!%p193_p2), %v1237_v5, %v1236_v2  ;;  %v1238_v9 = vld [vmem:[%s5217_s1 + $0x110] sm:$0xff] (!%p193_p2)  ;;  %v1239_v10 = vld [vmem:[%s5217_s1 + $0x118] sm:$0xff] (!%p193_p2)  ;;  %v2847_v11 = vpack.c.bf16 (!%p193_p2), %v1207_v7, %v1206_v6  ;;  %v1208_v13 = vld [vmem:[%s5217_s1 + $0x20] sm:$0xff] (!%p193_p2)  ;;  %v3368_v30 = vshrl.u32 (!%p193_p2), %v534_v23, 7 }
   0x8   : > { %2845 = vmatpush1.bf16.msra.mxu1 (!%p193_p2), %v2844_v4  ;;  %v2895_v12 = vpack.c.bf16 (!%p193_p2), %v1239_v10, %v1238_v9  ;;  %v1209_v14 = vld [vmem:[%s5217_s1 + $0x28] sm:$0xff] (!%p193_p2)  ;;  %v1240_v15 = vld [vmem:[%s5217_s1 + $0x120] sm:$0xff] (!%p193_p2)  ;;  %v1210_v19 = vld [vmem:[%s5217_s1 + $0x30] sm:$0xff] (!%p193_p2) }
   0x9   : > { %2893 = vmatpush1.bf16.msra.mxu0 (!%p193_p2), %v2892_v8  ;;  %2846 = vmatprep.subr.bf16.mxu1 (!%p193_p2), %v3255_v3  ;;  %v1241_v16 = vld [vmem:[%s5217_s1 + $0x128] sm:$0xff] (!%p193_p2)  ;;  %v2850_v17 = vpack.c.bf16 (!%p193_p2), %v1209_v14, %v1208_v13  ;;  %v1211_v20 = vld [vmem:[%s5217_s1 + $0x38] sm:$0xff] (!%p193_p2)  ;;  %v1242_v21 = vld [vmem:[%s5217_s1 + $0x130] sm:$0xff] (!%p193_p2)  ;;  %v540_v37 = vsub.s32 (!%p193_p2), 1, %v3368_v30  ;;  %v548_v38 = vsub.s32 (!%p193_p2), 3, %v3368_v30 }
   0xa   : > { %2894 = vmatprep.subr.bf16.mxu0 (!%p193_p2), %v3255_v3  ;;  %v2898_v18 = vpack.c.bf16 (!%p193_p2), %v1241_v16, %v1240_v15  ;;  %v1243_v22 = vld [vmem:[%s5217_s1 + $0x138] sm:$0xff] (!%p193_p2)  ;;  %v2853_v24 = vpack.c.bf16 (!%p193_p2), %v1211_v20, %v1210_v19  ;;  %v1212_v26 = vld [vmem:[%s5217_s1 + $0x40] sm:$0xff] (!%p193_p2)  ;;  %v1213_v27 = vld [vmem:[%s5217_s1 + $0x48] sm:$0xff] (!%p193_p2) }
   0xb   : > { %v2901_v25 = vpack.c.bf16 (!%p193_p2), %v1243_v22, %v1242_v21  ;;  %v1244_v28 = vld [vmem:[%s5217_s1 + $0x140] sm:$0xff] (!%p193_p2)  ;;  %v1245_v29 = vld [vmem:[%s5217_s1 + $0x148] sm:$0xff] (!%p193_p2)  ;;  %v2856_v31 = vpack.c.bf16 (!%p193_p2), %v1213_v27, %v1212_v26  ;;  %v1214_v33 = vld [vmem:[%s5217_s1 + $0x50] sm:$0xff] (!%p193_p2) }
   0xc   : > { %2848 = vmatpush1.bf16.msra.mxu1 (!%p193_p2), %v2847_v11  ;;  %v2904_v32 = vpack.c.bf16 (!%p193_p2), %v1245_v29, %v1244_v28  ;;  %v1215_v34 = vld [vmem:[%s5217_s1 + $0x58] sm:$0xff] (!%p193_p2)  ;;  %v1246_v35 = vld [vmem:[%s5217_s1 + $0x150] sm:$0xff] (!%p193_p2)  ;;  %v1216_v41 = vld [vmem:[%s5217_s1 + $0x60] sm:$0xff] (!%p193_p2) }
   0xd   : > { %2896 = vmatpush1.bf16.msra.mxu0 %v2895_v12  ;;  %2849 = vmatprep.subr.bf16.mxu1 %v3255_v3  ;;  %s5223_s11 = smov (!%p226_p3, %s2706_s11), 63  ;;  %v1247_v36 = vld [vmem:[%s5217_s1 + $0x158] sm:$0xff]  ;;  %v2859_v39 = vpack.c.bf16 %v1215_v34, %v1214_v33  ;;  %v1217_v42 = vld [vmem:[%s5217_s1 + $0x68] sm:$0xff]  ;;  %v1248_v43 = vld [vmem:[%s5217_s1 + $0x160] sm:$0xff]  ;;  %s5225_s19 = smov (!%p238_p4, %s3292_s19), 1 }
   0xe   : > { %2897 = vmatprep.subr.bf16.mxu0 %v3255_v3  ;;  %s3235_s14 = smul.u32 72, %s5223_s11  ;;  %v2907_v40 = vpack.c.bf16 %v1247_v36, %v1246_v35  ;;  %v1249_v44 = vld [vmem:[%s5217_s1 + $0x168] sm:$0xff]  ;;  %v3409_v46 = vld [vmem:[%s5218_s2] sm:$0xff]  ;;  %v2862_v51 = vpack.c.bf16 %v1217_v42, %v1216_v41  ;;  %v1218_v55 = vld [vmem:[%s5217_s1 + $0x70] sm:$0xff] }
   0xf   : > { %v3412_v47 = vrot.slane %v3409_v46, %v540_v37  ;;  %v3417_v48 = vld [vmem:[%s5219_s3] sm:$0xff]  ;;  %v3421_v50 = vrot.slane %v3409_v46, %v548_v38  ;;  %v2910_v54 = vpack.c.bf16 %v1249_v44, %v1248_v43  ;;  %v1219_v56 = vld [vmem:[%s5217_s1 + $0x78] sm:$0xff]  ;;  %v1250_v59 = vld [vmem:[%s5217_s1 + $0x170] sm:$0xff] }
  0x10   : > { %2851 = vmatpush1.bf16.msra.mxu1 %v2850_v17  ;;  %s3387_s27 = scalar_lea.vmem %s5216_s0, %s3235_s14  ;;  %v3424_v52 = vrot.slane %v3417_v48, %v540_v37  ;;  %v3427_v53 = vrot.slane %v3417_v48, %v548_v38  ;;  %v1251_v60 = vld [vmem:[%s5217_s1 + $0x178] sm:$0xff]  ;;  %v2865_v63 = vpack.c.bf16 %v1219_v56, %v1218_v55  ;;  %v1220_v1 = vld [vmem:[%s5217_s1 + $0x80] sm:$0xff]  ;;  %v1221_v2 = vld [vmem:[%s5217_s1 + $0x88] sm:$0xff]  ;;  %v536_v37 = vsub.s32 0, %v3368_v30 }
  0x11   : > { %2899 = vmatpush1.bf16.msra.mxu0 %v2898_v18  ;;  %2852 = vmatprep.subr.bf16.mxu1 %v3255_v3  ;;  %v243_v45 = vld [vmem:[%s3387_s27 + $0x8] sm:$0xff]  ;;  %v245_v49 = vld [vmem:[%s3387_s27 + $0x18] sm:$0xff]  ;;  %v2913_v0 = vpack.c.bf16 %v1251_v60, %v1250_v59  ;;  %v1252_v4 = vld [vmem:[%s5217_s1 + $0x180] sm:$0xff]  ;;  %v2868_v6 = vpack.c.bf16 %v1221_v2, %v1220_v1 }
  0x12   : > { %2900 = vmatprep.subr.bf16.mxu0 %v3255_v3  ;;  %v580_v57 = vmul.f32 %v3412_v47, %v243_v45  ;;  %v582_v58 = vmul.f32 %v3421_v50, %v245_v49  ;;  %v1253_v5 = vld [vmem:[%s5217_s1 + $0x188] sm:$0xff]  ;;  %v1222_v8 = vld [vmem:[%s5217_s1 + $0x90] sm:$0xff]  ;;  %v1223_v9 = vld [vmem:[%s5217_s1 + $0x98] sm:$0xff]  ;;  %v3548_v45 = vrot.slane %v3409_v46, %v536_v37 }
  0x13   : > { %v2916_v7 = vpack.c.bf16 %v1253_v5, %v1252_v4  ;;  %v1254_v10 = vld [vmem:[%s5217_s1 + $0x190] sm:$0xff]  ;;  %v1255_v11 = vld [vmem:[%s5217_s1 + $0x198] sm:$0xff]  ;;  %v2871_v12 = vpack.c.bf16 %v1223_v9, %v1222_v8  ;;  %v1224_v14 = vld [vmem:[%s5217_s1 + $0xa0] sm:$0xff] }
  0x14   : > { %2854 = vmatpush1.bf16.msra.mxu1 %v2853_v24  ;;  %v917_v61 = vadd.f32 %v3424_v52, %v580_v57  ;;  %v919_v62 = vadd.f32 %v3427_v53, %v582_v58  ;;  %v2919_v13 = vpack.c.bf16 %v1255_v11, %v1254_v10  ;;  %v1225_v15 = vld [vmem:[%s5217_s1 + $0xa8] sm:$0xff]  ;;  %v1256_v16 = vld [vmem:[%s5217_s1 + $0x1a0] sm:$0xff]  ;;  %v1226_v20 = vld [vmem:[%s5217_s1 + $0xb0] sm:$0xff] }
  0x15   : > { %2902 = vmatpush1.bf16.msra.mxu0 %v2901_v25  ;;  %2855 = vmatprep.subr.bf16.mxu1 %v3255_v3  ;;  %v1257_v17 = vld [vmem:[%s5217_s1 + $0x1a8] sm:$0xff]  ;;  %v2874_v18 = vpack.c.bf16 %v1225_v15, %v1224_v14  ;;  %v1227_v21 = vld [vmem:[%s5217_s1 + $0xb8] sm:$0xff]  ;;  %v1258_v22 = vld [vmem:[%s5217_s1 + $0x1b0] sm:$0xff] }
  0x16   : > { %2903 = vmatprep.subr.bf16.mxu0 %v3255_v3  ;;  %1412 = vmatprep.mubr.f32.mxu1 %v917_v61  ;;  %v2922_v19 = vpack.c.bf16 %v1257_v17, %v1256_v16  ;;  %v1259_v23 = vld [vmem:[%s5217_s1 + $0x1b8] sm:$0xff]  ;;  %v2877_v24 = vpack.c.bf16 %v1227_v21, %v1226_v20  ;;  %v1228_v26 = vld [vmem:[%s5217_s1 + $0xc0] sm:$0xff]  ;;  %v1229_v27 = vld [vmem:[%s5217_s1 + $0xc8] sm:$0xff] }
  0x17   : > { %1637 = vmatprep.mubr.f32.mxu0 %v919_v62  ;;  %v2925_v25 = vpack.c.bf16 %v1259_v23, %v1258_v22  ;;  %v1260_v28 = vld [vmem:[%s5217_s1 + $0x1c0] sm:$0xff]  ;;  %v1261_v29 = vld [vmem:[%s5217_s1 + $0x1c8] sm:$0xff]  ;;  %v1230_v33 = vld [vmem:[%s5217_s1 + $0xd0] sm:$0xff] }
  0x18   : > { %2857 = vmatpush1.bf16.msra.mxu1 %v2856_v31  ;;  %v2880_v31 = vpack.c.bf16 %v1229_v27, %v1228_v26  ;;  %v1231_v34 = vld [vmem:[%s5217_s1 + $0xd8] sm:$0xff]  ;;  %v1262_v35 = vld [vmem:[%s5217_s1 + $0x1d0] sm:$0xff]  ;;  %v1232_v41 = vld [vmem:[%s5217_s1 + $0xe0] sm:$0xff] }
  0x19   : > { %2905 = vmatpush1.bf16.msra.mxu0 %v2904_v32  ;;  %2858 = vmatprep.subr.bf16.mxu1 %v3255_v3  ;;  %v2928_v32 = vpack.c.bf16 %v1261_v29, %v1260_v28  ;;  %v1263_v36 = vld [vmem:[%s5217_s1 + $0x1d8] sm:$0xff]  ;;  %v2883_v38 = vpack.c.bf16 %v1231_v34, %v1230_v33  ;;  %v1233_v42 = vld [vmem:[%s5217_s1 + $0xe8] sm:$0xff]  ;;  %v1264_v43 = vld [vmem:[%s5217_s1 + $0x1e0] sm:$0xff] }
  0x1a   : > { %2906 = vmatprep.subr.bf16.mxu0 %v3255_v3  ;;  %v1265_v44 = vld [vmem:[%s5217_s1 + $0x1e8] sm:$0xff]  ;;  %v2886_v49 = vpack.c.bf16 %v1233_v42, %v1232_v41  ;;  %v1235_v57 = vld [vmem:[%s5217_s1 + $0xf8] sm:$0xff]  ;;  %v244_v58 = vld [vmem:[%s3387_s27 + $0x10] sm:$0xff] }
  0x1b   : > { %v2934_v56 = vpack.c.bf16 %v1265_v44, %v1264_v43  ;;  %v252_v59 = vld [vmem:[%s3387_s27 + $0x50] sm:$0xff]  ;;  %v254_v61 = vld [vmem:[%s3387_s27 + $0x60] sm:$0xff]  ;;  %v251_v5 = vld [vmem:[%s3387_s27 + $0x48] sm:$0xff] }
  0x1c   : > { %2860 = vmatpush1.bf16.msra.mxu1 %v2859_v39  ;;  %v544_v39 = vsub.s32 2, %v3368_v30  ;;  %v1266_v60 = vld [vmem:[%s5217_s1 + $0x1f0] sm:$0xff]  ;;  %v589_v4 = vmul.f32 %v3412_v47, %v252_v59  ;;  %v253_v8 = vld [vmem:[%s3387_s27 + $0x58] sm:$0xff]  ;;  %v1269_v10 = vld [vmem:[%s5217_s1 + $0x208] sm:$0xff] }
  0x1d   : > { %2908 = vmatpush1.bf16.msra.mxu0 %v2907_v40  ;;  %2861 = vmatprep.subr.bf16.mxu1 %v3255_v3  ;;  %v2931_v40 = vpack.c.bf16 %v1263_v36, %v1262_v35  ;;  %v261_v9 = vld [vmem:[%s3387_s27 + $0x98] sm:$0xff]  ;;  %v263_v11 = vld [vmem:[%s3387_s27 + $0xa8] sm:$0xff]  ;;  %v1300_v14 = vld [vmem:[%s5217_s1 + $0x300] sm:$0xff] }
  0x1e   : > { %2909 = vmatprep.subr.bf16.mxu0 %v3255_v3  ;;  %v3555_v55 = vrot.slane %v3409_v46, %v544_v39  ;;  %v1267_v46 = vld [vmem:[%s5217_s1 + $0x1f8] sm:$0xff]  ;;  %v3577_v2 = vrot.slane %v3417_v48, %v544_v39  ;;  %v1301_v15 = vld [vmem:[%s5217_s1 + $0x308] sm:$0xff]  ;;  %v926_v17 = vadd.f32 %v3424_v52, %v589_v4  ;;  %v260_v20 = vld [vmem:[%s3387_s27 + $0x90] sm:$0xff] }
  0x1f   : > { %v262_v21 = vld [vmem:[%s3387_s27 + $0xa0] sm:$0xff]  ;;  %v1270_v26 = vld [vmem:[%s5217_s1 + $0x210] sm:$0xff]  ;;  %v1271_v27 = vld [vmem:[%s5217_s1 + $0x218] sm:$0xff]  ;;  %v3619_v29 = vpack.c.bf16 %v1301_v15, %v1300_v14 }
  0x20   : > { %2863 = vmatpush1.bf16.msra.mxu1 %v2862_v51  ;;  %v1234_v51 = vld [vmem:[%s5217_s1 + $0xf0] sm:$0xff]  ;;  %v581_v1 = vmul.f32 %v3555_v55, %v244_v58  ;;  %v599_v33 = vmul.f32 %v3555_v55, %v262_v21  ;;  %v1303_v35 = vld [vmem:[%s5217_s1 + $0x318] sm:$0xff]  ;;  %v2943_v41 = vpack.c.bf16 %v1271_v27, %v1270_v26  ;;  %v271_v43 = vld [vmem:[%s3387_s27 + $0xe8] sm:$0xff] }
  0x21   : > { %2911 = vmatpush1.bf16.msra.mxu0 %v2910_v54  ;;  %2864 = vmatprep.subr.bf16.mxu1 %v3255_v3  ;;  %v242_v54 = vld [vmem:[%s3387_s27] sm:$0xff]  ;;  %v272_v28 = vld [vmem:[%s3387_s27 + $0xf0] sm:$0xff]  ;;  %v269_v39 = vld [vmem:[%s3387_s27 + $0xd8] sm:$0xff] }
  0x22   : > { %2912 = vmatprep.subr.bf16.mxu0 %v3255_v3  ;;  %v579_v62 = vmul.f32 %v3548_v45, %v242_v54  ;;  %v918_v16 = vadd.f32 %v3577_v2, %v581_v1  ;;  %v1302_v34 = vld [vmem:[%s5217_s1 + $0x310] sm:$0xff]  ;;  %v609_v42 = vmul.f32 %v3421_v50, %v272_v28  ;;  %v279_v44 = vld [vmem:[%s3387_s27 + $0x128] sm:$0xff]  ;;  %v936_v58 = vadd.f32 %v3577_v2, %v599_v33  ;;  %v278_v1 = vld [vmem:[%s3387_s27 + $0x120] sm:$0xff] }
  0x23   : > { %v1273_v54 = vld [vmem:[%s5217_s1 + $0x228] sm:$0xff]  ;;  %v606_v59 = vmul.f32 %v3548_v45, %v269_v39  ;;  %v280_v4 = vld [vmem:[%s3387_s27 + $0x130] sm:$0xff]  ;;  %v1276_v27 = vld [vmem:[%s5217_s1 + $0x240] sm:$0xff] }
  0x24   : > { %2866 = vmatpush1.bf16.msra.mxu1 %v2865_v63  ;;  %v3573_v63 = vrot.slane %v3417_v48, %v536_v37  ;;  %v1268_v48 = vld [vmem:[%s5217_s1 + $0x200] sm:$0xff]  ;;  %v617_v14 = vmul.f32 %v3555_v55, %v280_v4  ;;  %v1306_v15 = vld [vmem:[%s5217_s1 + $0x330] sm:$0xff]  ;;  %v299_v26 = vld [vmem:[%s3387_s27 + $0x1c8] sm:$0xff] }
  0x25   : > { %2914 = vmatpush1.bf16.msra.mxu0 %v2913_v0  ;;  %2867 = vmatprep.subr.bf16.mxu1 %v3255_v3  ;;  %v2889_v0 = vpack.c.bf16 %v1235_v57, %v1234_v51  ;;  %v2940_v22 = vpack.c.bf16 %v1269_v10, %v1268_v48  ;;  %v1272_v51 = vld [vmem:[%s5217_s1 + $0x220] sm:$0xff]  ;;  %v1274_v48 = vld [vmem:[%s5217_s1 + $0x230] sm:$0xff]  ;;  %v1275_v10 = vld [vmem:[%s5217_s1 + $0x238] sm:$0xff] }
  0x26   : > { %2915 = vmatprep.subr.bf16.mxu0 %v3255_v3  ;;  %v1277_v28 = vld [vmem:[%s5217_s1 + $0x248] sm:$0xff]  ;;  %v954_v33 = vadd.f32 %v3577_v2, %v617_v14 }
  0x28   : > { %2869 = vmatpush1.bf16.msra.mxu1 %v2868_v6  ;;  %v2937_v6 = vpack.c.bf16 %v1267_v46, %v1266_v60  ;;  %v1304_v60 = vld [vmem:[%s5217_s1 + $0x320] sm:$0xff]  ;;  %v1305_v46 = vld [vmem:[%s5217_s1 + $0x328] sm:$0xff] }
  0x29   : > { %2917 = vmatpush1.bf16.msra.mxu0 %v2916_v7  ;;  %2870 = vmatprep.subr.bf16.mxu1 %v3255_v3  ;;  %v591_v7 = vmul.f32 %v3421_v50, %v254_v61 }
  0x2a   : > { %2918 = vmatprep.subr.bf16.mxu0 %v3255_v3 }
  0x2b   : > { %v928_v23 = vadd.f32 %v3427_v53, %v591_v7  ;;  %v2946_v7 = vpack.c.bf16 %v1273_v54, %v1272_v51  ;;  %v308_v51 = vld [vmem:[%s3387_s27 + $0x210] sm:$0xff] }
  0x2c   : > { %2872 = vmatpush1.bf16.msra.mxu1 %v2871_v12  ;;  %v916_v12 = vadd.f32 %v3573_v63, %v579_v62  ;;  %v608_v62 = vmul.f32 %v3555_v55, %v271_v43  ;;  %v636_v43 = vmul.f32 %v3421_v50, %v299_v26  ;;  %v1278_v54 = vld [vmem:[%s5217_s1 + $0x250] sm:$0xff] }
  0x2d   : > { %2920 = vmatpush1.bf16.msra.mxu0 %v2919_v13  ;;  %2873 = vmatprep.subr.bf16.mxu1 %v3255_v3  ;;  %v588_v13 = vmul.f32 %v3548_v45, %v251_v5  ;;  %v946_v5 = vadd.f32 %v3427_v53, %v609_v42 }
  0x2e   : > { %2921 = vmatprep.subr.bf16.mxu0 %v3255_v3 }
  0x30   : > { %2875 = vmatpush1.bf16.msra.mxu1 %v2874_v18  ;;  %v590_v18 = vmul.f32 %v3555_v55, %v253_v8  ;;  %v288_v8 = vld [vmem:[%s3387_s27 + $0x170] sm:$0xff] }
  0x31   : > { %2923 = vmatpush1.bf16.msra.mxu0 %v2922_v19  ;;  %2876 = vmatprep.subr.bf16.mxu1 %v3255_v3  ;;  %v598_v19 = vmul.f32 %v3412_v47, %v261_v9  ;;  %v290_v9 = vld [vmem:[%s3387_s27 + $0x180] sm:$0xff] }
  0x32   : > { %2924 = vmatprep.subr.bf16.mxu0 %v3255_v3  ;;  %v927_v36 = vadd.f32 %v3577_v2, %v590_v18 }
  0x33   : > { %v935_v37 = vadd.f32 %v3424_v52, %v598_v19  ;;  %v625_v19 = vmul.f32 %v3412_v47, %v288_v8  ;;  %v307_v8 = vld [vmem:[%s3387_s27 + $0x208] sm:$0xff] }
  0x34   : > { %2878 = vmatpush1.bf16.msra.mxu1 %v2877_v24  ;;  %v600_v24 = vmul.f32 %v3421_v50, %v263_v11  ;;  %v3676_v11 = vpack.c.bf16 %v1305_v46, %v1304_v60 }
  0x35   : > { %2926 = vmatpush1.bf16.msra.mxu0 %v2925_v25  ;;  %2879 = vmatprep.subr.bf16.mxu1 %v3255_v3  ;;  %v270_v25 = vld [vmem:[%s3387_s27 + $0xe0] sm:$0xff] }
  0x36   : > { %2927 = vmatprep.subr.bf16.mxu0 %v3255_v3 }
  0x38   : > { %2881 = vmatpush1.bf16.msra.mxu1 %v2880_v31  ;;  %v925_v31 = vadd.f32 %v3573_v63, %v588_v13  ;;  %v615_v13 = vmul.f32 %v3548_v45, %v278_v1 }
  0x39   : > { %2929 = vmatpush1.bf16.msra.mxu0 %v2928_v32  ;;  %2882 = vmatprep.subr.bf16.mxu1 %v3255_v3  ;;  %v597_v32 = vmul.f32 %v3548_v45, %v260_v20  ;;  %v287_v20 = vld [vmem:[%s3387_s27 + $0x168] sm:$0xff] }
  0x3a   : > { %2930 = vmatprep.subr.bf16.mxu0 %v3255_v3 }
  0x3b   : > { %v934_v57 = vadd.f32 %v3573_v63, %v597_v32  ;;  %v952_v32 = vadd.f32 %v3573_v63, %v615_v13  ;;  %v1281_v13 = vld [vmem:[%s5217_s1 + $0x268] sm:$0xff] }
  0x3c   : > { %2884 = vmatpush1.bf16.msra.mxu1 %v2883_v38  ;;  %v607_v38 = vmul.f32 %v3412_v47, %v270_v25  ;;  %v2949_v25 = vpack.c.bf16 %v1275_v10, %v1274_v48  ;;  %v317_v10 = vld [vmem:[%s3387_s27 + $0x258] sm:$0xff] }
  0x3d   : > { %2932 = vmatpush1.bf16.msra.mxu0 %v2931_v40  ;;  %2885 = vmatprep.subr.bf16.mxu1 %v3255_v3  ;;  %v937_v40 = vadd.f32 %v3427_v53, %v600_v24  ;;  %v297_v24 = vld [vmem:[%s3387_s27 + $0x1b8] sm:$0xff]  ;;  %v654_v26 = vmul.f32 %v3421_v50, %v317_v10  ;;  %v334_v10 = vld [vmem:[%s3387_s27 + $0x2e0] sm:$0xff] }
  0x3e   : > { %2933 = vmatprep.subr.bf16.mxu0 %v3255_v3  ;;  %v944_v61 = vadd.f32 %v3424_v52, %v607_v38  ;;  %v634_v39 = vmul.f32 %v3412_v47, %v297_v24  ;;  %v316_v24 = vld [vmem:[%s3387_s27 + $0x250] sm:$0xff] }
  0x40   : > { %2887 = vmatpush1.bf16.msra.mxu1 %v2886_v49  ;;  %v281_v49 = vld [vmem:[%s3387_s27 + $0x138] sm:$0xff]  ;;  %v971_v1 = vadd.f32 %v3424_v52, %v634_v39  ;;  %v1314_v39 = vld [vmem:[%s5217_s1 + $0x370] sm:$0xff] }
  0x41   : > { %2935 = vmatpush1.bf16.msra.mxu0 %v2934_v56  ;;  %2888 = vmatprep.subr.bf16.mxu1 %v3255_v3  ;;  %v3647_v56 = vpack.c.bf16 %v1303_v35, %v1302_v34  ;;  %v624_v34 = vmul.f32 %v3548_v45, %v287_v20  ;;  %v1308_v35 = vld [vmem:[%s5217_s1 + $0x340] sm:$0xff] }
  0x42   : > { %2936 = vmatprep.subr.bf16.mxu0 %v3255_v3 }
  0x44   : > { %2890 = vmatpush1.bf16.msra.mxu1 %v2889_v0  ;;  %v616_v0 = vmul.f32 %v3412_v47, %v279_v44  ;;  %v306_v44 = vld [vmem:[%s3387_s27 + $0x200] sm:$0xff] }
  0x45   : > { %2938 = vmatpush1.bf16.msra.mxu0 %v2937_v6  ;;  %3067 = vmatprep.subr.bf16.mxu1 %v3255_v3  ;;  %v618_v6 = vmul.f32 %v3421_v50, %v281_v49  ;;  %v2952_v49 = vpack.c.bf16 %v1277_v28, %v1276_v27  ;;  %v643_v4 = vmul.f32 %v3412_v47, %v306_v44  ;;  %v324_v27 = vld [vmem:[%s3387_s27 + $0x290] sm:$0xff]  ;;  %v323_v44 = vld [vmem:[%s3387_s27 + $0x288] sm:$0xff] }
  0x46   : > { %2939 = vmatprep.subr.bf16.mxu0 %v3255_v3  ;;  %v953_v18 = vadd.f32 %v3424_v52, %v616_v0 }
  0x47   : > { %1413 = vmatmul.mubr.f32.vlgmr.msra.gmra.mrb[0].mxu1 %v916_v12  ;;  %v943_v12 = vadd.f32 %v3573_v63, %v606_v59  ;;  %v955_v21 = vadd.f32 %v3427_v53, %v618_v6  ;;  %v961_v59 = vadd.f32 %v3573_v63, %v624_v34  ;;  %v973_v6 = vadd.f32 %v3427_v53, %v636_v43  ;;  %v1283_v34 = vld [vmem:[%s5217_s1 + $0x278] sm:$0xff] }
  0x48   : > { %1638 = vmatmul.mubr.f32.vlgmr.msra.gmra.mrb[0].mxu0 %v918_v16  ;;  %1417 = vmatprep.mubr.f32.mxu1 %v926_v17  ;;  %v1307_v16 = vld [vmem:[%s5217_s1 + $0x338] sm:$0xff]  ;;  %v945_v17 = vadd.f32 %v3577_v2, %v608_v62  ;;  %v980_v20 = vadd.f32 %v3424_v52, %v643_v4  ;;  %v661_v43 = vmul.f32 %v3412_v47, %v324_v27 }
  0x49   : > { %2941 = vmatpush1.bf16.msra.mxu0 %v2940_v22  ;;  %1642 = vmatprep.mubr.f32.mxu0 %v928_v23  ;;  %v627_v22 = vmul.f32 %v3421_v50, %v290_v9  ;;  %v289_v23 = vld [vmem:[%s3387_s27 + $0x178] sm:$0xff]  ;;  %v315_v9 = vld [vmem:[%s3387_s27 + $0x248] sm:$0xff]  ;;  %v660_v4 = vmul.f32 %v3548_v45, %v323_v44 }
  0x4a   : > { %2942 = vmatprep.subr.bf16.mxu0 %v3255_v3  ;;  %3083 = vmatpush1.bf16.msra.mxu1 %v3619_v29  ;;  %v626_v38 = vmul.f32 %v3555_v55, %v289_v23  ;;  %v1311_v62 = vld [vmem:[%s5217_s1 + $0x358] sm:$0xff]  ;;  %v314_v23 = vld [vmem:[%s3387_s27 + $0x240] sm:$0xff] }
  0x4b   : > { %1418 = vmatmul.mubr.f32.gmra.mrb[2].mxu1 %v925_v31  ;;  %3068 = vmatprep.subr.bf16.mxu1 %v3255_v3  ;;  %v3705_v31 = vpack.c.bf16 %v1307_v16, %v1306_v15  ;;  %v964_v42 = vadd.f32 %v3427_v53, %v627_v22  ;;  %v652_v22 = vmul.f32 %v3412_v47, %v315_v9 }
  0x4c   : > { %1643 = vmatmul.mubr.f32.gmra.mrb[2].mxu0 %v927_v36  ;;  %1422 = vmatprep.mubr.f32.mxu1 %v935_v37  ;;  %v1309_v36 = vld [vmem:[%s5217_s1 + $0x348] sm:$0xff]  ;;  %v962_v37 = vadd.f32 %v3424_v52, %v625_v19  ;;  %v963_v0 = vadd.f32 %v3577_v2, %v626_v38  ;;  %v653_v38 = vmul.f32 %v3555_v55, %v316_v24  ;;  %v1318_v24 = vld [vmem:[%s5217_s1 + $0x390] sm:$0xff] }
  0x4d   : > { %1647 = vmatprep.mubr.f32.mxu0 %v937_v40  ;;  %2944 = vmatpush1.bf16.msra.mxu0 %v2943_v41  ;;  %v296_v40 = vld [vmem:[%s3387_s27 + $0x1b0] sm:$0xff]  ;;  %v298_v41 = vld [vmem:[%s3387_s27 + $0x1c0] sm:$0xff]  ;;  %v1313_v19 = vld [vmem:[%s5217_s1 + $0x368] sm:$0xff] }
  0x4e   : > { %2945 = vmatprep.subr.bf16.mxu0 %v3255_v3  ;;  %3084 = vmatpush1.bf16.msra.mxu1 %v3647_v56  ;;  %v633_v60 = vmul.f32 %v3548_v45, %v296_v40  ;;  %v635_v46 = vmul.f32 %v3555_v55, %v298_v41  ;;  %v1315_v40 = vld [vmem:[%s5217_s1 + $0x378] sm:$0xff] }
  0x4f   : > { %1423 = vmatmul.mubr.f32.gmra.mrb[4].mxu1 %v934_v57  ;;  %3069 = vmatprep.subr.bf16.mxu1 %v3255_v3  ;;  %v1279_v57 = vld [vmem:[%s5217_s1 + $0x258] sm:$0xff] }
  0x50   : > { %1648 = vmatmul.mubr.f32.gmra.mrb[4].mxu0 %v936_v58  ;;  %1427 = vmatprep.mubr.f32.mxu1 %v944_v61  ;;  %v3734_v58 = vpack.c.bf16 %v1309_v36, %v1308_v35  ;;  %v1310_v61 = vld [vmem:[%s5217_s1 + $0x350] sm:$0xff]  ;;  %v2955_v48 = vpack.c.bf16 %v1279_v57, %v1278_v54  ;;  %v970_v15 = vadd.f32 %v3573_v63, %v633_v60  ;;  %v325_v54 = vld [vmem:[%s3387_s27 + $0x298] sm:$0xff]  ;;  %v335_v60 = vld [vmem:[%s3387_s27 + $0x2e8] sm:$0xff] }
  0x51   : > { %1652 = vmatprep.mubr.f32.mxu0 %v946_v5  ;;  %2947 = vmatpush1.bf16.msra.mxu0 %v2946_v7  ;;  %v305_v5 = vld [vmem:[%s3387_s27 + $0x1f8] sm:$0xff]  ;;  %v645_v7 = vmul.f32 %v3421_v50, %v308_v51  ;;  %v3763_v14 = vpack.c.bf16 %v1311_v62, %v1310_v61  ;;  %v972_v16 = vadd.f32 %v3577_v2, %v635_v46  ;;  %v1284_v46 = vld [vmem:[%s5217_s1 + $0x280] sm:$0xff]  ;;  %v1285_v61 = vld [vmem:[%s5217_s1 + $0x288] sm:$0xff] }
  0x52   : > { %2948 = vmatprep.subr.bf16.mxu0 %v3255_v3  ;;  %3085 = vmatpush1.bf16.msra.mxu1 %v3676_v11  ;;  %v333_v57 = vld [vmem:[%s3387_s27 + $0x2d8] sm:$0xff]  ;;  %v3821_v62 = vpack.c.bf16 %v1315_v40, %v1314_v39  ;;  %v1288_v40 = vld [vmem:[%s5217_s1 + $0x2a0] sm:$0xff] }
  0x53   : > { %1428 = vmatmul.mubr.f32.gmra.mrb[6].mxu1 %v943_v12  ;;  %3070 = vmatprep.subr.bf16.mxu1 %v3255_v3  ;;  %v1280_v12 = vld [vmem:[%s5217_s1 + $0x260] sm:$0xff]  ;;  %v670_v9 = vmul.f32 %v3412_v47, %v333_v57  ;;  %v353_v39 = vld [vmem:[%s3387_s27 + $0x378] sm:$0xff] }
  0x54   : > { %1653 = vmatmul.mubr.f32.gmra.mrb[6].mxu0 %v945_v17  ;;  %1432 = vmatprep.mubr.f32.mxu1 %v953_v18  ;;  %v642_v17 = vmul.f32 %v3548_v45, %v305_v5  ;;  %v1312_v18 = vld [vmem:[%s5217_s1 + $0x360] sm:$0xff]  ;;  %v2958_v28 = vpack.c.bf16 %v1281_v13, %v1280_v12  ;;  %v672_v13 = vmul.f32 %v3421_v50, %v335_v60 }
  0x55   : > { %1657 = vmatprep.mubr.f32.mxu0 %v955_v21  ;;  %2950 = vmatpush1.bf16.msra.mxu0 %v2949_v25  ;;  %v644_v21 = vmul.f32 %v3555_v55, %v307_v8  ;;  %v982_v25 = vadd.f32 %v3427_v53, %v645_v7  ;;  %v3792_v35 = vpack.c.bf16 %v1313_v19, %v1312_v18  ;;  %v1316_v5 = vld [vmem:[%s5217_s1 + $0x380] sm:$0xff]  ;;  %v1286_v18 = vld [vmem:[%s5217_s1 + $0x290] sm:$0xff]  ;;  %v1287_v19 = vld [vmem:[%s5217_s1 + $0x298] sm:$0xff] }
  0x56   : > { %2951 = vmatprep.subr.bf16.mxu0 %v3255_v3  ;;  %3086 = vmatpush1.bf16.msra.mxu1 %v3705_v31  ;;  %v979_v36 = vadd.f32 %v3573_v63, %v642_v17  ;;  %v998_v7 = vadd.f32 %v3424_v52, %v661_v43  ;;  %v662_v8 = vmul.f32 %v3555_v55, %v325_v54  ;;  %v344_v17 = vld [vmem:[%s3387_s27 + $0x330] sm:$0xff]  ;;  %v1321_v54 = vld [vmem:[%s5217_s1 + $0x3a8] sm:$0xff] }
  0x57   : > { %1433 = vmatmul.mubr.f32.gmra.mrb[8].mxu1 %v952_v32  ;;  %3071 = vmatprep.subr.bf16.mxu1 %v3255_v3  ;;  %v326_v32 = vld [vmem:[%s3387_s27 + $0x2a0] sm:$0xff]  ;;  %v981_v41 = vadd.f32 %v3577_v2, %v644_v21  ;;  %v997_v21 = vadd.f32 %v3573_v63, %v660_v4  ;;  %v1007_v27 = vadd.f32 %v3424_v52, %v670_v9  ;;  %v360_v4 = vld [vmem:[%s3387_s27 + $0x3b0] sm:$0xff] }
  0x58   : > { %1658 = vmatmul.mubr.f32.gmra.mrb[8].mxu0 %v954_v33  ;;  %1437 = vmatprep.mubr.f32.mxu1 %v962_v37  ;;  %v1282_v33 = vld [vmem:[%s5217_s1 + $0x270] sm:$0xff]  ;;  %v651_v37 = vmul.f32 %v3548_v45, %v314_v23  ;;  %v663_v51 = vmul.f32 %v3421_v50, %v326_v32  ;;  %v671_v23 = vmul.f32 %v3555_v55, %v334_v10  ;;  %v341_v32 = vld [vmem:[%s3387_s27 + $0x318] sm:$0xff] }
  0x59   : > { %1662 = vmatprep.mubr.f32.mxu0 %v964_v42  ;;  %2953 = vmatpush1.bf16.msra.mxu0 %v2952_v49  ;;  %v989_v42 = vadd.f32 %v3424_v52, %v652_v22  ;;  %v991_v49 = vadd.f32 %v3427_v53, %v654_v26  ;;  %v999_v26 = vadd.f32 %v3577_v2, %v662_v8  ;;  %v1291_v8 = vld [vmem:[%s5217_s1 + $0x2b8] sm:$0xff] }
  0x5a   : > { %2954 = vmatprep.subr.bf16.mxu0 %v3255_v3  ;;  %3087 = vmatpush1.bf16.msra.mxu1 %v3734_v58  ;;  %v1000_v12 = vadd.f32 %v3427_v53, %v663_v51  ;;  %v1008_v44 = vadd.f32 %v3577_v2, %v671_v23  ;;  %v1320_v51 = vld [vmem:[%s5217_s1 + $0x3a0] sm:$0xff] }
  0x5b   : > { %1438 = vmatmul.mubr.f32.gmra.mrb[10].mxu1 %v961_v59  ;;  %3072 = vmatprep.subr.bf16.mxu1 %v3255_v3  ;;  %v2961_v59 = vpack.c.bf16 %v1283_v34, %v1282_v33  ;;  %v1009_v33 = vadd.f32 %v3427_v53, %v672_v13  ;;  %v681_v34 = vmul.f32 %v3421_v50, %v344_v17  ;;  %v1322_v13 = vld [vmem:[%s5217_s1 + $0x3b0] sm:$0xff] }
  0x5c   : > { %1663 = vmatmul.mubr.f32.gmra.mrb[10].mxu0 %v963_v0  ;;  %1442 = vmatprep.mubr.f32.mxu1 %v971_v1  ;;  %v988_v0 = vadd.f32 %v3573_v63, %v651_v37  ;;  %v990_v1 = vadd.f32 %v3577_v2, %v653_v38  ;;  %v351_v37 = vld [vmem:[%s3387_s27 + $0x368] sm:$0xff]  ;;  %v2967_v38 = vpack.c.bf16 %v1287_v19, %v1286_v18 }
  0x5d   : > { %1667 = vmatprep.mubr.f32.mxu0 %v973_v6  ;;  %2956 = vmatpush1.bf16.msra.mxu0 %v2955_v48  ;;  %v1317_v6 = vld [vmem:[%s5217_s1 + $0x388] sm:$0xff]  ;;  %v332_v48 = vld [vmem:[%s3387_s27 + $0x2d0] sm:$0xff]  ;;  %v688_v60 = vmul.f32 %v3412_v47, %v351_v37  ;;  %v3908_v9 = vpack.c.bf16 %v1321_v54, %v1320_v51  ;;  %v697_v18 = vmul.f32 %v3412_v47, %v360_v4  ;;  %v1324_v37 = vld [vmem:[%s5217_s1 + $0x3c0] sm:$0xff] }
  0x5e   : > { %2957 = vmatprep.subr.bf16.mxu0 %v3255_v3  ;;  %3088 = vmatpush1.bf16.msra.mxu1 %v3763_v14  ;;  %v669_v22 = vmul.f32 %v3548_v45, %v332_v48  ;;  %v359_v19 = vld [vmem:[%s3387_s27 + $0x3a8] sm:$0xff]  ;;  %v370_v51 = vld [vmem:[%s3387_s27 + $0x400] sm:$0xff] }
  0x5f   : > { %1443 = vmatmul.mubr.f32.gmra.mrb[12].mxu1 %v970_v15  ;;  %3073 = vmatprep.subr.bf16.mxu1 %v3255_v3  ;;  %v342_v15 = vld [vmem:[%s3387_s27 + $0x320] sm:$0xff]  ;;  %v1025_v17 = vadd.f32 %v3424_v52, %v688_v60  ;;  %v1294_v60 = vld [vmem:[%s5217_s1 + $0x2d0] sm:$0xff] }
  0x60   : > { %1668 = vmatmul.mubr.f32.gmra.mrb[12].mxu0 %v972_v16  ;;  %1447 = vmatprep.mubr.f32.mxu1 %v980_v20  ;;  %v2964_v16 = vpack.c.bf16 %v1285_v61, %v1284_v46  ;;  %v3850_v20 = vpack.c.bf16 %v1317_v6, %v1316_v5  ;;  %v1006_v43 = vadd.f32 %v3573_v63, %v669_v22  ;;  %v350_v46 = vld [vmem:[%s3387_s27 + $0x360] sm:$0xff]  ;;  %v352_v61 = vld [vmem:[%s3387_s27 + $0x370] sm:$0xff] }
  0x61   : > { %1672 = vmatprep.mubr.f32.mxu0 %v982_v25  ;;  %2959 = vmatpush1.bf16.msra.mxu0 %v2958_v28  ;;  %v1319_v25 = vld [vmem:[%s5217_s1 + $0x398] sm:$0xff]  ;;  %v679_v28 = vmul.f32 %v3412_v47, %v342_v15  ;;  %v362_v6 = vld [vmem:[%s3387_s27 + $0x3c0] sm:$0xff]  ;;  %v687_v10 = vmul.f32 %v3548_v45, %v350_v46 }
  0x62   : > { %2960 = vmatprep.subr.bf16.mxu0 %v3255_v3  ;;  %3089 = vmatpush1.bf16.msra.mxu1 %v3792_v35  ;;  %v1323_v15 = vld [vmem:[%s5217_s1 + $0x3b8] sm:$0xff]  ;;  %v699_v23 = vmul.f32 %v3421_v50, %v362_v6  ;;  %v378_v54 = vld [vmem:[%s3387_s27 + $0x440] sm:$0xff] }
  0x63   : > { %1448 = vmatmul.mubr.f32.gmra.mrb[14].mxu1 %v979_v36  ;;  %3074 = vmatprep.subr.bf16.mxu1 %v3255_v3  ;;  %v343_v36 = vld [vmem:[%s3387_s27 + $0x328] sm:$0xff]  ;;  %v1016_v57 = vadd.f32 %v3424_v52, %v679_v28  ;;  %v1295_v46 = vld [vmem:[%s5217_s1 + $0x2d8] sm:$0xff] }
  0x64   : > { %1673 = vmatmul.mubr.f32.gmra.mrb[14].mxu0 %v981_v41  ;;  %1452 = vmatprep.mubr.f32.mxu1 %v989_v42  ;;  %v1289_v41 = vld [vmem:[%s5217_s1 + $0x2a8] sm:$0xff]  ;;  %v3879_v42 = vpack.c.bf16 %v1319_v25, %v1318_v24  ;;  %v369_v24 = vld [vmem:[%s3387_s27 + $0x3f8] sm:$0xff] }
  0x65   : > { %1677 = vmatprep.mubr.f32.mxu0 %v991_v49  ;;  %2962 = vmatpush1.bf16.msra.mxu0 %v2961_v59  ;;  %v678_v49 = vmul.f32 %v3548_v45, %v341_v32  ;;  %v680_v59 = vmul.f32 %v3555_v55, %v343_v36  ;;  %v2970_v5 = vpack.c.bf16 %v1289_v41, %v1288_v40  ;;  %v1293_v28 = vld [vmem:[%s5217_s1 + $0x2c8] sm:$0xff]  ;;  %v1327_v6 = vld [vmem:[%s5217_s1 + $0x3d8] sm:$0xff] }
  0x66   : > { %2963 = vmatprep.subr.bf16.mxu0 %v3255_v3  ;;  %3090 = vmatpush1.bf16.msra.mxu1 %v3821_v62  ;;  %v3937_v32 = vpack.c.bf16 %v1323_v15, %v1322_v13  ;;  %v1034_v40 = vadd.f32 %v3424_v52, %v697_v18  ;;  %v706_v41 = vmul.f32 %v3412_v47, %v369_v24  ;;  %v389_v18 = vld [vmem:[%s3387_s27 + $0x498] sm:$0xff] }
  0x67   : > { %1453 = vmatmul.mubr.f32.gmra.mrb[16].mxu1 %v988_v0  ;;  %3075 = vmatprep.subr.bf16.mxu1 %v3255_v3  ;;  %v1018_v0 = vadd.f32 %v3427_v53, %v681_v34  ;;  %v1015_v48 = vadd.f32 %v3573_v63, %v678_v49  ;;  %v696_v34 = vmul.f32 %v3548_v45, %v359_v19  ;;  %v1296_v19 = vld [vmem:[%s5217_s1 + $0x2e0] sm:$0xff] }
  0x68   : > { %1678 = vmatmul.mubr.f32.gmra.mrb[16].mxu0 %v990_v1  ;;  %1457 = vmatprep.mubr.f32.mxu1 %v998_v7  ;;  %v690_v1 = vmul.f32 %v3421_v50, %v353_v39  ;;  %v1290_v7 = vld [vmem:[%s5217_s1 + $0x2b0] sm:$0xff] }
  0x69   : > { %1682 = vmatprep.mubr.f32.mxu0 %v1000_v12  ;;  %2965 = vmatpush1.bf16.msra.mxu0 %v2964_v16  ;;  %v689_v12 = vmul.f32 %v3555_v55, %v352_v61  ;;  %v1017_v16 = vadd.f32 %v3577_v2, %v680_v59  ;;  %v2973_v25 = vpack.c.bf16 %v1291_v8, %v1290_v7  ;;  %v380_v59 = vld [vmem:[%s3387_s27 + $0x450] sm:$0xff] }
  0x6a   : > { %2966 = vmatprep.subr.bf16.mxu0 %v3255_v3  ;;  %3091 = vmatpush1.bf16.msra.mxu1 %v3850_v20  ;;  %v1027_v22 = vadd.f32 %v3427_v53, %v690_v1  ;;  %v1043_v7 = vadd.f32 %v3424_v52, %v706_v41  ;;  %v707_v8 = vmul.f32 %v3555_v55, %v370_v51 }
  0x6b   : > { %1458 = vmatmul.mubr.f32.gmra.mrb[18].mxu1 %v997_v21  ;;  %3076 = vmatprep.subr.bf16.mxu1 %v3255_v3  ;;  %v361_v21 = vld [vmem:[%s3387_s27 + $0x3b8] sm:$0xff]  ;;  %v1026_v39 = vadd.f32 %v3577_v2, %v689_v12  ;;  %v379_v12 = vld [vmem:[%s3387_s27 + $0x448] sm:$0xff]  ;;  %v717_v15 = vmul.f32 %v3421_v50, %v380_v59 }
  0x6c   : > { %1683 = vmatmul.mubr.f32.gmra.mrb[18].mxu0 %v999_v26  ;;  %1462 = vmatprep.mubr.f32.mxu1 %v1007_v27  ;;  %v371_v26 = vld [vmem:[%s3387_s27 + $0x408] sm:$0xff]  ;;  %v1292_v27 = vld [vmem:[%s5217_s1 + $0x2c0] sm:$0xff]  ;;  %v698_v36 = vmul.f32 %v3555_v55, %v361_v21 }
  0x6d   : > { %1687 = vmatprep.mubr.f32.mxu0 %v1009_v33  ;;  %2968 = vmatpush1.bf16.msra.mxu0 %v2967_v38  ;;  %v1024_v33 = vadd.f32 %v3573_v63, %v687_v10  ;;  %v1325_v38 = vld [vmem:[%s5217_s1 + $0x3c8] sm:$0xff]  ;;  %v708_v49 = vmul.f32 %v3421_v50, %v371_v26  ;;  %v377_v10 = vld [vmem:[%s3387_s27 + $0x438] sm:$0xff]  ;;  %v1328_v26 = vld [vmem:[%s5217_s1 + $0x3e0] sm:$0xff] }
  0x6e   : > { %2969 = vmatprep.subr.bf16.mxu0 %v3255_v3  ;;  %3092 = vmatpush1.bf16.msra.mxu1 %v3879_v42  ;;  %v3966_v61 = vpack.c.bf16 %v1325_v38, %v1324_v37  ;;  %v1035_v1 = vadd.f32 %v3577_v2, %v698_v36  ;;  %v1297_v21 = vld [vmem:[%s5217_s1 + $0x2e8] sm:$0xff]  ;;  %v714_v24 = vmul.f32 %v3548_v45, %v377_v10  ;;  %v386_v36 = vld [vmem:[%s3387_s27 + $0x480] sm:$0xff]  ;;  %v388_v37 = vld [vmem:[%s3387_s27 + $0x490] sm:$0xff] }
  0x6f   : > { %1463 = vmatmul.mubr.f32.gmra.mrb[20].mxu1 %v1006_v43  ;;  %3077 = vmatprep.subr.bf16.mxu1 %v3255_v3  ;;  %v368_v43 = vld [vmem:[%s3387_s27 + $0x3f0] sm:$0xff]  ;;  %v1045_v13 = vadd.f32 %v3427_v53, %v708_v49  ;;  %v1054_v38 = vadd.f32 %v3427_v53, %v717_v15  ;;  %v2982_v41 = vpack.c.bf16 %v1297_v21, %v1296_v19  ;;  %v1299_v49 = vld [vmem:[%s5217_s1 + $0x2f8] sm:$0xff] }
  0x70   : > { %1688 = vmatmul.mubr.f32.gmra.mrb[20].mxu0 %v1008_v44  ;;  %1467 = vmatprep.mubr.f32.mxu1 %v1016_v57  ;;  %v1036_v44 = vadd.f32 %v3427_v53, %v699_v23  ;;  %v2976_v57 = vpack.c.bf16 %v1293_v28, %v1292_v27  ;;  %v705_v4 = vmul.f32 %v3548_v45, %v368_v43  ;;  %v1329_v27 = vld [vmem:[%s5217_s1 + $0x3e8] sm:$0xff]  ;;  %v398_v43 = vld [vmem:[%s3387_s27 + $0x4e0] sm:$0xff] }
  0x71   : > { %1692 = vmatprep.mubr.f32.mxu0 %v1018_v0  ;;  %2971 = vmatpush1.bf16.msra.mxu0 %v2970_v5  ;;  %v1033_v0 = vadd.f32 %v3573_v63, %v696_v34  ;;  %v1326_v5 = vld [vmem:[%s5217_s1 + $0x3d0] sm:$0xff]  ;;  %v1044_v28 = vadd.f32 %v3577_v2, %v707_v8  ;;  %v4024_v51 = vpack.c.bf16 %v1329_v27, %v1328_v26  ;;  %v397_v8 = vld [vmem:[%s3387_s27 + $0x4d8] sm:$0xff]  ;;  %v414_v27 = vld [vmem:[%s3387_s27 + $0x560] sm:$0xff] }
  0x72   : > { %2972 = vmatprep.subr.bf16.mxu0 %v3255_v3  ;;  %3093 = vmatpush1.bf16.msra.mxu1 %v3908_v9  ;;  %v1042_v23 = vadd.f32 %v3573_v63, %v705_v4  ;;  %v725_v59 = vmul.f32 %v3555_v55, %v388_v37  ;;  %v734_v19 = vmul.f32 %v3555_v55, %v397_v8  ;;  %v432_v8 = vld [vmem:[%s3387_s27 + $0x5f0] sm:$0xff] }
  0x73   : > { %1468 = vmatmul.mubr.f32.gmra.mrb[22].mxu1 %v1015_v48  ;;  %3078 = vmatprep.subr.bf16.mxu1 %v3255_v3  ;;  %v715_v48 = vmul.f32 %v3412_v47, %v378_v54  ;;  %v1051_v54 = vadd.f32 %v3573_v63, %v714_v24  ;;  %v406_v24 = vld [vmem:[%s3387_s27 + $0x520] sm:$0xff] }
  0x74   : > { %1693 = vmatmul.mubr.f32.gmra.mrb[22].mxu0 %v1017_v16  ;;  %1472 = vmatprep.mubr.f32.mxu1 %v1025_v17  ;;  %v387_v16 = vld [vmem:[%s3387_s27 + $0x488] sm:$0xff]  ;;  %v2979_v17 = vpack.c.bf16 %v1295_v46, %v1294_v60  ;;  %v1330_v60 = vld [vmem:[%s5217_s1 + $0x3f0] sm:$0xff]  ;;  %v1331_v46 = vld [vmem:[%s5217_s1 + $0x3f8] sm:$0xff]  ;;  %v1071_v37 = vadd.f32 %v3577_v2, %v734_v19 }
  0x75   : > { %1697 = vmatprep.mubr.f32.mxu0 %v1027_v22  ;;  %2974 = vmatpush1.bf16.msra.mxu0 %v2973_v25  ;;  %v3995_v22 = vpack.c.bf16 %v1327_v6, %v1326_v5  ;;  %v716_v25 = vmul.f32 %v3555_v55, %v379_v12  ;;  %v724_v34 = vmul.f32 %v3412_v47, %v387_v16  ;;  %v395_v5 = vld [vmem:[%s3387_s27 + $0x4c8] sm:$0xff] }
  0x76   : > { %2975 = vmatprep.subr.bf16.mxu0 %v3255_v3  ;;  %3094 = vmatpush1.bf16.msra.mxu1 %v3937_v32  ;;  %v407_v12 = vld [vmem:[%s3387_s27 + $0x528] sm:$0xff]  ;;  %v1062_v16 = vadd.f32 %v3577_v2, %v725_v59 }
  0x77   : > { %1473 = vmatmul.mubr.f32.gmra.mrb[24].mxu1 %v1024_v33  ;;  %3079 = vmatprep.subr.bf16.mxu1 %v3255_v3  ;;  %v1052_v33 = vadd.f32 %v3424_v52, %v715_v48  ;;  %v405_v48 = vld [vmem:[%s3387_s27 + $0x518] sm:$0xff]  ;;  %v744_v26 = vmul.f32 %v3421_v50, %v407_v12 }
  0x78   : > { %1698 = vmatmul.mubr.f32.gmra.mrb[24].mxu0 %v1026_v39  ;;  %1477 = vmatprep.mubr.f32.mxu1 %v1034_v40  ;;  %v726_v39 = vmul.f32 %v3421_v50, %v389_v18  ;;  %v396_v40 = vld [vmem:[%s3387_s27 + $0x4d0] sm:$0xff]  ;;  %v742_v21 = vmul.f32 %v3412_v47, %v405_v48  ;;  %v434_v48 = vld [vmem:[%s3387_s27 + $0x600] sm:$0xff] }
  0x79   : > { %1702 = vmatprep.mubr.f32.mxu0 %v1036_v44  ;;  %2977 = vmatpush1.bf16.msra.mxu0 %v2976_v57  ;;  %v1298_v44 = vld [vmem:[%s5217_s1 + $0x2f0] sm:$0xff]  ;;  %v723_v57 = vmul.f32 %v3548_v45, %v386_v36  ;;  %v733_v4 = vmul.f32 %v3412_v47, %v396_v40  ;;  %v743_v36 = vmul.f32 %v3555_v55, %v406_v24  ;;  %v413_v40 = vld [vmem:[%s3387_s27 + $0x558] sm:$0xff] }
  0x7a   : > { %2978 = vmatprep.subr.bf16.mxu0 %v3255_v3  ;;  %3095 = vmatpush1.bf16.msra.mxu1 %v3966_v61  ;;  %v1063_v6 = vadd.f32 %v3427_v53, %v726_v39  ;;  %v2985_v10 = vpack.c.bf16 %v1299_v49, %v1298_v44  ;;  %v751_v39 = vmul.f32 %v3412_v47, %v414_v27  ;;  %v415_v44 = vld [vmem:[%s3387_s27 + $0x568] sm:$0xff]  ;;  %v441_v27 = vld [vmem:[%s3387_s27 + $0x638] sm:$0xff] }
  0x7b   : > { %1478 = vmatmul.mubr.f32.gmra.mrb[26].mxu1 %v1033_v0  ;;  %3080 = vmatprep.subr.bf16.mxu1 %v3255_v3  ;;  %v1053_v0 = vadd.f32 %v3577_v2, %v716_v25  ;;  %v1060_v15 = vadd.f32 %v3573_v63, %v723_v57  ;;  %v1070_v18 = vadd.f32 %v3424_v52, %v733_v4  ;;  %v423_v49 = vld [vmem:[%s3387_s27 + $0x5a8] sm:$0xff]  ;;  %v422_v4 = vld [vmem:[%s3387_s27 + $0x5a0] sm:$0xff] }
  0x7c   : > { %1703 = vmatmul.mubr.f32.gmra.mrb[26].mxu0 %v1035_v1  ;;  %1482 = vmatprep.mubr.f32.mxu1 %v1043_v7  ;;  %v1061_v1 = vadd.f32 %v3424_v52, %v724_v34  ;;  %v735_v7 = vmul.f32 %v3421_v50, %v398_v43  ;;  %v1080_v59 = vadd.f32 %v3577_v2, %v743_v36 }
  0x7d   : > { %1707 = vmatprep.mubr.f32.mxu0 %v1045_v13  ;;  %2980 = vmatpush1.bf16.msra.mxu0 %v2979_v17  ;;  %v4047_v13 = vpack.c.bf16 %v1331_v46, %v1330_v60  ;;  %v732_v17 = vmul.f32 %v3548_v45, %v395_v5  ;;  %v750_v60 = vmul.f32 %v3548_v45, %v413_v40  ;;  %v424_v5 = vld [vmem:[%s3387_s27 + $0x5b0] sm:$0xff] }
  0x7e   : > { %2981 = vmatprep.subr.bf16.mxu0 %v3255_v3  ;;  %3096 = vmatpush1.bf16.msra.mxu1 %v3995_v22  ;;  %v1072_v25 = vadd.f32 %v3427_v53, %v735_v7  ;;  %v1088_v46 = vadd.f32 %v3424_v52, %v751_v39  ;;  %v759_v12 = vmul.f32 %v3548_v45, %v422_v4 }
  0x7f   : > { %1483 = vmatmul.mubr.f32.gmra.mrb[28].mxu1 %v1042_v23  ;;  %3081 = vmatprep.subr.bf16.mxu1 %v3255_v3  ;;  %v404_v23 = vld [vmem:[%s3387_s27 + $0x510] sm:$0xff]  ;;  %v778_v40 = vmul.f32 %v3412_v47, %v441_v27  ;;  %v470_v27 = vld [vmem:[%s3387_s27 + $0x720] sm:$0xff] }
  0x80   : > { %1708 = vmatmul.mubr.f32.gmra.mrb[28].mxu0 %v1044_v28  ;;  %1487 = vmatprep.mubr.f32.mxu1 %v1052_v33  ;;  %v416_v28 = vld [vmem:[%s3387_s27 + $0x570] sm:$0xff]  ;;  %v1069_v33 = vadd.f32 %v3573_v63, %v732_v17  ;;  %v741_v34 = vmul.f32 %v3548_v45, %v404_v23  ;;  %v1333_v17 = vld [vmem:[%s5217_s1 + $0x408] sm:$0xff] }
  0x81   : > { %1712 = vmatprep.mubr.f32.mxu0 %v1054_v38  ;;  %2983 = vmatpush1.bf16.msra.mxu0 %v2982_v41  ;;  %v1079_v38 = vadd.f32 %v3424_v52, %v742_v21  ;;  %v1081_v41 = vadd.f32 %v3427_v53, %v744_v26  ;;  %v753_v43 = vmul.f32 %v3421_v50, %v416_v28  ;;  %v431_v23 = vld [vmem:[%s3387_s27 + $0x5e8] sm:$0xff]  ;;  %v433_v26 = vld [vmem:[%s3387_s27 + $0x5f8] sm:$0xff] }
  0x82   : > { %2984 = vmatprep.subr.bf16.mxu0 %v3255_v3  ;;  %3097 = vmatpush1.bf16.msra.mxu1 %v4024_v51  ;;  %v1078_v57 = vadd.f32 %v3573_v63, %v741_v34  ;;  %v769_v21 = vmul.f32 %v3412_v47, %v432_v8  ;;  %v443_v28 = vld [vmem:[%s3387_s27 + $0x648] sm:$0xff]  ;;  %v1096_v34 = vadd.f32 %v3573_v63, %v759_v12 }
  0x83   : > { %1488 = vmatmul.mubr.f32.gmra.mrb[30].mxu1 %v1051_v54  ;;  %3082 = vmatprep.subr.bf16.mxu1 %v3255_v3  ;;  %v425_v54 = vld [vmem:[%s3387_s27 + $0x5b8] sm:$0xff]  ;;  %v770_v39 = vmul.f32 %v3555_v55, %v433_v26  ;;  %v451_v8 = vld [vmem:[%s3387_s27 + $0x688] sm:$0xff]  ;;  %v468_v26 = vld [vmem:[%s3387_s27 + $0x710] sm:$0xff] }
  0x84   : > { %1713 = vmatmul.mubr.f32.gmra.mrb[30].mxu0 %v1053_v0  ;;  %1492 = vmatprep.mubr.f32.mxu1 %v1061_v1  ;;  %v752_v0 = vmul.f32 %v3555_v55, %v415_v44  ;;  %v760_v1 = vmul.f32 %v3412_v47, %v423_v49  ;;  %v762_v7 = vmul.f32 %v3421_v50, %v425_v54  ;;  %v450_v54 = vld [vmem:[%s3387_s27 + $0x680] sm:$0xff] }
  0x85   : > { %1717 = vmatprep.mubr.f32.mxu0 %v1063_v6  ;;  %2986 = vmatpush1.bf16.msra.mxu0 %v2985_v10  ;;  %v1090_v6 = vadd.f32 %v3427_v53, %v753_v43  ;;  %v1087_v10 = vadd.f32 %v3573_v63, %v750_v60  ;;  %v442_v43 = vld [vmem:[%s3387_s27 + $0x640] sm:$0xff]  ;;  %v780_v49 = vmul.f32 %v3421_v50, %v443_v28 }
  0x86   : > { %3098 = vmatpush1.bf16.msra.mxu1 %v4047_v13  ;;  %2987 = vmatprep.subr.bf16.mxu0 %v3255_v3  ;;  %v1097_v19 = vadd.f32 %v3424_v52, %v760_v1  ;;  %v1099_v24 = vadd.f32 %v3427_v53, %v762_v7  ;;  %v1115_v1 = vadd.f32 %v3424_v52, %v778_v40  ;;  %v467_v40 = vld [vmem:[%s3387_s27 + $0x708] sm:$0xff] }
  0x87   : > { %1493 = vmatmul.mubr.f32.gmra.mrb[32].mxu1 %v1060_v15  ;;  %v761_v15 = vmul.f32 %v3555_v55, %v424_v5  ;;  %v787_v4 = vmul.f32 %v3412_v47, %v450_v54  ;;  %v449_v5 = vld [vmem:[%s3387_s27 + $0x678] sm:$0xff]  ;;  %v479_v54 = vld [vmem:[%s3387_s27 + $0x768] sm:$0xff] }
  0x88   : > { %1718 = vmatmul.mubr.f32.gmra.mrb[32].mxu0 %v1062_v16  ;;  %1497 = vmatprep.mubr.f32.mxu1 %v1070_v18  ;;  %v1332_v16 = vld [vmem:[%s5217_s1 + $0x400] sm:$0xff]  ;;  %v1089_v18 = vadd.f32 %v3577_v2, %v752_v0  ;;  %v1107_v0 = vadd.f32 %v3577_v2, %v770_v39  ;;  %v805_v39 = vmul.f32 %v3412_v47, %v468_v26  ;;  %v497_v26 = vld [vmem:[%s3387_s27 + $0x7f8] sm:$0xff] }
  0x89   : > { %1722 = vmatprep.mubr.f32.mxu0 %v1072_v25  ;;  %v771_v25 = vmul.f32 %v3421_v50, %v434_v48  ;;  %v1098_v36 = vadd.f32 %v3577_v2, %v761_v15  ;;  %v459_v48 = vld [vmem:[%s3387_s27 + $0x6c8] sm:$0xff] }
  0x8b   : > { %1498 = vmatmul.mubr.f32.gmra.mrb[34].mxu1 %v1069_v33  ;;  %v4106_v33 = vpack.c.bf16 %v1333_v17, %v1332_v16  ;;  %v1108_v44 = vadd.f32 %v3427_v53, %v771_v25  ;;  %v786_v16 = vmul.f32 %v3548_v45, %v449_v5  ;;  %v1124_v17 = vadd.f32 %v3424_v52, %v787_v4  ;;  %v476_v4 = vld [vmem:[%s3387_s27 + $0x750] sm:$0xff]  ;;  %v478_v5 = vld [vmem:[%s3387_s27 + $0x760] sm:$0xff] }
  0x8c   : > { %1723 = vmatmul.mubr.f32.gmra.mrb[34].mxu0 %v1071_v37  ;;  %1502 = vmatprep.mubr.f32.mxu1 %v1079_v38  ;;  %v768_v37 = vmul.f32 %v3548_v45, %v431_v23  ;;  %v1106_v38 = vadd.f32 %v3424_v52, %v769_v21  ;;  %v458_v21 = vld [vmem:[%s3387_s27 + $0x6c0] sm:$0xff]  ;;  %v460_v23 = vld [vmem:[%s3387_s27 + $0x6d0] sm:$0xff] }
  0x8d   : > { %1727 = vmatprep.mubr.f32.mxu0 %v1081_v41  ;;  %v440_v41 = vld [vmem:[%s3387_s27 + $0x630] sm:$0xff]  ;;  %3036 = vmatprep.subr.bf16.mxu1 %v4106_v33  ;;  %v1123_v28 = vadd.f32 %v3573_v63, %v786_v16 }
  0x8e   : > { %v777_v60 = vmul.f32 %v3548_v45, %v440_v41 }
  0x8f   : > { %1503 = vmatmul.mubr.f32.gmra.mrb[36].mxu1 %v1078_v57  ;;  %v452_v57 = vld [vmem:[%s3387_s27 + $0x690] sm:$0xff] }
  0x90   : > { %1728 = vmatmul.mubr.f32.gmra.mrb[36].mxu0 %v1080_v59  ;;  %1507 = vmatprep.mubr.f32.mxu1 %v1088_v46  ;;  %v1105_v59 = vadd.f32 %v3573_v63, %v768_v37  ;;  %v779_v46 = vmul.f32 %v3555_v55, %v442_v43  ;;  %v789_v7 = vmul.f32 %v3421_v50, %v452_v57 }
  0x91   : > { %1732 = vmatprep.mubr.f32.mxu0 %v1090_v6  ;;  %v1117_v6 = vadd.f32 %v3427_v53, %v780_v49  ;;  %v1114_v12 = vadd.f32 %v3573_v63, %v777_v60  ;;  %v807_v43 = vmul.f32 %v3421_v50, %v470_v27  ;;  %v477_v49 = vld [vmem:[%s3387_s27 + $0x758] sm:$0xff]  ;;  %v804_v60 = vmul.f32 %v3548_v45, %v467_v40  ;;  %v496_v40 = vld [vmem:[%s3387_s27 + $0x7f0] sm:$0xff] }
  0x92   : > { %v1116_v15 = vadd.f32 %v3577_v2, %v779_v46  ;;  %v1142_v46 = vadd.f32 %v3424_v52, %v805_v39  ;;  %v494_v39 = vld [vmem:[%s3387_s27 + $0x7e0] sm:$0xff] }
  0x93   : > { %1508 = vmatmul.mubr.f32.gmra.mrb[38].mxu1 %v1087_v10  ;;  %v461_v10 = vld [vmem:[%s3387_s27 + $0x6d8] sm:$0xff] }
  0x94   : > { %1733 = vmatmul.mubr.f32.gmra.mrb[38].mxu0 %v1089_v18  ;;  %1512 = vmatprep.mubr.f32.mxu1 %v1097_v19  ;;  %v788_v18 = vmul.f32 %v3555_v55, %v451_v8  ;;  %v796_v19 = vmul.f32 %v3412_v47, %v459_v48  ;;  %v798_v25 = vmul.f32 %v3421_v50, %v461_v10  ;;  %v486_v8 = vld [vmem:[%s3387_s27 + $0x7a0] sm:$0xff]  ;;  %v488_v48 = vld [vmem:[%s3387_s27 + $0x7b0] sm:$0xff] }
  0x95   : > { %1737 = vmatprep.mubr.f32.mxu0 %v1099_v24  ;;  %v1126_v24 = vadd.f32 %v3427_v53, %v789_v7  ;;  %v816_v7 = vmul.f32 %v3421_v50, %v479_v54  ;;  %v1141_v10 = vadd.f32 %v3573_v63, %v804_v60 }
  0x96   : > { %v1125_v37 = vadd.f32 %v3577_v2, %v788_v18  ;;  %v1135_v41 = vadd.f32 %v3427_v53, %v798_v25  ;;  %v823_v18 = vmul.f32 %v3412_v47, %v486_v8  ;;  %v495_v25 = vld [vmem:[%s3387_s27 + $0x7e8] sm:$0xff] }
  0x97   : > { %1513 = vmatmul.mubr.f32.gmra.mrb[40].mxu1 %v1096_v34  ;;  %v795_v34 = vmul.f32 %v3548_v45, %v458_v21  ;;  %v1153_v21 = vadd.f32 %v3427_v53, %v816_v7  ;;  %v513_v7 = vld [vmem:[%s3387_s27 + $0x878] sm:$0xff]  ;;  %v515_v8 = vld [vmem:[%s3387_s27 + $0x888] sm:$0xff] }
  0x98   : > { %1738 = vmatmul.mubr.f32.gmra.mrb[40].mxu0 %v1098_v36  ;;  %1517 = vmatprep.mubr.f32.mxu1 %v1106_v38  ;;  %v797_v36 = vmul.f32 %v3555_v55, %v460_v23  ;;  %v1133_v38 = vadd.f32 %v3424_v52, %v796_v19  ;;  %v485_v19 = vld [vmem:[%s3387_s27 + $0x798] sm:$0xff]  ;;  %v825_v23 = vmul.f32 %v3421_v50, %v488_v48 }
  0x99   : > { %1742 = vmatprep.mubr.f32.mxu0 %v1108_v44  ;;  %v469_v44 = vld [vmem:[%s3387_s27 + $0x718] sm:$0xff]  ;;  %v1132_v57 = vadd.f32 %v3573_v63, %v795_v34  ;;  %v822_v34 = vmul.f32 %v3548_v45, %v485_v19  ;;  %v514_v19 = vld [vmem:[%s3387_s27 + $0x880] sm:$0xff] }
  0x9b   : > { %1518 = vmatmul.mubr.f32.gmra.mrb[42].mxu1 %v1105_v59  ;;  %v1134_v59 = vadd.f32 %v3577_v2, %v797_v36  ;;  %v1160_v36 = vadd.f32 %v3424_v52, %v823_v18  ;;  %v1159_v54 = vadd.f32 %v3573_v63, %v822_v34  ;;  %v850_v18 = vmul.f32 %v3412_v47, %v513_v7 }
  0x9c   : > { %1743 = vmatmul.mubr.f32.gmra.mrb[42].mxu0 %v1107_v0  ;;  %1522 = vmatprep.mubr.f32.mxu1 %v1115_v1  ;;  %v806_v0 = vmul.f32 %v3555_v55, %v469_v44  ;;  %v814_v1 = vmul.f32 %v3412_v47, %v477_v49  ;;  %v504_v44 = vld [vmem:[%s3387_s27 + $0x830] sm:$0xff]  ;;  %v506_v49 = vld [vmem:[%s3387_s27 + $0x840] sm:$0xff]  ;;  %v552_v34 = vsub.s32 4, %v3368_v30 }
  0x9d   : > { %1747 = vmatprep.mubr.f32.mxu0 %v1117_v6  ;;  %v1144_v6 = vadd.f32 %v3427_v53, %v807_v43  ;;  %v834_v43 = vmul.f32 %v3421_v50, %v497_v26  ;;  %v556_v26 = vsub.s32 5, %v3368_v30 }
  0x9e   : > { %v1143_v16 = vadd.f32 %v3577_v2, %v806_v0  ;;  %v841_v0 = vmul.f32 %v3412_v47, %v504_v44  ;;  %v3245_v44 = vld [vmem:[%s5218_s2] sm:$0xff] }
  0x9f   : > { %1523 = vmatmul.mubr.f32.gmra.mrb[44].mxu1 %v1114_v12  ;;  %v813_v12 = vmul.f32 %v3548_v45, %v476_v4  ;;  %v1171_v4 = vadd.f32 %v3427_v53, %v834_v43  ;;  %v1187_v43 = vadd.f32 %v3424_v52, %v850_v18 }
  0xa0   : > { %1748 = vmatmul.mubr.f32.gmra.mrb[44].mxu0 %v1116_v15  ;;  %1527 = vmatprep.mubr.f32.mxu1 %v1124_v17  ;;  %v815_v15 = vmul.f32 %v3555_v55, %v478_v5  ;;  %v1151_v17 = vadd.f32 %v3424_v52, %v814_v1  ;;  %v503_v1 = vld [vmem:[%s3387_s27 + $0x828] sm:$0xff]  ;;  %v843_v5 = vmul.f32 %v3421_v50, %v506_v49 }
  0xa1   : > { %1752 = vmatprep.mubr.f32.mxu0 %v1126_v24  ;;  %v487_v24 = vld [vmem:[%s3387_s27 + $0x7a8] sm:$0xff]  ;;  %v1150_v27 = vadd.f32 %v3573_v63, %v813_v12  ;;  %v840_v12 = vmul.f32 %v3548_v45, %v503_v1 }
  0xa3   : > { %1528 = vmatmul.mubr.f32.gmra.mrb[46].mxu1 %v1123_v28  ;;  %v1152_v28 = vadd.f32 %v3577_v2, %v815_v15  ;;  %v512_v15 = vld [vmem:[%s3387_s27 + $0x870] sm:$0xff] }
  0xa4   : > { %1753 = vmatmul.mubr.f32.gmra.mrb[46].mxu0 %v1125_v37  ;;  %1532 = vmatprep.mubr.f32.mxu1 %v1133_v38  ;;  %v824_v37 = vmul.f32 %v3555_v55, %v487_v24  ;;  %v832_v38 = vmul.f32 %v3412_v47, %v495_v25  ;;  %v1180_v24 = vadd.f32 %v3427_v53, %v843_v5 }
  0xa5   : > { %1757 = vmatprep.mubr.f32.mxu0 %v1135_v41  ;;  %v1162_v41 = vadd.f32 %v3427_v53, %v825_v23  ;;  %v564_v23 = vsub.s32 7, %v3368_v30  ;;  %v852_v25 = vmul.f32 %v3421_v50, %v515_v8  ;;  %v4244_v5 = vrot.slane %v3245_v44, %v552_v34 }
  0xa6   : > { %v1161_v60 = vadd.f32 %v3577_v2, %v824_v37  ;;  %v851_v37 = vmul.f32 %v3555_v55, %v514_v19 }
  0xa7   : > { %1533 = vmatmul.mubr.f32.gmra.mrb[48].mxu1 %v1132_v57  ;;  %v831_v57 = vmul.f32 %v3548_v45, %v494_v39  ;;  %v521_v39 = vld [vmem:[%s3387_s27 + $0x8b8] sm:$0xff]  ;;  %v4231_v49 = vrot.slane %v3245_v44, %v564_v23 }
  0xa8   : > { %1758 = vmatmul.mubr.f32.gmra.mrb[48].mxu0 %v1134_v59  ;;  %1537 = vmatprep.mubr.f32.mxu1 %v1142_v46  ;;  %v833_v59 = vmul.f32 %v3555_v55, %v496_v40  ;;  %v1169_v46 = vadd.f32 %v3424_v52, %v832_v38  ;;  %v560_v40 = vsub.s32 6, %v3368_v30  ;;  %v321_v30 = vld [vmem:[%s3387_s27 + $0x278] sm:$0xff]  ;;  %v1188_v1 = vadd.f32 %v3577_v2, %v851_v37 }
  0xa9   : > { %1762 = vmatprep.mubr.f32.mxu0 %v1144_v6  ;;  %v505_v6 = vld [vmem:[%s3387_s27 + $0x838] sm:$0xff]  ;;  %v1168_v48 = vadd.f32 %v3573_v63, %v831_v57  ;;  %v523_v57 = vld [vmem:[%s3387_s27 + $0x8c8] sm:$0xff]  ;;  %v658_v7 = vmul.f32 %v4231_v49, %v321_v30 }
  0xab   : > { %1538 = vmatmul.mubr.f32.gmra.mrb[50].mxu1 %v1141_v10  ;;  %v1170_v10 = vadd.f32 %v3577_v2, %v833_v59  ;;  %v4236_v59 = vrot.slane %v3245_v44, %v556_v26 }
  0xac   : > { %1763 = vmatmul.mubr.f32.gmra.mrb[50].mxu0 %v1143_v16  ;;  %1542 = vmatprep.mubr.f32.mxu1 %v1151_v17  ;;  %v1178_v16 = vadd.f32 %v3424_v52, %v841_v0  ;;  %v842_v17 = vmul.f32 %v3555_v55, %v505_v6  ;;  %v247_v0 = vld [vmem:[%s3387_s27 + $0x28] sm:$0xff]  ;;  %v860_v6 = vmul.f32 %v3555_v55, %v523_v57 }
  0xad   : > { %1767 = vmatprep.mubr.f32.mxu0 %v1153_v21  ;;  %v522_v21 = vld [vmem:[%s3387_s27 + $0x8c0] sm:$0xff] }
  0xae   : > { %v859_v38 = vmul.f32 %v3412_v47, %v522_v21 }
  0xaf   : > { %1543 = vmatmul.mubr.f32.gmra.mrb[52].mxu1 %v1150_v27  ;;  %v849_v27 = vmul.f32 %v3548_v45, %v512_v15 }
  0xb0   : > { %1768 = vmatmul.mubr.f32.gmra.mrb[52].mxu0 %v1152_v28  ;;  %1547 = vmatprep.mubr.f32.mxu1 %v1160_v36  ;;  %v524_v28 = vld [vmem:[%s3387_s27 + $0x8d0] sm:$0xff]  ;;  %v1177_v36 = vadd.f32 %v3573_v63, %v840_v12  ;;  %v584_v12 = vmul.f32 %v4236_v59, %v247_v0  ;;  %v274_v0 = vld [vmem:[%s3387_s27 + $0x100] sm:$0xff] }
  0xb1   : > { %1772 = vmatprep.mubr.f32.mxu0 %v1162_v41  ;;  %v1179_v41 = vadd.f32 %v3577_v2, %v842_v17  ;;  %v861_v47 = vmul.f32 %v3421_v50, %v524_v28  ;;  %v4246_v50 = vrot.slane %v3245_v44, %v560_v40  ;;  %v256_v17 = vld [vmem:[%s3387_s27 + $0x70] sm:$0xff]  ;;  %v255_v28 = vld [vmem:[%s3387_s27 + $0x68] sm:$0xff]  ;;  %v338_v44 = vld [vmem:[%s3387_s27 + $0x300] sm:$0xff] }
  0xb3   : > { %1548 = vmatmul.mubr.f32.gmra.mrb[54].mxu1 %v1159_v54  ;;  %v1189_v54 = vadd.f32 %v3427_v53, %v852_v25  ;;  %v329_v25 = vld [vmem:[%s3387_s27 + $0x2b8] sm:$0xff] }
  0xb4   : > { %1773 = vmatmul.mubr.f32.gmra.mrb[54].mxu0 %v1161_v60  ;;  %1552 = vmatprep.mubr.f32.mxu1 %v1169_v46  ;;  %v1186_v60 = vadd.f32 %v3573_v63, %v849_v27  ;;  %v858_v46 = vmul.f32 %v3548_v45, %v521_v39  ;;  %v3246_v45 = vld [vmem:[%s5219_s3] sm:$0xff]  ;;  %v593_v27 = vmul.f32 %v4236_v59, %v256_v17  ;;  %v264_v39 = vld [vmem:[%s3387_s27 + $0xb0] sm:$0xff]  ;;  %v273_v17 = vld [vmem:[%s3387_s27 + $0xf8] sm:$0xff] }
  0xb5   : > { %1777 = vmatprep.mubr.f32.mxu0 %v1171_v4  ;;  %v1196_v4 = vadd.f32 %v3424_v52, %v859_v38  ;;  %v4253_v8 = vrot.slane %v3246_v45, %v564_v23  ;;  %v1198_v52 = vadd.f32 %v3427_v53, %v861_v47  ;;  %v4259_v15 = vrot.slane %v3246_v45, %v556_v26  ;;  %v1335_v47 = vld [vmem:[%s5217_s1 + $0x418] sm:$0xff] }
  0xb6   : > { %v1195_v55 = vadd.f32 %v3573_v63, %v858_v46  ;;  %v4265_v19 = vrot.slane %v3246_v45, %v552_v34  ;;  %v4268_v53 = vrot.slane %v3246_v45, %v560_v40  ;;  %v1197_v23 = vadd.f32 %v3577_v2, %v860_v6  ;;  %v339_v34 = vld [vmem:[%s3387_s27 + $0x308] sm:$0xff] }
  0xb7   : > { %1553 = vmatmul.mubr.f32.gmra.mrb[56].mxu1 %v1168_v48  ;;  %v246_v48 = vld [vmem:[%s3387_s27 + $0x20] sm:$0xff]  ;;  %v995_v63 = vadd.f32 %v4253_v8, %v658_v7  ;;  %v921_v26 = vadd.f32 %v4259_v15, %v584_v12  ;;  %v666_v38 = vmul.f32 %v4246_v50, %v329_v25  ;;  %v930_v57 = vadd.f32 %v4259_v15, %v593_v27  ;;  %v1337_v12 = vld [vmem:[%s5217_s1 + $0x428] sm:$0xff] }
  0xb8   : > { %1778 = vmatmul.mubr.f32.gmra.mrb[56].mxu0 %v1170_v10  ;;  %1557 = vmatprep.mubr.f32.mxu1 %v1178_v16  ;;  %v320_v10 = vld [vmem:[%s3387_s27 + $0x270] sm:$0xff]  ;;  %v330_v16 = vld [vmem:[%s3387_s27 + $0x2c0] sm:$0xff]  ;;  %v583_v18 = vmul.f32 %v4244_v5, %v246_v48  ;;  %v601_v46 = vmul.f32 %v4244_v5, %v264_v39  ;;  %v610_v27 = vmul.f32 %v4244_v5, %v273_v17 }
  0xb9   : > { %1782 = vmatprep.mubr.f32.mxu0 %v1180_v24  ;;  %v657_v21 = vmul.f32 %v4246_v50, %v320_v10  ;;  %v667_v24 = vmul.f32 %v4231_v49, %v330_v16  ;;  %v347_v10 = vld [vmem:[%s3387_s27 + $0x348] sm:$0xff]  ;;  %v1342_v17 = vld [vmem:[%s5217_s1 + $0x450] sm:$0xff] }
  0xba   : > { %v920_v37 = vadd.f32 %v4265_v19, %v583_v18  ;;  %v357_v18 = vld [vmem:[%s3387_s27 + $0x398] sm:$0xff] }
  0xbb   : > { %1558 = vmatmul.mubr.f32.gmra.mrb[58].mxu1 %v1177_v36  ;;  %v265_v36 = vld [vmem:[%s3387_s27 + $0xb8] sm:$0xff]  ;;  %v994_v2 = vadd.f32 %v4268_v53, %v657_v21  ;;  %v1004_v40 = vadd.f32 %v4253_v8, %v667_v24  ;;  %v938_v21 = vadd.f32 %v4265_v19, %v601_v46  ;;  %v282_v24 = vld [vmem:[%s3387_s27 + $0x140] sm:$0xff] }
  0xbc   : > { %1783 = vmatmul.mubr.f32.gmra.mrb[58].mxu0 %v1179_v41  ;;  %1562 = vmatprep.mubr.f32.mxu1 %v1187_v43  ;;  %v592_v41 = vmul.f32 %v4244_v5, %v255_v28  ;;  %v676_v43 = vmul.f32 %v4231_v49, %v339_v34  ;;  %v602_v30 = vmul.f32 %v4236_v59, %v265_v36  ;;  %v1338_v34 = vld [vmem:[%s5217_s1 + $0x430] sm:$0xff]  ;;  %v1339_v36 = vld [vmem:[%s5217_s1 + $0x438] sm:$0xff] }
  0xbd   : > { %1787 = vmatprep.mubr.f32.mxu0 %v1189_v54  ;;  %v1334_v54 = vld [vmem:[%s5217_s1 + $0x410] sm:$0xff]  ;;  %v694_v28 = vmul.f32 %v4231_v49, %v357_v18  ;;  %v619_v39 = vmul.f32 %v4244_v5, %v282_v24  ;;  %v1343_v18 = vld [vmem:[%s5217_s1 + $0x458] sm:$0xff]  ;;  %v310_v24 = vld [vmem:[%s3387_s27 + $0x220] sm:$0xff] }
  0xbe   : > { %v3039_v6 = vpack.c.bf16 %v1335_v47, %v1334_v54  ;;  %v929_v7 = vadd.f32 %v4265_v19, %v592_v41  ;;  %v1013_v45 = vadd.f32 %v4253_v8, %v676_v43  ;;  %v939_v16 = vadd.f32 %v4259_v15, %v602_v30  ;;  %v1340_v30 = vld [vmem:[%s5217_s1 + $0x440] sm:$0xff] }
  0xbf   : > { %1563 = vmatmul.mubr.f32.gmra.mrb[60].mxu1 %v1186_v60  ;;  %v348_v60 = vld [vmem:[%s3387_s27 + $0x350] sm:$0xff]  ;;  %v947_v54 = vadd.f32 %v4265_v19, %v610_v27  ;;  %v1031_v47 = vadd.f32 %v4253_v8, %v694_v28  ;;  %v383_v27 = vld [vmem:[%s3387_s27 + $0x468] sm:$0xff]  ;;  %v3055_v28 = vpack.c.bf16 %v1343_v18, %v1342_v17 }
  0xc0   : > { %1788 = vmatmul.mubr.f32.gmra.mrb[60].mxu0 %v1188_v1  ;;  %1567 = vmatprep.mubr.f32.mxu1 %v1196_v4  ;;  %v1003_v1 = vadd.f32 %v4268_v53, %v666_v38  ;;  %v675_v4 = vmul.f32 %v4246_v50, %v338_v44  ;;  %v685_v48 = vmul.f32 %v4231_v49, %v348_v60  ;;  %v366_v38 = vld [vmem:[%s3387_s27 + $0x3e0] sm:$0xff]  ;;  %v365_v44 = vld [vmem:[%s3387_s27 + $0x3d8] sm:$0xff]  ;;  %v1341_v60 = vld [vmem:[%s5217_s1 + $0x448] sm:$0xff] }
  0xc1   : > { %1792 = vmatprep.mubr.f32.mxu0 %v1198_v52  ;;  %v1336_v52 = vld [vmem:[%s5217_s1 + $0x420] sm:$0xff]  ;;  %v327_v18 = vld [vmem:[%s3387_s27 + $0x2a8] sm:$0xff] }
  0xc2   : > { %v3043_v25 = vpack.c.bf16 %v1337_v12, %v1336_v52 }
  0xc3   : > { %1568 = vmatmul.mubr.f32.gmra.mrb[62].mxu1 %v1195_v55  ;;  %v611_v55 = vmul.f32 %v4236_v59, %v274_v0 }
  0xc4   : > { %1793 = vmatmul.mubr.f32.gmra.mrb[62].mxu0 %v1197_v23  ;;  %2127 = vmatprep.mubr.f32.mxu1 %v995_v63  ;;  %v283_v23 = vld [vmem:[%s3387_s27 + $0x148] sm:$0xff]  ;;  %v1012_v63 = vadd.f32 %v4268_v53, %v675_v4 }
  0xc5   : > { %1862 = vmatprep.mubr.f32.mxu0 %v921_v26  ;;  %v1022_v26 = vadd.f32 %v4253_v8, %v685_v48  ;;  %v375_v4 = vld [vmem:[%s3387_s27 + $0x428] sm:$0xff] }
  0xc7   : > { %2128 = vmatmul.mubr.f32.vlgmr.msra.gmra.mrb[64].mxu1 %v994_v2  ;;  %v620_v2 = vmul.f32 %v4236_v59, %v283_v23 }
  0xc8   : > { %1863 = vmatmul.mubr.f32.vlgmr.msra.gmra.mrb[0].mxu0 %v920_v37  ;;  %2132 = vmatprep.mubr.f32.mxu1 %v1004_v40  ;;  %v948_v37 = vadd.f32 %v4259_v15, %v611_v55  ;;  %v292_v40 = vld [vmem:[%s3387_s27 + $0x190] sm:$0xff]  ;;  %v374_v55 = vld [vmem:[%s3387_s27 + $0x420] sm:$0xff] }
  0xc9   : > { %2989 = vmatpush1.bf16.msra.mxu0 %v3619_v29  ;;  %1867 = vmatprep.mubr.f32.mxu0 %v930_v57  ;;  %v684_v29 = vmul.f32 %v4246_v50, %v347_v10  ;;  %v703_v57 = vmul.f32 %v4231_v49, %v366_v38  ;;  %v957_v46 = vadd.f32 %v4259_v15, %v620_v2  ;;  %v300_v10 = vld [vmem:[%s3387_s27 + $0x1d0] sm:$0xff] }
  0xca   : > { %2990 = vmatprep.subr.bf16.mxu0 %v3255_v3  ;;  %3038 = vmatpush3.bf16.msra.mxu1 %v4106_v33  ;;  %v356_v33 = vld [vmem:[%s3387_s27 + $0x390] sm:$0xff]  ;;  %v629_v0 = vmul.f32 %v4236_v59, %v292_v40  ;;  %v647_v38 = vmul.f32 %v4236_v59, %v310_v24  ;;  %v393_v40 = vld [vmem:[%s3387_s27 + $0x4b8] sm:$0xff] }
  0xcb   : > { %2133 = vmatmul.mubr.f32.gmra.mrb[66].mxu1 %v1003_v1  ;;  %3040 = vmatprep.subr.bf16.mxu1 %v3039_v6  ;;  %v1021_v41 = vadd.f32 %v4268_v53, %v684_v29  ;;  %v693_v43 = vmul.f32 %v4246_v50, %v356_v33  ;;  %v291_v1 = vld [vmem:[%s3387_s27 + $0x188] sm:$0xff]  ;;  %v1040_v52 = vadd.f32 %v4253_v8, %v703_v57 }
  0xcc   : > { %1868 = vmatmul.mubr.f32.gmra.mrb[2].mxu0 %v929_v7  ;;  %2137 = vmatprep.mubr.f32.mxu1 %v1013_v45  ;;  %v301_v7 = vld [vmem:[%s3387_s27 + $0x1d8] sm:$0xff]  ;;  %v956_v45 = vadd.f32 %v4265_v19, %v619_v39  ;;  %v628_v12 = vmul.f32 %v4244_v5, %v291_v1  ;;  %v984_v1 = vadd.f32 %v4259_v15, %v647_v38 }
  0xcd   : > { %1872 = vmatprep.mubr.f32.mxu0 %v939_v16  ;;  %2992 = vmatpush1.bf16.msra.mxu0 %v3647_v56  ;;  %v3047_v56 = vpack.c.bf16 %v1339_v36, %v1338_v34  ;;  %v1030_v48 = vadd.f32 %v4268_v53, %v693_v43  ;;  %v712_v16 = vmul.f32 %v4231_v49, %v375_v4  ;;  %v1344_v36 = vld [vmem:[%s5217_s1 + $0x460] sm:$0xff]  ;;  %v309_v39 = vld [vmem:[%s3387_s27 + $0x218] sm:$0xff]  ;;  %v319_v43 = vld [vmem:[%s3387_s27 + $0x268] sm:$0xff] }
  0xce   : > { %2993 = vmatprep.subr.bf16.mxu0 %v3255_v3  ;;  %3042 = vmatpush3.bf16.msra.mxu1 %v3039_v6  ;;  %v702_v6 = vmul.f32 %v4246_v50, %v365_v44  ;;  %v638_v23 = vmul.f32 %v4236_v59, %v301_v7  ;;  %v646_v57 = vmul.f32 %v4244_v5, %v309_v39 }
  0xcf   : > { %2138 = vmatmul.mubr.f32.gmra.mrb[68].mxu1 %v1012_v63  ;;  %3044 = vmatprep.subr.bf16.mxu1 %v3043_v25  ;;  %v384_v63 = vld [vmem:[%s3387_s27 + $0x470] sm:$0xff]  ;;  %v1049_v33 = vadd.f32 %v4253_v8, %v712_v16  ;;  %v656_v4 = vmul.f32 %v4236_v59, %v319_v43  ;;  %v401_v16 = vld [vmem:[%s3387_s27 + $0x4f8] sm:$0xff] }
  0xd0   : > { %1873 = vmatmul.mubr.f32.gmra.mrb[4].mxu0 %v938_v21  ;;  %2142 = vmatprep.mubr.f32.mxu1 %v1022_v26  ;;  %v966_v21 = vadd.f32 %v4259_v15, %v629_v0  ;;  %v1039_v29 = vadd.f32 %v4268_v53, %v702_v6  ;;  %v711_v26 = vmul.f32 %v4246_v50, %v374_v55  ;;  %v1347_v0 = vld [vmem:[%s5217_s1 + $0x478] sm:$0xff]  ;;  %v402_v6 = vld [vmem:[%s3387_s27 + $0x500] sm:$0xff] }
  0xd1   : > { %1877 = vmatprep.mubr.f32.mxu0 %v948_v37  ;;  %2995 = vmatpush1.bf16.msra.mxu0 %v3676_v11  ;;  %v3051_v11 = vpack.c.bf16 %v1341_v60, %v1340_v30  ;;  %v721_v34 = vmul.f32 %v4231_v49, %v384_v63  ;;  %v1345_v37 = vld [vmem:[%s5217_s1 + $0x468] sm:$0xff]  ;;  %v975_v2 = vadd.f32 %v4259_v15, %v638_v23  ;;  %v392_v60 = vld [vmem:[%s3387_s27 + $0x4b0] sm:$0xff]  ;;  %v337_v23 = vld [vmem:[%s3387_s27 + $0x2f8] sm:$0xff] }
  0xd2   : > { %2996 = vmatprep.subr.bf16.mxu0 %v3255_v3  ;;  %3046 = vmatpush3.bf16.msra.mxu1 %v3043_v25  ;;  %v637_v25 = vmul.f32 %v4244_v5, %v300_v10  ;;  %v730_v30 = vmul.f32 %v4231_v49, %v393_v40  ;;  %v729_v10 = vmul.f32 %v4246_v50, %v392_v60 }
  0xd3   : > { %2143 = vmatmul.mubr.f32.gmra.mrb[70].mxu1 %v1021_v41  ;;  %3048 = vmatprep.subr.bf16.mxu1 %v3047_v56  ;;  %v720_v41 = vmul.f32 %v4246_v50, %v383_v27  ;;  %v993_v55 = vadd.f32 %v4259_v15, %v656_v4  ;;  %v738_v24 = vmul.f32 %v4246_v50, %v401_v16  ;;  %v336_v27 = vld [vmem:[%s3387_s27 + $0x2f0] sm:$0xff] }
  0xd4   : > { %1878 = vmatmul.mubr.f32.gmra.mrb[6].mxu0 %v947_v54  ;;  %2147 = vmatprep.mubr.f32.mxu1 %v1031_v47  ;;  %v974_v44 = vadd.f32 %v4265_v19, %v637_v25  ;;  %v318_v54 = vld [vmem:[%s3387_s27 + $0x260] sm:$0xff]  ;;  %v3059_v47 = vpack.c.bf16 %v1345_v37, %v1344_v36 }
  0xd5   : > { %1882 = vmatprep.mubr.f32.mxu0 %v957_v46  ;;  %2998 = vmatpush1.bf16.msra.mxu0 %v3705_v31  ;;  %v965_v31 = vadd.f32 %v4265_v19, %v628_v12  ;;  %v1346_v46 = vld [vmem:[%s5217_s1 + $0x470] sm:$0xff]  ;;  %v1057_v7 = vadd.f32 %v4268_v53, %v720_v41  ;;  %v739_v12 = vmul.f32 %v4231_v49, %v402_v6  ;;  %v346_v36 = vld [vmem:[%s3387_s27 + $0x340] sm:$0xff]  ;;  %v419_v41 = vld [vmem:[%s3387_s27 + $0x588] sm:$0xff] }
  0xd6   : > { %2999 = vmatprep.subr.bf16.mxu0 %v3255_v3  ;;  %3050 = vmatpush3.bf16.msra.mxu1 %v3047_v56  ;;  %v1048_v56 = vadd.f32 %v4268_v53, %v711_v26  ;;  %v1075_v37 = vadd.f32 %v4268_v53, %v738_v24 }
  0xd7   : > { %2148 = vmatmul.mubr.f32.gmra.mrb[72].mxu1 %v1030_v48  ;;  %3052 = vmatprep.subr.bf16.mxu1 %v3051_v11  ;;  %v655_v48 = vmul.f32 %v4244_v5, %v318_v54  ;;  %v1076_v25 = vadd.f32 %v4253_v8, %v739_v12  ;;  %v429_v54 = vld [vmem:[%s3387_s27 + $0x5d8] sm:$0xff] }
  0xd8   : > { %1883 = vmatmul.mubr.f32.gmra.mrb[8].mxu0 %v956_v45  ;;  %2152 = vmatprep.mubr.f32.mxu1 %v1040_v52  ;;  %v328_v45 = vld [vmem:[%s3387_s27 + $0x2b0] sm:$0xff]  ;;  %v1067_v52 = vadd.f32 %v4253_v8, %v730_v30  ;;  %v756_v30 = vmul.f32 %v4246_v50, %v419_v41  ;;  %v437_v12 = vld [vmem:[%s3387_s27 + $0x618] sm:$0xff] }
  0xd9   : > { %1887 = vmatprep.mubr.f32.mxu0 %v966_v21  ;;  %3001 = vmatpush1.bf16.msra.mxu0 %v3734_v58  ;;  %v1058_v58 = vadd.f32 %v4253_v8, %v721_v34  ;;  %v665_v17 = vmul.f32 %v4236_v59, %v328_v45  ;;  %v411_v21 = vld [vmem:[%s3387_s27 + $0x548] sm:$0xff]  ;;  %v992_v63 = vadd.f32 %v4265_v19, %v655_v48  ;;  %v420_v34 = vld [vmem:[%s3387_s27 + $0x590] sm:$0xff]  ;;  %v381_v41 = vld [vmem:[%s3387_s27 + $0x458] sm:$0xff] }
  0xda   : > { %3002 = vmatprep.subr.bf16.mxu0 %v3255_v3  ;;  %3054 = vmatpush3.bf16.msra.mxu1 %v3051_v11  ;;  %v3063_v11 = vpack.c.bf16 %v1347_v0, %v1346_v46  ;;  %v748_v26 = vmul.f32 %v4231_v49, %v411_v21  ;;  %v757_v40 = vmul.f32 %v4231_v49, %v420_v34  ;;  %v354_v0 = vld [vmem:[%s3387_s27 + $0x380] sm:$0xff]  ;;  %v364_v45 = vld [vmem:[%s3387_s27 + $0x3d0] sm:$0xff]  ;;  %v373_v21 = vld [vmem:[%s3387_s27 + $0x418] sm:$0xff] }
  0xdb   : > { %2153 = vmatmul.mubr.f32.gmra.mrb[74].mxu1 %v1039_v29  ;;  %3056 = vmatprep.subr.bf16.mxu1 %v3055_v28  ;;  %v1066_v29 = vadd.f32 %v4268_v53, %v729_v10  ;;  %v1093_v48 = vadd.f32 %v4268_v53, %v756_v30  ;;  %v691_v10 = vmul.f32 %v4244_v5, %v354_v0  ;;  %v390_v30 = vld [vmem:[%s3387_s27 + $0x4a0] sm:$0xff] }
  0xdc   : > { %1888 = vmatmul.mubr.f32.gmra.mrb[10].mxu0 %v965_v31  ;;  %2157 = vmatprep.mubr.f32.mxu1 %v1049_v33  ;;  %v1002_v31 = vadd.f32 %v4259_v15, %v665_v17  ;;  %v674_v33 = vmul.f32 %v4236_v59, %v337_v23  ;;  %v1094_v60 = vadd.f32 %v4253_v8, %v757_v40  ;;  %v363_v17 = vld [vmem:[%s3387_s27 + $0x3c8] sm:$0xff]  ;;  %v474_v0 = vld [vmem:[%s3387_s27 + $0x740] sm:$0xff] }
  0xdd   : > { %1892 = vmatprep.mubr.f32.mxu0 %v975_v2  ;;  %3004 = vmatpush1.bf16.msra.mxu0 %v3763_v14  ;;  %v983_v14 = vadd.f32 %v4265_v19, %v646_v57  ;;  %v673_v2 = vmul.f32 %v4244_v5, %v336_v27  ;;  %v1028_v23 = vadd.f32 %v4265_v19, %v691_v10  ;;  %v399_v10 = vld [vmem:[%s3387_s27 + $0x4e8] sm:$0xff] }
  0xde   : > { %3005 = vmatprep.subr.bf16.mxu0 %v3255_v3  ;;  %3058 = vmatpush3.bf16.msra.mxu1 %v3055_v28  ;;  %v410_v28 = vld [vmem:[%s3387_s27 + $0x540] sm:$0xff]  ;;  %v1011_v43 = vadd.f32 %v4259_v15, %v674_v33 }
  0xdf   : > { %2158 = vmatmul.mubr.f32.gmra.mrb[76].mxu1 %v1048_v56  ;;  %3060 = vmatprep.subr.bf16.mxu1 %v3059_v47  ;;  %v747_v38 = vmul.f32 %v4246_v50, %v410_v28  ;;  %v345_v56 = vld [vmem:[%s3387_s27 + $0x338] sm:$0xff]  ;;  %v710_v28 = vmul.f32 %v4236_v59, %v373_v21  ;;  %v382_v33 = vld [vmem:[%s3387_s27 + $0x460] sm:$0xff] }
  0xe0   : > { %1893 = vmatmul.mubr.f32.gmra.mrb[12].mxu0 %v974_v44  ;;  %2162 = vmatprep.mubr.f32.mxu1 %v1058_v58  ;;  %v683_v44 = vmul.f32 %v4236_v59, %v346_v36  ;;  %v1010_v58 = vadd.f32 %v4265_v19, %v673_v2  ;;  %v682_v46 = vmul.f32 %v4244_v5, %v345_v56 }
  0xe1   : > { %1897 = vmatprep.mubr.f32.mxu0 %v984_v1  ;;  %3007 = vmatpush1.bf16.msra.mxu0 %v3792_v35  ;;  %v664_v35 = vmul.f32 %v4244_v5, %v327_v18  ;;  %v1084_v57 = vadd.f32 %v4268_v53, %v747_v38  ;;  %v428_v1 = vld [vmem:[%s3387_s27 + $0x5d0] sm:$0xff]  ;;  %v447_v18 = vld [vmem:[%s3387_s27 + $0x668] sm:$0xff]  ;;  %v719_v40 = vmul.f32 %v4236_v59, %v382_v33  ;;  %v417_v33 = vld [vmem:[%s3387_s27 + $0x578] sm:$0xff] }
  0xe2   : > { %3008 = vmatprep.subr.bf16.mxu0 %v3255_v3  ;;  %3062 = vmatpush3.bf16.msra.mxu1 %v3059_v47  ;;  %v355_v47 = vld [vmem:[%s3387_s27 + $0x388] sm:$0xff]  ;;  %v1020_v4 = vadd.f32 %v4259_v15, %v683_v44 }
  0xe3   : > { %2163 = vmatmul.mubr.f32.gmra.mrb[78].mxu1 %v1057_v7  ;;  %3064 = vmatprep.subr.bf16.mxu1 %v3063_v11  ;;  %v1001_v39 = vadd.f32 %v4265_v19, %v664_v35  ;;  %v692_v6 = vmul.f32 %v4236_v59, %v355_v47  ;;  %v438_v7 = vld [vmem:[%s3387_s27 + $0x620] sm:$0xff]  ;;  %v372_v35 = vld [vmem:[%s3387_s27 + $0x410] sm:$0xff]  ;;  %v391_v44 = vld [vmem:[%s3387_s27 + $0x4a8] sm:$0xff] }
  0xe4   : > { %1898 = vmatmul.mubr.f32.gmra.mrb[14].mxu0 %v983_v14  ;;  %2167 = vmatprep.mubr.f32.mxu1 %v1067_v52  ;;  %v1019_v14 = vadd.f32 %v4265_v19, %v682_v46  ;;  %v709_v36 = vmul.f32 %v4244_v5, %v372_v35  ;;  %v1056_v46 = vadd.f32 %v4259_v15, %v719_v40 }
  0xe5   : > { %1902 = vmatprep.mubr.f32.mxu0 %v993_v55  ;;  %3010 = vmatpush1.bf16.msra.mxu0 %v3821_v62  ;;  %v1085_v62 = vadd.f32 %v4253_v8, %v748_v26  ;;  %v1029_v16 = vadd.f32 %v4259_v15, %v692_v6  ;;  %v701_v55 = vmul.f32 %v4236_v59, %v364_v45  ;;  %v446_v26 = vld [vmem:[%s3387_s27 + $0x660] sm:$0xff] }
  0xe6   : > { %3011 = vmatprep.subr.bf16.mxu0 %v3255_v3  ;;  %3066 = vmatpush3.bf16.msra.mxu1 %v3063_v11  ;;  %v765_v11 = vmul.f32 %v4246_v50, %v428_v1  ;;  %v1046_v56 = vadd.f32 %v4265_v19, %v709_v36  ;;  %v400_v1 = vld [vmem:[%s3387_s27 + $0x4f0] sm:$0xff]  ;;  %v727_v6 = vmul.f32 %v4244_v5, %v390_v30 }
  0xe7   : > { %2168 = vmatmul.mubr.f32.gmra.mrb[80].mxu1 %v1066_v29  ;;  %v774_v29 = vmul.f32 %v4246_v50, %v437_v12  ;;  %v1038_v27 = vadd.f32 %v4259_v15, %v701_v55  ;;  %v409_v12 = vld [vmem:[%s3387_s27 + $0x538] sm:$0xff]  ;;  %v736_v55 = vmul.f32 %v4244_v5, %v399_v10 }
  0xe8   : > { %1903 = vmatmul.mubr.f32.gmra.mrb[16].mxu0 %v992_v63  ;;  %2172 = vmatprep.mubr.f32.mxu1 %v1076_v25  ;;  %v1102_v63 = vadd.f32 %v4268_v53, %v765_v11  ;;  %v700_v25 = vmul.f32 %v4244_v5, %v363_v17  ;;  %v473_v11 = vld [vmem:[%s3387_s27 + $0x738] sm:$0xff] }
  0xe9   : > { %1907 = vmatprep.mubr.f32.mxu0 %v1002_v31  ;;  %3013 = vmatpush1.bf16.msra.mxu0 %v3850_v20  ;;  %v766_v20 = vmul.f32 %v4231_v49, %v429_v54  ;;  %v456_v31 = vld [vmem:[%s3387_s27 + $0x6b0] sm:$0xff]  ;;  %v1111_v34 = vadd.f32 %v4268_v53, %v774_v29  ;;  %v810_v17 = vmul.f32 %v4246_v50, %v473_v11 }
  0xea   : > { %3014 = vmatprep.subr.bf16.mxu0 %v3255_v3  ;;  %v1037_v2 = vadd.f32 %v4265_v19, %v700_v25  ;;  %v408_v29 = vld [vmem:[%s3387_s27 + $0x530] sm:$0xff]  ;;  %v418_v25 = vld [vmem:[%s3387_s27 + $0x580] sm:$0xff] }
  0xeb   : > { %2173 = vmatmul.mubr.f32.gmra.mrb[82].mxu1 %v1075_v37  ;;  %v1103_v52 = vadd.f32 %v4253_v8, %v766_v20  ;;  %v783_v37 = vmul.f32 %v4246_v50, %v446_v26  ;;  %v728_v20 = vmul.f32 %v4236_v59, %v391_v44  ;;  %v1147_v35 = vadd.f32 %v4268_v53, %v810_v17  ;;  %v528_v17 = vld [vmem:[%s3387_s27 + $0x8f0] sm:$0xff] }
  0xec   : > { %1908 = vmatmul.mubr.f32.gmra.mrb[18].mxu0 %v1001_v39  ;;  %2177 = vmatprep.mubr.f32.mxu1 %v1085_v62  ;;  %v455_v39 = vld [vmem:[%s3387_s27 + $0x6a8] sm:$0xff]  ;;  %v1047_v62 = vadd.f32 %v4259_v15, %v710_v28  ;;  %v745_v28 = vmul.f32 %v4244_v5, %v408_v29  ;;  %v755_v36 = vmul.f32 %v4236_v59, %v418_v25 }
  0xed   : > { %1912 = vmatprep.mubr.f32.mxu0 %v1011_v43  ;;  %3016 = vmatpush1.bf16.msra.mxu0 %v3879_v42  ;;  %v775_v42 = vmul.f32 %v4231_v49, %v438_v7  ;;  %v465_v43 = vld [vmem:[%s3387_s27 + $0x6f8] sm:$0xff]  ;;  %v1120_v54 = vadd.f32 %v4268_v53, %v783_v37  ;;  %v792_v47 = vmul.f32 %v4246_v50, %v455_v39  ;;  %v527_v25 = vld [vmem:[%s3387_s27 + $0x8e8] sm:$0xff] }
  0xee   : > { %3017 = vmatprep.subr.bf16.mxu0 %v3255_v3  ;;  %v501_v37 = vld [vmem:[%s3387_s27 + $0x818] sm:$0xff]  ;;  %v1092_v44 = vadd.f32 %v4259_v15, %v755_v36  ;;  %v865_v29 = vmul.f32 %v4231_v49, %v528_v17  ;;  %v304_v17 = vld [vmem:[%s3387_s27 + $0x1f0] sm:$0xff] }
  0xef   : > { %2178 = vmatmul.mubr.f32.gmra.mrb[84].mxu1 %v1084_v57  ;;  %v1112_v24 = vadd.f32 %v4253_v8, %v775_v42  ;;  %v718_v57 = vmul.f32 %v4244_v5, %v381_v41  ;;  %v483_v42 = vld [vmem:[%s3387_s27 + $0x788] sm:$0xff]  ;;  %v838_v41 = vmul.f32 %v4231_v49, %v501_v37 }
  0xf0   : > { %1913 = vmatmul.mubr.f32.gmra.mrb[20].mxu0 %v1010_v58  ;;  %2182 = vmatprep.mubr.f32.mxu1 %v1094_v60  ;;  %v464_v60 = vld [vmem:[%s3387_s27 + $0x6f0] sm:$0xff] }
  0xf1   : > { %1917 = vmatprep.mubr.f32.mxu0 %v1020_v4  ;;  %3019 = vmatpush1.bf16.msra.mxu0 %v3908_v9  ;;  %v784_v9 = vmul.f32 %v4231_v49, %v447_v18  ;;  %v1129_v4 = vadd.f32 %v4268_v53, %v792_v47  ;;  %v801_v7 = vmul.f32 %v4246_v50, %v464_v60  ;;  %v510_v47 = vld [vmem:[%s3387_s27 + $0x860] sm:$0xff] }
  0xf2   : > { %3020 = vmatprep.subr.bf16.mxu0 %v3255_v3  ;;  %v1055_v45 = vadd.f32 %v4265_v19, %v718_v57  ;;  %v1064_v18 = vadd.f32 %v4265_v19, %v727_v6  ;;  %v1175_v60 = vadd.f32 %v4253_v8, %v838_v41  ;;  %v4637_v41 = vld [vmem:[%s5219_s3 + $0x8] ss:$0 sm:$0xff] }
  0xf3   : > { %2183 = vmatmul.mubr.f32.gmra.mrb[86].mxu1 %v1093_v48  ;;  %v1121_v38 = vadd.f32 %v4253_v8, %v784_v9  ;;  %v1073_v9 = vadd.f32 %v4265_v19, %v736_v55  ;;  %v444_v55 = vld [vmem:[%s3387_s27 + $0x650] sm:$0xff] }
  0xf4   : > { %1918 = vmatmul.mubr.f32.gmra.mrb[22].mxu0 %v1019_v14  ;;  %2187 = vmatprep.mubr.f32.mxu1 %v1103_v52  ;;  %v1065_v14 = vadd.f32 %v4259_v15, %v728_v20  ;;  %v737_v52 = vmul.f32 %v4236_v59, %v400_v1  ;;  %v847_v20 = vmul.f32 %v4231_v49, %v510_v47  ;;  %v509_v1 = vld [vmem:[%s3387_s27 + $0x858] sm:$0xff] }
  0xf5   : > { %1922 = vmatprep.mubr.f32.mxu0 %v1029_v16  ;;  %3022 = vmatpush1.bf16.msra.mxu0 %v3937_v32  ;;  %v793_v32 = vmul.f32 %v4231_v49, %v456_v31  ;;  %v1138_v16 = vadd.f32 %v4268_v53, %v801_v7  ;;  %v519_v7 = vld [vmem:[%s3387_s27 + $0x8a8] sm:$0xff]  ;;  %v846_v10 = vmul.f32 %v4246_v50, %v509_v1 }
  0xf6   : > { %3023 = vmatprep.subr.bf16.mxu0 %v3255_v3  ;;  %v471_v1 = vld [vmem:[%s3387_s27 + $0x728] sm:$0xff] }
  0xf7   : > { %2188 = vmatmul.mubr.f32.gmra.mrb[88].mxu1 %v1102_v63  ;;  %v1130_v58 = vadd.f32 %v4253_v8, %v793_v32  ;;  %v746_v63 = vmul.f32 %v4236_v59, %v409_v12  ;;  %v754_v32 = vmul.f32 %v4244_v5, %v417_v33 }
  0xf8   : > { %1923 = vmatmul.mubr.f32.gmra.mrb[24].mxu0 %v1028_v23  ;;  %2192 = vmatprep.mubr.f32.mxu1 %v1112_v24  ;;  %v482_v23 = vld [vmem:[%s3387_s27 + $0x780] sm:$0xff]  ;;  %v492_v24 = vld [vmem:[%s3387_s27 + $0x7d0] sm:$0xff] }
  0xf9   : > { %1927 = vmatprep.mubr.f32.mxu0 %v1038_v27  ;;  %3025 = vmatpush1.bf16.msra.mxu0 %v3966_v61  ;;  %v802_v61 = vmul.f32 %v4231_v49, %v465_v43  ;;  %v819_v26 = vmul.f32 %v4246_v50, %v482_v23  ;;  %v829_v31 = vmul.f32 %v4231_v49, %v492_v24  ;;  %v500_v43 = vld [vmem:[%s3387_s27 + $0x810] sm:$0xff]  ;;  %v453_v24 = vld [vmem:[%s3387_s27 + $0x698] sm:$0xff] }
  0xfa   : > { %3026 = vmatprep.subr.bf16.mxu0 %v3255_v3  ;;  %v1091_v57 = vadd.f32 %v4265_v19, %v754_v32  ;;  %v837_v30 = vmul.f32 %v4246_v50, %v500_v43  ;;  %v462_v32 = vld [vmem:[%s3387_s27 + $0x6e0] sm:$0xff]  ;;  %v268_v43 = vld [vmem:[%s3387_s27 + $0xd0] sm:$0xff] }
  0xfb   : > { %2193 = vmatmul.mubr.f32.gmra.mrb[90].mxu1 %v1111_v34  ;;  %v1139_v48 = vadd.f32 %v4253_v8, %v802_v61  ;;  %v1083_v34 = vadd.f32 %v4259_v15, %v746_v63  ;;  %v1166_v40 = vadd.f32 %v4253_v8, %v829_v31  ;;  %v781_v63 = vmul.f32 %v4244_v5, %v444_v55 }
  0xfc   : > { %1928 = vmatmul.mubr.f32.gmra.mrb[26].mxu0 %v1037_v2  ;;  %2197 = vmatprep.mubr.f32.mxu1 %v1121_v38  ;;  %v427_v2 = vld [vmem:[%s3387_s27 + $0x5c8] sm:$0xff]  ;;  %v1156_v38 = vadd.f32 %v4268_v53, %v819_v26  ;;  %v250_v26 = vld [vmem:[%s3387_s27 + $0x40] sm:$0xff]  ;;  %v799_v47 = vmul.f32 %v4244_v5, %v462_v32 }
  0xfd   : > { %1932 = vmatprep.mubr.f32.mxu0 %v1047_v62  ;;  %3028 = vmatpush1.bf16.msra.mxu0 %v3995_v22  ;;  %v811_v22 = vmul.f32 %v4231_v49, %v474_v0  ;;  %v1082_v62 = vadd.f32 %v4265_v19, %v745_v28  ;;  %v435_v0 = vld [vmem:[%s3387_s27 + $0x608] sm:$0xff]  ;;  %v1118_v37 = vadd.f32 %v4265_v19, %v781_v63 }
  0xfe   : > { %3029 = vmatprep.subr.bf16.mxu0 %v3255_v3  ;;  %v463_v28 = vld [vmem:[%s3387_s27 + $0x6e8] sm:$0xff] }
  0xff   : > { %2198 = vmatmul.mubr.f32.gmra.mrb[92].mxu1 %v1120_v54  ;;  %v1148_v21 = vadd.f32 %v4253_v8, %v811_v22  ;;  %v426_v54 = vld [vmem:[%s3387_s27 + $0x5c0] sm:$0xff]  ;;  %v772_v22 = vmul.f32 %v4244_v5, %v435_v0 }
 0x100   : > { %1933 = vmatmul.mubr.f32.gmra.mrb[28].mxu0 %v1046_v56  ;;  %2202 = vmatprep.mubr.f32.mxu1 %v1130_v58  ;;  %v764_v56 = vmul.f32 %v4236_v59, %v427_v2  ;;  %v436_v58 = vld [vmem:[%s3387_s27 + $0x610] sm:$0xff]  ;;  %v1202_v2 = vadd.f32 %v4253_v8, %v865_v29 }
 0x101   : > { %1937 = vmatprep.mubr.f32.mxu0 %v1056_v46  ;;  %3031 = vmatpush1.bf16.msra.mxu0 %v4024_v51  ;;  %v820_v51 = vmul.f32 %v4231_v49, %v483_v42  ;;  %v763_v46 = vmul.f32 %v4244_v5, %v426_v54  ;;  %v773_v6 = vmul.f32 %v4236_v59, %v436_v58  ;;  %v518_v42 = vld [vmem:[%s3387_s27 + $0x8a0] sm:$0xff] }
 0x102   : > { %3032 = vmatprep.subr.bf16.mxu0 %v3255_v3  ;;  %v1074_v3 = vadd.f32 %v4259_v15, %v737_v52  ;;  %v856_v52 = vmul.f32 %v4231_v49, %v519_v7  ;;  %v855_v23 = vmul.f32 %v4246_v50, %v518_v42  ;;  %v480_v42 = vld [vmem:[%s3387_s27 + $0x770] sm:$0xff] }
 0x103   : > { %2203 = vmatmul.mubr.f32.gmra.mrb[94].mxu1 %v1129_v4  ;;  %v1157_v27 = vadd.f32 %v4253_v8, %v820_v51  ;;  %v1101_v4 = vadd.f32 %v4259_v15, %v764_v56  ;;  %v1100_v11 = vadd.f32 %v4265_v19, %v763_v46  ;;  %v1110_v12 = vadd.f32 %v4259_v15, %v773_v6  ;;  %v277_v46 = vld [vmem:[%s3387_s27 + $0x118] sm:$0xff] }
 0x104   : > { %1938 = vmatmul.mubr.f32.gmra.mrb[30].mxu0 %v1055_v45  ;;  %2207 = vmatprep.mubr.f32.mxu1 %v1139_v48  ;;  %v445_v45 = vld [vmem:[%s3387_s27 + $0x658] sm:$0xff]  ;;  %v1174_v48 = vadd.f32 %v4268_v53, %v837_v30  ;;  %v1183_v51 = vadd.f32 %v4268_v53, %v846_v10  ;;  %v1192_v33 = vadd.f32 %v4268_v53, %v855_v23 }
 0x105   : > { %1942 = vmatprep.mubr.f32.mxu0 %v1065_v14  ;;  %3034 = vmatpush1.bf16.msra.mxu0 %v4047_v13  ;;  %v491_v13 = vld [vmem:[%s3387_s27 + $0x7c8] sm:$0xff]  ;;  %v1184_v14 = vadd.f32 %v4253_v8, %v847_v20  ;;  %v481_v6 = vld [vmem:[%s3387_s27 + $0x778] sm:$0xff]  ;;  %v817_v23 = vmul.f32 %v4244_v5, %v480_v42 }
 0x106   : > { %v828_v39 = vmul.f32 %v4246_v50, %v491_v13  ;;  %v790_v13 = vmul.f32 %v4244_v5, %v453_v24  ;;  %v818_v55 = vmul.f32 %v4236_v59, %v481_v6  ;;  %v349_v6 = vld [vmem:[%s3387_s27 + $0x358] sm:$0xff] }
 0x107   : > { %2208 = vmatmul.mubr.f32.gmra.mrb[96].mxu1 %v1138_v16  ;;  %v782_v16 = vmul.f32 %v4236_v59, %v445_v45  ;;  %v1136_v45 = vadd.f32 %v4265_v19, %v799_v47  ;;  %v340_v47 = vld [vmem:[%s3387_s27 + $0x310] sm:$0xff] }
 0x108   : > { %1943 = vmatmul.mubr.f32.gmra.mrb[32].mxu0 %v1064_v18  ;;  %2212 = vmatprep.mubr.f32.mxu1 %v1148_v21  ;;  %v1165_v61 = vadd.f32 %v4268_v53, %v828_v39  ;;  %v454_v18 = vld [vmem:[%s3387_s27 + $0x6a0] sm:$0xff]  ;;  %v1109_v21 = vadd.f32 %v4265_v19, %v772_v22  ;;  %v259_v39 = vld [vmem:[%s3387_s27 + $0x88] sm:$0xff] }
 0x109   : > { %1947 = vmatprep.mubr.f32.mxu0 %v1074_v3  ;;  %v1193_v3 = vadd.f32 %v4253_v8, %v856_v52 }
 0x10b   : > { %2213 = vmatmul.mubr.f32.gmra.mrb[98].mxu1 %v1147_v35  ;;  %v791_v35 = vmul.f32 %v4236_v59, %v454_v18  ;;  %v490_v18 = vld [vmem:[%s3387_s27 + $0x7c0] sm:$0xff] }
 0x10c   : > { %1948 = vmatmul.mubr.f32.gmra.mrb[34].mxu0 %v1073_v9  ;;  %2217 = vmatprep.mubr.f32.mxu1 %v1157_v27  ;;  %v1119_v9 = vadd.f32 %v4259_v15, %v782_v16  ;;  %v4619_v27 = vld [vmem:[%s5218_s2 + $0x8] ss:$0 sm:$0xff] }
 0x10d   : > { %1952 = vmatprep.mubr.f32.mxu0 %v1083_v34  ;;  %v864_v34 = vmul.f32 %v4246_v50, %v527_v25  ;;  %v596_v58 = vmul.f32 %v4619_v27, %v259_v39  ;;  %v614_v22 = vmul.f32 %v4619_v27, %v277_v46  ;;  %v641_v25 = vmul.f32 %v4619_v27, %v304_v17 }
 0x10e   : > { %v686_v42 = vmul.f32 %v4619_v27, %v349_v6 }
 0x10f   : > { %2218 = vmatmul.mubr.f32.gmra.mrb[100].mxu1 %v1156_v38  ;;  %v587_v38 = vmul.f32 %v4619_v27, %v250_v26  ;;  %v1201_v54 = vadd.f32 %v4268_v53, %v864_v34  ;;  %v827_v26 = vmul.f32 %v4236_v59, %v490_v18  ;;  %v978_v32 = vadd.f32 %v4637_v41, %v641_v25  ;;  %v367_v18 = vld [vmem:[%s3387_s27 + $0x3e8] sm:$0xff] }
 0x110   : > { %1953 = vmatmul.mubr.f32.gmra.mrb[36].mxu0 %v1082_v62  ;;  %2222 = vmatprep.mubr.f32.mxu1 %v1166_v40  ;;  %v1128_v62 = vadd.f32 %v4259_v15, %v791_v35  ;;  %v800_v40 = vmul.f32 %v4236_v59, %v463_v28  ;;  %v1155_v35 = vadd.f32 %v4259_v15, %v818_v55  ;;  %v489_v28 = vld [vmem:[%s3387_s27 + $0x7b8] sm:$0xff] }
 0x111   : > { %1957 = vmatprep.mubr.f32.mxu0 %v1092_v44  ;;  %v472_v44 = vld [vmem:[%s3387_s27 + $0x730] sm:$0xff]  ;;  %v924_v30 = vadd.f32 %v4637_v41, %v587_v38  ;;  %v826_v39 = vmul.f32 %v4244_v5, %v489_v28 }
 0x112   : > { %v1137_v20 = vadd.f32 %v4259_v15, %v800_v40  ;;  %v809_v0 = vmul.f32 %v4236_v59, %v472_v44  ;;  %v498_v40 = vld [vmem:[%s3387_s27 + $0x800] sm:$0xff]  ;;  %v1164_v44 = vadd.f32 %v4259_v15, %v827_v26 }
 0x113   : > { %2223 = vmatmul.mubr.f32.gmra.mrb[102].mxu1 %v1165_v61  ;;  %v1127_v61 = vadd.f32 %v4265_v19, %v790_v13  ;;  %v499_v13 = vld [vmem:[%s3387_s27 + $0x808] sm:$0xff] }
 0x114   : > { %1958 = vmatmul.mubr.f32.gmra.mrb[38].mxu0 %v1091_v57  ;;  %2227 = vmatprep.mubr.f32.mxu1 %v1175_v60  ;;  %v605_v60 = vmul.f32 %v4619_v27, %v268_v43  ;;  %v1146_v16 = vadd.f32 %v4259_v15, %v809_v0  ;;  %v331_v43 = vld [vmem:[%s3387_s27 + $0x2c8] sm:$0xff] }
 0x115   : > { %1962 = vmatprep.mubr.f32.mxu0 %v1101_v4  ;;  %v286_v4 = vld [vmem:[%s3387_s27 + $0x160] sm:$0xff] }
 0x116   : > { %v623_v52 = vmul.f32 %v4619_v27, %v286_v4  ;;  %v507_v4 = vld [vmem:[%s3387_s27 + $0x848] sm:$0xff] }
 0x117   : > { %2228 = vmatmul.mubr.f32.gmra.mrb[104].mxu1 %v1174_v48  ;;  %v933_v48 = vadd.f32 %v4637_v41, %v596_v58  ;;  %v508_v58 = vld [vmem:[%s3387_s27 + $0x850] sm:$0xff] }
 0x118   : > { %1963 = vmatmul.mubr.f32.gmra.mrb[40].mxu0 %v1100_v11  ;;  %2232 = vmatprep.mubr.f32.mxu1 %v1184_v14  ;;  %v942_v11 = vadd.f32 %v4637_v41, %v605_v60  ;;  %v808_v14 = vmul.f32 %v4244_v5, %v471_v1  ;;  %v960_v24 = vadd.f32 %v4637_v41, %v623_v52 }
 0x119   : > { %1967 = vmatprep.mubr.f32.mxu0 %v1110_v12  ;;  %v295_v12 = vld [vmem:[%s3387_s27 + $0x1a8] sm:$0xff]  ;;  %v668_v60 = vmul.f32 %v4619_v27, %v331_v43  ;;  %v677_v1 = vmul.f32 %v4619_v27, %v340_v47  ;;  %v844_v52 = vmul.f32 %v4244_v5, %v507_v4 }
 0x11a   : > { %v4622_v31 = vpop.f32.mrb[0].mxu1  ;;  %v1145_v29 = vadd.f32 %v4265_v19, %v808_v14 }
 0x11b   : > { %2233 = vmatmul.mubr.f32.gmra.mrb[106].mxu1 %v1183_v51  ;;  %v1416_v36 = vpop.f32.mrb[1].mxu1  ;;  %v951_v51 = vadd.f32 %v4637_v41, %v614_v22  ;;  %v358_v22 = vld [vmem:[%s3387_s27 + $0x3a0] sm:$0xff]  ;;  %v1005_v14 = vadd.f32 %v4637_v41, %v668_v60  ;;  %v1014_v55 = vadd.f32 %v4637_v41, %v677_v1  ;;  %v1181_v25 = vadd.f32 %v4265_v19, %v844_v52 }
 0x11c   : > { %1968 = vmatmul.mubr.f32.gmra.mrb[42].mxu0 %v1109_v21  ;;  %2237 = vmatprep.mubr.f32.mxu1 %v1193_v3  ;;  %v632_v3 = vmul.f32 %v4619_v27, %v295_v12  ;;  %v1154_v36 = vadd.f32 %v4265_v19, %v817_v23  ;;  %v695_v17 = vmul.f32 %v4619_v27, %v358_v22 }
 0x11d   : > { %1972 = vmatprep.mubr.f32.mxu0 %v1119_v9  ;;  %v313_v9 = vld [vmem:[%s3387_s27 + $0x238] sm:$0xff] }
 0x11e   : > { %v4641_v56 = vpop.f32.mrb[2].mxu1  ;;  %v1032_v28 = vadd.f32 %v4637_v41, %v695_v17 }
 0x11f   : > { %2238 = vmatmul.mubr.f32.gmra.mrb[108].mxu1 %v1192_v33  ;;  %v1421_v57 = vpop.f32.mrb[3].mxu1  ;;  %v322_v33 = vld [vmem:[%s3387_s27 + $0x280] sm:$0xff] }
 0x120   : > { %1973 = vmatmul.mubr.f32.gmra.mrb[44].mxu0 %v1118_v37  ;;  %2242 = vmatprep.mubr.f32.mxu1 %v1202_v2  ;;  %v969_v37 = vadd.f32 %v4637_v41, %v632_v3  ;;  %v650_v2 = vmul.f32 %v4619_v27, %v313_v9  ;;  %v516_v3 = vld [vmem:[%s3387_s27 + $0x890] sm:$0xff]  ;;  %v1023_v9 = vadd.f32 %v4637_v41, %v686_v42  ;;  %v430_v42 = vld [vmem:[%s3387_s27 + $0x5e0] sm:$0xff] }
 0x121   : > { %1977 = vmatprep.mubr.f32.mxu0 %v1128_v62  ;;  %v659_v62 = vmul.f32 %v4619_v27, %v322_v33  ;;  %v853_v33 = vmul.f32 %v4244_v5, %v516_v3 }
 0x122   : > { %v4655_v7 = vpop.f32.mrb[4].mxu1 }
 0x123   : > { %2243 = vmatmul.mubr.f32.gmra.mrb[110].mxu1 %v1201_v54  ;;  %v1426_v10 = vpop.f32.mrb[5].mxu1  ;;  %v836_v54 = vmul.f32 %v4236_v59, %v499_v13  ;;  %v996_v0 = vadd.f32 %v4637_v41, %v659_v62  ;;  %v1190_v47 = vadd.f32 %v4265_v19, %v853_v33 }
 0x124   : > { %1978 = vmatmul.mubr.f32.gmra.mrb[46].mxu0 %v1127_v61  ;;  %2795 = vmatprep.mubr.f32.mxu1 %v924_v30  ;;  %v987_v61 = vadd.f32 %v4637_v41, %v650_v2  ;;  %v835_v30 = vmul.f32 %v4244_v5, %v498_v40  ;;  %v517_v10 = vld [vmem:[%s3387_s27 + $0x898] sm:$0xff] }
 0x125   : > { %1982 = vmatprep.mubr.f32.mxu0 %v1137_v20  ;;  %v1163_v20 = vadd.f32 %v4265_v19, %v826_v39  ;;  %v854_v23 = vmul.f32 %v4236_v59, %v517_v10  ;;  %v249_v39 = vld [vmem:[%s3387_s27 + $0x38] sm:$0xff] }
 0x126   : > { %v4669_v21 = vpop.f32.mrb[6].mxu1  ;;  %v586_v60 = vmul.f32 %v4231_v49, %v249_v39  ;;  %v257_v10 = vld [vmem:[%s3387_s27 + $0x78] sm:$0xff] }
 0x127   : > { %2796 = vmatmul.mubr.f32.vlgmr.msra.gmra.mrb[112].mxu1 %v933_v48  ;;  %v1431_v63 = vpop.f32.mrb[7].mxu1  ;;  %v845_v48 = vmul.f32 %v4236_v59, %v508_v58  ;;  %v1191_v2 = vadd.f32 %v4259_v15, %v854_v23  ;;  %v594_v17 = vmul.f32 %v4246_v50, %v257_v10 }
 0x128   : > { %1983 = vmatmul.mubr.f32.gmra.mrb[48].mxu0 %v1136_v45  ;;  %2798 = vmatprep.mubr.f32.mxu1 %v942_v11  ;;  %v1173_v45 = vadd.f32 %v4259_v15, %v836_v54  ;;  %v376_v63 = vld [vmem:[%s3387_s27 + $0x430] sm:$0xff]  ;;  %v923_v52 = vadd.f32 %v4253_v8, %v586_v60 }
 0x129   : > { %1987 = vmatprep.mubr.f32.mxu0 %v1146_v16  ;;  %v1172_v16 = vadd.f32 %v4265_v19, %v835_v30  ;;  %v713_v13 = vmul.f32 %v4619_v27, %v376_v63  ;;  %v767_v63 = vmul.f32 %v4619_v27, %v430_v42 }
 0x12a   : > { %v4683_v34 = vpop.f32.mrb[8].mxu1 }
 0x12b   : > { %2799 = vmatmul.mubr.f32.gmra.mrb[114].mxu1 %v951_v51  ;;  %v1436_v38 = vpop.f32.mrb[9].mxu1  ;;  %v1182_v51 = vadd.f32 %v4259_v15, %v845_v48 }
 0x12c   : > { %1988 = vmatmul.mubr.f32.gmra.mrb[50].mxu0 %v1145_v29  ;;  %2801 = vmatprep.mubr.f32.mxu1 %v960_v24  ;;  %v526_v29 = vld [vmem:[%s3387_s27 + $0x8e0] sm:$0xff] }
 0x12d   : > { %1992 = vmatprep.mubr.f32.mxu0 %v1155_v35  ;;  %v704_v35 = vmul.f32 %v4619_v27, %v367_v18  ;;  %v863_v38 = vmul.f32 %v4236_v59, %v526_v29  ;;  %v1050_v59 = vadd.f32 %v4637_v41, %v713_v13  ;;  %v439_v29 = vld [vmem:[%s3387_s27 + $0x628] sm:$0xff]  ;;  %v931_v13 = vadd.f32 %v4268_v53, %v594_v17 }
 0x12e   : > { %v4697_v57 = vpop.f32.mrb[10].mxu1 }
 0x12f   : > { %2802 = vmatmul.mubr.f32.gmra.mrb[116].mxu1 %v969_v37  ;;  %v1441_v46 = vpop.f32.mrb[11].mxu1  ;;  %v385_v37 = vld [vmem:[%s3387_s27 + $0x478] sm:$0xff]  ;;  %v1041_v40 = vadd.f32 %v4637_v41, %v704_v35  ;;  %v1200_v30 = vadd.f32 %v4259_v15, %v863_v38  ;;  %v266_v35 = vld [vmem:[%s3387_s27 + $0xc0] sm:$0xff]  ;;  %v1104_v38 = vadd.f32 %v4637_v41, %v767_v63 }
 0x130   : > { %1993 = vmatmul.mubr.f32.gmra.mrb[52].mxu0 %v1154_v36  ;;  %2804 = vmatprep.mubr.f32.mxu1 %v978_v32  ;;  %v525_v36 = vld [vmem:[%s3387_s27 + $0x8d8] sm:$0xff]  ;;  %v394_v32 = vld [vmem:[%s3387_s27 + $0x4c0] sm:$0xff]  ;;  %v412_v46 = vld [vmem:[%s3387_s27 + $0x550] sm:$0xff] }
 0x131   : > { %1997 = vmatprep.mubr.f32.mxu0 %v1164_v44  ;;  %v862_v43 = vmul.f32 %v4244_v5, %v525_v36  ;;  %v722_v44 = vmul.f32 %v4619_v27, %v385_v37  ;;  %v731_v58 = vmul.f32 %v4619_v27, %v394_v32  ;;  %v248_v5 = vld [vmem:[%s3387_s27 + $0x30] sm:$0xff]  ;;  %v749_v22 = vmul.f32 %v4619_v27, %v412_v46  ;;  %v502_v63 = vld [vmem:[%s3387_s27 + $0x820] sm:$0xff] }
 0x132   : > { %v4711_v11 = vpop.f32.mrb[12].mxu1  ;;  %v585_v48 = vmul.f32 %v4246_v50, %v248_v5  ;;  %v776_v37 = vmul.f32 %v4619_v27, %v439_v29  ;;  %v603_v32 = vmul.f32 %v4246_v50, %v266_v35  ;;  %v303_v29 = vld [vmem:[%s3387_s27 + $0x1e8] sm:$0xff] }
 0x133   : > { %2805 = vmatmul.mubr.f32.gmra.mrb[118].mxu1 %v987_v61  ;;  %v1446_v12 = vpop.f32.mrb[13].mxu1  ;;  %v403_v61 = vld [vmem:[%s3387_s27 + $0x508] sm:$0xff]  ;;  %v1199_v1 = vadd.f32 %v4265_v19, %v862_v43  ;;  %v1059_v4 = vadd.f32 %v4637_v41, %v722_v44  ;;  %v1068_v15 = vadd.f32 %v4637_v41, %v731_v58  ;;  %v1086_v3 = vadd.f32 %v4637_v41, %v749_v22  ;;  %v457_v43 = vld [vmem:[%s3387_s27 + $0x6b8] sm:$0xff]  ;;  %v294_v22 = vld [vmem:[%s3387_s27 + $0x1a0] sm:$0xff] }
 0x134   : > { %1998 = vmatmul.mubr.f32.gmra.mrb[54].mxu0 %v1163_v20  ;;  %2807 = vmatprep.mubr.f32.mxu1 %v996_v0  ;;  %v258_v20 = vld [vmem:[%s3387_s27 + $0x80] sm:$0xff]  ;;  %v740_v6 = vmul.f32 %v4619_v27, %v403_v61  ;;  %v267_v12 = vld [vmem:[%s3387_s27 + $0xc8] sm:$0xff]  ;;  %v922_v23 = vadd.f32 %v4268_v53, %v585_v48  ;;  %v1113_v61 = vadd.f32 %v4637_v41, %v776_v37  ;;  %v484_v48 = vld [vmem:[%s3387_s27 + $0x790] sm:$0xff] }
 0x135   : > { %2002 = vmatprep.mubr.f32.mxu0 %v1173_v45  ;;  %v595_v19 = vmul.f32 %v4231_v49, %v258_v20  ;;  %v794_v60 = vmul.f32 %v4619_v27, %v457_v43  ;;  %v940_v46 = vadd.f32 %v4268_v53, %v603_v32  ;;  %v821_v17 = vmul.f32 %v4619_v27, %v484_v48  ;;  %v312_v43 = vld [vmem:[%s3387_s27 + $0x230] sm:$0xff] }
 0x136   : > { %v4725_v24 = vpop.f32.mrb[14].mxu1  ;;  %v839_v37 = vmul.f32 %v4619_v27, %v502_v63  ;;  %v640_v32 = vmul.f32 %v4231_v49, %v303_v29 }
 0x137   : > { %2808 = vmatmul.mubr.f32.gmra.mrb[120].mxu1 %v1005_v14  ;;  %v1451_v26 = vpop.f32.mrb[15].mxu1  ;;  %v421_v14 = vld [vmem:[%s3387_s27 + $0x598] sm:$0xff] }
 0x138   : > { %2003 = vmatmul.mubr.f32.gmra.mrb[56].mxu0 %v1172_v16  ;;  %2810 = vmatprep.mubr.f32.mxu1 %v1014_v55  ;;  %v1077_v55 = vadd.f32 %v4637_v41, %v740_v6  ;;  %v758_v18 = vmul.f32 %v4619_v27, %v421_v14  ;;  %v448_v26 = vld [vmem:[%s3387_s27 + $0x670] sm:$0xff] }
 0x139   : > { %2007 = vmatprep.mubr.f32.mxu0 %v1182_v51  ;;  %v785_v39 = vmul.f32 %v4619_v27, %v448_v26 }
 0x13a   : > { %v4739_v62 = vpop.f32.mrb[16].mxu1  ;;  %v1095_v36 = vadd.f32 %v4637_v41, %v758_v18  ;;  %v293_v18 = vld [vmem:[%s3387_s27 + $0x198] sm:$0xff] }
 0x13b   : > { %2811 = vmatmul.mubr.f32.gmra.mrb[122].mxu1 %v1023_v9  ;;  %v1456_v54 = vpop.f32.mrb[17].mxu1  ;;  %v604_v9 = vmul.f32 %v4231_v49, %v267_v12  ;;  %v1122_v20 = vadd.f32 %v4637_v41, %v785_v39  ;;  %v630_v35 = vmul.f32 %v4246_v50, %v293_v18  ;;  %v302_v39 = vld [vmem:[%s3387_s27 + $0x1e0] sm:$0xff] }
 0x13c   : > { %2008 = vmatmul.mubr.f32.gmra.mrb[58].mxu0 %v1181_v25  ;;  %2813 = vmatprep.mubr.f32.mxu1 %v1032_v28  ;;  %v932_v25 = vadd.f32 %v4253_v8, %v595_v19  ;;  %v276_v28 = vld [vmem:[%s3387_s27 + $0x110] sm:$0xff] }
 0x13d   : > { %2012 = vmatprep.mubr.f32.mxu0 %v1191_v2  ;;  %v941_v44 = vadd.f32 %v4253_v8, %v604_v9  ;;  %v613_v54 = vmul.f32 %v4231_v49, %v276_v28 }
 0x13e   : > { %v4753_v0 = vpop.f32.mrb[18].mxu1 }
 0x13f   : > { %2814 = vmatmul.mubr.f32.gmra.mrb[124].mxu1 %v1041_v40  ;;  %v1461_v45 = vpop.f32.mrb[19].mxu1  ;;  %v275_v40 = vld [vmem:[%s3387_s27 + $0x108] sm:$0xff]  ;;  %v950_v6 = vadd.f32 %v4253_v8, %v613_v54  ;;  %v967_v54 = vadd.f32 %v4268_v53, %v630_v35 }
 0x140   : > { %2013 = vmatmul.mubr.f32.gmra.mrb[60].mxu0 %v1190_v47  ;;  %2816 = vmatprep.mubr.f32.mxu1 %v1050_v59  ;;  %v466_v47 = vld [vmem:[%s3387_s27 + $0x700] sm:$0xff]  ;;  %v285_v59 = vld [vmem:[%s3387_s27 + $0x158] sm:$0xff] }
 0x141   : > { %2017 = vmatprep.mubr.f32.mxu0 %v1200_v30  ;;  %v612_v30 = vmul.f32 %v4246_v50, %v275_v40  ;;  %v622_v45 = vmul.f32 %v4231_v49, %v285_v59  ;;  %v520_v40 = vld [vmem:[%s3387_s27 + $0x8b0] sm:$0xff] }
 0x142   : > { %v4767_v16 = vpop.f32.mrb[20].mxu1 }
 0x143   : > { %2817 = vmatmul.mubr.f32.gmra.mrb[126].mxu1 %v1059_v4  ;;  %v1466_v51 = vpop.f32.mrb[21].mxu1  ;;  %v475_v4 = vld [vmem:[%s3387_s27 + $0x748] sm:$0xff]  ;;  %v949_v14 = vadd.f32 %v4268_v53, %v612_v30  ;;  %v1176_v30 = vadd.f32 %v4637_v41, %v839_v37 }
 0x144   : > { %2018 = vmatmul.mubr.f32.gmra.mrb[62].mxu0 %v1199_v1  ;;  %2819 = vmatprep.mubr.f32.mxu1 %v1068_v15  ;;  %v803_v1 = vmul.f32 %v4619_v27, %v466_v47  ;;  %v284_v15 = vld [vmem:[%s3387_s27 + $0x150] sm:$0xff]  ;;  %v812_v19 = vmul.f32 %v4619_v27, %v475_v4  ;;  %v493_v51 = vld [vmem:[%s3387_s27 + $0x7d8] sm:$0xff]  ;;  %v311_v4 = vld [vmem:[%s3387_s27 + $0x228] sm:$0xff] }
 0x145   : > { %2087 = vmatprep.mubr.f32.mxu0 %v923_v52  ;;  %v1131_v52 = vadd.f32 %v4637_v41, %v794_v60  ;;  %v830_v26 = vmul.f32 %v4619_v27, %v493_v51  ;;  %v639_v60 = vmul.f32 %v4246_v50, %v302_v39 }
 0x146   : > { %v4781_v33 = vpop.f32.mrb[22].mxu1  ;;  %v1140_v12 = vadd.f32 %v4637_v41, %v803_v1  ;;  %v1149_v9 = vadd.f32 %v4637_v41, %v812_v19  ;;  %v649_v1 = vmul.f32 %v4231_v49, %v312_v43 }
 0x147   : > { %2820 = vmatmul.mubr.f32.gmra.mrb[128].mxu1 %v1077_v55  ;;  %v1471_v2 = vpop.f32.mrb[23].mxu1  ;;  %v621_v55 = vmul.f32 %v4246_v50, %v284_v15  ;;  %v1167_v47 = vadd.f32 %v4637_v41, %v830_v26 }
 0x148   : > { %2088 = vmatmul.mubr.f32.vlgmr.msra.gmra.mrb[0].mxu0 %v922_v23  ;;  %2822 = vmatprep.mubr.f32.mxu1 %v1086_v3  ;;  %v959_v23 = vadd.f32 %v4253_v8, %v622_v45  ;;  %v631_v3 = vmul.f32 %v4231_v49, %v294_v22  ;;  %v511_v2 = vld [vmem:[%s3387_s27 + $0x868] sm:$0xff]  ;;  %v976_v22 = vadd.f32 %v4268_v53, %v639_v60 }
 0x149   : > { %2092 = vmatprep.mubr.f32.mxu0 %v932_v25  ;;  %v848_v59 = vmul.f32 %v4619_v27, %v511_v2  ;;  %v986_v49 = vadd.f32 %v4253_v8, %v649_v1 }
 0x14a   : > { %v4795_v58 = vpop.f32.mrb[24].mxu1 }
 0x14b   : > { %2823 = vmatmul.mubr.f32.gmra.mrb[130].mxu1 %v1095_v36  ;;  %v1476_v5 = vpop.f32.mrb[25].mxu1  ;;  %v1158_v36 = vadd.f32 %v4637_v41, %v821_v17  ;;  %v1185_v45 = vadd.f32 %v4637_v41, %v848_v59 }
 0x14c   : > { %2093 = vmatmul.mubr.f32.gmra.mrb[2].mxu0 %v931_v13  ;;  %2825 = vmatprep.mubr.f32.mxu1 %v1104_v38  ;;  %v958_v13 = vadd.f32 %v4268_v53, %v621_v55  ;;  %v968_v38 = vadd.f32 %v4253_v8, %v631_v3  ;;  %v857_v5 = vmul.f32 %v4619_v27, %v520_v40 }
 0x14d   : > { %2097 = vmatprep.mubr.f32.mxu0 %v941_v44 }
 0x14e   : > { %v4809_v10 = vpop.f32.mrb[26].mxu1 }
 0x14f   : > { %2826 = vmatmul.mubr.f32.gmra.mrb[132].mxu1 %v1113_v61  ;;  %v1481_v42 = vpop.f32.mrb[27].mxu1 }
 0x150   : > { %2098 = vmatmul.mubr.f32.gmra.mrb[4].mxu0 %v940_v46  ;;  %2828 = vmatprep.mubr.f32.mxu1 %v1122_v20  ;;  %v529_v46 = vld [vmem:[%s3387_s27 + $0x8f8] sm:$0xff]  ;;  %v977_v20 = vadd.f32 %v4253_v8, %v640_v32  ;;  %s2709_s27 = sshll.u32 %s5223_s11, 3  ;;  %s2710_s11 = sshll.u32 %s5225_s19, 1 }
 0x151   : > { %2102 = vmatprep.mubr.f32.mxu0 %v950_v6  ;;  %v866_v15 = vmul.f32 %v4619_v27, %v529_v46  ;;  %s4973_s30 = scalar_lea.vmem %s5220_s4, %s2709_s27  ;;  %s241_s8 = scalar_lea.vmem %s5221_s5, %s2710_s11 }
 0x152   : > { %v4823_v25 = vpop.f32.mrb[28].mxu1 }
 0x153   : > { %2829 = vmatmul.mubr.f32.gmra.mrb[134].mxu1 %v1131_v52  ;;  %v1486_v28 = vpop.f32.mrb[29].mxu1  ;;  %v648_v52 = vmul.f32 %v4246_v50, %v311_v4  ;;  %v1203_v42 = vadd.f32 %v4637_v41, %v866_v15 }
 0x154   : > { %2103 = vmatmul.mubr.f32.gmra.mrb[6].mxu0 %v949_v14  ;;  %2831 = vmatprep.mubr.f32.mxu1 %v1140_v12  ;;  %v1194_v14 = vadd.f32 %v4637_v41, %v857_v5 }
 0x155   : > { %2107 = vmatprep.mubr.f32.mxu0 %v959_v23  ;;  %v985_v27 = vadd.f32 %v4268_v53, %v648_v52 }
 0x156   : > { %v4837_v44 = vpop.f32.mrb[30].mxu1 }
 0x157   : > { %2832 = vmatmul.mubr.f32.gmra.mrb[136].mxu1 %v1149_v9  ;;  %v1491_v61 = vpop.f32.mrb[31].mxu1 }
 0x158   : > { %2108 = vmatmul.mubr.f32.gmra.mrb[8].mxu0 %v958_v13  ;;  %2834 = vmatprep.mubr.f32.mxu1 %v1158_v36 }
 0x159   : > { %2112 = vmatprep.mubr.f32.mxu0 %v968_v38 }
 0x15a   : > { %v4849_v6 = vpop.f32.mrb[32].mxu1 }
 0x15b   : > { %2835 = vmatmul.mubr.f32.gmra.mrb[138].mxu1 %v1167_v47  ;;  %v1496_v48 = vpop.f32.mrb[33].mxu1 }
 0x15c   : > { %2113 = vmatmul.mubr.f32.gmra.mrb[10].mxu0 %v967_v54  ;;  %2837 = vmatprep.mubr.f32.mxu1 %v1176_v30 }
 0x15d   : > { %2117 = vmatprep.mubr.f32.mxu0 %v977_v20 }
 0x15e   : > { %v4857_v19 = vpop.f32.mrb[34].mxu1 }
 0x15f   : > { %2838 = vmatmul.mubr.f32.gmra.mrb[140].mxu1 %v1185_v45  ;;  %v1501_v12 = vpop.f32.mrb[35].mxu1 }
 0x160   : > { %2118 = vmatmul.mubr.f32.gmra.mrb[12].mxu0 %v976_v22  ;;  %2840 = vmatprep.mubr.f32.mxu1 %v1194_v14 }
 0x161   : > { %2122 = vmatprep.mubr.f32.mxu0 %v986_v49 }
 0x162   : > { %v4861_v55 = vpop.f32.mrb[36].mxu1 }
 0x163   : > { %2841 = vmatmul.mubr.f32.gmra.mrb[142].mxu1 %v1203_v42  ;;  %v1506_v17 = vpop.f32.mrb[37].mxu1 }
 0x164   : > { %2123 = vmatmul.mubr.f32.gmra.mrb[14].mxu0 %v985_v27 }
 0x166   : > { %v4863_v50 = vpop.f32.mrb[38].mxu1 }
 0x167   : > { %v1511_v18 = vpop.f32.mrb[39].mxu1 }
 0x16a   : > { %v4865_v8 = vpop.f32.mrb[40].mxu1 }
 0x16b   : > { %v1516_v51 = vpop.f32.mrb[41].mxu1 }
 0x16e   : > { %v4867_v23 = vpop.f32.mrb[42].mxu1 }
 0x16f   : > { %v1521_v41 = vpop.f32.mrb[43].mxu1 }
 0x172   : > { %v4869_v3 = vpop.f32.mrb[44].mxu1 }
 0x173   : > { %v1526_v63 = vpop.f32.mrb[45].mxu1 }
 0x176   : > { %v4871_v29 = vpop.f32.mrb[46].mxu1 }
 0x177   : > { %v1531_v53 = vpop.f32.mrb[47].mxu1 }
 0x17a   : > { %v4873_v9 = vpop.f32.mrb[48].mxu1 }
 0x17b   : > { %v1536_v35 = vpop.f32.mrb[49].mxu1 }
 0x17e   : > { %v4875_v26 = vpop.f32.mrb[50].mxu1 }
 0x17f   : > { %v1541_v28 = vpop.f32.mrb[51].mxu1 }
 0x182   : > { %v4877_v13 = vpop.f32.mrb[52].mxu1 }
 0x183   : > { %v1546_v36 = vpop.f32.mrb[53].mxu1 }
 0x186   : > { %v4879_v37 = vpop.f32.mrb[54].mxu1 }
 0x187   : > { %v1551_v2 = vpop.f32.mrb[55].mxu1 }
 0x18a   : > { %v4881_v38 = vpop.f32.mrb[56].mxu1 }
 0x18b   : > { %v1556_v32 = vpop.f32.mrb[57].mxu1 }
 0x18e   : > { %v4883_v39 = vpop.f32.mrb[58].mxu1 }
 0x18f   : > { %v1561_v40 = vpop.f32.mrb[59].mxu1 }
 0x192   : > { %v4885_v43 = vpop.f32.mrb[60].mxu1 }
 0x193   : > { %v1566_v54 = vpop.f32.mrb[61].mxu1 }
 0x196   : > { %v4887_v47 = vpop.f32.mrb[62].mxu1 }
 0x197   : > { %v1571_v59 = vpop.f32.mrb[63].mxu1 }
 0x19a   : > { %v2129_v61 = vpop.f32.mrb[64].mxu1 }
 0x19b   : > { %v2131_v30 = vpop.f32.mrb[65].mxu1 }
 0x19e   : > { %v2134_v60 = vpop.f32.mrb[66].mxu1 }
 0x19f   : > { %v2136_v5 = vpop.f32.mrb[67].mxu1 }
 0x1a2   : > { %v2139_v46 = vpop.f32.mrb[68].mxu1 }
 0x1a3   : > { %v2141_v20 = vpop.f32.mrb[69].mxu1 }
 0x1a6   : > { %v2144_v1 = vpop.f32.mrb[70].mxu1 }
 0x1a7   : > { %v2146_v4 = vpop.f32.mrb[71].mxu1 }
 0x1aa   : > { %v2149_v45 = vpop.f32.mrb[72].mxu1 }
 0x1ab   : > { %v2151_v15 = vpop.f32.mrb[73].mxu1 }
 0x1ae   : > { %v2154_v48 = vpop.f32.mrb[74].mxu1 }
 0x1af   : > { %v2156_v22 = vpop.f32.mrb[75].mxu1 }
 0x1b2   : > { %v2159_v14 = vpop.f32.mrb[76].mxu1 }
 0x1b3   : > { %v2161_v52 = vpop.f32.mrb[77].mxu1 }
 0x1b6   : > { %v2164_v49 = vpop.f32.mrb[78].mxu1 }
 0x1b7   : > { %v2166_v42 = vpop.f32.mrb[79].mxu1 }
 0x1ba   : > { %v2169_v12 = vpop.f32.mrb[80].mxu1 }
 0x1bb   : > { %v1904_v27 = vpop.f32.mrb[16].mxu0  ;;  %v2171_v17 = vpop.f32.mrb[81].mxu1 }
 0x1bc   : > { %v3107_v18 = vadd.f32 %v1904_v27, %v4739_v62  ;;  %v1906_v51 = vpop.f32.mrb[17].mxu0 }
 0x1be   : > { %v4890_v41 = vadd.f32 %v3107_v18, %v2129_v61  ;;  %v2174_v63 = vpop.f32.mrb[82].mxu1 }
 0x1bf   : > { %v1909_v53 = vpop.f32.mrb[18].mxu0  ;;  %v2176_v35 = vpop.f32.mrb[83].mxu1 }
 0x1c0   : > { %v3109_v28 = vadd.f32 %v1909_v53, %v4753_v0  ;;  %v1911_v36 = vpop.f32.mrb[19].mxu0 }
 0x1c2   : > { %v4893_v2 = vadd.f32 %v3109_v28, %v2134_v60  ;;  %v2179_v32 = vpop.f32.mrb[84].mxu1 }
 0x1c3   : > { %v1914_v40 = vpop.f32.mrb[20].mxu0  ;;  %v2181_v54 = vpop.f32.mrb[85].mxu1 }
 0x1c4   : > { %v3111_v59 = vadd.f32 %v1914_v40, %v4767_v16  ;;  %v1916_v30 = vpop.f32.mrb[21].mxu0 }
 0x1c6   : > { %v4896_v5 = vadd.f32 %v3111_v59, %v2139_v46  ;;  %v2184_v62 = vpop.f32.mrb[86].mxu1 }
 0x1c7   : > { %v1919_v20 = vpop.f32.mrb[22].mxu0  ;;  %v2186_v61 = vpop.f32.mrb[87].mxu1 }
 0x1c8   : > { %v3113_v4 = vadd.f32 %v1919_v20, %v4781_v33  ;;  %v1921_v15 = vpop.f32.mrb[23].mxu0 }
 0x1ca   : > { %v4899_v22 = vadd.f32 %v3113_v4, %v2144_v1  ;;  %v2189_v0 = vpop.f32.mrb[88].mxu1 }
 0x1cb   : > { %v1924_v52 = vpop.f32.mrb[24].mxu0  ;;  %v2191_v60 = vpop.f32.mrb[89].mxu1 }
 0x1cc   : > { %v3115_v42 = vadd.f32 %v1924_v52, %v4795_v58  ;;  %v1926_v27 = vpop.f32.mrb[25].mxu0 }
 0x1ce   : > { %v4902_v17 = vadd.f32 %v3115_v42, %v2149_v45  ;;  %v2194_v16 = vpop.f32.mrb[90].mxu1 }
 0x1cf   : > { %v1929_v18 = vpop.f32.mrb[26].mxu0  ;;  %v2196_v46 = vpop.f32.mrb[91].mxu1 }
 0x1d0   : > { %v3117_v51 = vadd.f32 %v1929_v18, %v4809_v10  ;;  %v1931_v53 = vpop.f32.mrb[27].mxu0 }
 0x1d2   : > { %v4905_v35 = vadd.f32 %v3117_v51, %v2154_v48  ;;  %v2199_v33 = vpop.f32.mrb[92].mxu1 }
 0x1d3   : > { %v1934_v28 = vpop.f32.mrb[28].mxu0  ;;  %v2201_v1 = vpop.f32.mrb[93].mxu1 }
 0x1d4   : > { %v3119_v36 = vadd.f32 %v1934_v28, %v4823_v25  ;;  %v1936_v40 = vpop.f32.mrb[29].mxu0 }
 0x1d6   : > { %v4908_v54 = vadd.f32 %v3119_v36, %v2159_v14  ;;  %v2204_v58 = vpop.f32.mrb[94].mxu1 }
 0x1d7   : > { %v1939_v59 = vpop.f32.mrb[30].mxu0  ;;  %v2206_v45 = vpop.f32.mrb[95].mxu1 }
 0x1d8   : > { %v3121_v30 = vadd.f32 %v1939_v59, %v4837_v44  ;;  %v1941_v20 = vpop.f32.mrb[31].mxu0 }
 0x1da   : > { %v4911_v61 = vadd.f32 %v3121_v30, %v2164_v49  ;;  %v2209_v10 = vpop.f32.mrb[96].mxu1 }
 0x1db   : > { %v1944_v4 = vpop.f32.mrb[32].mxu0  ;;  %v2211_v48 = vpop.f32.mrb[97].mxu1 }
 0x1dc   : > { %v3123_v15 = vadd.f32 %v1944_v4, %v4849_v6  ;;  %v1946_v52 = vpop.f32.mrb[33].mxu0 }
 0x1de   : > { %v4914_v60 = vadd.f32 %v3123_v15, %v2169_v12  ;;  %v2214_v25 = vpop.f32.mrb[98].mxu1 }
 0x1df   : > { %v1949_v42 = vpop.f32.mrb[34].mxu0  ;;  %v2216_v14 = vpop.f32.mrb[99].mxu1 }
 0x1e0   : > { %v3125_v27 = vadd.f32 %v1949_v42, %v4857_v19  ;;  %v1951_v18 = vpop.f32.mrb[35].mxu0 }
 0x1e2   : > { %v4917_v46 = vadd.f32 %v3125_v27, %v2174_v63  ;;  %v2219_v44 = vpop.f32.mrb[100].mxu1 }
 0x1e3   : > { %v1954_v51 = vpop.f32.mrb[36].mxu0  ;;  %v2221_v49 = vpop.f32.mrb[101].mxu1 }
 0x1e4   : > { %v3127_v53 = vadd.f32 %v1954_v51, %v4861_v55  ;;  %v1956_v28 = vpop.f32.mrb[37].mxu0 }
 0x1e6   : > { %v4920_v1 = vadd.f32 %v3127_v53, %v2179_v32  ;;  %v2224_v6 = vpop.f32.mrb[102].mxu1 }
 0x1e7   : > { %v1959_v36 = vpop.f32.mrb[38].mxu0  ;;  %v2226_v12 = vpop.f32.mrb[103].mxu1 }
 0x1e8   : > { %v3129_v40 = vadd.f32 %v1959_v36, %v4863_v50  ;;  %v1961_v59 = vpop.f32.mrb[39].mxu0 }
 0x1ea   : > { %v4923_v45 = vadd.f32 %v3129_v40, %v2184_v62  ;;  %v2229_v19 = vpop.f32.mrb[104].mxu1 }
 0x1eb   : > { %v1964_v30 = vpop.f32.mrb[40].mxu0  ;;  %v2231_v63 = vpop.f32.mrb[105].mxu1 }
 0x1ec   : > { %v3131_v20 = vadd.f32 %v1964_v30, %v4865_v8  ;;  %v1966_v4 = vpop.f32.mrb[41].mxu0 }
 0x1ee   : > { %v4926_v48 = vadd.f32 %v3131_v20, %v2189_v0  ;;  %v4928_v55 = vpop.f32.mrb[106].mxu1 }
 0x1ef   : > { %v1969_v32 = vpop.f32.mrb[42].mxu0  ;;  %v2236_v15 = vpop.f32.mrb[107].mxu1 }
 0x1f0   : > { %v3133_v52 = vadd.f32 %v1969_v32, %v4867_v23  ;;  %v1971_v42 = vpop.f32.mrb[43].mxu0 }
 0x1f2   : > { %v4931_v14 = vpop.f32.mrb[108].mxu1  ;;  %v4933_v50 = vadd.f32 %v3133_v52, %v2194_v16 }
 0x1f3   : > { %v1974_v62 = vpop.f32.mrb[44].mxu0  ;;  %v2241_v27 = vpop.f32.mrb[109].mxu1 }
 0x1f4   : > { %v3135_v18 = vadd.f32 %v1974_v62, %v4869_v3  ;;  %v1976_v51 = vpop.f32.mrb[45].mxu0 }
 0x1f6   : > { %v4936_v8 = vpop.f32.mrb[110].mxu1  ;;  %v4938_v0 = vadd.f32 %v3135_v18, %v2199_v33 }
 0x1f7   : > { %v1979_v49 = vpop.f32.mrb[46].mxu0  ;;  %v2246_v53 = vpop.f32.mrb[111].mxu1 }
 0x1f8   : > { %v3137_v28 = vadd.f32 %v1979_v49, %v4871_v29  ;;  %v1981_v36 = vpop.f32.mrb[47].mxu0 }
 0x1fa   : > { %v4941_v23 = vpop.f32.mrb[112].mxu1  ;;  %v4943_v12 = vadd.f32 %v3137_v28, %v2204_v58 }
 0x1fb   : > { %v1984_v16 = vpop.f32.mrb[48].mxu0  ;;  %v4945_v40 = vpop.f32.mrb[113].mxu1 }
 0x1fc   : > { %v3139_v59 = vadd.f32 %v1984_v16, %v4873_v9  ;;  %v1986_v3 = vpop.f32.mrb[49].mxu0 }
 0x1fe   : > { %v4948_v30 = vpop.f32.mrb[114].mxu1  ;;  %v4950_v33 = vadd.f32 %v3139_v59, %v2209_v10 }
 0x1ff   : > { %v1989_v63 = vpop.f32.mrb[50].mxu0  ;;  %v4952_v20 = vpop.f32.mrb[115].mxu1 }
 0x200   : > { %v3141_v29 = vadd.f32 %v1989_v63, %v4875_v26  ;;  %v1991_v4 = vpop.f32.mrb[51].mxu0 }
 0x202   : > { %v4955_v32 = vpop.f32.mrb[116].mxu1  ;;  %v4957_v58 = vadd.f32 %v3141_v29, %v2214_v25 }
 0x203   : > { %v1994_v15 = vpop.f32.mrb[52].mxu0  ;;  %v4959_v52 = vpop.f32.mrb[117].mxu1 }
 0x204   : > { %v3143_v9 = vadd.f32 %v1994_v15, %v4877_v13  ;;  %v1996_v42 = vpop.f32.mrb[53].mxu0 }
 0x206   : > { %v4962_v62 = vpop.f32.mrb[118].mxu1  ;;  %v4964_v10 = vadd.f32 %v3143_v9, %v2219_v44 }
 0x207   : > { %v1999_v27 = vpop.f32.mrb[54].mxu0  ;;  %v4966_v18 = vpop.f32.mrb[119].mxu1 }
 0x208   : > { %v3145_v26 = vadd.f32 %v1999_v27, %v4879_v37  ;;  %v2001_v51 = vpop.f32.mrb[55].mxu0 }
 0x20a   : > { %v2809_v13 = vpop.f32.mrb[120].mxu1  ;;  %v4975_v25 = vadd.f32 %v3145_v26, %v2224_v6 }
 0x20b   : > { %v2004_v49 = vpop.f32.mrb[56].mxu0  ;;  %v4978_v44 = vadd.f32 %v4893_v2, %v2809_v13  ;;  %v2354_v53 = vpop.f32.mrb[121].mxu1 }
 0x20c   : > { %v3147_v37 = vadd.f32 %v2004_v49, %v4881_v38  ;;  %v2006_v28 = vpop.f32.mrb[57].mxu0  ;;  %v4982_v36 = vadd.f32 %v4890_v41, %v2354_v53 }
 0x20d   : > { %2482 = vst [vmem:[%s4973_s30 + $0x48] sm:$0xff] %v4978_v44 }
 0x20e   : > { %2481 = vst [vmem:[%s4973_s30 + $0x40] sm:$0xff] %v4982_v36  ;;  %v2812_v16 = vpop.f32.mrb[122].mxu1  ;;  %v4988_v6 = vadd.f32 %v3147_v37, %v2229_v19 }
 0x20f   : > { %v2009_v59 = vpop.f32.mrb[58].mxu0  ;;  %v4991_v2 = vadd.f32 %v4899_v22, %v2812_v16  ;;  %v2364_v3 = vpop.f32.mrb[123].mxu1 }
 0x210   : > { %v3149_v38 = vadd.f32 %v2009_v59, %v4883_v39  ;;  %v2011_v63 = vpop.f32.mrb[59].mxu0  ;;  %v4995_v41 = vadd.f32 %v4896_v5, %v2364_v3 }
 0x211   : > { %2484 = vst [vmem:[%s4973_s30 + $0x58] sm:$0xff] %v4991_v2 }
 0x212   : > { %2483 = vst [vmem:[%s4973_s30 + $0x50] sm:$0xff] %v4995_v41  ;;  %v2815_v29 = vpop.f32.mrb[124].mxu1  ;;  %v5002_v19 = vadd.f32 %v3149_v38, %v4928_v55 }
 0x213   : > { %v2014_v4 = vpop.f32.mrb[60].mxu0  ;;  %v5005_v22 = vadd.f32 %v4905_v35, %v2815_v29  ;;  %v2374_v15 = vpop.f32.mrb[125].mxu1 }
 0x214   : > { %v3151_v39 = vadd.f32 %v2014_v4, %v4885_v43  ;;  %v2016_v9 = vpop.f32.mrb[61].mxu0  ;;  %v5009_v5 = vadd.f32 %v4902_v17, %v2374_v15 }
 0x215   : > { %2486 = vst [vmem:[%s4973_s30 + $0x68] sm:$0xff] %v5005_v22 }
 0x216   : > { %2485 = vst [vmem:[%s4973_s30 + $0x60] sm:$0xff] %v5009_v5  ;;  %v2818_v42 = vpop.f32.mrb[126].mxu1  ;;  %v5016_v55 = vadd.f32 %v3151_v39, %v4931_v14 }
 0x217   : > { %v2019_v27 = vpop.f32.mrb[62].mxu0  ;;  %v5019_v35 = vadd.f32 %v4911_v61, %v2818_v42  ;;  %v2384_v26 = vpop.f32.mrb[127].mxu1 }
 0x218   : > { %v3153_v43 = vadd.f32 %v2019_v27, %v4887_v47  ;;  %v2021_v51 = vpop.f32.mrb[63].mxu0  ;;  %v5023_v17 = vadd.f32 %v4908_v54, %v2384_v26 }
 0x219   : > { %2488 = vst [vmem:[%s4973_s30 + $0x78] sm:$0xff] %v5019_v35 }
 0x21a   : > { %2487 = vst [vmem:[%s4973_s30 + $0x70] sm:$0xff] %v5023_v17  ;;  %v2821_v14 = vpop.f32.mrb[128].mxu1  ;;  %v5030_v13 = vadd.f32 %v3153_v43, %v4936_v8 }
 0x21b   : > { %v2089_v49 = vpop.f32.mrb[0].mxu0  ;;  %v5033_v61 = vadd.f32 %v4917_v46, %v2821_v14  ;;  %v2394_v53 = vpop.f32.mrb[129].mxu1 }
 0x21c   : > { %v3099_v47 = vadd.f32 %v2089_v49, %v4622_v31  ;;  %v2091_v54 = vpop.f32.mrb[1].mxu0  ;;  %v5037_v37 = vadd.f32 %v4914_v60, %v2394_v53 }
 0x21d   : > { %2490 = vst [vmem:[%s4973_s30 + $0x88] sm:$0xff] %v5033_v61 }
 0x21e   : > { %v2315_v28 = vadd.f32 %v3099_v47, %v4945_v40  ;;  %2489 = vst [vmem:[%s4973_s30 + $0x80] sm:$0xff] %v5037_v37  ;;  %v2824_v8 = vpop.f32.mrb[130].mxu1 }
 0x21f   : > { %v2094_v16 = vpop.f32.mrb[2].mxu0  ;;  %v5045_v46 = vadd.f32 %v4923_v45, %v2824_v8  ;;  %v2404_v59 = vpop.f32.mrb[131].mxu1 }
 0x220   : > { %2473 = vst [vmem:[%s4973_s30] sm:$0xff] %v2315_v28  ;;  %v3100_v31 = vadd.f32 %v2094_v16, %v4641_v56  ;;  %v2096_v3 = vpop.f32.mrb[3].mxu0  ;;  %v5050_v60 = vadd.f32 %v4920_v1, %v2404_v59  ;;  %v2542_v63 = vmul.f32 %v2315_v28, %v2315_v28 }
 0x221   : > { %2492 = vst [vmem:[%s4973_s30 + $0x98] sm:$0xff] %v5045_v46 }
 0x222   : > { %v2320_v40 = vadd.f32 %v3100_v31, %v4941_v23  ;;  %2491 = vst [vmem:[%s4973_s30 + $0x90] sm:$0xff] %v5050_v60  ;;  %v2827_v38 = vpop.f32.mrb[132].mxu1 }
 0x223   : > { %v2099_v45 = vpop.f32.mrb[4].mxu0  ;;  %v5058_v29 = vadd.f32 %v4933_v50, %v2827_v38  ;;  %v2414_v56 = vpop.f32.mrb[133].mxu1 }
 0x224   : > { %2474 = vst [vmem:[%s4973_s30 + $0x8] sm:$0xff] %v2320_v40  ;;  %v2505_v4 = vadd.f32 %v2320_v40, %v2315_v28  ;;  %v2543_v15 = vmul.f32 %v2320_v40, %v2320_v40  ;;  %v3101_v1 = vadd.f32 %v2099_v45, %v4655_v7  ;;  %v2101_v39 = vpop.f32.mrb[5].mxu0  ;;  %v5063_v23 = vadd.f32 %v4926_v48, %v2414_v56 }
 0x225   : > { %2494 = vst [vmem:[%s4973_s30 + $0xa8] sm:$0xff] %v5058_v29 }
 0x226   : > { %v2574_v9 = vadd.f32 %v2543_v15, %v2542_v63  ;;  %v2325_v42 = vadd.f32 %v3101_v1, %v4952_v20  ;;  %2493 = vst [vmem:[%s4973_s30 + $0xa0] sm:$0xff] %v5063_v23  ;;  %v2830_v50 = vpop.f32.mrb[134].mxu1 }
 0x227   : > { %v2104_v27 = vpop.f32.mrb[6].mxu0  ;;  %v5071_v26 = vadd.f32 %v4943_v12, %v2830_v50  ;;  %v2424_v7 = vpop.f32.mrb[135].mxu1 }
 0x228   : > { %2475 = vst [vmem:[%s4973_s30 + $0x10] sm:$0xff] %v2325_v42  ;;  %v2506_v43 = vadd.f32 %v2505_v4, %v2325_v42  ;;  %v2544_v51 = vmul.f32 %v2325_v42, %v2325_v42  ;;  %v3102_v48 = vadd.f32 %v2104_v27, %v4669_v21  ;;  %v2106_v14 = vpop.f32.mrb[7].mxu0  ;;  %v5076_v49 = vadd.f32 %v4938_v0, %v2424_v7 }
 0x229   : > { %2496 = vst [vmem:[%s4973_s30 + $0xb8] sm:$0xff] %v5071_v26 }
 0x22a   : > { %v2575_v20 = vadd.f32 %v2574_v9, %v2544_v51  ;;  %v2330_v53 = vadd.f32 %v3102_v48, %v4948_v30  ;;  %2495 = vst [vmem:[%s4973_s30 + $0xb0] sm:$0xff] %v5076_v49  ;;  %v2833_v12 = vpop.f32.mrb[136].mxu1 }
 0x22b   : > { %v2109_v47 = vpop.f32.mrb[8].mxu0  ;;  %v5084_v54 = vadd.f32 %v4957_v58, %v2833_v12  ;;  %v2434_v21 = vpop.f32.mrb[137].mxu1 }
 0x22c   : > { %2476 = vst [vmem:[%s4973_s30 + $0x18] sm:$0xff] %v2330_v53  ;;  %v2507_v28 = vadd.f32 %v2506_v43, %v2330_v53  ;;  %v2545_v8 = vmul.f32 %v2330_v53, %v2330_v53  ;;  %v3103_v0 = vadd.f32 %v2109_v47, %v4683_v34  ;;  %v2111_v16 = vpop.f32.mrb[9].mxu0  ;;  %v5089_v59 = vadd.f32 %v4950_v33, %v2434_v21 }
 0x22d   : > { %2498 = vst [vmem:[%s4973_s30 + $0xc8] sm:$0xff] %v5084_v54  ;;  %v2550_v47 = vmul.f32 %v4982_v36, %v4982_v36 }
 0x22e   : > { %v2576_v30 = vadd.f32 %v2575_v20, %v2545_v8  ;;  %v2335_v31 = vadd.f32 %v3103_v0, %v4959_v52  ;;  %2497 = vst [vmem:[%s4973_s30 + $0xc0] sm:$0xff] %v5089_v59  ;;  %v2836_v58 = vpop.f32.mrb[138].mxu1 }
 0x22f   : > { %v2114_v3 = vpop.f32.mrb[10].mxu0  ;;  %v5097_v40 = vadd.f32 %v4975_v25, %v2836_v58  ;;  %v2444_v34 = vpop.f32.mrb[139].mxu1 }
 0x230   : > { %2477 = vst [vmem:[%s4973_s30 + $0x20] sm:$0xff] %v2335_v31  ;;  %v2508_v38 = vadd.f32 %v2507_v28, %v2335_v31  ;;  %v2546_v63 = vmul.f32 %v2335_v31, %v2335_v31  ;;  %v3104_v33 = vadd.f32 %v2114_v3, %v4697_v57  ;;  %v2116_v45 = vpop.f32.mrb[11].mxu0  ;;  %v5102_v56 = vadd.f32 %v4964_v10, %v2444_v34 }
 0x231   : > { %2500 = vst [vmem:[%s4973_s30 + $0xd8] sm:$0xff] %v5097_v40 }
 0x232   : > { %v2577_v52 = vadd.f32 %v2576_v30, %v2546_v63  ;;  %v2340_v4 = vadd.f32 %v3104_v33, %v4955_v32  ;;  %2499 = vst [vmem:[%s4973_s30 + $0xd0] sm:$0xff] %v5102_v56  ;;  %v2839_v25 = vpop.f32.mrb[140].mxu1  ;;  %v2553_v30 = vmul.f32 %v4991_v2, %v4991_v2 }
 0x233   : > { %v2119_v15 = vpop.f32.mrb[12].mxu0  ;;  %v5110_v1 = vadd.f32 %v5002_v19, %v2839_v25  ;;  %v2454_v57 = vpop.f32.mrb[141].mxu1 }
 0x234   : > { %2478 = vst [vmem:[%s4973_s30 + $0x28] sm:$0xff] %v2340_v4  ;;  %v2509_v39 = vadd.f32 %v2508_v38, %v2340_v4  ;;  %v2547_v9 = vmul.f32 %v2340_v4, %v2340_v4  ;;  %v3105_v10 = vadd.f32 %v2119_v15, %v4711_v11  ;;  %v2121_v42 = vpop.f32.mrb[13].mxu0  ;;  %v5115_v50 = vadd.f32 %v4988_v6, %v2454_v57 }
 0x235   : > { %2502 = vst [vmem:[%s4973_s30 + $0xe8] sm:$0xff] %v5110_v1 }
 0x236   : > { %v2578_v32 = vadd.f32 %v2577_v52, %v2547_v9  ;;  %v2345_v27 = vadd.f32 %v3105_v10, %v4966_v18  ;;  %2501 = vst [vmem:[%s4973_s30 + $0xe0] sm:$0xff] %v5115_v50  ;;  %v2842_v19 = vpop.f32.mrb[142].mxu1 }
 0x237   : > { %v2124_v7 = vpop.f32.mrb[14].mxu0  ;;  %v5123_v43 = vadd.f32 %v5030_v13, %v2842_v19  ;;  %v2464_v11 = vpop.f32.mrb[143].mxu1 }
 0x238   : > { %2479 = vst [vmem:[%s4973_s30 + $0x30] sm:$0xff] %v2345_v27  ;;  %v2510_v51 = vadd.f32 %v2509_v39, %v2345_v27  ;;  %v2548_v48 = vmul.f32 %v2345_v27, %v2345_v27  ;;  %v3106_v6 = vadd.f32 %v2124_v7, %v4725_v24  ;;  %v2126_v14 = vpop.f32.mrb[15].mxu0  ;;  %v5128_v20 = vadd.f32 %v5016_v55, %v2464_v11 }
 0x239   : > { %2504 = vst [vmem:[%s4973_s30 + $0xf8] sm:$0xff] %v5123_v43  ;;  %v2551_v55 = vmul.f32 %v4978_v44, %v4978_v44 }
 0x23a   : > { %v2579_v18 = vadd.f32 %v2578_v32, %v2548_v48  ;;  %v2350_v53 = vadd.f32 %v3106_v6, %v4962_v62  ;;  %2503 = vst [vmem:[%s4973_s30 + $0xf0] sm:$0xff] %v5128_v20  ;;  %v2552_v62 = vmul.f32 %v4995_v41, %v4995_v41 }
 0x23c   : > { %2480 = vst [vmem:[%s4973_s30 + $0x38] sm:$0xff] %v2350_v53  ;;  %v2511_v13 = vadd.f32 %v2510_v51, %v2350_v53  ;;  %v2549_v12 = vmul.f32 %v2350_v53, %v2350_v53 }
 0x23e   : > { %v2512_v21 = vadd.f32 %v2511_v13, %v4982_v36  ;;  %v2580_v24 = vadd.f32 %v2579_v18, %v2549_v12  ;;  %v2554_v36 = vmul.f32 %v5009_v5, %v5009_v5 }
 0x240   : > { %v2513_v28 = vadd.f32 %v2512_v21, %v4978_v44  ;;  %v2581_v8 = vadd.f32 %v2580_v24, %v2550_v47  ;;  %v2555_v44 = vmul.f32 %v5005_v22, %v5005_v22 }
 0x242   : > { %v2514_v0 = vadd.f32 %v2513_v28, %v4995_v41  ;;  %v2582_v16 = vadd.f32 %v2581_v8, %v2551_v55  ;;  %v2556_v41 = vmul.f32 %v5023_v17, %v5023_v17  ;;  %v2570_v55 = vmul.f32 %v5115_v50, %v5115_v50 }
 0x243   : > { %v2571_v8 = vmul.f32 %v5110_v1, %v5110_v1 }
 0x244   : > { %v2515_v31 = vadd.f32 %v2514_v0, %v4991_v2  ;;  %v2583_v58 = vadd.f32 %v2582_v16, %v2552_v62  ;;  %v2557_v2 = vmul.f32 %v5019_v35, %v5019_v35 }
 0x246   : > { %v2516_v3 = vadd.f32 %v2515_v31, %v5009_v5  ;;  %v2584_v34 = vadd.f32 %v2583_v58, %v2553_v30  ;;  %v2558_v5 = vmul.f32 %v5037_v37, %v5037_v37  ;;  %v2573_v30 = vmul.f32 %v5123_v43, %v5123_v43 }
 0x248   : > { %v2517_v38 = vadd.f32 %v2516_v3, %v5005_v22  ;;  %v2585_v63 = vadd.f32 %v2584_v34, %v2554_v36  ;;  %v2559_v22 = vmul.f32 %v5033_v61, %v5033_v61 }
 0x24a   : > { %v2518_v33 = vadd.f32 %v2517_v38, %v5023_v17  ;;  %v2586_v45 = vadd.f32 %v2585_v63, %v2555_v44  ;;  %v2560_v17 = vmul.f32 %v5050_v60, %v5050_v60 }
 0x24c   : > { %v2519_v52 = vadd.f32 %v2518_v33, %v5019_v35  ;;  %v2587_v4 = vadd.f32 %v2586_v45, %v2556_v41  ;;  %v2561_v35 = vmul.f32 %v5045_v46, %v5045_v46 }
 0x24e   : > { %v2520_v25 = vadd.f32 %v2519_v52, %v5037_v37  ;;  %v2588_v15 = vadd.f32 %v2587_v4, %v2557_v2  ;;  %v2562_v37 = vmul.f32 %v5063_v23, %v5063_v23 }
 0x250   : > { %v2521_v57 = vadd.f32 %v2520_v25, %v5033_v61  ;;  %v2589_v39 = vadd.f32 %v2588_v15, %v2558_v5  ;;  %v2563_v61 = vmul.f32 %v5058_v29, %v5058_v29 }
 0x252   : > { %v2590_v9 = vadd.f32 %v2589_v39, %v2559_v22  ;;  %v2522_v10 = vadd.f32 %v2521_v57, %v5050_v60  ;;  %v2564_v60 = vmul.f32 %v5076_v49, %v5076_v49 }
 0x254   : > { %v2523_v42 = vadd.f32 %v2522_v10, %v5045_v46  ;;  %v2591_v32 = vadd.f32 %v2590_v9, %v2560_v17  ;;  %v2565_v46 = vmul.f32 %v5071_v26, %v5071_v26 }
 0x256   : > { %v2524_v27 = vadd.f32 %v2523_v42, %v5063_v23  ;;  %v2592_v19 = vadd.f32 %v2591_v32, %v2561_v35  ;;  %v2566_v23 = vmul.f32 %v5089_v59, %v5089_v59 }
 0x258   : > { %v2525_v7 = vadd.f32 %v2524_v27, %v5058_v29  ;;  %v2593_v11 = vadd.f32 %v2592_v19, %v2562_v37  ;;  %v2567_v29 = vmul.f32 %v5084_v54, %v5084_v54 }
 0x25a   : > { %v2526_v51 = vadd.f32 %v2525_v7, %v5076_v49  ;;  %v2594_v48 = vadd.f32 %v2593_v11, %v2563_v61  ;;  %v2568_v49 = vmul.f32 %v5102_v56, %v5102_v56 }
 0x25c   : > { %v2527_v6 = vadd.f32 %v2526_v51, %v5071_v26  ;;  %v2595_v14 = vadd.f32 %v2594_v48, %v2564_v60  ;;  %v2569_v26 = vmul.f32 %v5097_v40, %v5097_v40 }
 0x25e   : > { %v2528_v18 = vadd.f32 %v2527_v6, %v5089_v59  ;;  %v2596_v53 = vadd.f32 %v2595_v14, %v2565_v46 }
 0x260   : > { %v2529_v13 = vadd.f32 %v2528_v18, %v5084_v54  ;;  %v2597_v12 = vadd.f32 %v2596_v53, %v2566_v23 }
 0x262   : > { %v2530_v47 = vadd.f32 %v2529_v13, %v5102_v56  ;;  %v2598_v21 = vadd.f32 %v2597_v12, %v2567_v29 }
 0x264   : > { %v2531_v24 = vadd.f32 %v2530_v47, %v5097_v40  ;;  %v2599_v59 = vadd.f32 %v2598_v21, %v2568_v49  ;;  %v2572_v40 = vmul.f32 %v5128_v20, %v5128_v20 }
 0x266   : > { %v2532_v28 = vadd.f32 %v2531_v24, %v5115_v50  ;;  %v2600_v54 = vadd.f32 %v2599_v59, %v2569_v26 }
 0x268   : > { %v2533_v56 = vadd.f32 %v2532_v28, %v5110_v1  ;;  %v2601_v62 = vadd.f32 %v2600_v54, %v2570_v55 }
 0x26a   : > { %v2534_v0 = vadd.f32 %v2533_v56, %v5128_v20  ;;  %v2602_v16 = vadd.f32 %v2601_v62, %v2571_v8 }
 0x26c   : > { %v2535_v31 = vadd.f32 %v2534_v0, %v5123_v43  ;;  %v2603_v50 = vadd.f32 %v2602_v16, %v2572_v40 }
 0x26e   : > { %v2536_v58 = vrot.slane %v2535_v31, 4  ;;  %v2604_v36 = vadd.f32 %v2603_v50, %v2573_v30 }
 0x270   : > { %v2537_v3 = vadd.f32 %v2536_v58, %v2535_v31  ;;  %v2605_v34 = vrot.slane %v2604_v36, 4 }
 0x272   : > { %v2538_v44 = vrot.slane %v2537_v3, 2  ;;  %v2606_v1 = vadd.f32 %v2605_v34, %v2604_v36 }
 0x274   : > { %v2539_v38 = vadd.f32 %v2538_v44, %v2537_v3  ;;  %v2607_v63 = vrot.slane %v2606_v1, 2 }
 0x276   : > { %v2540_v41 = vrot.slane %v2539_v38, 1  ;;  %v2608_v33 = vadd.f32 %v2607_v63, %v2606_v1 }
 0x278   : > { %v2609_v20 = vrot.slane %v2608_v33, 1  ;;  %v2541_v43 = vadd.f32 %v2540_v41, %v2539_v38 }
 0x27a   : > { %v2610_v45 = vadd.f32 %v2609_v20, %v2608_v33 }
 0x27c   : > { %v2612_v2 = vsel %vm2611_vm0, %v2541_v43, %v2610_v45 }
 0x27d   : > { %2613 = vst [vmem:[%s241_s8] sm:$0x3] %v2612_v2 }
 0x27e PF: > { %s16_s18 = sadd.s32 1, %s3253_s18  }
 0x27f   : > { %p13_p5 = scmp.ge.s32.totalorder %s16_s18, 4  }
 0x281   :  { %15 = sbr.rel (!%p13_p5) target bundleno = 1 (0x1), region = 78 }

</bundles_post_ra>
